<compile_context>
chip_gen: v6e
topology: v6e:2x2x1
jax: 0.10.0
libtpu: 0.0.40
codegen_flags: <defaults>
</compile_context>

<pallas_src>
import functools
import math

import jax
import jax.numpy as jnp
import numpy as np
from jax.experimental import pallas as pl
from jax.experimental.pallas import tpu as pltpu

_NEG_INF = -1e30                      # large finite negative: avoids -inf -> NaN in softmax
_VMEM_LIMIT = 32 * 1024 * 1024        # safe on v5e / v6e (128 MiB) and v7x (64 MiB)


# ----------------------------- in-kernel helpers -----------------------------

def _layernorm(x, w, b, eps=1e-5):
    # Single-pass LN: mean and mean-of-squares in one cross-lane reduction sweep.
    mu = jnp.mean(x, axis=-1, keepdims=True)
    ms = jnp.mean(x * x, axis=-1, keepdims=True)
    inv = jax.lax.rsqrt(ms - mu * mu + eps)
    return (x - mu) * inv * w + b


def _gelu_exact(x):
    # F.gelu default (erf form), kept in f32 for parity with the PyTorch reference.
    return 0.5 * x * (1.0 + jax.lax.erf(x * (1.0 / math.sqrt(2.0))))


# ------------------------------- Pallas kernels -------------------------------

def _ln_qkv_kernel(x_ref, lnw_ref, lnb_ref, w_ref, b_ref, o_ref):
    """qkv = ln1(x) @ Wqkv + b on one (rows, D) tile; output stored bf16."""
    h = _layernorm(x_ref[...], lnw_ref[0], lnb_ref[0])
    qkv = jnp.dot(h.astype(jnp.bfloat16), w_ref[...],
                  preferred_element_type=jnp.float32) + b_ref[0]
    o_ref[...] = qkv.astype(o_ref.dtype)


def _block_kernel(n_heads, head_dim, tq,
                  x_ref, q_ref, k_ref, v_ref,
                  wout_ref, bout_ref, ln2w_ref, ln2b_ref,
                  wup_ref, bup_ref, wdown_ref, bdown_ref, o_ref):
    """Fused: causal MSA + out_proj + residual + LN2 + MLP + residual on one (tq, D) q tile.

    Q is pre-scaled by 1/sqrt(head_dim) (folded into Wqkv at prep time). K/V cover the full
    sequence (single kv pass: no online-softmax rescale needed at these sequence lengths).
    """
    qi = pl.program_id(1)
    x = x_ref[0]                       # (tq, D)  f32 residual stream
    q = q_ref[0]                       # (tq, D)  bf16, already scaled
    k = k_ref[0]                       # (N,  D)  bf16
    v = v_ref[0]                       # (N,  D)  bf16
    n_keys = k.shape[0]

    # Causal mask built once per q tile (shared across heads).
    rows = qi * tq + jax.lax.broadcasted_iota(jnp.int32, (tq, n_keys), 0)
    cols = jax.lax.broadcasted_iota(jnp.int32, (tq, n_keys), 1)
    causal = cols <= rows

    # Accumulate the out-projection per head directly into a dense (tq, D) f32 tile:
    # y @ Wout == sum_h y_h @ Wout[h*hd:(h+1)*hd, :]  -> no head concatenate, no padded scratch.
    acc = jnp.zeros_like(x)
    for h in range(n_heads):           # static unroll; seq tile stays on MXU lane/sublane dims
        sl = slice(h * head_dim, (h + 1) * head_dim)
        s = jax.lax.dot_general(q[:, sl], k[:, sl],
                                (((1,), (1,)), ((), ())),
                                preferred_element_type=jnp.float32)        # (tq, N)
        s = jnp.where(causal, s, _NEG_INF)
        m = jnp.max(s, axis=-1, keepdims=True)
        p = jnp.exp(s - m)
        inv = pl.reciprocal(jnp.sum(p, axis=-1, keepdims=True), approx=True)  # EUP, not VPU
        y_h = inv * jnp.dot(p.astype(jnp.bfloat16), v[:, sl],
                            preferred_element_type=jnp.float32)            # (tq, hd)
        acc = acc + jnp.dot(y_h.astype(jnp.bfloat16), wout_ref[sl, :],
                            preferred_element_type=jnp.float32)

    x1 = x + acc + bout_ref[0]                                  # dropout1 == identity (inference)
    h2 = _layernorm(x1, ln2w_ref[0], ln2b_ref[0])
    up = _gelu_exact(jnp.dot(h2.astype(jnp.bfloat16), wup_ref[...],
                             preferred_element_type=jnp.float32) + bup_ref[0])
    down = jnp.dot(up.astype(jnp.bfloat16), wdown_ref[...],
                   preferred_element_type=jnp.float32) + bdown_ref[0]
    o_ref[0] = (x1 + down).astype(o_ref.dtype)                  # dropout2 == identity (inference)


def _ln_head_kernel(x_ref, lnw_ref, lnb_ref, w_ref, o_ref):
    """logits = ln(x) @ W_emb^T (tied head) on one (rows, D) tile."""
    h = _layernorm(x_ref[...], lnw_ref[0], lnb_ref[0])
    o_ref[...] = jnp.dot(h.astype(jnp.bfloat16), w_ref[...],
                         preferred_element_type=jnp.float32).astype(o_ref.dtype)


# --------------------------------- wrappers -----------------------------------

def ln_qkv(x2d, ln_w, ln_b, w_qkv, b_qkv, *, tr):
    R, D = x2d.shape
    D3 = w_qkv.shape[1]
    return pl.pallas_call(
        _ln_qkv_kernel,
        out_shape=jax.ShapeDtypeStruct((R, D3), jnp.bfloat16),   # bf16 intermediate (HBM traffic)
        grid_spec=pltpu.PrefetchScalarGridSpec(
            num_scalar_prefetch=0,
            grid=(R // tr,),
            in_specs=[
                pl.BlockSpec((tr, D), lambda i: (i, 0)),
                pl.BlockSpec((1, D), lambda i: (0, 0)),
                pl.BlockSpec((1, D), lambda i: (0, 0)),
                pl.BlockSpec((D, D3), lambda i: (0, 0)),
                pl.BlockSpec((1, D3), lambda i: (0, 0)),
            ],
            out_specs=pl.BlockSpec((tr, D3), lambda i: (i, 0)),
        ),
        compiler_params=pltpu.CompilerParams(
            dimension_semantics=("parallel",),
            vmem_limit_bytes=_VMEM_LIMIT),
    )(x2d, ln_w, ln_b, w_qkv, b_qkv)


def fused_block(x, qkv, p, n_heads, *, tq):
    B, N, D = x.shape
    hd = D // n_heads
    M = p['wup'].shape[1]
    kernel = functools.partial(_block_kernel, n_heads, hd, tq)

    def const(shape):
        # Grid-invariant (weight) block: constant index map, stays resident in VMEM.
        return pl.BlockSpec(shape, lambda b, i: (0, 0))

    return pl.pallas_call(
        kernel,
        out_shape=jax.ShapeDtypeStruct((B, N, D), jnp.float32),  # residual stream kept f32
        grid_spec=pltpu.PrefetchScalarGridSpec(
            num_scalar_prefetch=0,
            grid=(B, N // tq),
            in_specs=[
                pl.BlockSpec((1, tq, D), lambda b, i: (b, i, 0)),   # x (residual)
                pl.BlockSpec((1, tq, D), lambda b, i: (b, i, 0)),   # Q columns of fused qkv
                pl.BlockSpec((1, N, D), lambda b, i: (b, 0, 1)),    # K columns (full sequence)
                pl.BlockSpec((1, N, D), lambda b, i: (b, 0, 2)),    # V columns (full sequence)
                const((D, D)), const((1, D)),                       # Wout, bout
                const((1, D)), const((1, D)),                       # ln2 w, b
                const((D, M)), const((1, M)),                       # Wup, bup
                const((M, D)), const((1, D)),                       # Wdown, bdown
            ],
            out_specs=pl.BlockSpec((1, tq, D), lambda b, i: (b, i, 0)),
        ),
        compiler_params=pltpu.CompilerParams(
            dimension_semantics=("parallel", "parallel"),
            vmem_limit_bytes=_VMEM_LIMIT),
    )(x, qkv, qkv, qkv,
      p['wout'], p['bout'], p['ln2_w'], p['ln2_b'],
      p['wup'], p['bup'], p['wdown'], p['bdown'])


def ln_head(x2d, ln_w, ln_b, w_head, *, tr):
    R, D = x2d.shape
    V = w_head.shape[1]
    # TODO(synk): for a realistic vocab (>> 128) add a V-tile grid axis so the head weight and
    # the f32 logits tile fit the v7x 64 MiB VMEM; at V=128 the whole weight stays resident.
    return pl.pallas_call(
        _ln_head_kernel,
        out_shape=jax.ShapeDtypeStruct((R, V), jnp.float32),
        grid_spec=pltpu.PrefetchScalarGridSpec(
            num_scalar_prefetch=0,
            grid=(R // tr,),
            in_specs=[
                pl.BlockSpec((tr, D), lambda i: (i, 0)),
                pl.BlockSpec((1, D), lambda i: (0, 0)),
                pl.BlockSpec((1, D), lambda i: (0, 0)),
                pl.BlockSpec((D, V), lambda i: (0, 0)),
            ],
            out_specs=pl.BlockSpec((tr, V), lambda i: (i, 0)),
        ),
        compiler_params=pltpu.CompilerParams(
            dimension_semantics=("parallel",),
            vmem_limit_bytes=_VMEM_LIMIT),
    )(x2d, ln_w, ln_b, w_head)


def transformer_forward(tokens, prep, n_heads, *, tq=128, tr=256):
    B, N = tokens.shape
    D = prep['tok_emb'].shape[1]
    # TODO(synk): nn.Embedding lookup is a data-dependent gather; the gather itself is left to XLA.
    x = jnp.take(prep['tok_emb'], tokens, axis=0) + prep['pos_emb'][:N][None, :, :]
    for bp in prep['blocks']:
        qkv = ln_qkv(x.reshape(B * N, D), bp['ln1_w'], bp['ln1_b'],
                     bp['wqkv'], bp['bqkv'], tr=tr)
        x = fused_block(x, qkv.reshape(B, N, 3 * D), bp, n_heads, tq=tq)
    logits = ln_head(x.reshape(B * N, D), prep['lnf_w'], prep['lnf_b'],
                     prep['w_head'], tr=tr)
    return logits.reshape(B, N, -1)


# ------------------------ one-time parameter preparation ----------------------

def prepare_params(params, n_heads):
    """Run ONCE outside jit: cast matmul weights to bf16, fold 1/sqrt(head_dim) into the Q
    columns of Wqkv/bqkv, and pre-transpose the tied head weight. Biases / LN params stay f32."""
    D = params['tok_emb'].shape[1]
    hd = D // n_heads
    q_scale = jnp.concatenate(
        [jnp.full((1, D), 1.0 / math.sqrt(hd), jnp.float32),
         jnp.ones((1, 2 * D), jnp.float32)], axis=1)
    blocks = []
    for p in params['blocks']:
        blocks.append(dict(
            ln1_w=p['ln1_w'], ln1_b=p['ln1_b'],
            wqkv=(p['wqkv'] * q_scale).astype(jnp.bfloat16),
            bqkv=p['bqkv'] * q_scale,
            wout=p['wout'].astype(jnp.bfloat16), bout=p['bout'],
            ln2_w=p['ln2_w'], ln2_b=p['ln2_b'],
            wup=p['wup'].astype(jnp.bfloat16), bup=p['bup'],
            wdown=p['wdown'].astype(jnp.bfloat16), bdown=p['bdown'],
        ))
    return dict(
        tok_emb=params['tok_emb'], pos_emb=params['pos_emb'], blocks=blocks,
        lnf_w=params['lnf_w'], lnf_b=params['lnf_b'],
        w_head=params['tok_emb'].T.astype(jnp.bfloat16),     # tied head weight, (D, vocab)
    )


# ----------------------------- pure-JAX reference -----------------------------

def _ln_ref(z, w, b, eps=1e-5):
    mu = jnp.mean(z, axis=-1, keepdims=True)
    var = jnp.mean((z - mu) ** 2, axis=-1, keepdims=True)
    return (z - mu) / jnp.sqrt(var + eps) * w + b


def reference_block(x, p, n_heads):
    B, N, D = x.shape
    hd = D // n_heads
    h = _ln_ref(x, p['ln1_w'], p['ln1_b'])
    qkv = h @ p['wqkv'] + p['bqkv']
    q, k, v = jnp.split(qkv, 3, axis=-1)
    q = q.reshape(B, N, n_heads, hd).transpose(0, 2, 1, 3)
    k = k.reshape(B, N, n_heads, hd).transpose(0, 2, 1, 3)
    v = v.reshape(B, N, n_heads, hd).transpose(0, 2, 1, 3)
    s = jnp.einsum('bhnd,bhmd->bhnm', q, k) / math.sqrt(hd)
    mask = jnp.tril(jnp.ones((N, N), bool))
    s = jnp.where(mask, s, -jnp.inf)
    pm = jax.nn.softmax(s, axis=-1)
    y = jnp.einsum('bhnm,bhmd->bhnd', pm, v)
    y = y.transpose(0, 2, 1, 3).reshape(B, N, D)
    x1 = x + (y @ p['wout'] + p['bout'])
    h2 = _ln_ref(x1, p['ln2_w'], p['ln2_b'])
    up = jax.nn.gelu(h2 @ p['wup'] + p['bup'], approximate=False)
    return x1 + (up @ p['wdown'] + p['bdown'])


def reference_forward(tokens, params, n_heads):
    N = tokens.shape[1]
    x = params['tok_emb'][tokens] + params['pos_emb'][:N][None, :, :]
    for bp in params['blocks']:
        x = reference_block(x, bp, n_heads)
    h = _ln_ref(x, params['lnf_w'], params['lnf_b'])
    return h @ params['tok_emb'].T


# ------------------------------ parameter init --------------------------------

def init_params(key, vocab, max_len, D, M, n_blocks):
    out_scale = 1.0 / math.sqrt(2 * n_blocks)
    emb_std = 1.0 / math.sqrt(D)

    def uni(k, shape, bound):
        return jax.random.uniform(k, shape, jnp.float32, -bound, bound)

    keys = jax.random.split(key, 2 + n_blocks)
    blocks = []
    for bi in range(n_blocks):
        ks = jax.random.split(keys[2 + bi], 8)
        bd, bm = 1.0 / math.sqrt(D), 1.0 / math.sqrt(M)
        blocks.append(dict(
            ln1_w=jnp.ones((1, D), jnp.float32), ln1_b=jnp.zeros((1, D), jnp.float32),
            wqkv=uni(ks[0], (D, 3 * D), bd), bqkv=uni(ks[1], (1, 3 * D), bd),
            wout=uni(ks[2], (D, D), out_scale / math.sqrt(D)), bout=uni(ks[3], (1, D), bd),
            ln2_w=jnp.ones((1, D), jnp.float32), ln2_b=jnp.zeros((1, D), jnp.float32),
            wup=uni(ks[4], (D, M), bd), bup=uni(ks[5], (1, M), bd),
            wdown=uni(ks[6], (M, D), out_scale / math.sqrt(M)), bdown=uni(ks[7], (1, D), bm),
        ))
    return dict(
        tok_emb=emb_std * jax.random.normal(keys[0], (vocab, D), jnp.float32),
        pos_emb=emb_std * jax.random.normal(keys[1], (max_len, D), jnp.float32),
        blocks=blocks,
        lnf_w=jnp.ones((1, D), jnp.float32), lnf_b=jnp.zeros((1, D), jnp.float32),
    )


# ----------------------------------- main --------------------------------------

if __name__ == "__main__":
    VOCAB, MAXLEN = 128, 256        # lane-dense vocab / context (multiples of 128)
    D, M, H, NBLK = 128, 256, 4, 2  # embed dim, mlp channels, heads, blocks
    B, N = 2, 256                   # batch, sequence
    TQ, TR = 128, 256               # attention q-tile rows, flattened row tile

    key = jax.random.PRNGKey(0)
    pkey, tkey = jax.random.split(key)
    params = init_params(pkey, VOCAB, MAXLEN, D, M, NBLK)
    tokens = jax.random.randint(tkey, (B, N), 0, VOCAB, dtype=jnp.int32)

    prep = prepare_params(params, H)    # one-time bf16 cast / scale fold / head transpose
    fwd = jax.jit(functools.partial(transformer_forward, n_heads=H, tq=TQ, tr=TR))
    logits = jax.block_until_ready(fwd(tokens, prep))

    ref = reference_forward(tokens, params, H)
    # bf16 MXU operands + bf16 qkv intermediate vs f32 reference -> loosened tolerance.
    np.testing.assert_allclose(np.asarray(logits), np.asarray(ref), rtol=5e-2, atol=5e-2)

    print("KERNEL_OK")
</pallas_src>

<mosaic_0001>
module attributes {stable_mosaic.version = 11 : i64} {
  func.func @_ln_head_kernel(%arg0: i32, %arg1: memref<256x128xf32, #tpu.memory_space<vmem>>, %arg2: memref<1x128xf32, #tpu.memory_space<vmem>>, %arg3: memref<1x128xf32, #tpu.memory_space<vmem>>, %arg4: memref<128x128xbf16, #tpu.memory_space<vmem>>, %arg5: memref<256x128xf32, #tpu.memory_space<vmem>>) attributes {dimension_semantics = [#tpu.dimension_semantics<parallel>], iteration_bounds = array<i64: 2>, scalar_prefetch = 0 : i64, scratch_operands = 0 : i64, tpu.core_type = #tpu.core_type<tc>, window_params = [{transform_indices = @transform_0, window_bounds = array<i64: 256, 128>}, {pipeline_mode = #tpu.pipeline_mode<synchronous>, transform_indices = @transform_1, window_bounds = array<i64: 1, 128>}, {pipeline_mode = #tpu.pipeline_mode<synchronous>, transform_indices = @transform_2, window_bounds = array<i64: 1, 128>}, {pipeline_mode = #tpu.pipeline_mode<synchronous>, transform_indices = @transform_3, window_bounds = array<i64: 128, 128>}, {transform_indices = @transform_4, window_bounds = array<i64: 256, 128>}]} {
    %c0 = arith.constant 0 : index
    %c0_0 = arith.constant 0 : index
    %0 = vector.load %arg1[%c0, %c0_0] : memref<256x128xf32, #tpu.memory_space<vmem>>, vector<256x128xf32>
    %c0_1 = arith.constant 0 : index
    %c0_2 = arith.constant 0 : index
    %1 = vector.load %arg2[%c0_1, %c0_2] : memref<1x128xf32, #tpu.memory_space<vmem>>, vector<1x128xf32>
    %2 = vector.shape_cast %1 : vector<1x128xf32> to vector<128xf32>
    %c0_3 = arith.constant 0 : index
    %c0_4 = arith.constant 0 : index
    %3 = vector.load %arg3[%c0_3, %c0_4] : memref<1x128xf32, #tpu.memory_space<vmem>>, vector<1x128xf32>
    %4 = vector.shape_cast %3 : vector<1x128xf32> to vector<128xf32>
    %cst = arith.constant dense<0.000000e+00> : vector<256xf32>
    %5 = vector.multi_reduction <add>, %0, %cst [1] : vector<256x128xf32> to vector<256xf32>
    %6 = vector.shape_cast %5 : vector<256xf32> to vector<256x1xf32>
    %cst_5 = arith.constant 1.280000e+02 : f32
    %7 = vector.broadcast %cst_5 : f32 to vector<256x1xf32>
    %8 = arith.divf %6, %7 : vector<256x1xf32>
    %9 = arith.mulf %0, %0 : vector<256x128xf32>
    %cst_6 = arith.constant dense<0.000000e+00> : vector<256xf32>
    %10 = vector.multi_reduction <add>, %9, %cst_6 [1] : vector<256x128xf32> to vector<256xf32>
    %11 = vector.shape_cast %10 : vector<256xf32> to vector<256x1xf32>
    %cst_7 = arith.constant 1.280000e+02 : f32
    %12 = vector.broadcast %cst_7 : f32 to vector<256x1xf32>
    %13 = arith.divf %11, %12 : vector<256x1xf32>
    %14 = arith.mulf %8, %8 : vector<256x1xf32>
    %15 = arith.subf %13, %14 : vector<256x1xf32>
    %cst_8 = arith.constant 9.99999974E-6 : f32
    %16 = vector.broadcast %cst_8 : f32 to vector<256x1xf32>
    %17 = arith.addf %15, %16 : vector<256x1xf32>
    %18 = math.rsqrt %17 : vector<256x1xf32>
    %19 = vector.broadcast %8 : vector<256x1xf32> to vector<256x128xf32>
    %20 = arith.subf %0, %19 : vector<256x128xf32>
    %21 = vector.broadcast %18 : vector<256x1xf32> to vector<256x128xf32>
    %22 = arith.mulf %20, %21 : vector<256x128xf32>
    %23 = vector.shape_cast %2 : vector<128xf32> to vector<1x128xf32>
    %24 = vector.broadcast %23 : vector<1x128xf32> to vector<256x128xf32>
    %25 = arith.mulf %22, %24 : vector<256x128xf32>
    %26 = vector.shape_cast %4 : vector<128xf32> to vector<1x128xf32>
    %27 = vector.broadcast %26 : vector<1x128xf32> to vector<256x128xf32>
    %28 = arith.addf %25, %27 : vector<256x128xf32>
    %29 = arith.truncf %28 : vector<256x128xf32> to vector<256x128xbf16>
    %c0_9 = arith.constant 0 : index
    %c0_10 = arith.constant 0 : index
    %30 = vector.load %arg4[%c0_9, %c0_10] : memref<128x128xbf16, #tpu.memory_space<vmem>>, vector<128x128xbf16>
    %cst_11 = arith.constant dense<0.000000e+00> : vector<256x128xf32>
    %31 = tpu.matmul %29, %30, %cst_11 {dimension_numbers = #tpu.dot_dimension_numbers<[1], [0], [0], [1], [0, 0, 1, 1], [], []>} : vector<256x128xbf16>, vector<128x128xbf16>, vector<256x128xf32> -> vector<256x128xf32>
    %c0_12 = arith.constant 0 : index
    %c0_13 = arith.constant 0 : index
    %32 = vector.load %arg5[%c0_12, %c0_13] : memref<256x128xf32, #tpu.memory_space<vmem>>, vector<256x128xf32>
    tpu.vector_store %arg5[%c0_12, %c0_13], %31 {strides = array<i32>} : memref<256x128xf32, #tpu.memory_space<vmem>>, vector<256x128xf32>,
    return
  }
  func.func @transform_0(%arg0: i32) -> (i32, i32) {
    %c0_i32 = arith.constant 0 : i32
    %c0_i32_0 = arith.constant 0 : i32
    return %arg0, %c0_i32 : i32, i32
  }
  func.func @transform_1(%arg0: i32) -> (i32, i32) {
    %c0_i32 = arith.constant 0 : i32
    %c0_i32_0 = arith.constant 0 : i32
    %c0_i32_1 = arith.constant 0 : i32
    return %c0_i32, %c0_i32_0 : i32, i32
  }
  func.func @transform_2(%arg0: i32) -> (i32, i32) {
    %c0_i32 = arith.constant 0 : i32
    %c0_i32_0 = arith.constant 0 : i32
    %c0_i32_1 = arith.constant 0 : i32
    return %c0_i32, %c0_i32_0 : i32, i32
  }
  func.func @transform_3(%arg0: i32) -> (i32, i32) {
    %c0_i32 = arith.constant 0 : i32
    %c0_i32_0 = arith.constant 0 : i32
    %c0_i32_1 = arith.constant 0 : i32
    return %c0_i32, %c0_i32_0 : i32, i32
  }
  func.func @transform_4(%arg0: i32) -> (i32, i32) {
    %c0_i32 = arith.constant 0 : i32
    %c0_i32_0 = arith.constant 0 : i32
    return %arg0, %c0_i32 : i32, i32
  }
}

module attributes {stable_mosaic.version = 11 : i64} {
  func.func @_ln_qkv_kernel(%arg0: i32, %arg1: memref<256x128xf32, #tpu.memory_space<vmem>>, %arg2: memref<1x128xf32, #tpu.memory_space<vmem>>, %arg3: memref<1x128xf32, #tpu.memory_space<vmem>>, %arg4: memref<128x384xbf16, #tpu.memory_space<vmem>>, %arg5: memref<1x384xf32, #tpu.memory_space<vmem>>, %arg6: memref<256x384xbf16, #tpu.memory_space<vmem>>) attributes {dimension_semantics = [#tpu.dimension_semantics<parallel>], iteration_bounds = array<i64: 2>, scalar_prefetch = 0 : i64, scratch_operands = 0 : i64, tpu.core_type = #tpu.core_type<tc>, window_params = [{transform_indices = @transform_0, window_bounds = array<i64: 256, 128>}, {pipeline_mode = #tpu.pipeline_mode<synchronous>, transform_indices = @transform_1, window_bounds = array<i64: 1, 128>}, {pipeline_mode = #tpu.pipeline_mode<synchronous>, transform_indices = @transform_2, window_bounds = array<i64: 1, 128>}, {pipeline_mode = #tpu.pipeline_mode<synchronous>, transform_indices = @transform_3, window_bounds = array<i64: 128, 384>}, {pipeline_mode = #tpu.pipeline_mode<synchronous>, transform_indices = @transform_4, window_bounds = array<i64: 1, 384>}, {transform_indices = @transform_5, window_bounds = array<i64: 256, 384>}]} {
    %c0 = arith.constant 0 : index
    %c0_0 = arith.constant 0 : index
    %0 = vector.load %arg1[%c0, %c0_0] : memref<256x128xf32, #tpu.memory_space<vmem>>, vector<256x128xf32>
    %c0_1 = arith.constant 0 : index
    %c0_2 = arith.constant 0 : index
    %1 = vector.load %arg2[%c0_1, %c0_2] : memref<1x128xf32, #tpu.memory_space<vmem>>, vector<1x128xf32>
    %2 = vector.shape_cast %1 : vector<1x128xf32> to vector<128xf32>
    %c0_3 = arith.constant 0 : index
    %c0_4 = arith.constant 0 : index
    %3 = vector.load %arg3[%c0_3, %c0_4] : memref<1x128xf32, #tpu.memory_space<vmem>>, vector<1x128xf32>
    %4 = vector.shape_cast %3 : vector<1x128xf32> to vector<128xf32>
    %cst = arith.constant dense<0.000000e+00> : vector<256xf32>
    %5 = vector.multi_reduction <add>, %0, %cst [1] : vector<256x128xf32> to vector<256xf32>
    %6 = vector.shape_cast %5 : vector<256xf32> to vector<256x1xf32>
    %cst_5 = arith.constant 1.280000e+02 : f32
    %7 = vector.broadcast %cst_5 : f32 to vector<256x1xf32>
    %8 = arith.divf %6, %7 : vector<256x1xf32>
    %9 = arith.mulf %0, %0 : vector<256x128xf32>
    %cst_6 = arith.constant dense<0.000000e+00> : vector<256xf32>
    %10 = vector.multi_reduction <add>, %9, %cst_6 [1] : vector<256x128xf32> to vector<256xf32>
    %11 = vector.shape_cast %10 : vector<256xf32> to vector<256x1xf32>
    %cst_7 = arith.constant 1.280000e+02 : f32
    %12 = vector.broadcast %cst_7 : f32 to vector<256x1xf32>
    %13 = arith.divf %11, %12 : vector<256x1xf32>
    %14 = arith.mulf %8, %8 : vector<256x1xf32>
    %15 = arith.subf %13, %14 : vector<256x1xf32>
    %cst_8 = arith.constant 9.99999974E-6 : f32
    %16 = vector.broadcast %cst_8 : f32 to vector<256x1xf32>
    %17 = arith.addf %15, %16 : vector<256x1xf32>
    %18 = math.rsqrt %17 : vector<256x1xf32>
    %19 = vector.broadcast %8 : vector<256x1xf32> to vector<256x128xf32>
    %20 = arith.subf %0, %19 : vector<256x128xf32>
    %21 = vector.broadcast %18 : vector<256x1xf32> to vector<256x128xf32>
    %22 = arith.mulf %20, %21 : vector<256x128xf32>
    %23 = vector.shape_cast %2 : vector<128xf32> to vector<1x128xf32>
    %24 = vector.broadcast %23 : vector<1x128xf32> to vector<256x128xf32>
    %25 = arith.mulf %22, %24 : vector<256x128xf32>
    %26 = vector.shape_cast %4 : vector<128xf32> to vector<1x128xf32>
    %27 = vector.broadcast %26 : vector<1x128xf32> to vector<256x128xf32>
    %28 = arith.addf %25, %27 : vector<256x128xf32>
    %29 = arith.truncf %28 : vector<256x128xf32> to vector<256x128xbf16>
    %c0_9 = arith.constant 0 : index
    %c0_10 = arith.constant 0 : index
    %30 = vector.load %arg4[%c0_9, %c0_10] : memref<128x384xbf16, #tpu.memory_space<vmem>>, vector<128x384xbf16>
    %cst_11 = arith.constant dense<0.000000e+00> : vector<256x384xf32>
    %31 = tpu.matmul %29, %30, %cst_11 {dimension_numbers = #tpu.dot_dimension_numbers<[1], [0], [0], [1], [0, 0, 1, 1], [], []>} : vector<256x128xbf16>, vector<128x384xbf16>, vector<256x384xf32> -> vector<256x384xf32>
    %c0_12 = arith.constant 0 : index
    %c0_13 = arith.constant 0 : index
    %32 = vector.load %arg5[%c0_12, %c0_13] : memref<1x384xf32, #tpu.memory_space<vmem>>, vector<1x384xf32>
    %33 = vector.shape_cast %32 : vector<1x384xf32> to vector<384xf32>
    %34 = vector.shape_cast %33 : vector<384xf32> to vector<1x384xf32>
    %35 = vector.broadcast %34 : vector<1x384xf32> to vector<256x384xf32>
    %36 = arith.addf %31, %35 : vector<256x384xf32>
    %37 = arith.truncf %36 : vector<256x384xf32> to vector<256x384xbf16>
    %c0_14 = arith.constant 0 : index
    %c0_15 = arith.constant 0 : index
    %38 = vector.load %arg6[%c0_14, %c0_15] : memref<256x384xbf16, #tpu.memory_space<vmem>>, vector<256x384xbf16>
    tpu.vector_store %arg6[%c0_14, %c0_15], %37 {strides = array<i32>} : memref<256x384xbf16, #tpu.memory_space<vmem>>, vector<256x384xbf16>,
    return
  }
  func.func @transform_0(%arg0: i32) -> (i32, i32) {
    %c0_i32 = arith.constant 0 : i32
    %c0_i32_0 = arith.constant 0 : i32
    return %arg0, %c0_i32 : i32, i32
  }
  func.func @transform_1(%arg0: i32) -> (i32, i32) {
    %c0_i32 = arith.constant 0 : i32
    %c0_i32_0 = arith.constant 0 : i32
    %c0_i32_1 = arith.constant 0 : i32
    return %c0_i32, %c0_i32_0 : i32, i32
  }
  func.func @transform_2(%arg0: i32) -> (i32, i32) {
    %c0_i32 = arith.constant 0 : i32
    %c0_i32_0 = arith.constant 0 : i32
    %c0_i32_1 = arith.constant 0 : i32
    return %c0_i32, %c0_i32_0 : i32, i32
  }
  func.func @transform_3(%arg0: i32) -> (i32, i32) {
    %c0_i32 = arith.constant 0 : i32
    %c0_i32_0 = arith.constant 0 : i32
    %c0_i32_1 = arith.constant 0 : i32
    return %c0_i32, %c0_i32_0 : i32, i32
  }
  func.func @transform_4(%arg0: i32) -> (i32, i32) {
    %c0_i32 = arith.constant 0 : i32
    %c0_i32_0 = arith.constant 0 : i32
    %c0_i32_1 = arith.constant 0 : i32
    return %c0_i32, %c0_i32_0 : i32, i32
  }
  func.func @transform_5(%arg0: i32) -> (i32, i32) {
    %c0_i32 = arith.constant 0 : i32
    %c0_i32_0 = arith.constant 0 : i32
    return %arg0, %c0_i32 : i32, i32
  }
}

module attributes {stable_mosaic.version = 11 : i64} {
  func.func @_block_kernel(%arg0: i32, %arg1: i32, %arg2: memref<1x128x128xf32, #tpu.memory_space<vmem>>, %arg3: memref<1x128x128xbf16, #tpu.memory_space<vmem>>, %arg4: memref<1x256x128xbf16, #tpu.memory_space<vmem>>, %arg5: memref<1x256x128xbf16, #tpu.memory_space<vmem>>, %arg6: memref<128x128xbf16, #tpu.memory_space<vmem>>, %arg7: memref<1x128xf32, #tpu.memory_space<vmem>>, %arg8: memref<1x128xf32, #tpu.memory_space<vmem>>, %arg9: memref<1x128xf32, #tpu.memory_space<vmem>>, %arg10: memref<128x256xbf16, #tpu.memory_space<vmem>>, %arg11: memref<1x256xf32, #tpu.memory_space<vmem>>, %arg12: memref<256x128xbf16, #tpu.memory_space<vmem>>, %arg13: memref<1x128xf32, #tpu.memory_space<vmem>>, %arg14: memref<1x128x128xf32, #tpu.memory_space<vmem>>) attributes {dimension_semantics = [#tpu.dimension_semantics<parallel>, #tpu.dimension_semantics<parallel>], iteration_bounds = array<i64: 2, 2>, scalar_prefetch = 0 : i64, scratch_operands = 0 : i64, tpu.core_type = #tpu.core_type<tc>, window_params = [{transform_indices = @transform_0, window_bounds = array<i64: 1, 128, 128>}, {transform_indices = @transform_1, window_bounds = array<i64: 1, 128, 128>}, {transform_indices = @transform_2, window_bounds = array<i64: 1, 256, 128>}, {transform_indices = @transform_3, window_bounds = array<i64: 1, 256, 128>}, {pipeline_mode = #tpu.pipeline_mode<synchronous>, transform_indices = @transform_4, window_bounds = array<i64: 128, 128>}, {pipeline_mode = #tpu.pipeline_mode<synchronous>, transform_indices = @transform_5, window_bounds = array<i64: 1, 128>}, {pipeline_mode = #tpu.pipeline_mode<synchronous>, transform_indices = @transform_6, window_bounds = array<i64: 1, 128>}, {pipeline_mode = #tpu.pipeline_mode<synchronous>, transform_indices = @transform_7, window_bounds = array<i64: 1, 128>}, {pipeline_mode = #tpu.pipeline_mode<synchronous>, transform_indices = @transform_8, window_bounds = array<i64: 128, 256>}, {pipeline_mode = #tpu.pipeline_mode<synchronous>, transform_indices = @transform_9, window_bounds = array<i64: 1, 256>}, {pipeline_mode = #tpu.pipeline_mode<synchronous>, transform_indices = @transform_10, window_bounds = array<i64: 256, 128>}, {pipeline_mode = #tpu.pipeline_mode<synchronous>, transform_indices = @transform_11, window_bounds = array<i64: 1, 128>}, {transform_indices = @transform_12, window_bounds = array<i64: 1, 128, 128>}]} {
    %c0 = arith.constant 0 : index
    %c0_0 = arith.constant 0 : index
    %c0_1 = arith.constant 0 : index
    %0 = vector.load %arg2[%c0, %c0_0, %c0_1] : memref<1x128x128xf32, #tpu.memory_space<vmem>>, vector<1x128x128xf32>
    %1 = vector.shape_cast %0 : vector<1x128x128xf32> to vector<128x128xf32>
    %c0_2 = arith.constant 0 : index
    %c0_3 = arith.constant 0 : index
    %c0_4 = arith.constant 0 : index
    %2 = vector.load %arg3[%c0_2, %c0_3, %c0_4] : memref<1x128x128xbf16, #tpu.memory_space<vmem>>, vector<1x128x128xbf16>
    %3 = vector.shape_cast %2 : vector<1x128x128xbf16> to vector<128x128xbf16>
    %c0_5 = arith.constant 0 : index
    %c0_6 = arith.constant 0 : index
    %c0_7 = arith.constant 0 : index
    %4 = vector.load %arg4[%c0_5, %c0_6, %c0_7] : memref<1x256x128xbf16, #tpu.memory_space<vmem>>, vector<1x256x128xbf16>
    %5 = vector.shape_cast %4 : vector<1x256x128xbf16> to vector<256x128xbf16>
    %c0_8 = arith.constant 0 : index
    %c0_9 = arith.constant 0 : index
    %c0_10 = arith.constant 0 : index
    %6 = vector.load %arg5[%c0_8, %c0_9, %c0_10] : memref<1x256x128xbf16, #tpu.memory_space<vmem>>, vector<1x256x128xbf16>
    %7 = vector.shape_cast %6 : vector<1x256x128xbf16> to vector<256x128xbf16>
    %c128_i32 = arith.constant 128 : i32
    %8 = arith.muli %arg1, %c128_i32 : i32
    %9 = tpu.iota {dimensions = array<i32: 0>} : vector<128x256xi32>
    %10 = vector.broadcast %8 : i32 to vector<128x256xi32>
    %11 = arith.addi %10, %9 : vector<128x256xi32>
    %12 = tpu.iota {dimensions = array<i32: 1>} : vector<128x256xi32>
    %13 = arith.cmpi sle, %12, %11 : vector<128x256xi32>
    %cst = arith.constant 0.000000e+00 : f32
    %14 = vector.broadcast %cst : f32 to vector<128x128xf32>
    %15 = vector.extract_strided_slice %3 {offsets = [0, 0], sizes = [128, 32], strides = [1, 1]} : vector<128x128xbf16> to vector<128x32xbf16>
    %16 = vector.extract_strided_slice %5 {offsets = [0, 0], sizes = [256, 32], strides = [1, 1]} : vector<256x128xbf16> to vector<256x32xbf16>
    %cst_11 = arith.constant dense<0.000000e+00> : vector<128x256xf32>
    %17 = tpu.matmul %15, %16, %cst_11 {dimension_numbers = #tpu.dot_dimension_numbers<[1], [1], [0], [0], [0, 0, 1, 0], [], []>} : vector<128x32xbf16>, vector<256x32xbf16>, vector<128x256xf32> -> vector<128x256xf32>
    %cst_12 = arith.constant -1.000000e+30 : f32
    %18 = vector.broadcast %cst_12 : f32 to vector<128x256xf32>
    %19 = arith.select %13, %17, %18 : vector<128x256xi1>, vector<128x256xf32>
    %cst_13 = arith.constant dense<0xFF800000> : vector<128xf32>
    %20 = vector.multi_reduction <maximumf>, %19, %cst_13 [1] : vector<128x256xf32> to vector<128xf32>
    %21 = vector.shape_cast %20 : vector<128xf32> to vector<128x1xf32>
    %22 = vector.broadcast %21 : vector<128x1xf32> to vector<128x256xf32>
    %23 = arith.subf %19, %22 : vector<128x256xf32>
    %24 = math.exp %23 : vector<128x256xf32>
    %cst_14 = arith.constant dense<0.000000e+00> : vector<128xf32>
    %25 = vector.multi_reduction <add>, %24, %cst_14 [1] : vector<128x256xf32> to vector<128xf32>
    %26 = vector.shape_cast %25 : vector<128xf32> to vector<128x1xf32>
    %27 = tpu.reciprocal %26 {approx = true} : vector<128x1xf32> -> vector<128x1xf32>
    %28 = arith.truncf %24 : vector<128x256xf32> to vector<128x256xbf16>
    %29 = vector.extract_strided_slice %7 {offsets = [0, 0], sizes = [256, 32], strides = [1, 1]} : vector<256x128xbf16> to vector<256x32xbf16>
    %cst_15 = arith.constant dense<0.000000e+00> : vector<128x32xf32>
    %30 = tpu.matmul %28, %29, %cst_15 {dimension_numbers = #tpu.dot_dimension_numbers<[1], [0], [0], [1], [0, 0, 1, 1], [], []>} : vector<128x256xbf16>, vector<256x32xbf16>, vector<128x32xf32> -> vector<128x32xf32>
    %31 = vector.broadcast %27 : vector<128x1xf32> to vector<128x32xf32>
    %32 = arith.mulf %31, %30 : vector<128x32xf32>
    %33 = arith.truncf %32 : vector<128x32xf32> to vector<128x32xbf16>
    %c0_16 = arith.constant 0 : index
    %c0_17 = arith.constant 0 : index
    %34 = vector.load %arg6[%c0_16, %c0_17] : memref<128x128xbf16, #tpu.memory_space<vmem>>, vector<32x128xbf16>
    %cst_18 = arith.constant dense<0.000000e+00> : vector<128x128xf32>
    %35 = tpu.matmul %33, %34, %cst_18 {dimension_numbers = #tpu.dot_dimension_numbers<[1], [0], [0], [1], [0, 0, 1, 1], [], []>} : vector<128x32xbf16>, vector<32x128xbf16>, vector<128x128xf32> -> vector<128x128xf32>
    %36 = arith.addf %14, %35 : vector<128x128xf32>
    %37 = vector.extract_strided_slice %3 {offsets = [0, 32], sizes = [128, 32], strides = [1, 1]} : vector<128x128xbf16> to vector<128x32xbf16>
    %38 = vector.extract_strided_slice %5 {offsets = [0, 32], sizes = [256, 32], strides = [1, 1]} : vector<256x128xbf16> to vector<256x32xbf16>
    %cst_19 = arith.constant dense<0.000000e+00> : vector<128x256xf32>
    %39 = tpu.matmul %37, %38, %cst_19 {dimension_numbers = #tpu.dot_dimension_numbers<[1], [1], [0], [0], [0, 0, 1, 0], [], []>} : vector<128x32xbf16>, vector<256x32xbf16>, vector<128x256xf32> -> vector<128x256xf32>
    %cst_20 = arith.constant -1.000000e+30 : f32
    %40 = vector.broadcast %cst_20 : f32 to vector<128x256xf32>
    %41 = arith.select %13, %39, %40 : vector<128x256xi1>, vector<128x256xf32>
    %cst_21 = arith.constant dense<0xFF800000> : vector<128xf32>
    %42 = vector.multi_reduction <maximumf>, %41, %cst_21 [1] : vector<128x256xf32> to vector<128xf32>
    %43 = vector.shape_cast %42 : vector<128xf32> to vector<128x1xf32>
    %44 = vector.broadcast %43 : vector<128x1xf32> to vector<128x256xf32>
    %45 = arith.subf %41, %44 : vector<128x256xf32>
    %46 = math.exp %45 : vector<128x256xf32>
    %cst_22 = arith.constant dense<0.000000e+00> : vector<128xf32>
    %47 = vector.multi_reduction <add>, %46, %cst_22 [1] : vector<128x256xf32> to vector<128xf32>
    %48 = vector.shape_cast %47 : vector<128xf32> to vector<128x1xf32>
    %49 = tpu.reciprocal %48 {approx = true} : vector<128x1xf32> -> vector<128x1xf32>
    %50 = arith.truncf %46 : vector<128x256xf32> to vector<128x256xbf16>
    %51 = vector.extract_strided_slice %7 {offsets = [0, 32], sizes = [256, 32], strides = [1, 1]} : vector<256x128xbf16> to vector<256x32xbf16>
    %cst_23 = arith.constant dense<0.000000e+00> : vector<128x32xf32>
    %52 = tpu.matmul %50, %51, %cst_23 {dimension_numbers = #tpu.dot_dimension_numbers<[1], [0], [0], [1], [0, 0, 1, 1], [], []>} : vector<128x256xbf16>, vector<256x32xbf16>, vector<128x32xf32> -> vector<128x32xf32>
    %53 = vector.broadcast %49 : vector<128x1xf32> to vector<128x32xf32>
    %54 = arith.mulf %53, %52 : vector<128x32xf32>
    %55 = arith.truncf %54 : vector<128x32xf32> to vector<128x32xbf16>
    %c32 = arith.constant 32 : index
    %c0_24 = arith.constant 0 : index
    %56 = vector.load %arg6[%c32, %c0_24] : memref<128x128xbf16, #tpu.memory_space<vmem>>, vector<32x128xbf16>
    %cst_25 = arith.constant dense<0.000000e+00> : vector<128x128xf32>
    %57 = tpu.matmul %55, %56, %cst_25 {dimension_numbers = #tpu.dot_dimension_numbers<[1], [0], [0], [1], [0, 0, 1, 1], [], []>} : vector<128x32xbf16>, vector<32x128xbf16>, vector<128x128xf32> -> vector<128x128xf32>
    %58 = arith.addf %36, %57 : vector<128x128xf32>
    %59 = vector.extract_strided_slice %3 {offsets = [0, 64], sizes = [128, 32], strides = [1, 1]} : vector<128x128xbf16> to vector<128x32xbf16>
    %60 = vector.extract_strided_slice %5 {offsets = [0, 64], sizes = [256, 32], strides = [1, 1]} : vector<256x128xbf16> to vector<256x32xbf16>
    %cst_26 = arith.constant dense<0.000000e+00> : vector<128x256xf32>
    %61 = tpu.matmul %59, %60, %cst_26 {dimension_numbers = #tpu.dot_dimension_numbers<[1], [1], [0], [0], [0, 0, 1, 0], [], []>} : vector<128x32xbf16>, vector<256x32xbf16>, vector<128x256xf32> -> vector<128x256xf32>
    %cst_27 = arith.constant -1.000000e+30 : f32
    %62 = vector.broadcast %cst_27 : f32 to vector<128x256xf32>
    %63 = arith.select %13, %61, %62 : vector<128x256xi1>, vector<128x256xf32>
    %cst_28 = arith.constant dense<0xFF800000> : vector<128xf32>
    %64 = vector.multi_reduction <maximumf>, %63, %cst_28 [1] : vector<128x256xf32> to vector<128xf32>
    %65 = vector.shape_cast %64 : vector<128xf32> to vector<128x1xf32>
    %66 = vector.broadcast %65 : vector<128x1xf32> to vector<128x256xf32>
    %67 = arith.subf %63, %66 : vector<128x256xf32>
    %68 = math.exp %67 : vector<128x256xf32>
    %cst_29 = arith.constant dense<0.000000e+00> : vector<128xf32>
    %69 = vector.multi_reduction <add>, %68, %cst_29 [1] : vector<128x256xf32> to vector<128xf32>
    %70 = vector.shape_cast %69 : vector<128xf32> to vector<128x1xf32>
    %71 = tpu.reciprocal %70 {approx = true} : vector<128x1xf32> -> vector<128x1xf32>
    %72 = arith.truncf %68 : vector<128x256xf32> to vector<128x256xbf16>
    %73 = vector.extract_strided_slice %7 {offsets = [0, 64], sizes = [256, 32], strides = [1, 1]} : vector<256x128xbf16> to vector<256x32xbf16>
    %cst_30 = arith.constant dense<0.000000e+00> : vector<128x32xf32>
    %74 = tpu.matmul %72, %73, %cst_30 {dimension_numbers = #tpu.dot_dimension_numbers<[1], [0], [0], [1], [0, 0, 1, 1], [], []>} : vector<128x256xbf16>, vector<256x32xbf16>, vector<128x32xf32> -> vector<128x32xf32>
    %75 = vector.broadcast %71 : vector<128x1xf32> to vector<128x32xf32>
    %76 = arith.mulf %75, %74 : vector<128x32xf32>
    %77 = arith.truncf %76 : vector<128x32xf32> to vector<128x32xbf16>
    %c64 = arith.constant 64 : index
    %c0_31 = arith.constant 0 : index
    %78 = vector.load %arg6[%c64, %c0_31] : memref<128x128xbf16, #tpu.memory_space<vmem>>, vector<32x128xbf16>
    %cst_32 = arith.constant dense<0.000000e+00> : vector<128x128xf32>
    %79 = tpu.matmul %77, %78, %cst_32 {dimension_numbers = #tpu.dot_dimension_numbers<[1], [0], [0], [1], [0, 0, 1, 1], [], []>} : vector<128x32xbf16>, vector<32x128xbf16>, vector<128x128xf32> -> vector<128x128xf32>
    %80 = arith.addf %58, %79 : vector<128x128xf32>
    %81 = vector.extract_strided_slice %3 {offsets = [0, 96], sizes = [128, 32], strides = [1, 1]} : vector<128x128xbf16> to vector<128x32xbf16>
    %82 = vector.extract_strided_slice %5 {offsets = [0, 96], sizes = [256, 32], strides = [1, 1]} : vector<256x128xbf16> to vector<256x32xbf16>
    %cst_33 = arith.constant dense<0.000000e+00> : vector<128x256xf32>
    %83 = tpu.matmul %81, %82, %cst_33 {dimension_numbers = #tpu.dot_dimension_numbers<[1], [1], [0], [0], [0, 0, 1, 0], [], []>} : vector<128x32xbf16>, vector<256x32xbf16>, vector<128x256xf32> -> vector<128x256xf32>
    %cst_34 = arith.constant -1.000000e+30 : f32
    %84 = vector.broadcast %cst_34 : f32 to vector<128x256xf32>
    %85 = arith.select %13, %83, %84 : vector<128x256xi1>, vector<128x256xf32>
    %cst_35 = arith.constant dense<0xFF800000> : vector<128xf32>
    %86 = vector.multi_reduction <maximumf>, %85, %cst_35 [1] : vector<128x256xf32> to vector<128xf32>
    %87 = vector.shape_cast %86 : vector<128xf32> to vector<128x1xf32>
    %88 = vector.broadcast %87 : vector<128x1xf32> to vector<128x256xf32>
    %89 = arith.subf %85, %88 : vector<128x256xf32>
    %90 = math.exp %89 : vector<128x256xf32>
    %cst_36 = arith.constant dense<0.000000e+00> : vector<128xf32>
    %91 = vector.multi_reduction <add>, %90, %cst_36 [1] : vector<128x256xf32> to vector<128xf32>
    %92 = vector.shape_cast %91 : vector<128xf32> to vector<128x1xf32>
    %93 = tpu.reciprocal %92 {approx = true} : vector<128x1xf32> -> vector<128x1xf32>
    %94 = arith.truncf %90 : vector<128x256xf32> to vector<128x256xbf16>
    %95 = vector.extract_strided_slice %7 {offsets = [0, 96], sizes = [256, 32], strides = [1, 1]} : vector<256x128xbf16> to vector<256x32xbf16>
    %cst_37 = arith.constant dense<0.000000e+00> : vector<128x32xf32>
    %96 = tpu.matmul %94, %95, %cst_37 {dimension_numbers = #tpu.dot_dimension_numbers<[1], [0], [0], [1], [0, 0, 1, 1], [], []>} : vector<128x256xbf16>, vector<256x32xbf16>, vector<128x32xf32> -> vector<128x32xf32>
    %97 = vector.broadcast %93 : vector<128x1xf32> to vector<128x32xf32>
    %98 = arith.mulf %97, %96 : vector<128x32xf32>
    %99 = arith.truncf %98 : vector<128x32xf32> to vector<128x32xbf16>
    %c96 = arith.constant 96 : index
    %c0_38 = arith.constant 0 : index
    %100 = vector.load %arg6[%c96, %c0_38] : memref<128x128xbf16, #tpu.memory_space<vmem>>, vector<32x128xbf16>
    %cst_39 = arith.constant dense<0.000000e+00> : vector<128x128xf32>
    %101 = tpu.matmul %99, %100, %cst_39 {dimension_numbers = #tpu.dot_dimension_numbers<[1], [0], [0], [1], [0, 0, 1, 1], [], []>} : vector<128x32xbf16>, vector<32x128xbf16>, vector<128x128xf32> -> vector<128x128xf32>
    %102 = arith.addf %80, %101 : vector<128x128xf32>
    %103 = arith.addf %1, %102 : vector<128x128xf32>
    %c0_40 = arith.constant 0 : index
    %c0_41 = arith.constant 0 : index
    %104 = vector.load %arg7[%c0_40, %c0_41] : memref<1x128xf32, #tpu.memory_space<vmem>>, vector<1x128xf32>
    %105 = vector.shape_cast %104 : vector<1x128xf32> to vector<128xf32>
    %106 = vector.shape_cast %105 : vector<128xf32> to vector<1x128xf32>
    %107 = vector.broadcast %106 : vector<1x128xf32> to vector<128x128xf32>
    %108 = arith.addf %103, %107 : vector<128x128xf32>
    %c0_42 = arith.constant 0 : index
    %c0_43 = arith.constant 0 : index
    %109 = vector.load %arg8[%c0_42, %c0_43] : memref<1x128xf32, #tpu.memory_space<vmem>>, vector<1x128xf32>
    %110 = vector.shape_cast %109 : vector<1x128xf32> to vector<128xf32>
    %c0_44 = arith.constant 0 : index
    %c0_45 = arith.constant 0 : index
    %111 = vector.load %arg9[%c0_44, %c0_45] : memref<1x128xf32, #tpu.memory_space<vmem>>, vector<1x128xf32>
    %112 = vector.shape_cast %111 : vector<1x128xf32> to vector<128xf32>
    %cst_46 = arith.constant dense<0.000000e+00> : vector<128xf32>
    %113 = vector.multi_reduction <add>, %108, %cst_46 [1] : vector<128x128xf32> to vector<128xf32>
    %114 = vector.shape_cast %113 : vector<128xf32> to vector<128x1xf32>
    %cst_47 = arith.constant 1.280000e+02 : f32
    %115 = vector.broadcast %cst_47 : f32 to vector<128x1xf32>
    %116 = arith.divf %114, %115 : vector<128x1xf32>
    %117 = arith.mulf %108, %108 : vector<128x128xf32>
    %cst_48 = arith.constant dense<0.000000e+00> : vector<128xf32>
    %118 = vector.multi_reduction <add>, %117, %cst_48 [1] : vector<128x128xf32> to vector<128xf32>
    %119 = vector.shape_cast %118 : vector<128xf32> to vector<128x1xf32>
    %cst_49 = arith.constant 1.280000e+02 : f32
    %120 = vector.broadcast %cst_49 : f32 to vector<128x1xf32>
    %121 = arith.divf %119, %120 : vector<128x1xf32>
    %122 = arith.mulf %116, %116 : vector<128x1xf32>
    %123 = arith.subf %121, %122 : vector<128x1xf32>
    %cst_50 = arith.constant 9.99999974E-6 : f32
    %124 = vector.broadcast %cst_50 : f32 to vector<128x1xf32>
    %125 = arith.addf %123, %124 : vector<128x1xf32>
    %126 = math.rsqrt %125 : vector<128x1xf32>
    %127 = vector.broadcast %116 : vector<128x1xf32> to vector<128x128xf32>
    %128 = arith.subf %108, %127 : vector<128x128xf32>
    %129 = vector.broadcast %126 : vector<128x1xf32> to vector<128x128xf32>
    %130 = arith.mulf %128, %129 : vector<128x128xf32>
    %131 = vector.shape_cast %110 : vector<128xf32> to vector<1x128xf32>
    %132 = vector.broadcast %131 : vector<1x128xf32> to vector<128x128xf32>
    %133 = arith.mulf %130, %132 : vector<128x128xf32>
    %134 = vector.shape_cast %112 : vector<128xf32> to vector<1x128xf32>
    %135 = vector.broadcast %134 : vector<1x128xf32> to vector<128x128xf32>
    %136 = arith.addf %133, %135 : vector<128x128xf32>
    %137 = arith.truncf %136 : vector<128x128xf32> to vector<128x128xbf16>
    %c0_51 = arith.constant 0 : index
    %c0_52 = arith.constant 0 : index
    %138 = vector.load %arg10[%c0_51, %c0_52] : memref<128x256xbf16, #tpu.memory_space<vmem>>, vector<128x256xbf16>
    %cst_53 = arith.constant dense<0.000000e+00> : vector<128x256xf32>
    %139 = tpu.matmul %137, %138, %cst_53 {dimension_numbers = #tpu.dot_dimension_numbers<[1], [0], [0], [1], [0, 0, 1, 1], [], []>} : vector<128x128xbf16>, vector<128x256xbf16>, vector<128x256xf32> -> vector<128x256xf32>
    %c0_54 = arith.constant 0 : index
    %c0_55 = arith.constant 0 : index
    %140 = vector.load %arg11[%c0_54, %c0_55] : memref<1x256xf32, #tpu.memory_space<vmem>>, vector<1x256xf32>
    %141 = vector.shape_cast %140 : vector<1x256xf32> to vector<256xf32>
    %142 = vector.shape_cast %141 : vector<256xf32> to vector<1x256xf32>
    %143 = vector.broadcast %142 : vector<1x256xf32> to vector<128x256xf32>
    %144 = arith.addf %139, %143 : vector<128x256xf32>
    %cst_56 = arith.constant 5.000000e-01 : f32
    %145 = vector.broadcast %cst_56 : f32 to vector<128x256xf32>
    %146 = arith.mulf %145, %144 : vector<128x256xf32>
    %cst_57 = arith.constant 0.707106769 : f32
    %147 = vector.broadcast %cst_57 : f32 to vector<128x256xf32>
    %148 = arith.mulf %144, %147 : vector<128x256xf32>
    %149 = math.erf %148 : vector<128x256xf32>
    %cst_58 = arith.constant 1.000000e+00 : f32
    %150 = vector.broadcast %cst_58 : f32 to vector<128x256xf32>
    %151 = arith.addf %150, %149 : vector<128x256xf32>
    %152 = arith.mulf %146, %151 : vector<128x256xf32>
    %153 = arith.truncf %152 : vector<128x256xf32> to vector<128x256xbf16>
    %c0_59 = arith.constant 0 : index
    %c0_60 = arith.constant 0 : index
    %154 = vector.load %arg12[%c0_59, %c0_60] : memref<256x128xbf16, #tpu.memory_space<vmem>>, vector<256x128xbf16>
    %cst_61 = arith.constant dense<0.000000e+00> : vector<128x128xf32>
    %155 = tpu.matmul %153, %154, %cst_61 {dimension_numbers = #tpu.dot_dimension_numbers<[1], [0], [0], [1], [0, 0, 1, 1], [], []>} : vector<128x256xbf16>, vector<256x128xbf16>, vector<128x128xf32> -> vector<128x128xf32>
    %c0_62 = arith.constant 0 : index
    %c0_63 = arith.constant 0 : index
    %156 = vector.load %arg13[%c0_62, %c0_63] : memref<1x128xf32, #tpu.memory_space<vmem>>, vector<1x128xf32>
    %157 = vector.shape_cast %156 : vector<1x128xf32> to vector<128xf32>
    %158 = vector.shape_cast %157 : vector<128xf32> to vector<1x128xf32>
    %159 = vector.broadcast %158 : vector<1x128xf32> to vector<128x128xf32>
    %160 = arith.addf %155, %159 : vector<128x128xf32>
    %161 = arith.addf %108, %160 : vector<128x128xf32>
    %c0_64 = arith.constant 0 : index
    %c0_65 = arith.constant 0 : index
    %c0_66 = arith.constant 0 : index
    %162 = vector.load %arg14[%c0_64, %c0_65, %c0_66] : memref<1x128x128xf32, #tpu.memory_space<vmem>>, vector<1x128x128xf32>
    %163 = vector.shape_cast %162 : vector<1x128x128xf32> to vector<128x128xf32>
    %164 = vector.shape_cast %161 : vector<128x128xf32> to vector<1x128x128xf32>
    tpu.vector_store %arg14[%c0_64, %c0_65, %c0_66], %164 {strides = array<i32>} : memref<1x128x128xf32, #tpu.memory_space<vmem>>, vector<1x128x128xf32>,
    return
  }
  func.func @transform_0(%arg0: i32, %arg1: i32) -> (i32, i32, i32) {
    %c0_i32 = arith.constant 0 : i32
    %c0_i32_0 = arith.constant 0 : i32
    return %arg0, %arg1, %c0_i32 : i32, i32, i32
  }
  func.func @transform_1(%arg0: i32, %arg1: i32) -> (i32, i32, i32) {
    %c0_i32 = arith.constant 0 : i32
    %c0_i32_0 = arith.constant 0 : i32
    return %arg0, %arg1, %c0_i32 : i32, i32, i32
  }
  func.func @transform_2(%arg0: i32, %arg1: i32) -> (i32, i32, i32) {
    %c0_i32 = arith.constant 0 : i32
    %c1_i32 = arith.constant 1 : i32
    %c0_i32_0 = arith.constant 0 : i32
    return %arg0, %c0_i32, %c1_i32 : i32, i32, i32
  }
  func.func @transform_3(%arg0: i32, %arg1: i32) -> (i32, i32, i32) {
    %c0_i32 = arith.constant 0 : i32
    %c2_i32 = arith.constant 2 : i32
    %c0_i32_0 = arith.constant 0 : i32
    return %arg0, %c0_i32, %c2_i32 : i32, i32, i32
  }
  func.func @transform_4(%arg0: i32, %arg1: i32) -> (i32, i32) {
    %c0_i32 = arith.constant 0 : i32
    %c0_i32_0 = arith.constant 0 : i32
    %c0_i32_1 = arith.constant 0 : i32
    return %c0_i32, %c0_i32_0 : i32, i32
  }
  func.func @transform_5(%arg0: i32, %arg1: i32) -> (i32, i32) {
    %c0_i32 = arith.constant 0 : i32
    %c0_i32_0 = arith.constant 0 : i32
    %c0_i32_1 = arith.constant 0 : i32
    return %c0_i32, %c0_i32_0 : i32, i32
  }
  func.func @transform_6(%arg0: i32, %arg1: i32) -> (i32, i32) {
    %c0_i32 = arith.constant 0 : i32
    %c0_i32_0 = arith.constant 0 : i32
    %c0_i32_1 = arith.constant 0 : i32
    return %c0_i32, %c0_i32_0 : i32, i32
  }
  func.func @transform_7(%arg0: i32, %arg1: i32) -> (i32, i32) {
    %c0_i32 = arith.constant 0 : i32
    %c0_i32_0 = arith.constant 0 : i32
    %c0_i32_1 = arith.constant 0 : i32
    return %c0_i32, %c0_i32_0 : i32, i32
  }
  func.func @transform_8(%arg0: i32, %arg1: i32) -> (i32, i32) {
    %c0_i32 = arith.constant 0 : i32
    %c0_i32_0 = arith.constant 0 : i32
    %c0_i32_1 = arith.constant 0 : i32
    return %c0_i32, %c0_i32_0 : i32, i32
  }
  func.func @transform_9(%arg0: i32, %arg1: i32) -> (i32, i32) {
    %c0_i32 = arith.constant 0 : i32
    %c0_i32_0 = arith.constant 0 : i32
    %c0_i32_1 = arith.constant 0 : i32
    return %c0_i32, %c0_i32_0 : i32, i32
  }
  func.func @transform_10(%arg0: i32, %arg1: i32) -> (i32, i32) {
    %c0_i32 = arith.constant 0 : i32
    %c0_i32_0 = arith.constant 0 : i32
    %c0_i32_1 = arith.constant 0 : i32
    return %c0_i32, %c0_i32_0 : i32, i32
  }
  func.func @transform_11(%arg0: i32, %arg1: i32) -> (i32, i32) {
    %c0_i32 = arith.constant 0 : i32
    %c0_i32_0 = arith.constant 0 : i32
    %c0_i32_1 = arith.constant 0 : i32
    return %c0_i32, %c0_i32_0 : i32, i32
  }
  func.func @transform_12(%arg0: i32, %arg1: i32) -> (i32, i32, i32) {
    %c0_i32 = arith.constant 0 : i32
    %c0_i32_0 = arith.constant 0 : i32
    return %arg0, %arg1, %c0_i32 : i32, i32, i32
  }
}

</mosaic_0001>

<bundles_post_ra>
// kernel: transformer_forward.9
= control target key start
LH: loop header
LB: loop body
LE: loop exit
PB: predicated region body
PF: predicated region fallthrough
CT: control target
= control target key end

     0   :  { %9 = vsyncpa [#allocation3], 0  ;;  %s2014_s0 = inlined_call_operand.vmem [shape: f32[512,128], index: 0, kind: input, shape index: {}]   ;;  %s2015_s1 = inlined_call_operand.vmem [shape: f32[1,128], index: 1, kind: input, shape index: {}]   ;;  %s2016_s2 = inlined_call_operand.vmem [shape: f32[1,128], index: 2, kind: input, shape index: {}]   ;;  %s2017_s3 = inlined_call_operand.vmem [shape: bf16[128,128], index: 3, kind: input, shape index: {}]   ;;  %s2018_s4 = inlined_call_operand.hbm [shape: f32[512,128], index: 4, kind: output, shape index: {}]  }
   0x1   :  { %11 = vsyncpa [#allocation3 + $0x1], 0  ;;  %s1390_s15 = smov 0   ;;  %s1392_s16 = smov 0  }
   0x2   :  { %s1394_s17 = smov 0   ;;  %s1396_s18 = smov 0  }
   0x3 LB: > { %s1411_s19 = sadd.s32 4294967295, %s1360_s18   ;;  %s1076_s20 = sadd.s32 4294967294, %s1360_s18   ;;  %s1360_s18 = sphi %s1396_s18, %s2024_s18   ;;  %s1356_s17 = sphi %s1394_s17, %s2023_s17   ;;  %s1352_s16 = sphi %s1392_s16, %s2022_s16   ;;  %s1348_s15 = sphi %s1390_s15, %s2021_s15  }
   0x4   : > { %s1415_s21 = sadd.s32 1, %s1360_s18   ;;  %s113_s22 = sadd.s32 1, %s1356_s17 }
   0x5   : > { %s110_s23 = ssub.s32 %s1360_s18, %s1415_s21  ;;  %p123_p0 = scmp.ne.s32.totalorder %s1356_s17, %s1352_s16 }
   0x6   : > { %p111_p1 = scmp.eq.s32.totalorder %s110_s23, 0  ;;  %p124_p2 = scmp.eq.s32.totalorder %s1411_s19, 1 }
   0x7   : > { %p129_p3 = scmp.ne.s32.totalorder %s1352_s16, %s1348_s15  ;;  %p130_p4 = scmp.eq.s32.totalorder %s1076_s20, 1 }
   0x8   : > { %s1426_s24 = scalar_select %p111_p1, %s1356_s17, %s113_s22  }
   0x9   : > { %p1428_p5 = por %p124_p2, %p123_p0  ;;  %p1432_p6 = por %p130_p4, %p129_p3 }
   0xa   : > { %p1079_p7 = scmp.ge.s32.totalorder %s1360_s18, 1  ;;  %p166_p8 = scmp.lt.s32.totalorder %s1360_s18, 3 }
   0xc   : > { %p167_p9 = pnand %p1079_p7, %p166_p8 }
   0xd   : > { %s1081_s27 = sshll.u32 (!%p167_p9), %s1411_s19, 5  ;;  %s189_s9 = sand.u32 (!%p167_p9), 1, %s1352_s16  }
   0xe   : > { %170 = sbr.rel (%p167_p9) target bundleno = 527 (0x20f), region = 36  ;;  %p193_p10 = scmp.lt.s32.totalorder (!%p167_p9), %s1081_s27, 63 }
   0xf   : > { %s1080_s10 = sshll.u32 (!%p167_p9), %s189_s9, 8  ;;  %s1098_s12 = sshll.u32 (!%p167_p9), %s1411_s19, 12 }
  0x10   : > { %s1929_s11 = scalar_lea.vmem (!%p167_p9), [#allocation2], %s1080_s10  ;;  %s1966_s22 = scalar_lea.hbm (!%p167_p9), %s2018_s4, %s1098_s12 }
  0x11   : > { %s1014_s13 = sshll.u32 (!%p167_p9), %s1929_s11, 4  ;;  %s1974_s19 = scalar_lea.sflag (!%p167_p9), [#allocation3], %s189_s9  ;;  %s1968_s13 = int_to_ptr.vmem [resolvable:$true] %s1014_s13 }
  0x12   : > { %s1300_s23 = scalar_lea.vmem (!%p167_p9), %s1968_s13, 4096 }
  0x13   : > { %s2026_s27 = smov (!%p193_p10, %s1081_s27), 63  ;;  %v1228_v18 = vld [vmem:[%s2017_s3 + $0x38] sm:$0xff]   ;;  %v1229_v21 = vld [vmem:[%s2017_s3 + $0x30] sm:$0xff]   ;;  %v1230_v24 = vld [vmem:[%s2017_s3 + $0x28] sm:$0xff]   ;;  %p1301_p11 = scmp.ne.s32.totalorder %s1968_s13, %s1300_s23 }
  0x14   : > { %s1082_s28 = sshll.u32 %s2026_s27, 3  ;;  %1123 = vmatprep.subr.bf16.mxu0 %v1228_v18  ;;  %1171 = vmatprep.subr.bf16.mxu1 %v1228_v18  ;;  %v1231_v27 = vld [vmem:[%s2017_s3 + $0x20] sm:$0xff]   ;;  %v1232_v30 = vld [vmem:[%s2017_s3 + $0x18] sm:$0xff]   ;;  %v1233_v33 = vld [vmem:[%s2017_s3 + $0x10] sm:$0xff]   ;;  %s1362_s27 = smov [#allocation2]  }
  0x15   : > { %s1442_s5 = scalar_lea.vmem %s2014_s0, %s1082_s28  ;;  %1124 = vmatpush3.bf16.msra.mxu0 %v1228_v18  ;;  %1179 = vmatpush3.bf16.msra.mxu1 %v1228_v18  ;;  %v1234_v36 = vld [vmem:[%s2017_s3 + $0x8] sm:$0xff]   ;;  %v1235_v39 = vld [vmem:[%s2017_s3] sm:$0xff]   ;;  %p1302_p12 = pnand %p1301_p11, %p1428_p5 }
  0x16   : > { %v1445_v0 = vld [vmem:[%s1442_s5 + $0x80] sm:$0xff]  ;;  %v1453_v2 = vld [vmem:[%s1442_s5 + $0x88] sm:$0xff]  ;;  %v1461_v4 = vld [vmem:[%s1442_s5 + $0x18] sm:$0xff]  ;;  %1125 = vmatprep.subr.bf16.mxu0 %v1229_v21  ;;  %1172 = vmatprep.subr.bf16.mxu1 %v1229_v21  ;;  %s1304_s28 = sshll.u32 %s1362_s27, 4  ;;  %s1305_s28 = int_to_ptr.vmem [resolvable:$false] %s1304_s28 }
  0x17   : > { %v1448_v1 = vld [vmem:[%s1442_s5] sm:$0xff]  ;;  %266 = vadd.xlane.f32.xlu1 %v1445_v0  ;;  %v1456_v3 = vld [vmem:[%s1442_s5 + $0x8] sm:$0xff]  ;;  %v1464_v5 = vld [vmem:[%s1442_s5 + $0x10] sm:$0xff]  ;;  %v348_v10 = vmul.f32 %v1453_v2, %v1453_v2  ;;  %v347_v11 = vmul.f32 %v1445_v0, %v1445_v0  ;;  %v334_v12 = vmul.f32 %v1461_v4, %v1461_v4  ;;  %p1303_p13 = pneg %p1302_p12  ;;  %s1306_s29 = scalar_lea.vmem %s1305_s28, 8192 }
  0x18   : > { %234 = vadd.xlane.f32.xlu0 %v1448_v1  ;;  %v1469_v6 = vld [vmem:[%s1442_s5 + $0x98] sm:$0xff]  ;;  %v1472_v7 = vld [vmem:[%s1442_s5 + $0x90] sm:$0xff]  ;;  %v332_v8 = vmul.f32 %v1456_v3, %v1456_v3  ;;  %v331_v9 = vmul.f32 %v1448_v1, %v1448_v1  ;;  %v333_v13 = vmul.f32 %v1464_v5, %v1464_v5  ;;  %v1493_v16 = vld [vmem:[%s1442_s5 + $0x28] sm:$0xff]  ;;  %p1307_p0 = scmp.lt.s32.totalorder %s1968_s13, %s1305_s28  ;;  %p1308_p1 = scmp.lt.s32.totalorder %s1306_s29, %s1300_s23 }
  0x19   : > { %v350_v14 = vmul.f32 %v1469_v6, %v1469_v6  ;;  %v349_v15 = vmul.f32 %v1472_v7, %v1472_v7  ;;  %v1496_v17 = vld [vmem:[%s1442_s5 + $0x20] sm:$0xff]  ;;  %v1504_v19 = vld [vmem:[%s1442_s5 + $0xa8] sm:$0xff]  ;;  %v1515_v22 = vld [vmem:[%s1442_s5 + $0x38] sm:$0xff]  ;;  %1126 = vmatpush3.bf16.msra.mxu0 %v1229_v21  ;;  %1180 = vmatpush3.bf16.msra.mxu1 %v1229_v21  ;;  %v336_v28 = vmul.f32 %v1493_v16, %v1493_v16 }
  0x1a   : > { %v1507_v20 = vld [vmem:[%s1442_s5 + $0xa0] sm:$0xff]  ;;  %v1518_v23 = vld [vmem:[%s1442_s5 + $0x30] sm:$0xff]  ;;  %1127 = vmatprep.subr.bf16.mxu0 %v1230_v24  ;;  %1173 = vmatprep.subr.bf16.mxu1 %v1230_v24  ;;  %v1526_v25 = vld [vmem:[%s1442_s5 + $0xb8] sm:$0xff]  ;;  %v335_v29 = vmul.f32 %v1496_v17, %v1496_v17  ;;  %v352_v31 = vmul.f32 %v1504_v19, %v1504_v19  ;;  %v338_v34 = vmul.f32 %v1515_v22, %v1515_v22  ;;  %p1309_p2 = por %p1308_p1, %p1307_p0 }
  0x1b   : > { %268 = vadd.xlane.f32.xlu1 %v1453_v2  ;;  %v1529_v26 = vld [vmem:[%s1442_s5 + $0xb0] sm:$0xff]  ;;  %v351_v32 = vmul.f32 %v1507_v20, %v1507_v20  ;;  %v337_v35 = vmul.f32 %v1518_v23, %v1518_v23  ;;  %v354_v37 = vmul.f32 %v1526_v25, %v1526_v25  ;;  %v1565_v40 = vld [vmem:[%s1442_s5 + $0x48] sm:$0xff]  ;;  %v1568_v41 = vld [vmem:[%s1442_s5 + $0x40] sm:$0xff] }
  0x1c   : > { %236 = vadd.xlane.f32.xlu0 %v1456_v3  ;;  %v353_v38 = vmul.f32 %v1529_v26, %v1529_v26  ;;  %v1573_v42 = vld [vmem:[%s1442_s5 + $0xc8] sm:$0xff]  ;;  %v1576_v43 = vld [vmem:[%s1442_s5 + $0xc0] sm:$0xff]  ;;  %v1581_v44 = vld [vmem:[%s1442_s5 + $0x58] sm:$0xff]  ;;  %v340_v48 = vmul.f32 %v1565_v40, %v1565_v40  ;;  %v339_v49 = vmul.f32 %v1568_v41, %v1568_v41  ;;  %p1310_p3 = pnand %p1309_p2, %p1303_p13 }
  0x1d   : > { %1128 = vmatpush3.bf16.msra.mxu0 %v1230_v24  ;;  %1181 = vmatpush3.bf16.msra.mxu1 %v1230_v24  ;;  %v1584_v45 = vld [vmem:[%s1442_s5 + $0x50] sm:$0xff]  ;;  %v1589_v46 = vld [vmem:[%s1442_s5 + $0xd8] sm:$0xff]  ;;  %v356_v50 = vmul.f32 %v1573_v42, %v1573_v42  ;;  %v355_v51 = vmul.f32 %v1576_v43, %v1576_v43  ;;  %v342_v52 = vmul.f32 %v1581_v44, %v1581_v44  ;;  %v1613_v56 = vld [vmem:[%s1442_s5 + $0x68] sm:$0xff] }
  0x1e   : > { %1129 = vmatprep.subr.bf16.mxu0 %v1231_v27  ;;  %1174 = vmatprep.subr.bf16.mxu1 %v1231_v27  ;;  %v1592_v47 = vld [vmem:[%s1442_s5 + $0xd0] sm:$0xff]  ;;  %v341_v53 = vmul.f32 %v1584_v45, %v1584_v45  ;;  %v358_v54 = vmul.f32 %v1589_v46, %v1589_v46  ;;  %v1616_v57 = vld [vmem:[%s1442_s5 + $0x60] sm:$0xff]  ;;  %v1621_v58 = vld [vmem:[%s1442_s5 + $0xe8] sm:$0xff] }
  0x1f   : > { %240 = vadd.xlane.f32.xlu1 %v1461_v4  ;;  %v357_v55 = vmul.f32 %v1592_v47, %v1592_v47  ;;  %v1624_v59 = vld [vmem:[%s1442_s5 + $0xe0] sm:$0xff]  ;;  %v1629_v60 = vld [vmem:[%s1442_s5 + $0x78] sm:$0xff]  ;;  %v1632_v61 = vld [vmem:[%s1442_s5 + $0x70] sm:$0xff] }
  0x20   : > { %238 = vadd.xlane.f32.xlu0 %v1464_v5  ;;  %v1637_v62 = vld [vmem:[%s1442_s5 + $0xf8] sm:$0xff]  ;;  %v1640_v63 = vld [vmem:[%s1442_s5 + $0xf0] sm:$0xff] }
  0x21   : > { %1130 = vmatpush3.bf16.msra.mxu0 %v1231_v27  ;;  %1182 = vmatpush3.bf16.msra.mxu1 %v1231_v27 }
  0x22   : > { %1131 = vmatprep.subr.bf16.mxu0 %v1232_v30  ;;  %1175 = vmatprep.subr.bf16.mxu1 %v1232_v30 }
  0x23   : > { %272 = vadd.xlane.f32.xlu1 %v1469_v6 }
  0x24   : > { %270 = vadd.xlane.f32.xlu0 %v1472_v7 }
  0x25   : > { %1132 = vmatpush3.bf16.msra.mxu0 %v1232_v30  ;;  %1183 = vmatpush3.bf16.msra.mxu1 %v1232_v30 }
  0x26   : > { %1133 = vmatprep.subr.bf16.mxu0 %v1233_v33  ;;  %1176 = vmatprep.subr.bf16.mxu1 %v1233_v33 }
  0x27   : > { %365 = vadd.xlane.f32.xlu1 %v332_v8  ;;  %v344_v8 = vmul.f32 %v1613_v56, %v1613_v56 }
  0x28   : > { %363 = vadd.xlane.f32.xlu0 %v331_v9  ;;  %v343_v9 = vmul.f32 %v1616_v57, %v1616_v57 }
  0x29   : > { %1134 = vmatpush3.bf16.msra.mxu0 %v1233_v33  ;;  %1184 = vmatpush3.bf16.msra.mxu1 %v1233_v33 }
  0x2a   : > { %1135 = vmatprep.subr.bf16.mxu0 %v1234_v36  ;;  %1177 = vmatprep.subr.bf16.mxu1 %v1234_v36 }
  0x2b   : > { %397 = vadd.xlane.f32.xlu1 %v348_v10  ;;  %v360_v10 = vmul.f32 %v1621_v58, %v1621_v58 }
  0x2c   : > { %395 = vadd.xlane.f32.xlu0 %v347_v11  ;;  %v359_v11 = vmul.f32 %v1624_v59, %v1624_v59 }
  0x2d   : > { %1136 = vmatpush3.bf16.msra.mxu0 %v1234_v36  ;;  %1185 = vmatpush3.bf16.msra.mxu1 %v1234_v36 }
  0x2e   : > { %1137 = vmatprep.subr.bf16.mxu0 %v1235_v39  ;;  %1178 = vmatprep.subr.bf16.mxu1 %v1235_v39 }
  0x2f   : > { %369 = vadd.xlane.f32.xlu1 %v334_v12  ;;  %v346_v12 = vmul.f32 %v1629_v60, %v1629_v60 }
  0x30   : > { %367 = vadd.xlane.f32.xlu0 %v333_v13  ;;  %v345_v13 = vmul.f32 %v1632_v61, %v1632_v61 }
  0x31   : > { %1138 = vmatpush3.bf16.msra.mxu0 %v1235_v39  ;;  %1186 = vmatpush3.bf16.msra.mxu1 %v1235_v39 }
  0x33   : > { %401 = vadd.xlane.f32.xlu1 %v350_v14  ;;  %v362_v14 = vmul.f32 %v1637_v62, %v1637_v62 }
  0x34   : > { %399 = vadd.xlane.f32.xlu0 %v349_v15  ;;  %v361_v15 = vmul.f32 %v1640_v63, %v1640_v63 }
  0x37   : > { %244 = vadd.xlane.f32.xlu1 %v1493_v16 }
  0x38   : > { %242 = vadd.xlane.f32.xlu0 %v1496_v17 }
  0x3b   : > { %276 = vadd.xlane.f32.xlu1 %v1504_v19 }
  0x3c   : > { %274 = vadd.xlane.f32.xlu0 %v1507_v20 }
  0x3f   : > { %248 = vadd.xlane.f32.xlu1 %v1515_v22 }
  0x40   : > { %246 = vadd.xlane.f32.xlu0 %v1518_v23 }
  0x43   : > { %280 = vadd.xlane.f32.xlu1 %v1526_v25 }
  0x44   : > { %278 = vadd.xlane.f32.xlu0 %v1529_v26 }
  0x47   : > { %373 = vadd.xlane.f32.xlu1 %v336_v28 }
  0x48   : > { %371 = vadd.xlane.f32.xlu0 %v335_v29 }
  0x4b   : > { %405 = vadd.xlane.f32.xlu1 %v352_v31 }
  0x4c   : > { %403 = vadd.xlane.f32.xlu0 %v351_v32 }
  0x4f   : > { %377 = vadd.xlane.f32.xlu1 %v338_v34 }
  0x50   : > { %375 = vadd.xlane.f32.xlu0 %v337_v35 }
  0x53   : > { %409 = vadd.xlane.f32.xlu1 %v354_v37 }
  0x54   : > { %407 = vadd.xlane.f32.xlu0 %v353_v38 }
  0x57   : > { %252 = vadd.xlane.f32.xlu1 %v1565_v40 }
  0x58   : > { %250 = vadd.xlane.f32.xlu0 %v1568_v41 }
  0x5b   : > { %284 = vadd.xlane.f32.xlu1 %v1573_v42 }
  0x5c   : > { %282 = vadd.xlane.f32.xlu0 %v1576_v43 }
  0x5f   : > { %256 = vadd.xlane.f32.xlu1 %v1581_v44 }
  0x60   : > { %254 = vadd.xlane.f32.xlu0 %v1584_v45 }
  0x63   : > { %288 = vadd.xlane.f32.xlu1 %v1589_v46 }
  0x64   : > { %286 = vadd.xlane.f32.xlu0 %v1592_v47 }
  0x67   : > { %381 = vadd.xlane.f32.xlu1 %v340_v48 }
  0x68   : > { %379 = vadd.xlane.f32.xlu0 %v339_v49 }
  0x6b   : > { %413 = vadd.xlane.f32.xlu1 %v356_v50 }
  0x6c   : > { %411 = vadd.xlane.f32.xlu0 %v355_v51 }
  0x6f   : > { %385 = vadd.xlane.f32.xlu1 %v342_v52 }
  0x70   : > { %383 = vadd.xlane.f32.xlu0 %v341_v53 }
  0x73   : > { %417 = vadd.xlane.f32.xlu1 %v358_v54 }
  0x74   : > { %415 = vadd.xlane.f32.xlu0 %v357_v55 }
  0x77   : > { %260 = vadd.xlane.f32.xlu1 %v1613_v56 }
  0x78   : > { %258 = vadd.xlane.f32.xlu0 %v1616_v57 }
  0x7b   : > { %292 = vadd.xlane.f32.xlu1 %v1621_v58 }
  0x7c   : > { %290 = vadd.xlane.f32.xlu0 %v1624_v59 }
  0x7f   : > { %264 = vadd.xlane.f32.xlu1 %v1629_v60 }
  0x80   : > { %262 = vadd.xlane.f32.xlu0 %v1632_v61 }
  0x83   : > { %296 = vadd.xlane.f32.xlu1 %v1637_v62 }
  0x84   : > { %294 = vadd.xlane.f32.xlu0 %v1640_v63 }
  0x87   : > { %389 = vadd.xlane.f32.xlu1 %v344_v8 }
  0x88   : > { %387 = vadd.xlane.f32.xlu0 %v343_v9 }
  0x8b   : > { %421 = vadd.xlane.f32.xlu1 %v360_v10 }
  0x8c   : > { %419 = vadd.xlane.f32.xlu0 %v359_v11 }
  0x8f   : > { %393 = vadd.xlane.f32.xlu1 %v346_v12 }
  0x90   : > { %391 = vadd.xlane.f32.xlu0 %v345_v13 }
  0x93   : > { %425 = vadd.xlane.f32.xlu1 %v362_v14 }
  0x94   : > { %423 = vadd.xlane.f32.xlu0 %v361_v15 }
  0xa0   : > { %v267_v18 = vpop.xlane.xlu1 %266 }
  0xa1   : > { %v235_v21 = vpop.xlane.xlu0 %234  ;;  %v1664_v34 = vmul.f32 0.0078125, %v267_v18 }
  0xa2   : > { %v1660_v32 = vmul.f32 0.0078125, %v235_v21 }
  0xa3   : > { %v475_v53 = vmul.f32 %v1664_v34, %v1664_v34 }
  0xa4   : > { %v269_v24 = vpop.xlane.xlu1 %268  ;;  %v459_v38 = vmul.f32 %v1660_v32, %v1660_v32 }
  0xa5   : > { %v237_v27 = vpop.xlane.xlu0 %236  ;;  %v1666_v35 = vmul.f32 0.0078125, %v269_v24 }
  0xa6   : > { %v1662_v33 = vmul.f32 0.0078125, %v237_v27 }
  0xa7   : > { %v476_v54 = vmul.f32 %v1666_v35, %v1666_v35 }
  0xa8   : > { %v241_v28 = vpop.xlane.xlu1 %240  ;;  %v460_v39 = vmul.f32 %v1662_v33, %v1662_v33 }
  0xa9   : > { %v239_v29 = vpop.xlane.xlu0 %238  ;;  %v1672_v50 = vmul.f32 0.0078125, %v241_v28 }
  0xaa   : > { %v1678_v55 = vmul.f32 0.0078125, %v239_v29 }
  0xab   : > { %v462_v14 = vmul.f32 %v1672_v50, %v1672_v50 }
  0xac   : > { %v273_v30 = vpop.xlane.xlu1 %272  ;;  %v461_v21 = vmul.f32 %v1678_v55, %v1678_v55 }
  0xad   : > { %v271_v31 = vpop.xlane.xlu0 %270  ;;  %v1684_v24 = vmul.f32 0.0078125, %v273_v30 }
  0xae   : > { %v1686_v27 = vmul.f32 0.0078125, %v271_v31 }
  0xb0   : > { %v366_v36 = vpop.xlane.xlu1 %365 }
  0xb1   : > { %v364_v37 = vpop.xlane.xlu0 %363  ;;  %v428_v48 = vmul.f32 0.0078125, %v366_v36 }
  0xb2   : > { %v427_v49 = vmul.f32 0.0078125, %v364_v37 }
  0xb3   : > { %v492_v51 = vsub.f32 %v428_v48, %v460_v39 }
  0xb4   : > { %v491_v52 = vsub.f32 %v427_v49, %v459_v38  ;;  %v398_v8 = vpop.xlane.xlu1 %397 }
  0xb5   : > { %v396_v9 = vpop.xlane.xlu0 %395  ;;  %v524_v10 = vadd.f32 1e-05, %v492_v51  ;;  %v444_v12 = vmul.f32 0.0078125, %v398_v8  ;;  %v478_v51 = vmul.f32 %v1684_v24, %v1684_v24 }
  0xb6   : > { %v523_v11 = vadd.f32 1e-05, %v491_v52  ;;  %v443_v13 = vmul.f32 0.0078125, %v396_v9  ;;  %v477_v52 = vmul.f32 %v1686_v27, %v1686_v27 }
  0xb7   : > { %1236 = vrsqrt.f32 %v524_v10  ;;  %v508_v15 = vsub.f32 %v444_v12, %v476_v54 }
  0xb8   : > { %v507_v18 = vsub.f32 %v443_v13, %v475_v53  ;;  %1238 = vrsqrt.f32 %v523_v11  ;;  %v370_v28 = vpop.xlane.xlu1 %369 }
  0xb9   : > { %v368_v29 = vpop.xlane.xlu0 %367  ;;  %v540_v36 = vadd.f32 1e-05, %v508_v15  ;;  %v430_v38 = vmul.f32 0.0078125, %v370_v28  ;;  %v587_v28 = vsub.f32 %v1448_v1, %v1660_v32  ;;  %v603_v32 = vsub.f32 %v1445_v0, %v1664_v34 }
  0xba   : > { %v539_v37 = vadd.f32 1e-05, %v507_v18  ;;  %v429_v39 = vmul.f32 0.0078125, %v368_v29  ;;  %v588_v18 = vsub.f32 %v1456_v3, %v1662_v33  ;;  %v1706_v3 = vld [vmem:[%s2016_s2] ss:$0 sm:$0xff]  ;;  %v589_v0 = vsub.f32 %v1464_v5, %v1678_v55 }
  0xbb   : > { %1240 = vrsqrt.f32 %v540_v36  ;;  %v494_v48 = vsub.f32 %v430_v38, %v462_v14  ;;  %v1699_v38 = vld [vmem:[%s2015_s1] ss:$0 sm:$0xff]  ;;  %v606_v5 = vsub.f32 %v1469_v6, %v1684_v24  ;;  %v605_v55 = vsub.f32 %v1472_v7, %v1686_v27 }
  0xbc   : > { %v493_v49 = vsub.f32 %v429_v39, %v461_v21  ;;  %1242 = vrsqrt.f32 %v539_v37  ;;  %v402_v30 = vpop.xlane.xlu1 %401 }
  0xbd   : > { %v400_v31 = vpop.xlane.xlu0 %399  ;;  %v526_v53 = vadd.f32 1e-05, %v494_v48  ;;  %v446_v8 = vmul.f32 0.0078125, %v402_v30 }
  0xbe   : > { %v525_v54 = vadd.f32 1e-05, %v493_v49  ;;  %v445_v9 = vmul.f32 0.0078125, %v400_v31  ;;  %v604_v49 = vsub.f32 %v1453_v2, %v1666_v35 }
  0xbf   : > { %1244 = vrsqrt.f32 %v526_v53  ;;  %v510_v10 = vsub.f32 %v446_v8, %v478_v51  ;;  %v590_v8 = vsub.f32 %v1461_v4, %v1672_v50 }
  0xc0   : > { %v509_v11 = vsub.f32 %v445_v9, %v477_v52  ;;  %1246 = vrsqrt.f32 %v525_v54  ;;  %v245_v12 = vpop.xlane.xlu1 %244 }
  0xc1   : > { %v243_v13 = vpop.xlane.xlu0 %242  ;;  %v542_v14 = vadd.f32 1e-05, %v510_v10  ;;  %v1716_v9 = vmul.f32 0.0078125, %v245_v12 }
  0xc2   : > { %v541_v15 = vadd.f32 1e-05, %v509_v11 }
  0xc3   : > { %1248 = vrsqrt.f32 %v542_v14 }
  0xc4   : > { %v1237_v21 = vpop.eup %1236  ;;  %1250 = vrsqrt.f32 %v541_v15  ;;  %v277_v29 = vpop.xlane.xlu1 %276 }
  0xc5   : > { %v275_v36 = vpop.xlane.xlu0 %274  ;;  %v1239_v37 = vpop.eup %1238  ;;  %v620_v39 = vmul.f32 %v1237_v21, %v588_v18 }
  0xc6   : > { %v619_v48 = vmul.f32 %v1239_v37, %v587_v28  ;;  %v1722_v28 = vmul.f32 0.0078125, %v243_v13 }
  0xc7   : > { %v658_v30 = vmul.f32 %v1699_v38, %v620_v39  ;;  %v464_v39 = vmul.f32 %v1716_v9, %v1716_v9 }
  0xc8   : > { %v1241_v1 = vpop.eup %1240  ;;  %v249_v33 = vpop.xlane.xlu1 %248  ;;  %v657_v52 = vmul.f32 %v1699_v38, %v619_v48  ;;  %v1732_v48 = vmul.f32 0.0078125, %v277_v29  ;;  %v463_v6 = vmul.f32 %v1722_v28, %v1722_v28 }
  0xc9   : > { %v247_v51 = vpop.xlane.xlu0 %246  ;;  %v1243_v31 = vpop.eup %1242  ;;  %v636_v53 = vmul.f32 %v1241_v1, %v604_v49  ;;  %v696_v2 = vadd.f32 %v1706_v3, %v658_v30  ;;  %v1734_v49 = vmul.f32 0.0078125, %v275_v36 }
  0xca   : > { %v695_v54 = vadd.f32 %v1706_v3, %v657_v52  ;;  %v635_v35 = vmul.f32 %v1243_v31, %v603_v32 }
  0xcb   : > { %v674_v18 = vmul.f32 %v1699_v38, %v636_v53 }
  0xcc   : > { %v1245_v10 = vpop.eup %1244  ;;  %v281_v34 = vpop.xlane.xlu1 %280  ;;  %v727_v14 = vpack.c.bf16 %v696_v2, %v695_v54  ;;  %v673_v15 = vmul.f32 %v1699_v38, %v635_v35  ;;  %v1740_v54 = vmul.f32 0.0078125, %v249_v33  ;;  %v1744_v35 = vmul.f32 0.0078125, %v247_v51 }
  0xcd   : > { %v279_v11 = vpop.xlane.xlu0 %278  ;;  %v1247_v21 = vpop.eup %1246  ;;  %v622_v37 = vmul.f32 %v1245_v10, %v590_v8  ;;  %v712_v50 = vadd.f32 %v1706_v3, %v674_v18 }
  0xce   : > { %1139 = vmatprep.mubr.bf16.mxu0 %v727_v14  ;;  %v711_v4 = vadd.f32 %v1706_v3, %v673_v15  ;;  %v621_v12 = vmul.f32 %v1247_v21, %v589_v0  ;;  %v480_v14 = vmul.f32 %v1732_v48, %v1732_v48  ;;  %v479_v15 = vmul.f32 %v1734_v49, %v1734_v49 }
  0xcf   : > { %v660_v31 = vmul.f32 %v1699_v38, %v622_v37 }
  0xd0   : > { %v1249_v13 = vpop.eup %1248  ;;  %v374_v1 = vpop.xlane.xlu1 %373  ;;  %v735_v52 = vpack.c.bf16 %v712_v50, %v711_v4  ;;  %v659_v30 = vmul.f32 %v1699_v38, %v621_v12 }
  0xd1   : > { %v372_v32 = vpop.xlane.xlu0 %371  ;;  %v1251_v53 = vpop.eup %1250  ;;  %v432_v7 = vmul.f32 0.0078125, %v374_v1  ;;  %v638_v27 = vmul.f32 %v1249_v13, %v606_v5  ;;  %v698_v36 = vadd.f32 %v1706_v3, %v660_v31  ;;  %v466_v5 = vmul.f32 %v1740_v54, %v1740_v54 }
  0xd2   : > { %v431_v24 = vmul.f32 0.0078125, %v372_v32  ;;  %1155 = vmatprep.mubr.bf16.mxu1 %v735_v52  ;;  %v697_v29 = vadd.f32 %v1706_v3, %v659_v30  ;;  %v637_v2 = vmul.f32 %v1251_v53, %v605_v55  ;;  %v465_v13 = vmul.f32 %v1744_v35, %v1744_v35 }
  0xd3   : > { %v496_v8 = vsub.f32 %v432_v7, %v464_v39  ;;  %v676_v0 = vmul.f32 %v1699_v38, %v638_v27  ;;  %v1758_v52 = vmul.f32 0.0078125, %v281_v34  ;;  %v1760_v30 = vmul.f32 0.0078125, %v279_v11 }
  0xd4   : > { %v495_v10 = vsub.f32 %v431_v24, %v463_v6  ;;  %v406_v33 = vpop.xlane.xlu1 %405  ;;  %v728_v21 = vpack.c.bf16 %v698_v36, %v697_v29  ;;  %v675_v37 = vmul.f32 %v1699_v38, %v637_v2 }
  0xd5   : > { %v404_v18 = vpop.xlane.xlu0 %403  ;;  %v528_v4 = vadd.f32 1e-05, %v496_v8  ;;  %v448_v12 = vmul.f32 0.0078125, %v406_v33  ;;  %v714_v39 = vadd.f32 %v1706_v3, %v676_v0  ;;  %v482_v8 = vmul.f32 %v1758_v52, %v1758_v52 }
  0xd6   : > { %v527_v50 = vadd.f32 1e-05, %v495_v10  ;;  %v447_v51 = vmul.f32 0.0078125, %v404_v18  ;;  %1140 = vmatmul.mubr.bf16.vlgmr.msra.gmra.mxu0 %v728_v21  ;;  %v713_v55 = vadd.f32 %v1706_v3, %v675_v37  ;;  %v481_v34 = vmul.f32 %v1760_v30, %v1760_v30 }
  0xd7   : > { %1252 = vrsqrt.f32 %v528_v4  ;;  %v512_v1 = vsub.f32 %v448_v12, %v480_v14 }
  0xd8   : > { %v511_v32 = vsub.f32 %v447_v51, %v479_v15  ;;  %1254 = vrsqrt.f32 %v527_v50  ;;  %v378_v31 = vpop.xlane.xlu1 %377  ;;  %v736_v6 = vpack.c.bf16 %v714_v39, %v713_v55  ;;  %v592_v51 = vsub.f32 %v1493_v16, %v1716_v9 }
  0xd9   : > { %v376_v53 = vpop.xlane.xlu0 %375  ;;  %v544_v7 = vadd.f32 1e-05, %v512_v1  ;;  %v434_v27 = vmul.f32 0.0078125, %v378_v31  ;;  %v591_v55 = vsub.f32 %v1496_v17, %v1722_v28 }
  0xda   : > { %v543_v24 = vadd.f32 1e-05, %v511_v32  ;;  %v433_v29 = vmul.f32 0.0078125, %v376_v53  ;;  %1156 = vmatmul.mubr.bf16.vlgmr.msra.gmra.mxu1 %v736_v6  ;;  %v608_v53 = vsub.f32 %v1504_v19, %v1732_v48  ;;  %v594_v19 = vsub.f32 %v1515_v22, %v1740_v54 }
  0xdb   : > { %1256 = vrsqrt.f32 %v544_v7  ;;  %v498_v36 = vsub.f32 %v434_v27, %v466_v5  ;;  %v607_v7 = vsub.f32 %v1507_v20, %v1734_v49  ;;  %v593_v20 = vsub.f32 %v1518_v23, %v1744_v35 }
  0xdc   : > { %v497_v2 = vsub.f32 %v433_v29, %v465_v13  ;;  %1258 = vrsqrt.f32 %v543_v24  ;;  %v410_v11 = vpop.xlane.xlu1 %409  ;;  %v610_v23 = vsub.f32 %v1526_v25, %v1758_v52  ;;  %v609_v35 = vsub.f32 %v1529_v26, %v1760_v30 }
  0xdd   : > { %v408_v10 = vpop.xlane.xlu0 %407  ;;  %v530_v0 = vadd.f32 1e-05, %v498_v36  ;;  %v450_v15 = vmul.f32 0.0078125, %v410_v11 }
  0xde   : > { %v529_v14 = vadd.f32 1e-05, %v497_v2  ;;  %v449_v33 = vmul.f32 0.0078125, %v408_v10 }
  0xdf   : > { %1260 = vrsqrt.f32 %v530_v0  ;;  %v514_v18 = vsub.f32 %v450_v15, %v482_v8 }
  0xe0   : > { %v513_v21 = vsub.f32 %v449_v33, %v481_v34  ;;  %1262 = vrsqrt.f32 %v529_v14  ;;  %v253_v37 = vpop.xlane.xlu1 %252 }
  0xe1   : > { %v251_v4 = vpop.xlane.xlu0 %250  ;;  %v546_v50 = vadd.f32 1e-05, %v514_v18  ;;  %v1780_v48 = vmul.f32 0.0078125, %v253_v37 }
  0xe2   : > { %v545_v12 = vadd.f32 1e-05, %v513_v21  ;;  %v1786_v15 = vmul.f32 0.0078125, %v251_v4 }
  0xe3   : > { %1264 = vrsqrt.f32 %v546_v50  ;;  %v468_v21 = vmul.f32 %v1780_v48, %v1780_v48 }
  0xe4   : > { %v1253_v5 = vpop.eup %1252  ;;  %1266 = vrsqrt.f32 %v545_v12  ;;  %v285_v39 = vpop.xlane.xlu1 %284  ;;  %v467_v25 = vmul.f32 %v1786_v15, %v1786_v15 }
  0xe5   : > { %v283_v13 = vpop.xlane.xlu0 %282  ;;  %v1255_v1 = vpop.eup %1254  ;;  %v624_v32 = vmul.f32 %v1253_v5, %v592_v51  ;;  %v1796_v37 = vmul.f32 0.0078125, %v285_v39 }
  0xe6   : > { %v623_v31 = vmul.f32 %v1255_v1, %v591_v55  ;;  %v1798_v50 = vmul.f32 0.0078125, %v283_v13 }
  0xe7   : > { %v662_v27 = vmul.f32 %v1699_v38, %v624_v32 }
  0xe8   : > { %v1257_v6 = vpop.eup %1256  ;;  %v257_v24 = vpop.xlane.xlu1 %256  ;;  %v661_v9 = vmul.f32 %v1699_v38, %v623_v31 }
  0xe9   : > { %v255_v16 = vpop.xlane.xlu0 %254  ;;  %v1259_v17 = vpop.eup %1258  ;;  %v640_v28 = vmul.f32 %v1257_v6, %v608_v53  ;;  %v700_v36 = vadd.f32 %v1706_v3, %v662_v27  ;;  %v1804_v31 = vmul.f32 0.0078125, %v257_v24 }
  0xea   : > { %v699_v29 = vadd.f32 %v1706_v3, %v661_v9  ;;  %v639_v2 = vmul.f32 %v1259_v17, %v607_v7  ;;  %v1808_v6 = vmul.f32 0.0078125, %v255_v16  ;;  %v484_v17 = vmul.f32 %v1796_v37, %v1796_v37 }
  0xeb   : > { %v678_v0 = vmul.f32 %v1699_v38, %v640_v28  ;;  %v483_v28 = vmul.f32 %v1798_v50, %v1798_v50 }
  0xec   : > { %v1261_v8 = vpop.eup %1260  ;;  %v289_v49 = vpop.xlane.xlu1 %288  ;;  %v729_v11 = vpack.c.bf16 %v700_v36, %v699_v29  ;;  %v677_v10 = vmul.f32 %v1699_v38, %v639_v2 }
  0xed   : > { %v287_v34 = vpop.xlane.xlu0 %286  ;;  %v1263_v14 = vpop.eup %1262  ;;  %v626_v33 = vmul.f32 %v1261_v8, %v594_v19  ;;  %v716_v54 = vadd.f32 %v1706_v3, %v678_v0 }
  0xee   : > { %1143 = vmatprep.mubr.bf16.mxu0 %v729_v11  ;;  %v715_v22 = vadd.f32 %v1706_v3, %v677_v10  ;;  %v625_v18 = vmul.f32 %v1263_v14, %v593_v20  ;;  %v470_v11 = vmul.f32 %v1804_v31, %v1804_v31  ;;  %v469_v14 = vmul.f32 %v1808_v6, %v1808_v6 }
  0xef   : > { %v664_v1 = vmul.f32 %v1699_v38, %v626_v33 }
  0xf0   : > { %v1265_v4 = vpop.eup %1264  ;;  %v382_v12 = vpop.xlane.xlu1 %381  ;;  %v737_v5 = vpack.c.bf16 %v716_v54, %v715_v22  ;;  %v663_v55 = vmul.f32 %v1699_v38, %v625_v18  ;;  %v1822_v54 = vmul.f32 0.0078125, %v289_v49  ;;  %v1824_v18 = vmul.f32 0.0078125, %v287_v34 }
  0xf1   : > { %v380_v51 = vpop.xlane.xlu0 %379  ;;  %v1267_v32 = vpop.eup %1266  ;;  %v436_v26 = vmul.f32 0.0078125, %v382_v12  ;;  %v642_v30 = vmul.f32 %v1265_v4, %v610_v23  ;;  %v702_v13 = vadd.f32 %v1706_v3, %v664_v1 }
  0xf2   : > { %v435_v52 = vmul.f32 0.0078125, %v380_v51  ;;  %1159 = vmatprep.mubr.bf16.mxu1 %v737_v5  ;;  %v701_v39 = vadd.f32 %v1706_v3, %v663_v55  ;;  %v641_v53 = vmul.f32 %v1267_v32, %v609_v35  ;;  %v486_v32 = vmul.f32 %v1822_v54, %v1822_v54 }
  0xf3   : > { %v500_v7 = vsub.f32 %v436_v26, %v468_v21  ;;  %v680_v27 = vmul.f32 %v1699_v38, %v642_v30  ;;  %v485_v49 = vmul.f32 %v1824_v18, %v1824_v18 }
  0xf4   : > { %v499_v9 = vsub.f32 %v435_v52, %v467_v25  ;;  %v414_v24 = vpop.xlane.xlu1 %413  ;;  %v730_v36 = vpack.c.bf16 %v702_v13, %v701_v39  ;;  %v679_v2 = vmul.f32 %v1699_v38, %v641_v53 }
  0xf5   : > { %v412_v29 = vpop.xlane.xlu0 %411  ;;  %v532_v19 = vadd.f32 1e-05, %v500_v7  ;;  %v452_v20 = vmul.f32 0.0078125, %v414_v24  ;;  %v718_v0 = vadd.f32 %v1706_v3, %v680_v27 }
  0xf6   : > { %v531_v8 = vadd.f32 1e-05, %v499_v9  ;;  %v451_v16 = vmul.f32 0.0078125, %v412_v29  ;;  %1144 = vmatmul.mubr.bf16.gmra.mxu0 %v730_v36  ;;  %v717_v10 = vadd.f32 %v1706_v3, %v679_v2  ;;  %v595_v29 = vsub.f32 %v1568_v41, %v1786_v15 }
  0xf7   : > { %1268 = vrsqrt.f32 %v532_v19  ;;  %v516_v33 = vsub.f32 %v452_v20, %v484_v17 }
  0xf8   : > { %v515_v22 = vsub.f32 %v451_v16, %v483_v28  ;;  %1270 = vrsqrt.f32 %v531_v8  ;;  %v386_v23 = vpop.xlane.xlu1 %385  ;;  %v738_v21 = vpack.c.bf16 %v718_v0, %v717_v10  ;;  %v596_v28 = vsub.f32 %v1565_v40, %v1780_v48 }
  0xf9   : > { %v384_v35 = vpop.xlane.xlu0 %383  ;;  %v548_v4 = vadd.f32 1e-05, %v516_v33  ;;  %v438_v51 = vmul.f32 0.0078125, %v386_v23  ;;  %v612_v16 = vsub.f32 %v1573_v42, %v1796_v37  ;;  %v611_v10 = vsub.f32 %v1576_v43, %v1798_v50 }
  0xfa   : > { %v547_v12 = vadd.f32 1e-05, %v515_v22  ;;  %v437_v5 = vmul.f32 0.0078125, %v384_v35  ;;  %1160 = vmatmul.mubr.bf16.gmra.mxu1 %v738_v21  ;;  %v598_v42 = vsub.f32 %v1581_v44, %v1804_v31  ;;  %v597_v43 = vsub.f32 %v1584_v45, %v1808_v6 }
  0xfb   : > { %1272 = vrsqrt.f32 %v548_v4  ;;  %v502_v55 = vsub.f32 %v438_v51, %v470_v11  ;;  %v614_v45 = vsub.f32 %v1589_v46, %v1822_v54  ;;  %v613_v6 = vsub.f32 %v1592_v47, %v1824_v18 }
  0xfc   : > { %v501_v1 = vsub.f32 %v437_v5, %v469_v14  ;;  %1274 = vrsqrt.f32 %v547_v12  ;;  %v418_v34 = vpop.xlane.xlu1 %417 }
  0xfd   : > { %v416_v25 = vpop.xlane.xlu0 %415  ;;  %v534_v26 = vadd.f32 1e-05, %v502_v55  ;;  %v454_v30 = vmul.f32 0.0078125, %v418_v34 }
  0xfe   : > { %v533_v52 = vadd.f32 1e-05, %v501_v1  ;;  %v453_v39 = vmul.f32 0.0078125, %v416_v25 }
  0xff   : > { %1276 = vrsqrt.f32 %v534_v26  ;;  %v518_v13 = vsub.f32 %v454_v30, %v486_v32 }
 0x100   : > { %v517_v53 = vsub.f32 %v453_v39, %v485_v49  ;;  %1278 = vrsqrt.f32 %v533_v52  ;;  %v261_v7 = vpop.xlane.xlu1 %260 }
 0x101   : > { %v259_v9 = vpop.xlane.xlu0 %258  ;;  %v550_v27 = vadd.f32 1e-05, %v518_v13  ;;  %v1844_v37 = vmul.f32 0.0078125, %v261_v7 }
 0x102   : > { %v549_v17 = vadd.f32 1e-05, %v517_v53  ;;  %v1850_v55 = vmul.f32 0.0078125, %v259_v9 }
 0x103   : > { %1280 = vrsqrt.f32 %v550_v27  ;;  %v472_v49 = vmul.f32 %v1844_v37, %v1844_v37 }
 0x104   : > { %v1269_v24 = vpop.eup %1268  ;;  %1282 = vrsqrt.f32 %v549_v17  ;;  %v293_v36 = vpop.xlane.xlu1 %292  ;;  %v471_v46 = vmul.f32 %v1850_v55, %v1850_v55 }
 0x105   : > { %v291_v2 = vpop.xlane.xlu0 %290  ;;  %v1271_v19 = vpop.eup %1270  ;;  %v628_v8 = vmul.f32 %v1269_v24, %v596_v28  ;;  %v1860_v34 = vmul.f32 0.0078125, %v293_v36 }
 0x106   : > { %v627_v20 = vmul.f32 %v1271_v19, %v595_v29  ;;  %v1862_v26 = vmul.f32 0.0078125, %v291_v2 }
 0x107   : > { %v666_v14 = vmul.f32 %v1699_v38, %v628_v8  ;;  %v488_v19 = vmul.f32 %v1860_v34, %v1860_v34 }
 0x108   : > { %v1273_v11 = vpop.eup %1272  ;;  %v265_v0 = vpop.xlane.xlu1 %264  ;;  %v665_v48 = vmul.f32 %v1699_v38, %v627_v20  ;;  %v487_v8 = vmul.f32 %v1862_v26, %v1862_v26 }
 0x109   : > { %v263_v40 = vpop.xlane.xlu0 %262  ;;  %v1275_v41 = vpop.eup %1274  ;;  %v644_v15 = vmul.f32 %v1273_v11, %v612_v16  ;;  %v704_v22 = vadd.f32 %v1706_v3, %v666_v14  ;;  %v1868_v9 = vmul.f32 0.0078125, %v265_v0 }
 0x10a   : > { %v703_v33 = vadd.f32 %v1706_v3, %v665_v48  ;;  %v643_v23 = vmul.f32 %v1275_v41, %v611_v10  ;;  %v1872_v24 = vmul.f32 0.0078125, %v263_v40 }
 0x10b   : > { %v682_v51 = vmul.f32 %v1699_v38, %v644_v15  ;;  %v474_v41 = vmul.f32 %v1868_v9, %v1868_v9 }
 0x10c   : > { %v1277_v35 = vpop.eup %1276  ;;  %v297_v50 = vpop.xlane.xlu1 %296  ;;  %v731_v4 = vpack.c.bf16 %v704_v22, %v703_v33  ;;  %v681_v12 = vmul.f32 %v1699_v38, %v643_v23  ;;  %v473_v22 = vmul.f32 %v1872_v24, %v1872_v24 }
 0x10d   : > { %v295_v21 = vpop.xlane.xlu0 %294  ;;  %v1279_v5 = vpop.eup %1278  ;;  %v630_v1 = vmul.f32 %v1277_v35, %v598_v42  ;;  %v720_v31 = vadd.f32 %v1706_v3, %v682_v51  ;;  %v1886_v35 = vmul.f32 0.0078125, %v297_v50 }
 0x10e   : > { %1147 = vmatprep.mubr.bf16.mxu0 %v731_v4  ;;  %v719_v44 = vadd.f32 %v1706_v3, %v681_v12  ;;  %v629_v32 = vmul.f32 %v1279_v5, %v597_v43  ;;  %v1888_v43 = vmul.f32 0.0078125, %v295_v21 }
 0x10f   : > { %v668_v53 = vmul.f32 %v1699_v38, %v630_v1 }
 0x110   : > { %v1281_v25 = vpop.eup %1280  ;;  %v390_v52 = vpop.xlane.xlu1 %389  ;;  %v739_v39 = vpack.c.bf16 %v720_v31, %v719_v44  ;;  %v667_v13 = vmul.f32 %v1699_v38, %v629_v32  ;;  %v489_v50 = vmul.f32 %v1888_v43, %v1888_v43 }
 0x111   : > { %v388_v30 = vpop.xlane.xlu0 %387  ;;  %v1283_v7 = vpop.eup %1282  ;;  %v440_v47 = vmul.f32 0.0078125, %v390_v52  ;;  %v646_v18 = vmul.f32 %v1281_v25, %v614_v45  ;;  %v706_v17 = vadd.f32 %v1706_v3, %v668_v53 }
 0x112   : > { %v439_v54 = vmul.f32 0.0078125, %v388_v30  ;;  %1163 = vmatprep.mubr.bf16.mxu1 %v739_v39  ;;  %v705_v27 = vadd.f32 %v1706_v3, %v667_v13  ;;  %v645_v28 = vmul.f32 %v1283_v7, %v613_v6  ;;  %v490_v6 = vmul.f32 %v1886_v35, %v1886_v35 }
 0x113   : > { %v504_v29 = vsub.f32 %v440_v47, %v472_v49  ;;  %v684_v2 = vmul.f32 %v1699_v38, %v646_v18  ;;  %v600_v47 = vsub.f32 %v1613_v56, %v1844_v37  ;;  %v599_v18 = vsub.f32 %v1616_v57, %v1850_v55 }
 0x114   : > { %v503_v36 = vsub.f32 %v439_v54, %v471_v46  ;;  %v422_v20 = vpop.xlane.xlu1 %421  ;;  %v732_v11 = vpack.c.bf16 %v706_v17, %v705_v27  ;;  %v683_v10 = vmul.f32 %v1699_v38, %v645_v28 }
 0x115   : > { %v420_v16 = vpop.xlane.xlu0 %419  ;;  %v536_v0 = vadd.f32 1e-05, %v504_v29  ;;  %v456_v14 = vmul.f32 0.0078125, %v422_v20  ;;  %v722_v33 = vadd.f32 %v1706_v3, %v684_v2  ;;  %v616_v29 = vsub.f32 %v1621_v58, %v1860_v34 }
 0x116   : > { %v535_v48 = vadd.f32 1e-05, %v503_v36  ;;  %v455_v40 = vmul.f32 0.0078125, %v420_v16  ;;  %1148 = vmatmul.mubr.bf16.gmra.mxu0 %v732_v11  ;;  %v721_v15 = vadd.f32 %v1706_v3, %v683_v10  ;;  %v602_v16 = vsub.f32 %v1629_v60, %v1868_v9 }
 0x117   : > { %1284 = vrsqrt.f32 %v536_v0  ;;  %v520_v23 = vsub.f32 %v456_v14, %v488_v19  ;;  %v615_v19 = vsub.f32 %v1624_v59, %v1862_v26  ;;  %v601_v11 = vsub.f32 %v1632_v61, %v1872_v24 }
 0x118   : > { %v519_v42 = vsub.f32 %v455_v40, %v487_v8  ;;  %1286 = vrsqrt.f32 %v535_v48  ;;  %v394_v4 = vpop.xlane.xlu1 %393  ;;  %v740_v51 = vpack.c.bf16 %v722_v33, %v721_v15  ;;  %v618_v60 = vsub.f32 %v1637_v62, %v1886_v35 }
 0x119   : > { %v392_v12 = vpop.xlane.xlu0 %391  ;;  %v552_v5 = vadd.f32 1e-05, %v520_v23  ;;  %v442_v44 = vmul.f32 0.0078125, %v394_v4  ;;  %v617_v61 = vsub.f32 %v1640_v63, %v1888_v43 }
 0x11a   : > { %v551_v1 = vadd.f32 1e-05, %v519_v42  ;;  %v441_v31 = vmul.f32 0.0078125, %v392_v12  ;;  %1164 = vmatmul.mubr.bf16.gmra.mxu1 %v740_v51 }
 0x11b   : > { %1288 = vrsqrt.f32 %v552_v5  ;;  %v506_v32 = vsub.f32 %v442_v44, %v474_v41 }
 0x11c   : > { %v505_v45 = vsub.f32 %v441_v31, %v473_v22  ;;  %1290 = vrsqrt.f32 %v551_v1  ;;  %v426_v21 = vpop.xlane.xlu1 %425 }
 0x11d   : > { %v424_v49 = vpop.xlane.xlu0 %423  ;;  %v538_v25 = vadd.f32 1e-05, %v506_v32  ;;  %v458_v30 = vmul.f32 0.0078125, %v426_v21 }
 0x11e   : > { %v537_v52 = vadd.f32 1e-05, %v505_v45  ;;  %v457_v39 = vmul.f32 0.0078125, %v424_v49 }
 0x11f   : > { %1292 = vrsqrt.f32 %v538_v25  ;;  %v522_v13 = vsub.f32 %v458_v30, %v490_v6 }
 0x120   : > { %v521_v53 = vsub.f32 %v457_v39, %v489_v50  ;;  %1294 = vrsqrt.f32 %v537_v52 }
 0x121   : > { %v554_v7 = vadd.f32 1e-05, %v522_v13 }
 0x122   : > { %v553_v46 = vadd.f32 1e-05, %v521_v53 }
 0x123   : > { %1296 = vrsqrt.f32 %v554_v7 }
 0x124   : > { %v1285_v54 = vpop.eup %1284  ;;  %1298 = vrsqrt.f32 %v553_v46 }
 0x125   : > { %v1287_v27 = vpop.eup %1286  ;;  %v632_v17 = vmul.f32 %v1285_v54, %v600_v47 }
 0x126   : > { %v631_v28 = vmul.f32 %v1287_v27, %v599_v18 }
 0x127   : > { %v670_v36 = vmul.f32 %v1699_v38, %v632_v17 }
 0x128   : > { %v1289_v2 = vpop.eup %1288  ;;  %v669_v56 = vmul.f32 %v1699_v38, %v631_v28 }
 0x129   : > { %v1291_v37 = vpop.eup %1290  ;;  %v708_v8 = vadd.f32 %v1706_v3, %v670_v36  ;;  %v648_v20 = vmul.f32 %v1289_v2, %v616_v29 }
 0x12a   : > { %v707_v57 = vadd.f32 %v1706_v3, %v669_v56  ;;  %v647_v55 = vmul.f32 %v1291_v37, %v615_v19 }
 0x12b   : > { %v686_v58 = vmul.f32 %v1699_v38, %v648_v20 }
 0x12c   : > { %v1293_v34 = vpop.eup %1292  ;;  %v733_v10 = vpack.c.bf16 %v708_v8, %v707_v57  ;;  %v685_v59 = vmul.f32 %v1699_v38, %v647_v55 }
 0x12d   : > { %v1295_v26 = vpop.eup %1294  ;;  %v724_v0 = vadd.f32 %v1706_v3, %v686_v58  ;;  %v634_v48 = vmul.f32 %v1293_v34, %v602_v16 }
 0x12e   : > { %1151 = vmatprep.mubr.bf16.mxu0 %v733_v10  ;;  %v723_v14 = vadd.f32 %v1706_v3, %v685_v59  ;;  %v633_v40 = vmul.f32 %v1295_v26, %v601_v11 }
 0x12f   : > { %v672_v9 = vmul.f32 %v1699_v38, %v634_v48 }
 0x130   : > { %v1297_v41 = vpop.eup %1296  ;;  %v741_v24 = vpack.c.bf16 %v724_v0, %v723_v14  ;;  %v671_v15 = vmul.f32 %v1699_v38, %v633_v40 }
 0x131   : > { %v1299_v33 = vpop.eup %1298  ;;  %v710_v22 = vadd.f32 %v1706_v3, %v672_v9  ;;  %v650_v23 = vmul.f32 %v1297_v41, %v618_v60 }
 0x132   : > { %1167 = vmatprep.mubr.bf16.mxu1 %v741_v24  ;;  %v709_v42 = vadd.f32 %v1706_v3, %v671_v15  ;;  %v649_v4 = vmul.f32 %v1299_v33, %v617_v61 }
 0x133   : > { %v688_v62 = vmul.f32 %v1699_v38, %v650_v23 }
 0x134   : > { %v734_v35 = vpack.c.bf16 %v710_v22, %v709_v42  ;;  %v687_v12 = vmul.f32 %v1699_v38, %v649_v4 }
 0x135   : > { %v726_v63 = vadd.f32 %v1706_v3, %v688_v62 }
 0x136   : > { %1152 = vmatmul.mubr.bf16.gmra.mxu0 %v734_v35  ;;  %v725_v43 = vadd.f32 %v1706_v3, %v687_v12 }
 0x138   : > { %v742_v51 = vpack.c.bf16 %v726_v63, %v725_v43 }
 0x13a   : > { %1168 = vmatmul.mubr.bf16.gmra.mxu1 %v742_v51 }
 0x196   : > { %v1141_v5 = vpop.f32.mrf.mxu0 }
 0x197   : > { %970 = vst [vmem:[%s1929_s11 + $0x10] sm:$0xff] %v1141_v5 }
 0x198   : > { %v841_v38 = vpop.f32.mrf.mxu0 }
 0x199   : > { %968 = vst [vmem:[%s1929_s11] sm:$0xff] %v841_v38 }
 0x19a   : > { %v1142_v3 = vpop.f32.mrf.mxu0  ;;  %v1157_v1 = vpop.f32.mrf.mxu1 }
 0x19b   : > { %971 = vst [vmem:[%s1929_s11 + $0x18] sm:$0xff] %v1142_v3  ;;  %986 = vst [vmem:[%s1929_s11 + $0x90] sm:$0xff] %v1157_v1 }
 0x19c   : > { %v844_v44 = vpop.f32.mrf.mxu0  ;;  %v905_v31 = vpop.f32.mrf.mxu1 }
 0x19d   : > { %969 = vst [vmem:[%s1929_s11 + $0x8] sm:$0xff] %v844_v44  ;;  %984 = vst [vmem:[%s1929_s11 + $0x80] sm:$0xff] %v905_v31 }
 0x19e   : > { %v1158_v32 = vpop.f32.mrf.mxu1 }
 0x19f   : > { %987 = vst [vmem:[%s1929_s11 + $0x98] sm:$0xff] %v1158_v32 }
 0x1a0   : > { %v908_v45 = vpop.f32.mrf.mxu1 }
 0x1a1   : > { %985 = vst [vmem:[%s1929_s11 + $0x88] sm:$0xff] %v908_v45 }
 0x1b6   : > { %v1145_v6 = vpop.f32.mrf.mxu0 }
 0x1b7   : > { %974 = vst [vmem:[%s1929_s11 + $0x30] sm:$0xff] %v1145_v6 }
 0x1b8   : > { %v857_v50 = vpop.f32.mrf.mxu0 }
 0x1b9   : > { %972 = vst [vmem:[%s1929_s11 + $0x20] sm:$0xff] %v857_v50 }
 0x1ba   : > { %v1146_v21 = vpop.f32.mrf.mxu0  ;;  %v1161_v49 = vpop.f32.mrf.mxu1 }
 0x1bb   : > { %975 = vst [vmem:[%s1929_s11 + $0x38] sm:$0xff] %v1146_v21  ;;  %990 = vst [vmem:[%s1929_s11 + $0xb0] sm:$0xff] %v1161_v49 }
 0x1bc   : > { %v860_v25 = vpop.f32.mrf.mxu0  ;;  %v921_v52 = vpop.f32.mrf.mxu1 }
 0x1bd   : > { %973 = vst [vmem:[%s1929_s11 + $0x28] sm:$0xff] %v860_v25  ;;  %988 = vst [vmem:[%s1929_s11 + $0xa0] sm:$0xff] %v921_v52 }
 0x1be   : > { %v1162_v30 = vpop.f32.mrf.mxu1 }
 0x1bf   : > { %991 = vst [vmem:[%s1929_s11 + $0xb8] sm:$0xff] %v1162_v30 }
 0x1c0   : > { %v924_v39 = vpop.f32.mrf.mxu1 }
 0x1c1   : > { %989 = vst [vmem:[%s1929_s11 + $0xa8] sm:$0xff] %v924_v39 }
 0x1d6   : > { %v1149_v13 = vpop.f32.mrf.mxu0 }
 0x1d7   : > { %978 = vst [vmem:[%s1929_s11 + $0x50] sm:$0xff] %v1149_v13 }
 0x1d8   : > { %v873_v53 = vpop.f32.mrf.mxu0 }
 0x1d9   : > { %976 = vst [vmem:[%s1929_s11 + $0x40] sm:$0xff] %v873_v53 }
 0x1da   : > { %v1150_v7 = vpop.f32.mrf.mxu0  ;;  %v1165_v46 = vpop.f32.mrf.mxu1 }
 0x1db   : > { %979 = vst [vmem:[%s1929_s11 + $0x58] sm:$0xff] %v1150_v7  ;;  %994 = vst [vmem:[%s1929_s11 + $0xd0] sm:$0xff] %v1165_v46 }
 0x1dc   : > { %v876_v47 = vpop.f32.mrf.mxu0  ;;  %v937_v54 = vpop.f32.mrf.mxu1 }
 0x1dd   : > { %977 = vst [vmem:[%s1929_s11 + $0x48] sm:$0xff] %v876_v47  ;;  %992 = vst [vmem:[%s1929_s11 + $0xc0] sm:$0xff] %v937_v54 }
 0x1de   : > { %v1166_v18 = vpop.f32.mrf.mxu1 }
 0x1df   : > { %995 = vst [vmem:[%s1929_s11 + $0xd8] sm:$0xff] %v1166_v18 }
 0x1e0   : > { %v940_v27 = vpop.f32.mrf.mxu1 }
 0x1e1   : > { %993 = vst [vmem:[%s1929_s11 + $0xc8] sm:$0xff] %v940_v27 }
 0x1f6   : > { %v1153_v17 = vpop.f32.mrf.mxu0 }
 0x1f7   : > { %982 = vst [vmem:[%s1929_s11 + $0x70] sm:$0xff] %v1153_v17 }
 0x1f8   : > { %v889_v28 = vpop.f32.mrf.mxu0 }
 0x1f9   : > { %980 = vst [vmem:[%s1929_s11 + $0x60] sm:$0xff] %v889_v28 }
 0x1fa   : > { %v1154_v29 = vpop.f32.mrf.mxu0  ;;  %v1169_v36 = vpop.f32.mrf.mxu1 }
 0x1fb   : > { %983 = vst [vmem:[%s1929_s11 + $0x78] sm:$0xff] %v1154_v29  ;;  %998 = vst [vmem:[%s1929_s11 + $0xf0] sm:$0xff] %v1169_v36 }
 0x1fc   : > { %v892_v2 = vpop.f32.mrf.mxu0  ;;  %v953_v19 = vpop.f32.mrf.mxu1 }
 0x1fd   : > { %981 = vst [vmem:[%s1929_s11 + $0x68] sm:$0xff] %v892_v2  ;;  %996 = vst [vmem:[%s1929_s11 + $0xe0] sm:$0xff] %v953_v19 }
 0x1fe   : > { %v1170_v56 = vpop.f32.mrf.mxu1 }
 0x1ff   : > { %999 = vst [vmem:[%s1929_s11 + $0xf8] sm:$0xff] %v1170_v56 }
 0x200   : > { %v956_v37 = vpop.f32.mrf.mxu1 }
 0x201   : > { %997 = vst [vmem:[%s1929_s11 + $0xe8] sm:$0xff] %v956_v37 }
 0x202   : > { %1313 = shalt.err (!%p1310_p3)
}
 0x203   : > { %s1314_s30 = scalar_lea.hbm %s1966_s22, 4096  ;;  %s1318_s7 = scalar_lea.hbm %s2018_s4, 8192 }
 0x204   : > { %p1315_p4 = scmp.ne.s32.totalorder %s1966_s22, %s1314_s30  ;;  %p1319_p9 = scmp.lt.s32.totalorder %s1966_s22, %s2018_s4 }
 0x205   : > { %p1320_p10 = scmp.lt.s32.totalorder %s1318_s7, %s1314_s30 }
 0x206   : > { %p1316_p7 = pnand %p1315_p4, %p1428_p5 }
 0x207   : > { %p1321_p11 = por %p1320_p10, %p1319_p9 }
 0x208   : > { %p1317_p8 = pneg %p1316_p7 }
 0x20a   : > { %p1322_p12 = pnand %p1321_p11, %p1317_p8 }
 0x20c   : > { %1325 = shalt.err (!%p1322_p12)
}
 0x20d   : > { %s1363_s10 = smov 128   ;;  %s1364_s11 = smov 8  }
 0x20e   : > { %1187 = dma.vmem_to_hbm [thread:$0]  (%p1428_p5), %s1968_s13, 4096, %s1966_s22, %s1974_s19, %s1363_s10, %s1363_s10, %s1364_s11  }
 0x20f PF: > { %p1193_p13 = scmp.ge.s32.totalorder %s1360_s18, 2  ;;  %s1029_s12 = sand.u32 1, %s1348_s15  }
 0x210   : > { %s1030_s14 = scalar_lea.sflag [#allocation3], %s1029_s12 }
 0x211   : > { %p1190_p0 = pnand %p1193_p13, %p1432_p6 }
 0x213   : > { %p1191_p1 = pneg %p1190_p0 }
 0x215   : > { %1343 = dma.done.wait (%p1191_p1), %s1030_s14, 4096  }
 0x216   : > { %1345 = vsyncadd (%p1191_p1), %s1030_s14, 4294963200  ;;  %p14_p2 = scmp.ge.s32.totalorder %s1415_s21, 4   ;;  %s2021_s15 = smov %s1352_s16 }
 0x217   : > { %s2022_s16 = smov %s1356_s17  ;;  %s2023_s17 = smov %s1426_s24 }
 0x218   : > { %s2024_s18 = smov %s1415_s21  ;;  %16 = sbr.rel (!%p14_p2) target bundleno = 3 (0x3), region = 71 }
 0x21d   :  { %1035 = vsyncpa [#allocation3], 1 }
 0x21e   :  { %1037 = vsyncpa [#allocation3 + $0x1], 1 }

// kernel: transformer_forward.5
= control target key start
LH: loop header
LB: loop body
LE: loop exit
PB: predicated region body
PF: predicated region fallthrough
CT: control target
= control target key end

     0   :  { %s2145_s18 = smov 0   ;;  %s2921_s0 = inlined_call_operand.vmem [shape: f32[512,128], index: 0, kind: input, shape index: {}]   ;;  %s2922_s1 = inlined_call_operand.vmem [shape: f32[1,128], index: 1, kind: input, shape index: {}]   ;;  %s2923_s2 = inlined_call_operand.vmem [shape: f32[1,128], index: 2, kind: input, shape index: {}]   ;;  %s2924_s3 = inlined_call_operand.vmem [shape: bf16[128,384], index: 3, kind: input, shape index: {}]   ;;  %s2925_s4 = inlined_call_operand.vmem [shape: f32[1,384], index: 4, kind: input, shape index: {}]   ;;  %s2926_s5 = inlined_call_operand.vmem [shape: bf16[512,384], index: 5, kind: output, shape index: {}]  }
   0x1 LB: > { %s1747_s19 = sadd.s32 4294967295, %s2112_s18   ;;  %p1751_p0 = scmp.ge.s32.totalorder %s2112_s18, 1  ;;  %s2112_s18 = sphi %s2145_s18, %s15_s18  }
   0x2   : > { %p188_p1 = scmp.lt.s32.totalorder %s2112_s18, 3 }
   0x4   : > { %p189_p2 = pnand %p1751_p0, %p188_p1 }
   0x5   : > { %s1752_s20 = sshll.u32 (!%p189_p2), %s1747_s19, 5 }
   0x6   : > { %192 = sbr.rel (%p189_p2) target bundleno = 526 (0x20e), region = 40  ;;  %p218_p3 = scmp.lt.s32.totalorder (!%p189_p2), %s1752_s20, 63 }
   0xb   : > { %s2928_s20 = smov (!%p218_p3, %s1752_s20), 63  ;;  %v2010_v10 = vld [vmem:[%s2924_s3 + $0xac] ss:$12 sps:$4 sm:$0xff]   ;;  %v2012_v11 = vld [vmem:[%s2924_s3 + $0xa8] ss:$12 sps:$4 sm:$0xff]   ;;  %v2114_v42 = vmov 0  }
   0xc   : > { %s1753_s21 = sshll.u32 %s2928_s20, 3  ;;  %951 = vmatprep.subr.bf16.mxu0 %v2010_v10  ;;  %1984 = vmatprep.subr.bf16.mxu1 %v2010_v10  ;;  %v2013_v14 = vld [vmem:[%s2924_s3 + $0x94] ss:$12 sps:$4 sm:$0xff]   ;;  %v2015_v15 = vld [vmem:[%s2924_s3 + $0x90] ss:$12 sps:$4 sm:$0xff]   ;;  %s2000_s9 = smul.u32 12, %s2928_s20 }
   0xd   : > { %s2159_s24 = scalar_lea.vmem %s2921_s0, %s1753_s21  ;;  %952 = vmatpush1.bf16.msra.mxu0 %v2012_v11  ;;  %1992 = vmatpush1.bf16.msra.mxu1 %v2012_v11  ;;  %v2016_v18 = vld [vmem:[%s2924_s3 + $0x7c] ss:$12 sps:$4 sm:$0xff]   ;;  %v2018_v19 = vld [vmem:[%s2924_s3 + $0x78] ss:$12 sps:$4 sm:$0xff]   ;;  %v2021_v23 = vld [vmem:[%s2924_s3 + $0x60] ss:$12 sps:$4 sm:$0xff]  }
   0xe   : > { %v2162_v0 = vld [vmem:[%s2159_s24 + $0xc0] sm:$0xff]  ;;  %v2170_v2 = vld [vmem:[%s2159_s24 + $0xc8] sm:$0xff]  ;;  %v2186_v8 = vld [vmem:[%s2159_s24 + $0x18] sm:$0xff]  ;;  %953 = vmatprep.subr.bf16.mxu0 %v2013_v14  ;;  %1985 = vmatprep.subr.bf16.mxu1 %v2013_v14 }
   0xf   : > { %v2165_v1 = vld [vmem:[%s2159_s24] sm:$0xff]  ;;  %313 = vadd.xlane.f32.xlu1 %v2162_v0  ;;  %v2173_v3 = vld [vmem:[%s2159_s24 + $0x8] sm:$0xff]  ;;  %v387_v6 = vmul.f32 %v2170_v2, %v2170_v2  ;;  %v386_v7 = vmul.f32 %v2162_v0, %v2162_v0  ;;  %v2189_v9 = vld [vmem:[%s2159_s24 + $0x10] sm:$0xff]  ;;  %v365_v16 = vmul.f32 %v2186_v8, %v2186_v8  ;;  %983 = vmatprep.mubr.bf16.mxu0 %v2114_v42 }
  0x10   : > { %265 = vadd.xlane.f32.xlu0 %v2165_v1  ;;  %v363_v4 = vmul.f32 %v2173_v3, %v2173_v3  ;;  %v362_v5 = vmul.f32 %v2165_v1, %v2165_v1  ;;  %v2200_v12 = vld [vmem:[%s2159_s24 + $0xd8] sm:$0xff]  ;;  %v2203_v13 = vld [vmem:[%s2159_s24 + $0xd0] sm:$0xff]  ;;  %v364_v17 = vmul.f32 %v2189_v9, %v2189_v9  ;;  %v2234_v24 = vld [vmem:[%s2159_s24 + $0x28] sm:$0xff]  ;;  %1103 = vmatprep.mubr.bf16.mxu1 %v2114_v42 }
  0x11   : > { %954 = vmatpush1.bf16.msra.mxu0 %v2015_v15  ;;  %1993 = vmatpush1.bf16.msra.mxu1 %v2015_v15  ;;  %v389_v20 = vmul.f32 %v2200_v12, %v2200_v12  ;;  %v388_v21 = vmul.f32 %v2203_v13, %v2203_v13  ;;  %v2019_v22 = vld [vmem:[%s2924_s3 + $0x64] ss:$12 sps:$4 sm:$0xff]   ;;  %v2022_v26 = vld [vmem:[%s2924_s3 + $0x4c] ss:$12 sps:$4 sm:$0xff]   ;;  %v2024_v27 = vld [vmem:[%s2924_s3 + $0x48] ss:$12 sps:$4 sm:$0xff]   ;;  %v367_v32 = vmul.f32 %v2234_v24, %v2234_v24 }
  0x12   : > { %955 = vmatprep.subr.bf16.mxu0 %v2016_v18  ;;  %1986 = vmatprep.subr.bf16.mxu1 %v2016_v18  ;;  %v2237_v25 = vld [vmem:[%s2159_s24 + $0x20] sm:$0xff]  ;;  %v2248_v28 = vld [vmem:[%s2159_s24 + $0xe8] sm:$0xff]  ;;  %v2027_v31 = vld [vmem:[%s2924_s3 + $0x30] ss:$12 sps:$4 sm:$0xff]  }
  0x13   : > { %315 = vadd.xlane.f32.xlu1 %v2170_v2  ;;  %v2251_v29 = vld [vmem:[%s2159_s24 + $0xe0] sm:$0xff]  ;;  %v366_v33 = vmul.f32 %v2237_v25, %v2237_v25  ;;  %v2028_v34 = vld [vmem:[%s2924_s3 + $0x1c] ss:$12 sps:$4 sm:$0xff]   ;;  %v391_v36 = vmul.f32 %v2248_v28, %v2248_v28  ;;  %v2285_v41 = vld [vmem:[%s2159_s24 + $0x30] sm:$0xff] }
  0x14   : > { %267 = vadd.xlane.f32.xlu0 %v2173_v3  ;;  %v2025_v30 = vld [vmem:[%s2924_s3 + $0x34] ss:$12 sps:$4 sm:$0xff]   ;;  %v2030_v35 = vld [vmem:[%s2924_s3 + $0x18] ss:$12 sps:$4 sm:$0xff]   ;;  %v390_v37 = vmul.f32 %v2251_v29, %v2251_v29  ;;  %v368_v46 = vmul.f32 %v2285_v41, %v2285_v41  ;;  %v2308_v49 = vld [vmem:[%s2159_s24 + $0x48] sm:$0xff] }
  0x15   : > { %956 = vmatpush1.bf16.msra.mxu0 %v2018_v19  ;;  %1994 = vmatpush1.bf16.msra.mxu1 %v2018_v19  ;;  %v2031_v38 = vld [vmem:[%s2924_s3 + $0x4] ss:$12 sps:$4 sm:$0xff]   ;;  %v2033_v39 = vld [vmem:[%s2924_s3] ss:$12 sps:$4 sm:$0xff]   ;;  %v2282_v40 = vld [vmem:[%s2159_s24 + $0x38] sm:$0xff]  ;;  %v371_v51 = vmul.f32 %v2308_v49, %v2308_v49 }
  0x16   : > { %957 = vmatprep.subr.bf16.mxu0 %v2019_v22  ;;  %1987 = vmatprep.subr.bf16.mxu1 %v2019_v22  ;;  %v2292_v43 = vld [vmem:[%s2159_s24 + $0xf8] sm:$0xff]  ;;  %v2295_v44 = vld [vmem:[%s2159_s24 + $0xf0] sm:$0xff]  ;;  %v369_v45 = vmul.f32 %v2282_v40, %v2282_v40  ;;  %v2311_v50 = vld [vmem:[%s2159_s24 + $0x40] sm:$0xff] }
  0x17   : > { %396 = vadd.xlane.f32.xlu1 %v363_v4  ;;  %v393_v47 = vmul.f32 %v2292_v43, %v2292_v43  ;;  %v392_v48 = vmul.f32 %v2295_v44, %v2295_v44  ;;  %v370_v52 = vmul.f32 %v2311_v50, %v2311_v50  ;;  %v2320_v53 = vld [vmem:[%s2159_s24 + $0x58] sm:$0xff]  ;;  %v2323_v54 = vld [vmem:[%s2159_s24 + $0x50] sm:$0xff]  ;;  %v2337_v58 = vld [vmem:[%s2159_s24 + $0x68] sm:$0xff] }
  0x18   : > { %394 = vadd.xlane.f32.xlu0 %v362_v5  ;;  %v373_v55 = vmul.f32 %v2320_v53, %v2320_v53  ;;  %v372_v56 = vmul.f32 %v2323_v54, %v2323_v54  ;;  %v2334_v57 = vld [vmem:[%s2924_s3 + $0xb0] ss:$12 sps:$4 sm:$0xff]   ;;  %v2340_v59 = vld [vmem:[%s2159_s24 + $0x60] sm:$0xff]  ;;  %v375_v60 = vmul.f32 %v2337_v58, %v2337_v58  ;;  %v2386_v18 = vld [vmem:[%s2159_s24 + $0xa8] sm:$0xff] }
  0x19   : > { %958 = vmatpush1.bf16.msra.mxu0 %v2021_v23  ;;  %1995 = vmatpush1.bf16.msra.mxu1 %v2021_v23  ;;  %v374_v61 = vmul.f32 %v2340_v59, %v2340_v59  ;;  %v2350_v62 = vld [vmem:[%s2159_s24 + $0x78] sm:$0xff]  ;;  %v2353_v63 = vld [vmem:[%s2159_s24 + $0x70] sm:$0xff]  ;;  %v2389_v19 = vld [vmem:[%s2159_s24 + $0xa0] sm:$0xff]  ;;  %v383_v22 = vmul.f32 %v2386_v18, %v2386_v18 }
  0x1a   : > { %959 = vmatprep.subr.bf16.mxu0 %v2022_v26  ;;  %1988 = vmatprep.subr.bf16.mxu1 %v2022_v26  ;;  %v377_v4 = vmul.f32 %v2350_v62, %v2350_v62  ;;  %v376_v5 = vmul.f32 %v2353_v63, %v2353_v63  ;;  %v2370_v10 = vld [vmem:[%s2159_s24 + $0x98] sm:$0xff]  ;;  %v2373_v11 = vld [vmem:[%s2159_s24 + $0x90] sm:$0xff]  ;;  %v382_v23 = vmul.f32 %v2389_v19, %v2389_v19 }
  0x1b   : > { %444 = vadd.xlane.f32.xlu1 %v387_v6  ;;  %v2362_v6 = vld [vmem:[%s2159_s24 + $0x88] sm:$0xff] }
  0x1c   : > { %442 = vadd.xlane.f32.xlu0 %v386_v7  ;;  %v2365_v7 = vld [vmem:[%s2159_s24 + $0x80] sm:$0xff]  ;;  %v379_v14 = vmul.f32 %v2362_v6, %v2362_v6 }
  0x1d   : > { %960 = vmatpush1.bf16.msra.mxu0 %v2024_v27  ;;  %1996 = vmatpush1.bf16.msra.mxu1 %v2024_v27  ;;  %v378_v15 = vmul.f32 %v2365_v7, %v2365_v7 }
  0x1e   : > { %961 = vmatprep.subr.bf16.mxu0 %v2025_v30  ;;  %1989 = vmatprep.subr.bf16.mxu1 %v2025_v30 }
  0x1f   : > { %271 = vadd.xlane.f32.xlu1 %v2186_v8 }
  0x20   : > { %269 = vadd.xlane.f32.xlu0 %v2189_v9 }
  0x21   : > { %962 = vmatpush1.bf16.msra.mxu0 %v2027_v31  ;;  %1997 = vmatpush1.bf16.msra.mxu1 %v2027_v31 }
  0x22   : > { %963 = vmatprep.subr.bf16.mxu0 %v2028_v34  ;;  %1990 = vmatprep.subr.bf16.mxu1 %v2028_v34 }
  0x23   : > { %319 = vadd.xlane.f32.xlu1 %v2200_v12 }
  0x24   : > { %317 = vadd.xlane.f32.xlu0 %v2203_v13 }
  0x25   : > { %964 = vmatpush1.bf16.msra.mxu0 %v2030_v35  ;;  %1998 = vmatpush1.bf16.msra.mxu1 %v2030_v35 }
  0x26   : > { %965 = vmatprep.subr.bf16.mxu0 %v2031_v38  ;;  %1991 = vmatprep.subr.bf16.mxu1 %v2031_v38 }
  0x27   : > { %400 = vadd.xlane.f32.xlu1 %v365_v16  ;;  %v381_v16 = vmul.f32 %v2370_v10, %v2370_v10 }
  0x28   : > { %398 = vadd.xlane.f32.xlu0 %v364_v17  ;;  %v380_v17 = vmul.f32 %v2373_v11, %v2373_v11 }
  0x29   : > { %966 = vmatpush1.bf16.msra.mxu0 %v2033_v39  ;;  %1999 = vmatpush1.bf16.msra.mxu1 %v2033_v39 }
  0x2a   : > { %1936 = vmatprep.subr.bf16.mxu1 %v2334_v57 }
  0x2b   : > { %448 = vadd.xlane.f32.xlu1 %v389_v20  ;;  %v2394_v20 = vld [vmem:[%s2159_s24 + $0xb8] sm:$0xff] }
  0x2c   : > { %446 = vadd.xlane.f32.xlu0 %v388_v21  ;;  %v2397_v21 = vld [vmem:[%s2159_s24 + $0xb0] sm:$0xff]  ;;  %v385_v26 = vmul.f32 %v2394_v20, %v2394_v20  ;;  %s2754_s24 = scalar_lea.vmem %s2926_s5, %s2000_s9 }
  0x2d   : > { %v384_v27 = vmul.f32 %v2397_v21, %v2397_v21 }
  0x2f   : > { %275 = vadd.xlane.f32.xlu1 %v2234_v24 }
  0x30   : > { %273 = vadd.xlane.f32.xlu0 %v2237_v25 }
  0x33   : > { %323 = vadd.xlane.f32.xlu1 %v2248_v28 }
  0x34   : > { %321 = vadd.xlane.f32.xlu0 %v2251_v29 }
  0x37   : > { %404 = vadd.xlane.f32.xlu1 %v367_v32 }
  0x38   : > { %402 = vadd.xlane.f32.xlu0 %v366_v33 }
  0x3b   : > { %452 = vadd.xlane.f32.xlu1 %v391_v36 }
  0x3c   : > { %450 = vadd.xlane.f32.xlu0 %v390_v37 }
  0x3f   : > { %279 = vadd.xlane.f32.xlu1 %v2282_v40 }
  0x40   : > { %277 = vadd.xlane.f32.xlu0 %v2285_v41 }
  0x43   : > { %327 = vadd.xlane.f32.xlu1 %v2292_v43 }
  0x44   : > { %325 = vadd.xlane.f32.xlu0 %v2295_v44 }
  0x47   : > { %408 = vadd.xlane.f32.xlu1 %v369_v45 }
  0x48   : > { %406 = vadd.xlane.f32.xlu0 %v368_v46 }
  0x4b   : > { %456 = vadd.xlane.f32.xlu1 %v393_v47 }
  0x4c   : > { %454 = vadd.xlane.f32.xlu0 %v392_v48 }
  0x4f   : > { %283 = vadd.xlane.f32.xlu1 %v2308_v49 }
  0x50   : > { %281 = vadd.xlane.f32.xlu0 %v2311_v50 }
  0x53   : > { %412 = vadd.xlane.f32.xlu1 %v371_v51 }
  0x54   : > { %410 = vadd.xlane.f32.xlu0 %v370_v52 }
  0x57   : > { %287 = vadd.xlane.f32.xlu1 %v2320_v53 }
  0x58   : > { %285 = vadd.xlane.f32.xlu0 %v2323_v54 }
  0x5b   : > { %416 = vadd.xlane.f32.xlu1 %v373_v55 }
  0x5c   : > { %414 = vadd.xlane.f32.xlu0 %v372_v56 }
  0x5f   : > { %291 = vadd.xlane.f32.xlu1 %v2337_v58 }
  0x60   : > { %289 = vadd.xlane.f32.xlu0 %v2340_v59 }
  0x63   : > { %420 = vadd.xlane.f32.xlu1 %v375_v60 }
  0x64   : > { %418 = vadd.xlane.f32.xlu0 %v374_v61 }
  0x67   : > { %295 = vadd.xlane.f32.xlu1 %v2350_v62 }
  0x68   : > { %293 = vadd.xlane.f32.xlu0 %v2353_v63 }
  0x6b   : > { %424 = vadd.xlane.f32.xlu1 %v377_v4 }
  0x6c   : > { %422 = vadd.xlane.f32.xlu0 %v376_v5 }
  0x6f   : > { %299 = vadd.xlane.f32.xlu1 %v2362_v6 }
  0x70   : > { %297 = vadd.xlane.f32.xlu0 %v2365_v7 }
  0x73   : > { %303 = vadd.xlane.f32.xlu1 %v2370_v10 }
  0x74   : > { %301 = vadd.xlane.f32.xlu0 %v2373_v11 }
  0x77   : > { %428 = vadd.xlane.f32.xlu1 %v379_v14 }
  0x78   : > { %426 = vadd.xlane.f32.xlu0 %v378_v15 }
  0x7b   : > { %432 = vadd.xlane.f32.xlu1 %v381_v16 }
  0x7c   : > { %430 = vadd.xlane.f32.xlu0 %v380_v17 }
  0x7f   : > { %307 = vadd.xlane.f32.xlu1 %v2386_v18 }
  0x80   : > { %305 = vadd.xlane.f32.xlu0 %v2389_v19 }
  0x83   : > { %311 = vadd.xlane.f32.xlu1 %v2394_v20 }
  0x84   : > { %309 = vadd.xlane.f32.xlu0 %v2397_v21 }
  0x87   : > { %436 = vadd.xlane.f32.xlu1 %v383_v22 }
  0x88   : > { %434 = vadd.xlane.f32.xlu0 %v382_v23 }
  0x8b   : > { %440 = vadd.xlane.f32.xlu1 %v385_v26 }
  0x8c   : > { %438 = vadd.xlane.f32.xlu0 %v384_v27 }
  0x98   : > { %v314_v30 = vpop.xlane.xlu1 %313 }
  0x99   : > { %v266_v31 = vpop.xlane.xlu0 %265  ;;  %v2409_v36 = vmul.f32 0.0078125, %v314_v30 }
  0x9a   : > { %v330_v34 = vmul.f32 0.0078125, %v266_v31 }
  0x9b   : > { %v514_v55 = vmul.f32 %v2409_v36, %v2409_v36 }
  0x9c   : > { %v316_v32 = vpop.xlane.xlu1 %315  ;;  %v490_v45 = vmul.f32 %v330_v34, %v330_v34 }
  0x9d   : > { %v268_v33 = vpop.xlane.xlu0 %267  ;;  %v2411_v37 = vmul.f32 0.0078125, %v316_v32 }
  0x9e   : > { %v331_v35 = vmul.f32 0.0078125, %v268_v33 }
  0x9f   : > { %v515_v56 = vmul.f32 %v2411_v37, %v2411_v37 }
  0xa0   : > { %v397_v38 = vpop.xlane.xlu1 %396  ;;  %v491_v46 = vmul.f32 %v331_v35, %v331_v35 }
  0xa1   : > { %v395_v39 = vpop.xlane.xlu0 %394  ;;  %v459_v47 = vmul.f32 0.0078125, %v397_v38 }
  0xa2   : > { %v458_v48 = vmul.f32 0.0078125, %v395_v39 }
  0xa3   : > { %v523_v51 = vsub.f32 %v459_v47, %v491_v46 }
  0xa4   : > { %v522_v52 = vsub.f32 %v458_v48, %v490_v45  ;;  %v445_v60 = vpop.xlane.xlu1 %444 }
  0xa5   : > { %v443_v61 = vpop.xlane.xlu0 %442  ;;  %v555_v4 = vadd.f32 1e-05, %v523_v51  ;;  %v483_v14 = vmul.f32 0.0078125, %v445_v60 }
  0xa6   : > { %v554_v5 = vadd.f32 1e-05, %v522_v52  ;;  %v482_v15 = vmul.f32 0.0078125, %v443_v61  ;;  %v618_v61 = vsub.f32 %v2165_v1, %v330_v34 }
  0xa7   : > { %2042 = vrsqrt.f32 %v555_v4  ;;  %v547_v16 = vsub.f32 %v483_v14, %v515_v56  ;;  %v619_v4 = vsub.f32 %v2173_v3, %v331_v35  ;;  %v642_v35 = vsub.f32 %v2162_v0, %v2409_v36 }
  0xa8   : > { %v546_v17 = vsub.f32 %v482_v15, %v514_v55  ;;  %2044 = vrsqrt.f32 %v554_v5  ;;  %v272_v22 = vpop.xlane.xlu1 %271 }
  0xa9   : > { %v270_v23 = vpop.xlane.xlu0 %269  ;;  %v579_v26 = vadd.f32 1e-05, %v547_v16  ;;  %v2417_v32 = vmul.f32 0.0078125, %v272_v22 }
  0xaa   : > { %v578_v27 = vadd.f32 1e-05, %v546_v17  ;;  %v2419_v33 = vmul.f32 0.0078125, %v270_v23  ;;  %v2438_v17 = vld [vmem:[%s2922_s1] ss:$0 sm:$0xff] }
  0xab   : > { %2046 = vrsqrt.f32 %v579_v26  ;;  %v493_v47 = vmul.f32 %v2417_v32, %v2417_v32 }
  0xac   : > { %2048 = vrsqrt.f32 %v578_v27  ;;  %v320_v30 = vpop.xlane.xlu1 %319  ;;  %v492_v48 = vmul.f32 %v2419_v33, %v2419_v33 }
  0xad   : > { %v318_v31 = vpop.xlane.xlu0 %317  ;;  %v2421_v38 = vmul.f32 0.0078125, %v320_v30 }
  0xae   : > { %v2423_v39 = vmul.f32 0.0078125, %v318_v31 }
  0xaf   : > { %v517_v5 = vmul.f32 %v2421_v38, %v2421_v38 }
  0xb0   : > { %v401_v45 = vpop.xlane.xlu1 %400  ;;  %v516_v14 = vmul.f32 %v2423_v39, %v2423_v39 }
  0xb1   : > { %v399_v46 = vpop.xlane.xlu0 %398  ;;  %v461_v51 = vmul.f32 0.0078125, %v401_v45  ;;  %v2445_v45 = vld [vmem:[%s2923_s2] ss:$0 sm:$0xff] }
  0xb2   : > { %v460_v52 = vmul.f32 0.0078125, %v399_v46 }
  0xb3   : > { %v525_v55 = vsub.f32 %v461_v51, %v493_v47  ;;  %v643_v47 = vsub.f32 %v2170_v2, %v2411_v37 }
  0xb4   : > { %v524_v56 = vsub.f32 %v460_v52, %v492_v48  ;;  %v2043_v60 = vpop.eup %2042  ;;  %v449_v15 = vpop.xlane.xlu1 %448 }
  0xb5   : > { %v447_v16 = vpop.xlane.xlu0 %446  ;;  %v2045_v22 = vpop.eup %2044  ;;  %v557_v23 = vadd.f32 1e-05, %v525_v55  ;;  %v485_v27 = vmul.f32 0.0078125, %v449_v15  ;;  %v651_v3 = vmul.f32 %v2043_v60, %v619_v4 }
  0xb6   : > { %v556_v26 = vadd.f32 1e-05, %v524_v56  ;;  %v484_v1 = vmul.f32 0.0078125, %v447_v16  ;;  %v650_v34 = vmul.f32 %v2045_v22, %v618_v61 }
  0xb7   : > { %2050 = vrsqrt.f32 %v557_v23  ;;  %v549_v30 = vsub.f32 %v485_v27, %v517_v5  ;;  %v689_v55 = vmul.f32 %v2438_v17, %v651_v3 }
  0xb8   : > { %v548_v31 = vsub.f32 %v484_v1, %v516_v14  ;;  %v2047_v46 = vpop.eup %2046  ;;  %2052 = vrsqrt.f32 %v556_v26  ;;  %v276_v48 = vpop.xlane.xlu1 %275  ;;  %v688_v52 = vmul.f32 %v2438_v17, %v650_v34 }
  0xb9   : > { %v274_v51 = vpop.xlane.xlu0 %273  ;;  %v2049_v0 = vpop.eup %2048  ;;  %v581_v36 = vadd.f32 1e-05, %v549_v30  ;;  %v727_v61 = vadd.f32 %v2445_v45, %v689_v55  ;;  %v675_v5 = vmul.f32 %v2047_v46, %v643_v47  ;;  %v2456_v16 = vmul.f32 0.0078125, %v276_v48 }
  0xba   : > { %v580_v56 = vadd.f32 1e-05, %v548_v31  ;;  %v726_v60 = vadd.f32 %v2445_v45, %v688_v52  ;;  %v674_v4 = vmul.f32 %v2049_v0, %v642_v35  ;;  %v2458_v22 = vmul.f32 0.0078125, %v274_v51  ;;  %v2035_v51 = vld [vmem:[%s2924_s3 + $0x98] ss:$12 sps:$4 sm:$0xff]  }
  0xbb   : > { %2054 = vrsqrt.f32 %v581_v36  ;;  %v713_v23 = vmul.f32 %v2438_v17, %v675_v5  ;;  %v495_v30 = vmul.f32 %v2456_v16, %v2456_v16  ;;  %v621_v36 = vsub.f32 %v2186_v8, %v2417_v32  ;;  %v2036_v32 = vld [vmem:[%s2924_s3 + $0x80] ss:$12 sps:$4 sm:$0xff]  }
  0xbc   : > { %2056 = vrsqrt.f32 %v580_v56  ;;  %v324_v14 = vpop.xlane.xlu1 %323  ;;  %v2453_v37 = vpack.c.bf16 %v727_v61, %v726_v60  ;;  %v712_v15 = vmul.f32 %v2438_v17, %v674_v4  ;;  %v494_v31 = vmul.f32 %v2458_v22, %v2458_v22 }
  0xbd   : > { %v322_v2 = vpop.xlane.xlu0 %321  ;;  %v2464_v27 = vmul.f32 0.0078125, %v324_v14  ;;  %v751_v35 = vadd.f32 %v2445_v45, %v713_v23  ;;  %v620_v56 = vsub.f32 %v2189_v9, %v2419_v33  ;;  %v645_v33 = vsub.f32 %v2200_v12, %v2421_v38 }
  0xbe   : > { %984 = vmatmul.mubr.bf16.vlgmr.msra.gmra.mxu0 %v2453_v37  ;;  %v750_v26 = vadd.f32 %v2445_v45, %v712_v15  ;;  %v2466_v1 = vmul.f32 0.0078125, %v322_v2 }
  0xbf   : > { %993 = vmatprep.mubr.bf16.mxu0 %v2114_v42  ;;  %v519_v60 = vmul.f32 %v2464_v27, %v2464_v27 }
  0xc0   : > { %v405_v34 = vpop.xlane.xlu1 %404  ;;  %v2473_v48 = vpack.c.bf16 %v751_v35, %v750_v26  ;;  %v518_v61 = vmul.f32 %v2466_v1, %v2466_v1 }
  0xc1   : > { %v403_v3 = vpop.xlane.xlu0 %402  ;;  %v463_v46 = vmul.f32 0.0078125, %v405_v34 }
  0xc2   : > { %v462_v47 = vmul.f32 0.0078125, %v403_v3  ;;  %1104 = vmatmul.mubr.bf16.vlgmr.msra.gmra.mxu1 %v2473_v48 }
  0xc3   : > { %v527_v52 = vsub.f32 %v463_v46, %v495_v30  ;;  %1113 = vmatprep.mubr.bf16.mxu1 %v2114_v42  ;;  %1937 = vmatpush3.bf16.msra.mxu1 %v2334_v57  ;;  %v644_v30 = vsub.f32 %v2203_v13, %v2423_v39  ;;  %v2037_v13 = vld [vmem:[%s2924_s3 + $0x68] ss:$12 sps:$4 sm:$0xff]  }
  0xc4   : > { %v526_v55 = vsub.f32 %v462_v47, %v494_v31  ;;  %v2051_v0 = vpop.eup %2050  ;;  %v453_v4 = vpop.xlane.xlu1 %452  ;;  %1938 = vmatprep.subr.bf16.mxu1 %v2035_v51 }
  0xc5   : > { %v451_v5 = vpop.xlane.xlu0 %450  ;;  %v2053_v14 = vpop.eup %2052  ;;  %v559_v2 = vadd.f32 1e-05, %v527_v52  ;;  %v487_v23 = vmul.f32 0.0078125, %v453_v4  ;;  %v653_v9 = vmul.f32 %v2051_v0, %v621_v36 }
  0xc6   : > { %v558_v15 = vadd.f32 1e-05, %v526_v55  ;;  %v486_v26 = vmul.f32 0.0078125, %v451_v5  ;;  %v652_v8 = vmul.f32 %v2053_v14, %v620_v56 }
  0xc7   : > { %2058 = vrsqrt.f32 %v559_v2  ;;  %v551_v34 = vsub.f32 %v487_v23, %v519_v60  ;;  %v691_v47 = vmul.f32 %v2438_v17, %v653_v9  ;;  %1939 = vmatpush3.bf16.msra.mxu1 %v2035_v51 }
  0xc8   : > { %v550_v3 = vsub.f32 %v486_v26, %v518_v61  ;;  %v2055_v35 = vpop.eup %2054  ;;  %2060 = vrsqrt.f32 %v558_v15  ;;  %v280_v31 = vpop.xlane.xlu1 %279  ;;  %v690_v46 = vmul.f32 %v2438_v17, %v652_v8  ;;  %1940 = vmatprep.subr.bf16.mxu1 %v2036_v32  ;;  %v2038_v15 = vld [vmem:[%s2924_s3 + $0x50] ss:$12 sps:$4 sm:$0xff]  }
  0xc9   : > { %v278_v57 = vpop.xlane.xlu0 %277  ;;  %v2057_v52 = vpop.eup %2056  ;;  %v583_v55 = vadd.f32 1e-05, %v551_v34  ;;  %v729_v38 = vadd.f32 %v2445_v45, %v691_v47  ;;  %v677_v56 = vmul.f32 %v2055_v35, %v645_v33  ;;  %v2506_v51 = vmul.f32 0.0078125, %v280_v31  ;;  %v2039_v31 = vld [vmem:[%s2924_s3 + $0x38] ss:$12 sps:$4 sm:$0xff]  }
  0xca   : > { %v582_v0 = vadd.f32 1e-05, %v550_v3  ;;  %v728_v12 = vadd.f32 %v2445_v45, %v690_v46  ;;  %v676_v36 = vmul.f32 %v2057_v52, %v644_v30  ;;  %v2508_v5 = vmul.f32 0.0078125, %v278_v57 }
  0xcb   : > { %2062 = vrsqrt.f32 %v583_v55  ;;  %v715_v14 = vmul.f32 %v2438_v17, %v677_v56  ;;  %1941 = vmatpush3.bf16.msra.mxu1 %v2036_v32  ;;  %v497_v32 = vmul.f32 %v2506_v51, %v2506_v51  ;;  %v623_v52 = vsub.f32 %v2234_v24, %v2456_v16  ;;  %v2040_v16 = vld [vmem:[%s2924_s3 + $0x20] ss:$12 sps:$4 sm:$0xff]  }
  0xcc   : > { %2064 = vrsqrt.f32 %v582_v0  ;;  %v328_v39 = vpop.xlane.xlu1 %327  ;;  %v2503_v61 = vpack.c.bf16 %v729_v38, %v728_v12  ;;  %v714_v4 = vmul.f32 %v2438_v17, %v676_v36  ;;  %1942 = vmatprep.subr.bf16.mxu1 %v2037_v13  ;;  %v496_v34 = vmul.f32 %v2508_v5, %v2508_v5 }
  0xcd   : > { %v326_v60 = vpop.xlane.xlu0 %325  ;;  %v2517_v23 = vmul.f32 0.0078125, %v328_v39  ;;  %v753_v33 = vadd.f32 %v2445_v45, %v715_v14  ;;  %v622_v55 = vsub.f32 %v2237_v25, %v2458_v22  ;;  %v647_v22 = vsub.f32 %v2248_v28, %v2464_v27 }
  0xce   : > { %994 = vmatmul.mubr.bf16.gmra.mxu0 %v2503_v61  ;;  %v752_v2 = vadd.f32 %v2445_v45, %v714_v4  ;;  %v2519_v26 = vmul.f32 0.0078125, %v326_v60 }
  0xcf   : > { %1003 = vmatprep.mubr.bf16.mxu0 %v2114_v42  ;;  %1943 = vmatpush3.bf16.msra.mxu1 %v2037_v13  ;;  %v521_v0 = vmul.f32 %v2517_v23, %v2517_v23 }
  0xd0   : > { %v409_v8 = vpop.xlane.xlu1 %408  ;;  %v2526_v30 = vpack.c.bf16 %v753_v33, %v752_v2  ;;  %1944 = vmatprep.subr.bf16.mxu1 %v2038_v15  ;;  %v520_v12 = vmul.f32 %v2519_v26, %v2519_v26 }
  0xd1   : > { %v407_v9 = vpop.xlane.xlu0 %406  ;;  %v465_v3 = vmul.f32 0.0078125, %v409_v8 }
  0xd2   : > { %v464_v35 = vmul.f32 0.0078125, %v407_v9  ;;  %1114 = vmatmul.mubr.bf16.gmra.mxu1 %v2526_v30  ;;  %v646_v9 = vsub.f32 %v2251_v29, %v2466_v1 }
  0xd3   : > { %v529_v57 = vsub.f32 %v465_v3, %v497_v32  ;;  %1123 = vmatprep.mubr.bf16.mxu1 %v2114_v42  ;;  %1945 = vmatpush3.bf16.msra.mxu1 %v2038_v15 }
  0xd4   : > { %v528_v46 = vsub.f32 %v464_v35, %v496_v34  ;;  %v2059_v47 = vpop.eup %2058  ;;  %v457_v38 = vpop.xlane.xlu1 %456  ;;  %1946 = vmatprep.subr.bf16.mxu1 %v2039_v31 }
  0xd5   : > { %v455_v36 = vpop.xlane.xlu0 %454  ;;  %v2061_v56 = vpop.eup %2060  ;;  %v561_v13 = vadd.f32 1e-05, %v529_v57  ;;  %v489_v60 = vmul.f32 0.0078125, %v457_v38  ;;  %v655_v25 = vmul.f32 %v2059_v47, %v623_v52  ;;  %v2041_v52 = vld [vmem:[%s2924_s3 + $0x8] ss:$12 sps:$4 sm:$0xff]  }
  0xd6   : > { %v560_v39 = vadd.f32 1e-05, %v528_v46  ;;  %v488_v4 = vmul.f32 0.0078125, %v455_v36  ;;  %v654_v24 = vmul.f32 %v2061_v56, %v622_v55 }
  0xd7   : > { %2066 = vrsqrt.f32 %v561_v13  ;;  %v553_v14 = vsub.f32 %v489_v60, %v521_v0  ;;  %v693_v34 = vmul.f32 %v2438_v17, %v655_v25  ;;  %1947 = vmatpush3.bf16.msra.mxu1 %v2039_v31 }
  0xd8   : > { %v552_v2 = vsub.f32 %v488_v4, %v520_v12  ;;  %v2063_v8 = vpop.eup %2062  ;;  %2068 = vrsqrt.f32 %v560_v39  ;;  %v284_v33 = vpop.xlane.xlu1 %283  ;;  %v692_v32 = vmul.f32 %v2438_v17, %v654_v24  ;;  %1948 = vmatprep.subr.bf16.mxu1 %v2040_v16 }
  0xd9   : > { %v282_v15 = vpop.xlane.xlu0 %281  ;;  %v2065_v3 = vpop.eup %2064  ;;  %v585_v35 = vadd.f32 1e-05, %v553_v14  ;;  %v2550_v46 = vmul.f32 0.0078125, %v284_v33  ;;  %v731_v47 = vadd.f32 %v2445_v45, %v693_v34  ;;  %v679_v1 = vmul.f32 %v2063_v8, %v647_v22 }
  0xda   : > { %v584_v57 = vadd.f32 1e-05, %v552_v2  ;;  %v2552_v28 = vmul.f32 0.0078125, %v282_v15  ;;  %v730_v27 = vadd.f32 %v2445_v45, %v692_v32  ;;  %v678_v29 = vmul.f32 %v2065_v3, %v646_v9 }
  0xdb   : > { %2070 = vrsqrt.f32 %v585_v35  ;;  %v499_v55 = vmul.f32 %v2550_v46, %v2550_v46  ;;  %v717_v39 = vmul.f32 %v2438_v17, %v679_v1  ;;  %1949 = vmatpush3.bf16.msra.mxu1 %v2040_v16  ;;  %v625_v15 = vsub.f32 %v2282_v40, %v2506_v51 }
  0xdc   : > { %2072 = vrsqrt.f32 %v584_v57  ;;  %v413_v0 = vpop.xlane.xlu1 %412  ;;  %v2561_v38 = vpack.c.bf16 %v731_v47, %v730_v27  ;;  %v716_v31 = vmul.f32 %v2438_v17, %v678_v29  ;;  %v498_v36 = vmul.f32 %v2552_v28, %v2552_v28  ;;  %1950 = vmatprep.subr.bf16.mxu1 %v2041_v52 }
  0xdd   : > { %v411_v12 = vpop.xlane.xlu0 %410  ;;  %v467_v56 = vmul.f32 0.0078125, %v413_v0  ;;  %v755_v25 = vadd.f32 %v2445_v45, %v717_v39  ;;  %v624_v34 = vsub.f32 %v2285_v41, %v2508_v5  ;;  %v649_v0 = vsub.f32 %v2292_v43, %v2517_v23 }
  0xde   : > { %v466_v13 = vmul.f32 0.0078125, %v411_v12  ;;  %1004 = vmatmul.mubr.bf16.gmra.mxu0 %v2561_v38  ;;  %v754_v60 = vadd.f32 %v2445_v45, %v716_v31  ;;  %v648_v12 = vsub.f32 %v2295_v44, %v2519_v26 }
  0xdf   : > { %v531_v4 = vsub.f32 %v467_v56, %v499_v55  ;;  %1013 = vmatprep.mubr.bf16.mxu0 %v2114_v42  ;;  %1951 = vmatpush3.bf16.msra.mxu1 %v2041_v52 }
  0xe0   : > { %v530_v24 = vsub.f32 %v466_v13, %v498_v36  ;;  %v288_v22 = vpop.xlane.xlu1 %287  ;;  %v2575_v16 = vpack.c.bf16 %v755_v25, %v754_v60 }
  0xe1   : > { %v286_v14 = vpop.xlane.xlu0 %285  ;;  %v563_v2 = vadd.f32 1e-05, %v531_v4  ;;  %v2571_v9 = vmul.f32 0.0078125, %v288_v22 }
  0xe2   : > { %v562_v8 = vadd.f32 1e-05, %v530_v24  ;;  %v2573_v33 = vmul.f32 0.0078125, %v286_v14  ;;  %1124 = vmatmul.mubr.bf16.gmra.mxu1 %v2575_v16 }
  0xe3   : > { %2074 = vrsqrt.f32 %v563_v2  ;;  %v501_v3 = vmul.f32 %v2571_v9, %v2571_v9  ;;  %1133 = vmatprep.mubr.bf16.mxu1 %v2114_v42 }
  0xe4   : > { %v2067_v32 = vpop.eup %2066  ;;  %2076 = vrsqrt.f32 %v562_v8  ;;  %v417_v35 = vpop.xlane.xlu1 %416  ;;  %v500_v47 = vmul.f32 %v2573_v33, %v2573_v33 }
  0xe5   : > { %v415_v57 = vpop.xlane.xlu0 %414  ;;  %v2069_v27 = vpop.eup %2068  ;;  %v469_v29 = vmul.f32 0.0078125, %v417_v35  ;;  %v657_v40 = vmul.f32 %v2067_v32, %v625_v15 }
  0xe6   : > { %v468_v1 = vmul.f32 0.0078125, %v415_v57  ;;  %v656_v51 = vmul.f32 %v2069_v27, %v624_v34 }
  0xe7   : > { %v533_v52 = vsub.f32 %v469_v29, %v501_v3  ;;  %v695_v5 = vmul.f32 %v2438_v17, %v657_v40  ;;  %v626_v40 = vsub.f32 %v2311_v50, %v2552_v28 }
  0xe8   : > { %v532_v41 = vsub.f32 %v468_v1, %v500_v47  ;;  %v2071_v55 = vpop.eup %2070  ;;  %v292_v31 = vpop.xlane.xlu1 %291  ;;  %v694_v56 = vmul.f32 %v2438_v17, %v656_v51  ;;  %v627_v1 = vsub.f32 %v2308_v49, %v2550_v46 }
  0xe9   : > { %v290_v36 = vpop.xlane.xlu0 %289  ;;  %v2073_v13 = vpop.eup %2072  ;;  %v565_v39 = vadd.f32 1e-05, %v533_v52  ;;  %v2593_v4 = vmul.f32 0.0078125, %v292_v31  ;;  %v733_v22 = vadd.f32 %v2445_v45, %v695_v5  ;;  %v681_v43 = vmul.f32 %v2071_v55, %v649_v0 }
  0xea   : > { %v564_v60 = vadd.f32 1e-05, %v532_v41  ;;  %v2595_v24 = vmul.f32 0.0078125, %v290_v36  ;;  %v732_v25 = vadd.f32 %v2445_v45, %v694_v56  ;;  %v680_v14 = vmul.f32 %v2073_v13, %v648_v12 }
  0xeb   : > { %2078 = vrsqrt.f32 %v565_v39  ;;  %v503_v44 = vmul.f32 %v2593_v4, %v2593_v4  ;;  %v719_v3 = vmul.f32 %v2438_v17, %v681_v43 }
  0xec   : > { %2080 = vrsqrt.f32 %v564_v60  ;;  %v421_v23 = vpop.xlane.xlu1 %420  ;;  %v2601_v2 = vpack.c.bf16 %v733_v22, %v732_v25  ;;  %v718_v8 = vmul.f32 %v2438_v17, %v680_v14  ;;  %v502_v15 = vmul.f32 %v2595_v24, %v2595_v24 }
  0xed   : > { %v419_v26 = vpop.xlane.xlu0 %418  ;;  %v471_v32 = vmul.f32 0.0078125, %v421_v23  ;;  %v757_v47 = vadd.f32 %v2445_v45, %v719_v3 }
  0xee   : > { %v470_v34 = vmul.f32 0.0078125, %v419_v26  ;;  %1014 = vmatmul.mubr.bf16.gmra.mxu0 %v2601_v2  ;;  %v756_v35 = vadd.f32 %v2445_v45, %v718_v8  ;;  %v629_v26 = vsub.f32 %v2320_v53, %v2571_v9  ;;  %v628_v8 = vsub.f32 %v2323_v54, %v2573_v33 }
  0xef   : > { %v535_v57 = vsub.f32 %v471_v32, %v503_v44  ;;  %1023 = vmatprep.mubr.bf16.mxu0 %v2114_v42 }
  0xf0   : > { %v534_v27 = vsub.f32 %v470_v34, %v502_v15  ;;  %v2075_v29 = vpop.eup %2074  ;;  %v296_v51 = vpop.xlane.xlu1 %295  ;;  %v2619_v31 = vpack.c.bf16 %v757_v47, %v756_v35 }
  0xf1   : > { %v294_v52 = vpop.xlane.xlu0 %293  ;;  %v2077_v41 = vpop.eup %2076  ;;  %v567_v5 = vadd.f32 1e-05, %v535_v57  ;;  %v2615_v0 = vmul.f32 0.0078125, %v296_v51  ;;  %v659_v56 = vmul.f32 %v2075_v29, %v627_v1  ;;  %v631_v51 = vsub.f32 %v2337_v58, %v2593_v4 }
  0xf2   : > { %v566_v55 = vadd.f32 1e-05, %v534_v27  ;;  %v2617_v12 = vmul.f32 0.0078125, %v294_v52  ;;  %v658_v36 = vmul.f32 %v2077_v41, %v626_v40  ;;  %1134 = vmatmul.mubr.bf16.gmra.mxu1 %v2619_v31 }
  0xf3   : > { %2082 = vrsqrt.f32 %v567_v5  ;;  %v697_v28 = vmul.f32 %v2438_v17, %v659_v56  ;;  %v505_v13 = vmul.f32 %v2615_v0, %v2615_v0  ;;  %1952 = vmatprep.mubr.bf16.mxu1 %v2453_v37 }
  0xf4   : > { %2084 = vrsqrt.f32 %v566_v55  ;;  %v425_v49 = vpop.xlane.xlu1 %424  ;;  %v696_v50 = vmul.f32 %v2438_v17, %v658_v36  ;;  %v504_v39 = vmul.f32 %v2617_v12, %v2617_v12 }
  0xf5   : > { %v423_v46 = vpop.xlane.xlu0 %422  ;;  %v473_v60 = vmul.f32 0.0078125, %v425_v49  ;;  %v735_v14 = vadd.f32 %v2445_v45, %v697_v28 }
  0xf6   : > { %v472_v25 = vmul.f32 0.0078125, %v423_v46  ;;  %v734_v22 = vadd.f32 %v2445_v45, %v696_v50 }
  0xf7   : > { %v537_v43 = vsub.f32 %v473_v60, %v505_v13 }
  0xf8   : > { %v536_v44 = vsub.f32 %v472_v25, %v504_v39  ;;  %v2079_v23 = vpop.eup %2078  ;;  %v300_v15 = vpop.xlane.xlu1 %299  ;;  %v762_v34 = vpack.c.bf16 %v735_v14, %v734_v22 }
  0xf9   : > { %v298_v32 = vpop.xlane.xlu0 %297  ;;  %v2081_v3 = vpop.eup %2080  ;;  %v569_v37 = vadd.f32 1e-05, %v537_v43  ;;  %v661_v27 = vmul.f32 %v2079_v23, %v629_v26  ;;  %v2636_v47 = vmul.f32 0.0078125, %v300_v15 }
  0xfa   : > { %v568_v35 = vadd.f32 1e-05, %v536_v44  ;;  %1024 = vmatmul.mubr.bf16.gmra.mxu0 %v762_v34  ;;  %v660_v57 = vmul.f32 %v2081_v3, %v628_v8  ;;  %1953 = vmatmul.mubr.bf16.vlgmr.msra.gmra.mxu1 %v2503_v61  ;;  %v2641_v29 = vmul.f32 0.0078125, %v298_v32  ;;  %v630_v61 = vsub.f32 %v2340_v59, %v2595_v24 }
  0xfb   : > { %2086 = vrsqrt.f32 %v569_v37  ;;  %1033 = vmatprep.mubr.bf16.mxu0 %v2114_v42  ;;  %v699_v33 = vmul.f32 %v2438_v17, %v661_v27  ;;  %1956 = vmatprep.mubr.bf16.mxu1 %v2561_v38  ;;  %v507_v41 = vmul.f32 %v2636_v47, %v2636_v47 }
  0xfc   : > { %2088 = vrsqrt.f32 %v568_v35  ;;  %v304_v53 = vpop.xlane.xlu1 %303  ;;  %v698_v54 = vmul.f32 %v2438_v17, %v660_v57  ;;  %v506_v46 = vmul.f32 %v2641_v29, %v2641_v29  ;;  %v632_v35 = vsub.f32 %v2353_v63, %v2617_v12 }
  0xfd   : > { %v302_v9 = vpop.xlane.xlu0 %301  ;;  %v737_v40 = vadd.f32 %v2445_v45, %v699_v33  ;;  %v2652_v5 = vmul.f32 0.0078125, %v304_v53 }
  0xfe   : > { %v736_v1 = vadd.f32 %v2445_v45, %v698_v54  ;;  %v2654_v55 = vmul.f32 0.0078125, %v302_v9 }
  0xff   : > { %v509_v39 = vmul.f32 %v2652_v5, %v2652_v5 }
 0x100   : > { %v2083_v52 = vpop.eup %2082  ;;  %v429_v36 = vpop.xlane.xlu1 %428  ;;  %v763_v56 = vpack.c.bf16 %v737_v40, %v736_v1  ;;  %v508_v60 = vmul.f32 %v2654_v55, %v2654_v55 }
 0x101   : > { %v427_v38 = vpop.xlane.xlu0 %426  ;;  %v2085_v49 = vpop.eup %2084  ;;  %v475_v50 = vmul.f32 0.0078125, %v429_v36  ;;  %v663_v4 = vmul.f32 %v2083_v52, %v631_v51 }
 0x102   : > { %v474_v58 = vmul.f32 0.0078125, %v427_v38  ;;  %1034 = vmatmul.mubr.bf16.gmra.mxu0 %v763_v56  ;;  %v662_v59 = vmul.f32 %v2085_v49, %v630_v61  ;;  %1957 = vmatmul.mubr.bf16.gmra.mxu1 %v2601_v2  ;;  %v633_v2 = vsub.f32 %v2350_v62, %v2615_v0 }
 0x103   : > { %v539_v24 = vsub.f32 %v475_v50, %v507_v41  ;;  %1043 = vmatprep.mubr.bf16.mxu0 %v2114_v42  ;;  %v701_v13 = vmul.f32 %v2438_v17, %v663_v4  ;;  %1960 = vmatprep.mubr.bf16.mxu1 %v762_v34 }
 0x104   : > { %v538_v28 = vsub.f32 %v474_v58, %v506_v46  ;;  %v433_v25 = vpop.xlane.xlu1 %432  ;;  %v700_v14 = vmul.f32 %v2438_v17, %v662_v59 }
 0x105   : > { %v431_v22 = vpop.xlane.xlu0 %430  ;;  %v571_v43 = vadd.f32 1e-05, %v539_v24  ;;  %v477_v23 = vmul.f32 0.0078125, %v433_v25  ;;  %v739_v15 = vadd.f32 %v2445_v45, %v701_v13  ;;  %v635_v13 = vsub.f32 %v2362_v6, %v2636_v47 }
 0x106   : > { %v570_v44 = vadd.f32 1e-05, %v538_v28  ;;  %v476_v26 = vmul.f32 0.0078125, %v431_v22  ;;  %v738_v8 = vadd.f32 %v2445_v45, %v700_v14  ;;  %v637_v6 = vsub.f32 %v2370_v10, %v2652_v5 }
 0x107   : > { %2090 = vrsqrt.f32 %v571_v43  ;;  %v541_v32 = vsub.f32 %v477_v23, %v509_v39  ;;  %v634_v39 = vsub.f32 %v2365_v7, %v2641_v29 }
 0x108   : > { %v540_v3 = vsub.f32 %v476_v26, %v508_v60  ;;  %v2087_v37 = vpop.eup %2086  ;;  %2092 = vrsqrt.f32 %v570_v44  ;;  %v308_v57 = vpop.xlane.xlu1 %307  ;;  %v764_v34 = vpack.c.bf16 %v739_v15, %v738_v8 }
 0x109   : > { %v306_v27 = vpop.xlane.xlu0 %305  ;;  %v2089_v53 = vpop.eup %2088  ;;  %v573_v9 = vadd.f32 1e-05, %v541_v32  ;;  %v665_v1 = vmul.f32 %v2087_v37, %v633_v2  ;;  %v2675_v12 = vmul.f32 0.0078125, %v308_v57 }
 0x10a   : > { %v572_v54 = vadd.f32 1e-05, %v540_v3  ;;  %1044 = vmatmul.mubr.bf16.gmra.mxu0 %v764_v34  ;;  %v664_v33 = vmul.f32 %v2089_v53, %v632_v35  ;;  %1961 = vmatmul.mubr.bf16.gmra.mxu1 %v763_v56  ;;  %v2677_v51 = vmul.f32 0.0078125, %v306_v27  ;;  %v636_v3 = vsub.f32 %v2373_v11, %v2654_v55 }
 0x10b   : > { %2094 = vrsqrt.f32 %v573_v9  ;;  %1053 = vmatprep.mubr.bf16.mxu0 %v2114_v42  ;;  %v703_v63 = vmul.f32 %v2438_v17, %v665_v1  ;;  %1964 = vmatprep.mubr.bf16.mxu1 %v764_v34  ;;  %v511_v46 = vmul.f32 %v2675_v12, %v2675_v12 }
 0x10c   : > { %2096 = vrsqrt.f32 %v572_v54  ;;  %v312_v40 = vpop.xlane.xlu1 %311  ;;  %v702_v0 = vmul.f32 %v2438_v17, %v664_v33  ;;  %v510_v50 = vmul.f32 %v2677_v51, %v2677_v51 }
 0x10d   : > { %v310_v62 = vpop.xlane.xlu0 %309  ;;  %v741_v52 = vadd.f32 %v2445_v45, %v703_v63  ;;  %v2681_v41 = vmul.f32 0.0078125, %v312_v40  ;;  %v639_v40 = vsub.f32 %v2386_v18, %v2675_v12 }
 0x10e   : > { %v740_v61 = vadd.f32 %v2445_v45, %v702_v0  ;;  %v2683_v36 = vmul.f32 0.0078125, %v310_v62  ;;  %v638_v0 = vsub.f32 %v2389_v19, %v2677_v51 }
 0x10f   : > { %v513_v60 = vmul.f32 %v2681_v41, %v2681_v41 }
 0x110   : > { %v437_v38 = vpop.xlane.xlu1 %436  ;;  %v765_v49 = vpack.c.bf16 %v741_v52, %v740_v61  ;;  %v512_v25 = vmul.f32 %v2683_v36, %v2683_v36 }
 0x111   : > { %v435_v56 = vpop.xlane.xlu0 %434  ;;  %v479_v58 = vmul.f32 0.0078125, %v437_v38  ;;  %v641_v38 = vsub.f32 %v2394_v20, %v2681_v41 }
 0x112   : > { %v478_v4 = vmul.f32 0.0078125, %v435_v56  ;;  %1054 = vmatmul.mubr.bf16.gmra.mxu0 %v765_v49  ;;  %1965 = vmatmul.mubr.bf16.gmra.mxu1 %v765_v49 }
 0x113   : > { %v543_v59 = vsub.f32 %v479_v58, %v511_v46  ;;  %1063 = vmatprep.mubr.bf16.mxu0 %v2114_v42  ;;  %v640_v46 = vsub.f32 %v2397_v21, %v2683_v36 }
 0x114   : > { %v542_v24 = vsub.f32 %v478_v4, %v510_v50  ;;  %v2091_v28 = vpop.eup %2090  ;;  %v441_v22 = vpop.xlane.xlu1 %440 }
 0x115   : > { %v439_v14 = vpop.xlane.xlu0 %438  ;;  %v2093_v43 = vpop.eup %2092  ;;  %v575_v44 = vadd.f32 1e-05, %v543_v59  ;;  %v481_v26 = vmul.f32 0.0078125, %v441_v22  ;;  %v667_v32 = vmul.f32 %v2091_v28, %v635_v13 }
 0x116   : > { %v574_v23 = vadd.f32 1e-05, %v542_v24  ;;  %v480_v8 = vmul.f32 0.0078125, %v439_v14  ;;  %v666_v15 = vmul.f32 %v2093_v43, %v634_v39 }
 0x117   : > { %2098 = vrsqrt.f32 %v575_v44  ;;  %v545_v7 = vsub.f32 %v481_v26, %v513_v60  ;;  %v705_v2 = vmul.f32 %v2438_v17, %v667_v32 }
 0x118   : > { %v544_v47 = vsub.f32 %v480_v8, %v512_v25  ;;  %v2095_v29 = vpop.eup %2094  ;;  %2100 = vrsqrt.f32 %v574_v23  ;;  %v704_v37 = vmul.f32 %v2438_v17, %v666_v15 }
 0x119   : > { %v2097_v35 = vpop.eup %2096  ;;  %v577_v57 = vadd.f32 1e-05, %v545_v7  ;;  %v669_v34 = vmul.f32 %v2095_v29, %v637_v6  ;;  %v743_v10 = vadd.f32 %v2445_v45, %v705_v2 }
 0x11a   : > { %v576_v27 = vadd.f32 1e-05, %v544_v47  ;;  %v742_v53 = vadd.f32 %v2445_v45, %v704_v37  ;;  %v668_v5 = vmul.f32 %v2097_v35, %v636_v3 }
 0x11b   : > { %2102 = vrsqrt.f32 %v577_v57  ;;  %v707_v9 = vmul.f32 %v2438_v17, %v669_v34 }
 0x11c   : > { %2104 = vrsqrt.f32 %v576_v27  ;;  %v766_v54 = vpack.c.bf16 %v743_v10, %v742_v53  ;;  %v706_v11 = vmul.f32 %v2438_v17, %v668_v5 }
 0x11d   : > { %v745_v55 = vadd.f32 %v2445_v45, %v707_v9 }
 0x11e   : > { %1064 = vmatmul.mubr.bf16.gmra.mxu0 %v766_v54  ;;  %1968 = vmatprep.mubr.bf16.mxu1 %v766_v54  ;;  %v744_v33 = vadd.f32 %v2445_v45, %v706_v11 }
 0x11f   : > { %1073 = vmatprep.mubr.bf16.mxu0 %v2114_v42 }
 0x120   : > { %v767_v1 = vpack.c.bf16 %v745_v55, %v744_v33 }
 0x122   : > { %1969 = vmatmul.mubr.bf16.gmra.mxu1 %v767_v1 }
 0x124   : > { %v2099_v62 = vpop.eup %2098 }
 0x125   : > { %v2101_v63 = vpop.eup %2100  ;;  %v671_v61 = vmul.f32 %v2099_v62, %v639_v40 }
 0x126   : > { %1074 = vmatmul.mubr.bf16.gmra.mxu0 %v767_v1  ;;  %v670_v52 = vmul.f32 %v2101_v63, %v638_v0 }
 0x127   : > { %1083 = vmatprep.mubr.bf16.mxu0 %v2114_v42  ;;  %v709_v56 = vmul.f32 %v2438_v17, %v671_v61 }
 0x128   : > { %v2103_v49 = vpop.eup %2102  ;;  %v708_v18 = vmul.f32 %v2438_v17, %v670_v52 }
 0x129   : > { %v2105_v12 = vpop.eup %2104  ;;  %v747_v19 = vadd.f32 %v2445_v45, %v709_v56  ;;  %v673_v51 = vmul.f32 %v2103_v49, %v641_v38 }
 0x12a   : > { %v746_v50 = vadd.f32 %v2445_v45, %v708_v18  ;;  %v672_v58 = vmul.f32 %v2105_v12, %v640_v46 }
 0x12b   : > { %v711_v4 = vmul.f32 %v2438_v17, %v673_v51 }
 0x12c   : > { %v768_v20 = vpack.c.bf16 %v747_v19, %v746_v50  ;;  %v710_v41 = vmul.f32 %v2438_v17, %v672_v58  ;;  %v808_v17 = vlaneseq }
 0x12d   : > { %v749_v59 = vadd.f32 %v2445_v45, %v711_v4 }
 0x12e   : > { %1084 = vmatmul.mubr.bf16.gmra.mxu0 %v768_v20  ;;  %1972 = vmatprep.mubr.bf16.mxu1 %v768_v20  ;;  %v748_v21 = vadd.f32 %v2445_v45, %v710_v41  ;;  %v2733_v24 = vshrl.u32 %v808_v17, 7 }
 0x12f   : > { %1093 = vmatprep.mubr.bf16.mxu0 %v2114_v42  ;;  %v2740_v42 = vld [vmem:[%s2925_s4] sm:$0x7] }
 0x130   : > { %v769_v36 = vpack.c.bf16 %v749_v59, %v748_v21  ;;  %v810_v28 = vsub.s32 0, %v2733_v24  ;;  %v814_v45 = vsub.s32 1, %v2733_v24 }
 0x132   : > { %1973 = vmatmul.mubr.bf16.gmra.mxu1 %v769_v36 }
 0x133   : > { %1976 = vmatprep.mubr.bf16.mxu1 %v2473_v48  ;;  %v2743_v48 = vrot.slane %v2740_v42, %v810_v28 }
 0x136   : > { %1094 = vmatmul.mubr.bf16.gmra.mxu0 %v769_v36 }
 0x13a   : > { %1977 = vmatmul.mubr.bf16.gmra.mxu1 %v2526_v30  ;;  %v2746_v30 = vrot.slane %v2740_v42, %v814_v45 }
 0x13b   : > { %1980 = vmatprep.mubr.bf16.mxu1 %v2575_v16 }
 0x142   : > { %1981 = vmatmul.mubr.bf16.gmra.mxu1 %v2619_v31 }
 0x17e   : > { %v985_v16 = vpop.f32.mrf.mxu0 }
 0x17f   : > { %v986_v13 = vadd.f32 %v985_v16, %v2743_v48 }
 0x180   : > { %v987_v31 = vpop.f32.mrf.mxu0 }
 0x181   : > { %v988_v39 = vadd.f32 %v987_v31, %v2746_v30 }
 0x182   : > { %v989_v60 = vpop.f32.mrf.mxu0  ;;  %v1105_v22 = vpop.f32.mrf.mxu1 }
 0x183   : > { %v1848_v25 = vpack.c.bf16 %v988_v39, %v986_v13  ;;  %v990_v43 = vadd.f32 %v989_v60, %v2743_v48  ;;  %v1106_v26 = vadd.f32 %v1105_v22, %v2743_v48 }
 0x184   : > { %v991_v14 = vpop.f32.mrf.mxu0  ;;  %v1107_v23 = vpop.f32.mrf.mxu1 }
 0x185   : > { %1625 = vst [vmem:[%s2754_s24] sm:$0xff] %v1848_v25  ;;  %v992_v44 = vadd.f32 %v991_v14, %v2746_v30  ;;  %v1108_v15 = vadd.f32 %v1107_v23, %v2746_v30  ;;  %v818_v23 = vsub.s32 2, %v2733_v24 }
 0x186   : > { %v1109_v32 = vpop.f32.mrf.mxu1 }
 0x187   : > { %v1850_v8 = vpack.c.bf16 %v992_v44, %v990_v43  ;;  %v1896_v6 = vpack.c.bf16 %v1108_v15, %v1106_v26  ;;  %v1110_v47 = vadd.f32 %v1109_v32, %v2743_v48 }
 0x188   : > { %v1111_v7 = vpop.f32.mrf.mxu1 }
 0x189   : > { %1627 = vst [vmem:[%s2754_s24 + $0xc] sm:$0xff] %v1850_v8  ;;  %1673 = vst [vmem:[%s2754_s24 + $0x120] sm:$0xff] %v1896_v6  ;;  %v1112_v29 = vadd.f32 %v1111_v7, %v2746_v30 }
 0x18b   : > { %v1898_v3 = vpack.c.bf16 %v1112_v29, %v1110_v47  ;;  %v2800_v47 = vrot.slane %v2740_v42, %v818_v23 }
 0x18d   : > { %1675 = vst [vmem:[%s2754_s24 + $0x12c] sm:$0xff] %v1898_v3 }
 0x18e   : > { %v995_v37 = vpop.f32.mrf.mxu0 }
 0x18f   : > { %v996_v35 = vadd.f32 %v995_v37, %v2743_v48 }
 0x190   : > { %v997_v2 = vpop.f32.mrf.mxu0 }
 0x191   : > { %v998_v57 = vadd.f32 %v997_v2, %v2746_v30 }
 0x192   : > { %v999_v27 = vpop.f32.mrf.mxu0  ;;  %v1115_v53 = vpop.f32.mrf.mxu1 }
 0x193   : > { %v1852_v34 = vpack.c.bf16 %v998_v57, %v996_v35  ;;  %v1000_v5 = vadd.f32 %v999_v27, %v2743_v48  ;;  %v1116_v11 = vadd.f32 %v1115_v53, %v2743_v48 }
 0x194   : > { %v1001_v10 = vpop.f32.mrf.mxu0  ;;  %v1117_v54 = vpop.f32.mrf.mxu1 }
 0x195   : > { %1629 = vst [vmem:[%s2754_s24 + $0x18] sm:$0xff] %v1852_v34  ;;  %v1002_v9 = vadd.f32 %v1001_v10, %v2746_v30  ;;  %v1118_v33 = vadd.f32 %v1117_v54, %v2746_v30 }
 0x196   : > { %v1119_v1 = vpop.f32.mrf.mxu1 }
 0x197   : > { %v1854_v55 = vpack.c.bf16 %v1002_v9, %v1000_v5  ;;  %v1900_v40 = vpack.c.bf16 %v1118_v33, %v1116_v11  ;;  %v1120_v0 = vadd.f32 %v1119_v1, %v2743_v48 }
 0x198   : > { %v1121_v62 = vpop.f32.mrf.mxu1 }
 0x199   : > { %1631 = vst [vmem:[%s2754_s24 + $0x24] sm:$0xff] %v1854_v55  ;;  %1677 = vst [vmem:[%s2754_s24 + $0x138] sm:$0xff] %v1900_v40  ;;  %v1122_v63 = vadd.f32 %v1121_v62, %v2746_v30 }
 0x19b   : > { %v1902_v61 = vpack.c.bf16 %v1122_v63, %v1120_v0 }
 0x19d   : > { %1679 = vst [vmem:[%s2754_s24 + $0x144] sm:$0xff] %v1902_v61 }
 0x19e   : > { %v1005_v52 = vpop.f32.mrf.mxu0 }
 0x19f   : > { %v1006_v56 = vadd.f32 %v1005_v52, %v2743_v48 }
 0x1a0   : > { %v1007_v38 = vpop.f32.mrf.mxu0 }
 0x1a1   : > { %v1008_v49 = vadd.f32 %v1007_v38, %v2746_v30 }
 0x1a2   : > { %v1009_v46 = vpop.f32.mrf.mxu0  ;;  %v1125_v12 = vpop.f32.mrf.mxu1 }
 0x1a3   : > { %v1856_v18 = vpack.c.bf16 %v1008_v49, %v1006_v56  ;;  %v1010_v51 = vadd.f32 %v1009_v46, %v2743_v48  ;;  %v1126_v4 = vadd.f32 %v1125_v12, %v2743_v48 }
 0x1a4   : > { %v1011_v19 = vpop.f32.mrf.mxu0  ;;  %v1127_v58 = vpop.f32.mrf.mxu1 }
 0x1a5   : > { %1633 = vst [vmem:[%s2754_s24 + $0x30] sm:$0xff] %v1856_v18  ;;  %v1012_v50 = vadd.f32 %v1011_v19, %v2746_v30  ;;  %v1128_v41 = vadd.f32 %v1127_v58, %v2746_v30 }
 0x1a6   : > { %v1129_v59 = vpop.f32.mrf.mxu1 }
 0x1a7   : > { %v1858_v20 = vpack.c.bf16 %v1012_v50, %v1010_v51  ;;  %v1904_v21 = vpack.c.bf16 %v1128_v41, %v1126_v4  ;;  %v1130_v17 = vadd.f32 %v1129_v59, %v2743_v48 }
 0x1a8   : > { %v1131_v36 = vpop.f32.mrf.mxu1 }
 0x1a9   : > { %1635 = vst [vmem:[%s2754_s24 + $0x3c] sm:$0xff] %v1858_v20  ;;  %1681 = vst [vmem:[%s2754_s24 + $0x150] sm:$0xff] %v1904_v21  ;;  %v1132_v28 = vadd.f32 %v1131_v36, %v2746_v30 }
 0x1ab   : > { %v1906_v45 = vpack.c.bf16 %v1132_v28, %v1130_v17 }
 0x1ad   : > { %1683 = vst [vmem:[%s2754_s24 + $0x15c] sm:$0xff] %v1906_v45 }
 0x1ae   : > { %v1015_v16 = vpop.f32.mrf.mxu0 }
 0x1af   : > { %v1016_v13 = vadd.f32 %v1015_v16, %v2743_v48 }
 0x1b0   : > { %v1017_v31 = vpop.f32.mrf.mxu0 }
 0x1b1   : > { %v1018_v39 = vadd.f32 %v1017_v31, %v2746_v30 }
 0x1b2   : > { %v1019_v60 = vpop.f32.mrf.mxu0  ;;  %v1135_v22 = vpop.f32.mrf.mxu1 }
 0x1b3   : > { %v1860_v25 = vpack.c.bf16 %v1018_v39, %v1016_v13  ;;  %v1020_v43 = vadd.f32 %v1019_v60, %v2743_v48  ;;  %v1136_v8 = vadd.f32 %v1135_v22, %v2743_v48 }
 0x1b4   : > { %v1021_v14 = vpop.f32.mrf.mxu0  ;;  %v1137_v26 = vpop.f32.mrf.mxu1 }
 0x1b5   : > { %1637 = vst [vmem:[%s2754_s24 + $0x48] sm:$0xff] %v1860_v25  ;;  %v1022_v44 = vadd.f32 %v1021_v14, %v2746_v30  ;;  %v1138_v32 = vadd.f32 %v1137_v26, %v2746_v30 }
 0x1b6   : > { %v1139_v6 = vpop.f32.mrf.mxu1 }
 0x1b7   : > { %v1862_v15 = vpack.c.bf16 %v1022_v44, %v1020_v43  ;;  %v1908_v7 = vpack.c.bf16 %v1138_v32, %v1136_v8  ;;  %v1140_v37 = vadd.f32 %v1139_v6, %v2743_v48 }
 0x1b8   : > { %v1141_v29 = vpop.f32.mrf.mxu1 }
 0x1b9   : > { %1639 = vst [vmem:[%s2754_s24 + $0x54] sm:$0xff] %v1862_v15  ;;  %1685 = vst [vmem:[%s2754_s24 + $0x168] sm:$0xff] %v1908_v7  ;;  %v1142_v24 = vadd.f32 %v1141_v29, %v2746_v30 }
 0x1ba   : > { %v1025_v3 = vpop.f32.mrf.mxu0  ;;  %v1954_v2 = vpop.f32.mrf.mxu1 }
 0x1bb   : > { %v1910_v57 = vpack.c.bf16 %v1142_v24, %v1140_v37  ;;  %v1026_v27 = vadd.f32 %v1025_v3, %v2743_v48  ;;  %v1187_v34 = vadd.f32 %v1954_v2, %v2800_v47 }
 0x1bc   : > { %v1027_v35 = vpop.f32.mrf.mxu0  ;;  %v1178_v42 = vpop.f32.mrf.mxu1 }
 0x1bd   : > { %v1028_v53 = vadd.f32 %v1027_v35, %v2746_v30  ;;  %1687 = vst [vmem:[%s2754_s24 + $0x174] sm:$0xff] %v1910_v57  ;;  %v1853_v5 = vpack.c.bf16 %v1187_v34, %v1187_v34  ;;  %v1179_v54 = vadd.f32 %v1178_v42, %v2800_v47 }
 0x1be   : > { %v1029_v10 = vpop.f32.mrf.mxu0  ;;  %v1955_v11 = vpop.f32.mrf.mxu1 }
 0x1bf   : > { %v1864_v9 = vpack.c.bf16 %v1028_v53, %v1026_v27  ;;  %1630 = vst [vmem:[%s2754_s24 + $0x20] sm:$0xf] %v1853_v5  ;;  %v1849_v33 = vpack.c.bf16 %v1179_v54, %v1179_v54  ;;  %v1030_v1 = vadd.f32 %v1029_v10, %v2743_v48  ;;  %v1190_v40 = vadd.f32 %v1955_v11, %v2800_v47 }
 0x1c0   : > { %v1031_v55 = vpop.f32.mrf.mxu0  ;;  %v1181_v0 = vpop.f32.mrf.mxu1 }
 0x1c1   : > { %1641 = vst [vmem:[%s2754_s24 + $0x60] sm:$0xff] %v1864_v9  ;;  %v1032_v62 = vadd.f32 %v1031_v55, %v2746_v30  ;;  %1626 = vst [vmem:[%s2754_s24 + $0x8] sm:$0xf] %v1849_v33  ;;  %v1855_v61 = vpack.c.bf16 %v1190_v40, %v1190_v40  ;;  %v1182_v38 = vadd.f32 %v1181_v0, %v2800_v47 }
 0x1c2   : > { %v1035_v63 = vpop.f32.mrf.mxu0  ;;  %v1958_v56 = vpop.f32.mrf.mxu1 }
 0x1c3   : > { %v1866_v52 = vpack.c.bf16 %v1032_v62, %v1030_v1  ;;  %1632 = vst [vmem:[%s2754_s24 + $0x2c] sm:$0xf] %v1855_v61  ;;  %v1851_v46 = vpack.c.bf16 %v1182_v38, %v1182_v38  ;;  %v1036_v18 = vadd.f32 %v1035_v63, %v2743_v48  ;;  %v1203_v12 = vadd.f32 %v1958_v56, %v2800_v47 }
 0x1c4   : > { %v1037_v49 = vpop.f32.mrf.mxu0  ;;  %v1194_v51 = vpop.f32.mrf.mxu1 }
 0x1c5   : > { %1643 = vst [vmem:[%s2754_s24 + $0x6c] sm:$0xff] %v1866_v52  ;;  %v1038_v19 = vadd.f32 %v1037_v49, %v2746_v30  ;;  %1628 = vst [vmem:[%s2754_s24 + $0x14] sm:$0xf] %v1851_v46  ;;  %v1861_v58 = vpack.c.bf16 %v1203_v12, %v1203_v12  ;;  %v1195_v20 = vadd.f32 %v1194_v51, %v2800_v47 }
 0x1c6   : > { %v1039_v50 = vpop.f32.mrf.mxu0  ;;  %v1959_v41 = vpop.f32.mrf.mxu1 }
 0x1c7   : > { %v1868_v4 = vpack.c.bf16 %v1038_v19, %v1036_v18  ;;  %1638 = vst [vmem:[%s2754_s24 + $0x50] sm:$0xf] %v1861_v58  ;;  %v1857_v21 = vpack.c.bf16 %v1195_v20, %v1195_v20  ;;  %v1040_v36 = vadd.f32 %v1039_v50, %v2743_v48  ;;  %v1206_v17 = vadd.f32 %v1959_v41, %v2800_v47 }
 0x1c8   : > { %v1041_v59 = vpop.f32.mrf.mxu0  ;;  %v1197_v45 = vpop.f32.mrf.mxu1 }
 0x1c9   : > { %1645 = vst [vmem:[%s2754_s24 + $0x78] sm:$0xff] %v1868_v4  ;;  %v1042_v28 = vadd.f32 %v1041_v59, %v2746_v30  ;;  %1634 = vst [vmem:[%s2754_s24 + $0x38] sm:$0xf] %v1857_v21  ;;  %v1863_v31 = vpack.c.bf16 %v1206_v17, %v1206_v17  ;;  %v1198_v39 = vadd.f32 %v1197_v45, %v2800_v47 }
 0x1ca   : > { %v1045_v16 = vpop.f32.mrf.mxu0  ;;  %v1962_v60 = vpop.f32.mrf.mxu1 }
 0x1cb   : > { %v1870_v13 = vpack.c.bf16 %v1042_v28, %v1040_v36  ;;  %1640 = vst [vmem:[%s2754_s24 + $0x5c] sm:$0xf] %v1863_v31  ;;  %v1859_v22 = vpack.c.bf16 %v1198_v39, %v1198_v39  ;;  %v1046_v14 = vadd.f32 %v1045_v16, %v2743_v48  ;;  %v1219_v43 = vadd.f32 %v1962_v60, %v2800_v47 }
 0x1cc   : > { %v1047_v25 = vpop.f32.mrf.mxu0  ;;  %v1210_v23 = vpop.f32.mrf.mxu1 }
 0x1cd   : > { %1647 = vst [vmem:[%s2754_s24 + $0x84] sm:$0xff] %v1870_v13  ;;  %v1048_v44 = vadd.f32 %v1047_v25, %v2746_v30  ;;  %1636 = vst [vmem:[%s2754_s24 + $0x44] sm:$0xf] %v1859_v22  ;;  %v1869_v8 = vpack.c.bf16 %v1219_v43, %v1219_v43  ;;  %v1211_v32 = vadd.f32 %v1210_v23, %v2800_v47 }
 0x1ce   : > { %v1049_v26 = vpop.f32.mrf.mxu0  ;;  %v1963_v6 = vpop.f32.mrf.mxu1 }
 0x1cf   : > { %v1872_v15 = vpack.c.bf16 %v1048_v44, %v1046_v14  ;;  %1646 = vst [vmem:[%s2754_s24 + $0x80] sm:$0xf] %v1869_v8  ;;  %v1865_v29 = vpack.c.bf16 %v1211_v32, %v1211_v32  ;;  %v1050_v3 = vadd.f32 %v1049_v26, %v2743_v48  ;;  %v1222_v37 = vadd.f32 %v1963_v6, %v2800_v47 }
 0x1d0   : > { %v1051_v7 = vpop.f32.mrf.mxu0  ;;  %v1213_v2 = vpop.f32.mrf.mxu1 }
 0x1d1   : > { %1649 = vst [vmem:[%s2754_s24 + $0x90] sm:$0xff] %v1872_v15  ;;  %v1052_v24 = vadd.f32 %v1051_v7, %v2746_v30  ;;  %1642 = vst [vmem:[%s2754_s24 + $0x68] sm:$0xf] %v1865_v29  ;;  %v1871_v57 = vpack.c.bf16 %v1222_v37, %v1222_v37  ;;  %v1214_v34 = vadd.f32 %v1213_v2, %v2800_v47 }
 0x1d2   : > { %v1055_v35 = vpop.f32.mrf.mxu0  ;;  %v1966_v53 = vpop.f32.mrf.mxu1 }
 0x1d3   : > { %v1874_v27 = vpack.c.bf16 %v1052_v24, %v1050_v3  ;;  %1648 = vst [vmem:[%s2754_s24 + $0x8c] sm:$0xf] %v1871_v57  ;;  %v1867_v10 = vpack.c.bf16 %v1214_v34, %v1214_v34  ;;  %v1056_v5 = vadd.f32 %v1055_v35, %v2743_v48  ;;  %v1235_v9 = vadd.f32 %v1966_v53, %v2800_v47 }
 0x1d4   : > { %v1057_v42 = vpop.f32.mrf.mxu0  ;;  %v1226_v11 = vpop.f32.mrf.mxu1 }
 0x1d5   : > { %1651 = vst [vmem:[%s2754_s24 + $0x9c] sm:$0xff] %v1874_v27  ;;  %v1058_v54 = vadd.f32 %v1057_v42, %v2746_v30  ;;  %1644 = vst [vmem:[%s2754_s24 + $0x74] sm:$0xf] %v1867_v10  ;;  %v1877_v33 = vpack.c.bf16 %v1235_v9, %v1235_v9  ;;  %v1227_v40 = vadd.f32 %v1226_v11, %v2800_v47 }
 0x1d6   : > { %v1059_v55 = vpop.f32.mrf.mxu0  ;;  %v1967_v62 = vpop.f32.mrf.mxu1 }
 0x1d7   : > { %v1876_v1 = vpack.c.bf16 %v1058_v54, %v1056_v5  ;;  %1654 = vst [vmem:[%s2754_s24 + $0xb0] sm:$0xf] %v1877_v33  ;;  %v1873_v63 = vpack.c.bf16 %v1227_v40, %v1227_v40  ;;  %v1060_v61 = vadd.f32 %v1059_v55, %v2743_v48  ;;  %v1238_v52 = vadd.f32 %v1967_v62, %v2800_v47 }
 0x1d8   : > { %v1061_v0 = vpop.f32.mrf.mxu0  ;;  %v1229_v56 = vpop.f32.mrf.mxu1 }
 0x1d9   : > { %1653 = vst [vmem:[%s2754_s24 + $0xa8] sm:$0xff] %v1876_v1  ;;  %v1062_v38 = vadd.f32 %v1061_v0, %v2746_v30  ;;  %1650 = vst [vmem:[%s2754_s24 + $0x98] sm:$0xf] %v1873_v63  ;;  %v1879_v49 = vpack.c.bf16 %v1238_v52, %v1238_v52  ;;  %v1230_v18 = vadd.f32 %v1229_v56, %v2800_v47 }
 0x1db   : > { %v1878_v46 = vpack.c.bf16 %v1062_v38, %v1060_v61  ;;  %1656 = vst [vmem:[%s2754_s24 + $0xbc] sm:$0xf] %v1879_v49  ;;  %v1875_v12 = vpack.c.bf16 %v1230_v18, %v1230_v18 }
 0x1dd   : > { %1655 = vst [vmem:[%s2754_s24 + $0xb4] sm:$0xff] %v1878_v46  ;;  %1652 = vst [vmem:[%s2754_s24 + $0xa4] sm:$0xf] %v1875_v12 }
 0x1de   : > { %v1065_v19 = vpop.f32.mrf.mxu0 }
 0x1df   : > { %v1066_v50 = vadd.f32 %v1065_v19, %v2743_v48 }
 0x1e0   : > { %v1067_v51 = vpop.f32.mrf.mxu0 }
 0x1e1   : > { %v1068_v58 = vadd.f32 %v1067_v51, %v2746_v30 }
 0x1e2   : > { %v1069_v4 = vpop.f32.mrf.mxu0  ;;  %v1970_v20 = vpop.f32.mrf.mxu1 }
 0x1e3   : > { %v1880_v41 = vpack.c.bf16 %v1068_v58, %v1066_v50  ;;  %v1251_v59 = vadd.f32 %v1970_v20, %v2800_v47  ;;  %v1070_v17 = vadd.f32 %v1069_v4, %v2743_v48 }
 0x1e4   : > { %v1071_v21 = vpop.f32.mrf.mxu0  ;;  %v1242_v36 = vpop.f32.mrf.mxu1 }
 0x1e5   : > { %1657 = vst [vmem:[%s2754_s24 + $0xc0] sm:$0xff] %v1880_v41  ;;  %v1885_v28 = vpack.c.bf16 %v1251_v59, %v1251_v59  ;;  %v1072_v45 = vadd.f32 %v1071_v21, %v2746_v30  ;;  %v1243_v16 = vadd.f32 %v1242_v36, %v2800_v47 }
 0x1e6   : > { %v1075_v31 = vpop.f32.mrf.mxu0  ;;  %v1971_v13 = vpop.f32.mrf.mxu1 }
 0x1e7   : > { %1662 = vst [vmem:[%s2754_s24 + $0xe0] sm:$0xf] %v1885_v28  ;;  %v1882_v39 = vpack.c.bf16 %v1072_v45, %v1070_v17  ;;  %v1881_v60 = vpack.c.bf16 %v1243_v16, %v1243_v16  ;;  %v1254_v25 = vadd.f32 %v1971_v13, %v2800_v47  ;;  %v1076_v43 = vadd.f32 %v1075_v31, %v2743_v48 }
 0x1e8   : > { %v1077_v22 = vpop.f32.mrf.mxu0  ;;  %v1245_v14 = vpop.f32.mrf.mxu1 }
 0x1e9   : > { %1659 = vst [vmem:[%s2754_s24 + $0xcc] sm:$0xff] %v1882_v39  ;;  %1658 = vst [vmem:[%s2754_s24 + $0xc8] sm:$0xf] %v1881_v60  ;;  %v1887_v44 = vpack.c.bf16 %v1254_v25, %v1254_v25  ;;  %v1078_v23 = vadd.f32 %v1077_v22, %v2746_v30  ;;  %v1246_v26 = vadd.f32 %v1245_v14, %v2800_v47 }
 0x1ea   : > { %v1079_v8 = vpop.f32.mrf.mxu0 }
 0x1eb   : > { %1664 = vst [vmem:[%s2754_s24 + $0xec] sm:$0xf] %v1887_v44  ;;  %v1884_v15 = vpack.c.bf16 %v1078_v23, %v1076_v43  ;;  %v1883_v32 = vpack.c.bf16 %v1246_v26, %v1246_v26  ;;  %v1080_v7 = vadd.f32 %v1079_v8, %v2743_v48 }
 0x1ec   : > { %v1081_v6 = vpop.f32.mrf.mxu0 }
 0x1ed   : > { %1661 = vst [vmem:[%s2754_s24 + $0xd8] sm:$0xff] %v1884_v15  ;;  %1660 = vst [vmem:[%s2754_s24 + $0xd4] sm:$0xf] %v1883_v32  ;;  %v1082_v29 = vadd.f32 %v1081_v6, %v2746_v30 }
 0x1ee   : > { %v1085_v3 = vpop.f32.mrf.mxu0 }
 0x1ef   : > { %v1886_v37 = vpack.c.bf16 %v1082_v29, %v1080_v7  ;;  %v1086_v2 = vadd.f32 %v1085_v3, %v2743_v48 }
 0x1f0   : > { %v1087_v24 = vpop.f32.mrf.mxu0 }
 0x1f1   : > { %1663 = vst [vmem:[%s2754_s24 + $0xe4] sm:$0xff] %v1886_v37  ;;  %v1088_v35 = vadd.f32 %v1087_v24, %v2746_v30 }
 0x1f2   : > { %v1089_v57 = vpop.f32.mrf.mxu0  ;;  %v1974_v27 = vpop.f32.mrf.mxu1 }
 0x1f3   : > { %v1888_v34 = vpack.c.bf16 %v1088_v35, %v1086_v2  ;;  %v1267_v53 = vadd.f32 %v1974_v27, %v2800_v47  ;;  %v1090_v5 = vadd.f32 %v1089_v57, %v2743_v48 }
 0x1f4   : > { %v1091_v42 = vpop.f32.mrf.mxu0  ;;  %v1258_v10 = vpop.f32.mrf.mxu1 }
 0x1f5   : > { %1665 = vst [vmem:[%s2754_s24 + $0xf0] sm:$0xff] %v1888_v34  ;;  %v1893_v9 = vpack.c.bf16 %v1267_v53, %v1267_v53  ;;  %v1092_v54 = vadd.f32 %v1091_v42, %v2746_v30  ;;  %v1259_v11 = vadd.f32 %v1258_v10, %v2800_v47 }
 0x1f6   : > { %v1095_v55 = vpop.f32.mrf.mxu0  ;;  %v1975_v33 = vpop.f32.mrf.mxu1 }
 0x1f7   : > { %1670 = vst [vmem:[%s2754_s24 + $0x110] sm:$0xf] %v1893_v9  ;;  %v1890_v1 = vpack.c.bf16 %v1092_v54, %v1090_v5  ;;  %v1889_v40 = vpack.c.bf16 %v1259_v11, %v1259_v11  ;;  %v1270_v62 = vadd.f32 %v1975_v33, %v2800_v47  ;;  %v1096_v61 = vadd.f32 %v1095_v55, %v2743_v48 }
 0x1f8   : > { %v1097_v0 = vpop.f32.mrf.mxu0  ;;  %v1261_v63 = vpop.f32.mrf.mxu1 }
 0x1f9   : > { %1667 = vst [vmem:[%s2754_s24 + $0xfc] sm:$0xff] %v1890_v1  ;;  %1666 = vst [vmem:[%s2754_s24 + $0xf8] sm:$0xf] %v1889_v40  ;;  %v1895_v52 = vpack.c.bf16 %v1270_v62, %v1270_v62  ;;  %v1098_v38 = vadd.f32 %v1097_v0, %v2746_v30  ;;  %v1262_v56 = vadd.f32 %v1261_v63, %v2800_v47 }
 0x1fa   : > { %v1099_v49 = vpop.f32.mrf.mxu0  ;;  %v1978_v46 = vpop.f32.mrf.mxu1 }
 0x1fb   : > { %1672 = vst [vmem:[%s2754_s24 + $0x11c] sm:$0xf] %v1895_v52  ;;  %v1892_v18 = vpack.c.bf16 %v1098_v38, %v1096_v61  ;;  %v1891_v12 = vpack.c.bf16 %v1262_v56, %v1262_v56  ;;  %v1283_v19 = vadd.f32 %v1978_v46, %v2800_v47  ;;  %v1100_v58 = vadd.f32 %v1099_v49, %v2743_v48 }
 0x1fc   : > { %v1101_v51 = vpop.f32.mrf.mxu0  ;;  %v1274_v50 = vpop.f32.mrf.mxu1 }
 0x1fd   : > { %1669 = vst [vmem:[%s2754_s24 + $0x108] sm:$0xff] %v1892_v18  ;;  %1668 = vst [vmem:[%s2754_s24 + $0x104] sm:$0xf] %v1891_v12  ;;  %v1901_v4 = vpack.c.bf16 %v1283_v19, %v1283_v19  ;;  %v1102_v20 = vadd.f32 %v1101_v51, %v2746_v30  ;;  %v1275_v41 = vadd.f32 %v1274_v50, %v2800_v47 }
 0x1fe   : > { %v1979_v59 = vpop.f32.mrf.mxu1 }
 0x1ff   : > { %1678 = vst [vmem:[%s2754_s24 + $0x140] sm:$0xf] %v1901_v4  ;;  %v1894_v21 = vpack.c.bf16 %v1102_v20, %v1100_v58  ;;  %v1897_v36 = vpack.c.bf16 %v1275_v41, %v1275_v41  ;;  %v1286_v17 = vadd.f32 %v1979_v59, %v2800_v47 }
 0x200   : > { %v1277_v28 = vpop.f32.mrf.mxu1 }
 0x201   : > { %1671 = vst [vmem:[%s2754_s24 + $0x114] sm:$0xff] %v1894_v21  ;;  %1674 = vst [vmem:[%s2754_s24 + $0x128] sm:$0xf] %v1897_v36  ;;  %v1903_v45 = vpack.c.bf16 %v1286_v17, %v1286_v17  ;;  %v1278_v48 = vadd.f32 %v1277_v28, %v2800_v47 }
 0x202   : > { %v1982_v16 = vpop.f32.mrf.mxu1 }
 0x203   : > { %1680 = vst [vmem:[%s2754_s24 + $0x14c] sm:$0xf] %v1903_v45  ;;  %v1899_v30 = vpack.c.bf16 %v1278_v48, %v1278_v48  ;;  %v1299_v31 = vadd.f32 %v1982_v16, %v2800_v47 }
 0x204   : > { %v1290_v13 = vpop.f32.mrf.mxu1 }
 0x205   : > { %1676 = vst [vmem:[%s2754_s24 + $0x134] sm:$0xf] %v1899_v30  ;;  %v1909_v39 = vpack.c.bf16 %v1299_v31, %v1299_v31  ;;  %v1291_v60 = vadd.f32 %v1290_v13, %v2800_v47 }
 0x206   : > { %v1983_v25 = vpop.f32.mrf.mxu1 }
 0x207   : > { %1686 = vst [vmem:[%s2754_s24 + $0x170] sm:$0xf] %v1909_v39  ;;  %v1905_v22 = vpack.c.bf16 %v1291_v60, %v1291_v60  ;;  %v1302_v14 = vadd.f32 %v1983_v25, %v2800_v47 }
 0x208   : > { %v1293_v43 = vpop.f32.mrf.mxu1 }
 0x209   : > { %1682 = vst [vmem:[%s2754_s24 + $0x158] sm:$0xf] %v1905_v22  ;;  %v1911_v44 = vpack.c.bf16 %v1302_v14, %v1302_v14  ;;  %v1294_v23 = vadd.f32 %v1293_v43, %v2800_v47 }
 0x20b   : > { %1688 = vst [vmem:[%s2754_s24 + $0x17c] sm:$0xf] %v1911_v44  ;;  %v1907_v26 = vpack.c.bf16 %v1294_v23, %v1294_v23 }
 0x20d   : > { %1684 = vst [vmem:[%s2754_s24 + $0x164] sm:$0xf] %v1907_v26 }
 0x20e PF: > { %s15_s18 = sadd.s32 1, %s2112_s18  }
 0x20f   : > { %p12_p4 = scmp.ge.s32.totalorder %s15_s18, 4  }
 0x211   :  { %14 = sbr.rel (!%p12_p4) target bundleno = 1 (0x1), region = 70 }

// kernel: transformer_forward.6
= control target key start
LH: loop header
LB: loop body
LE: loop exit
PB: predicated region body
PF: predicated region fallthrough
CT: control target
= control target key end

     0   :  { %s10252_s0 = inlined_call_operand.vmem [shape: f32[2,256,128], index: 0, kind: input, shape index: {}]   ;;  %s10253_s1 = inlined_call_operand.vmem [shape: bf16[2,256,384], index: 1, kind: input, shape index: {}, may-alias: {1,2,3}]   ;;  %s10254_s2 = inlined_call_operand.vmem [shape: bf16[2,256,384], index: 2, kind: input, shape index: {}, may-alias: {1,2,3}]   ;;  %s10255_s3 = inlined_call_operand.vmem [shape: bf16[2,256,384], index: 3, kind: input, shape index: {}, may-alias: {1,2,3}]   ;;  %s10256_s4 = inlined_call_operand.vmem [shape: bf16[128,128], index: 4, kind: input, shape index: {}]   ;;  %s10257_s5 = inlined_call_operand.vmem [shape: f32[1,128], index: 5, kind: input, shape index: {}]   ;;  %s10258_s6 = inlined_call_operand.vmem [shape: f32[1,128], index: 6, kind: input, shape index: {}]   ;;  %s10259_s7 = inlined_call_operand.vmem [shape: f32[1,128], index: 7, kind: input, shape index: {}]   ;;  %s10260_s8 = inlined_call_operand.vmem [shape: bf16[128,256], index: 8, kind: input, shape index: {}]   ;;  %s10261_s9 = inlined_call_operand.vmem [shape: f32[1,256], index: 9, kind: input, shape index: {}]   ;;  %s10262_s10 = inlined_call_operand.vmem [shape: bf16[256,128], index: 10, kind: input, shape index: {}]   ;;  %s10263_s11 = inlined_call_operand.vmem [shape: f32[1,128], index: 11, kind: input, shape index: {}]   ;;  %s10264_s12 = inlined_call_operand.vmem [shape: f32[2,256,128], index: 12, kind: output, shape index: {}]  }
   0x1   :  { %10373 = sst [smem:[#allocation62_spill]] %s10261_s9 }
   0x2   :  { %10374 = sst [smem:[#allocation63_spill]] %s10262_s10 }
   0x3   :  { %10375 = sst [smem:[#allocation64_spill]] %s10263_s11 }
   0x4   :  { %10376 = sst [smem:[#allocation65_spill]] %s10264_s12 }
   0x5   :  { %s7248_s21 = smov 0   ;;  %s7250_s22 = smov 0  }
   0x6   :  { %s7252_s23 = smov 0   ;;  %s7254_s24 = smov 0  }
   0x7   :  { %s7256_s25 = smov 0   ;;  %s7258_s26 = smov 0  }
   0x8   :  { %s7260_s27 = smov 0   ;;  %s7262_s28 = smov 0  }
   0x9   :  { %s7264_s29 = smov 0  }
   0xa LB: > { %s31_s30 = sadd.s32 1, %s7169_s27  ;;  %s34_s13 = sadd.s32 1, %s7173_s28  ;;  %s7177_s29 = sphi %s7264_s29, %s22_s29   ;;  %s7173_s28 = sphi %s7262_s28, %s10683_s28   ;;  %s7169_s27 = sphi %s7260_s27, %s10682_s27   ;;  %s7165_s26 = sphi %s7258_s26, %s10681_s26   ;;  %s7161_s25 = sphi %s7256_s25, %s10680_s25   ;;  %s7157_s24 = sphi %s7254_s24, %s10679_s24   ;;  %s7153_s23 = sphi %s7252_s23, %s10678_s23   ;;  %s7149_s22 = sphi %s7250_s22, %s10677_s22   ;;  %s7145_s21 = sphi %s7248_s21, %s10676_s21  }
   0xb   : > { %p32_p0 = scmp.ge.s32.totalorder %s31_s30, 2  ;;  %p78_p1 = scmp.ne.s32.totalorder %s7157_s24, %s7153_s23 }
   0xc   : > { %p79_p2 = scmp.eq.s32.totalorder %s7177_s29, 0  ;;  %p104_p5 = scmp.ne.s32.totalorder %s7149_s22, %s7145_s21 }
   0xd   : > { %s10685_s30 = smov (%p32_p0, %s31_s30), 0  ;;  %s10687_s13 = smov (!%p32_p0, %s34_s13), %s7173_s28 }
   0xe   : > { %10377 = sst [smem:[#allocation5_spill]] %s10685_s30  ;;  %p7301_p3 = por %p79_p2, %p78_p1 }
   0xf   : > { %p36_p4 = scmp.ge.s32.totalorder %s10687_s13, 2  ;;  %s67_s15 = ssub.s32 %s7169_s27, %s10685_s30 }
  0x10   : > { %s71_s16 = sadd.s32 1, %s7157_s24  ;;  %p7312_p6 = por %p104_p5, %p79_p2 }
  0x11   : > { %s10689_s13 = smov (%p36_p4, %s10687_s13), 0  ;;  %s97_s19 = sadd.s32 1, %s7149_s22 }
  0x12   : > { %10379 = sst [smem:[#allocation6_spill]] %s10689_s13  ;;  %s66_s18 = ssub.s32 %s7173_s28, %s10689_s13 }
  0x13   : > { %s68_s20 = sor.u32 %s67_s15, %s66_s18  ;;  %p95_p7 = scmp.eq.s32.totalorder %s66_s18, 0 }
  0x14   : > { %p69_p8 = scmp.eq.s32.totalorder %s68_s20, 0  ;;  %p5578_p9 = scmp.ge.s32.totalorder %s7177_s29, 4 }
  0x15   : > { %s7320_s12 = scalar_select %p95_p7, %s7149_s22, %s97_s19  }
  0x16   : > { %s7323_s11 = scalar_select %p69_p8, %s7157_s24, %s71_s16  }
  0x17   : > { %376 = sbr.rel (%p5578_p9) target bundleno = 98 (0x62), region = 48 }
  0x1c   : > { %392 = sbr.rel (!%p7301_p3) target bundleno = 46 (0x2e), region = 56  ;;  %s394_s30 = sand.u32 (%p7301_p3), 1, %s7157_s24  }
  0x1d   : > { %s6412_s9 = smul.u32 (%p7301_p3), 48, %s7169_s27  ;;  %s5579_s13 = sshll.u32 (%p7301_p3), %s394_s30, 6 }
  0x1e   : > { %s6413_s10 = smul.u32 (%p7301_p3), 96, %s7173_s28  ;;  %s396_s30 = scalar_lea.vmem (%p7301_p3), [#allocation2], %s5579_s13 }
  0x20   : > { %s400_s15 = sadd.s32 (%p7301_p3), %s6413_s10, %s6412_s9 }
  0x21   : > { %s5582_s18 = sshll.u32 %s400_s15, 2 }
  0x22   : > { %s7334_s16 = scalar_lea.vmem %s10253_s1, %s5582_s18 }
  0x23   : > { %v419_v0 = vld [vmem:[%s7334_s16] sm:$0xf]  ;;  %v421_v1 = vld [vmem:[%s7334_s16 + $0xc] sm:$0xf]  ;;  %v423_v2 = vld [vmem:[%s7334_s16 + $0x18] sm:$0xf] }
  0x24   : > { %420 = vst [vmem:[%s396_s30] sm:$0xf] %v419_v0  ;;  %422 = vst [vmem:[%s396_s30 + $0x4] sm:$0xf] %v421_v1  ;;  %v425_v3 = vld [vmem:[%s7334_s16 + $0x24] sm:$0xf] }
  0x25   : > { %424 = vst [vmem:[%s396_s30 + $0x8] sm:$0xf] %v423_v2  ;;  %v427_v4 = vld [vmem:[%s7334_s16 + $0x30] sm:$0xf]  ;;  %v429_v5 = vld [vmem:[%s7334_s16 + $0x3c] sm:$0xf] }
  0x26   : > { %426 = vst [vmem:[%s396_s30 + $0xc] sm:$0xf] %v425_v3  ;;  %428 = vst [vmem:[%s396_s30 + $0x10] sm:$0xf] %v427_v4  ;;  %v431_v6 = vld [vmem:[%s7334_s16 + $0x48] sm:$0xf] }
  0x27   : > { %430 = vst [vmem:[%s396_s30 + $0x14] sm:$0xf] %v429_v5  ;;  %v433_v7 = vld [vmem:[%s7334_s16 + $0x54] sm:$0xf]  ;;  %v435_v8 = vld [vmem:[%s7334_s16 + $0x60] sm:$0xf] }
  0x28   : > { %432 = vst [vmem:[%s396_s30 + $0x18] sm:$0xf] %v431_v6  ;;  %434 = vst [vmem:[%s396_s30 + $0x1c] sm:$0xf] %v433_v7  ;;  %v437_v9 = vld [vmem:[%s7334_s16 + $0x6c] sm:$0xf] }
  0x29   : > { %436 = vst [vmem:[%s396_s30 + $0x20] sm:$0xf] %v435_v8  ;;  %v439_v10 = vld [vmem:[%s7334_s16 + $0x78] sm:$0xf]  ;;  %v441_v11 = vld [vmem:[%s7334_s16 + $0x84] sm:$0xf] }
  0x2a   : > { %438 = vst [vmem:[%s396_s30 + $0x24] sm:$0xf] %v437_v9  ;;  %440 = vst [vmem:[%s396_s30 + $0x28] sm:$0xf] %v439_v10  ;;  %v443_v12 = vld [vmem:[%s7334_s16 + $0x90] sm:$0xf] }
  0x2b   : > { %442 = vst [vmem:[%s396_s30 + $0x2c] sm:$0xf] %v441_v11  ;;  %v445_v13 = vld [vmem:[%s7334_s16 + $0x9c] sm:$0xf]  ;;  %v447_v14 = vld [vmem:[%s7334_s16 + $0xa8] sm:$0xf] }
  0x2c   : > { %444 = vst [vmem:[%s396_s30 + $0x30] sm:$0xf] %v443_v12  ;;  %446 = vst [vmem:[%s396_s30 + $0x34] sm:$0xf] %v445_v13  ;;  %v449_v15 = vld [vmem:[%s7334_s16 + $0xb4] sm:$0xf] }
  0x2d   : > { %448 = vst [vmem:[%s396_s30 + $0x38] sm:$0xf] %v447_v14  ;;  %450 = vst [vmem:[%s396_s30 + $0x3c] sm:$0xf] %v449_v15 }
  0x2e PF: > { %506 = sbr.rel (!%p7312_p6) target bundleno = 72 (0x48), region = 97  ;;  %s508_s9 = sand.u32 (%p7312_p6), 1, %s7149_s22  }
  0x2f   : > { %s5584_s10 = smul.u32 (%p7312_p6), 384, %s7173_s28  ;;  %s5583_s13 = sshll.u32 (%p7312_p6), %s508_s9, 7 }
  0x30   : > { %s7364_s20 = scalar_lea.vmem (%p7312_p6), [#allocation3], %s5583_s13 }
  0x31   : > { %s7359_s18 = scalar_lea.vmem (%p7312_p6), %s10254_s2, %s5584_s10 }
  0x32   : > { %v5585_v16 = vld [vmem:[%s7359_s18 + $0x4] sm:$0xf] (%p7312_p6)  ;;  %v5586_v17 = vld [vmem:[%s7359_s18 + $0x10] sm:$0xf] (%p7312_p6)  ;;  %v5587_v18 = vld [vmem:[%s7359_s18 + $0x1c] sm:$0xf] (%p7312_p6) }
  0x33   : > { %532 = vst [vmem:[%s7364_s20] sm:$0xf] %v5585_v16  ;;  %534 = vst [vmem:[%s7364_s20 + $0x4] sm:$0xf] %v5586_v17  ;;  %v5588_v19 = vld [vmem:[%s7359_s18 + $0x28] sm:$0xf] }
  0x34   : > { %536 = vst [vmem:[%s7364_s20 + $0x8] sm:$0xf] %v5587_v18  ;;  %v5589_v20 = vld [vmem:[%s7359_s18 + $0x34] sm:$0xf]  ;;  %v5590_v21 = vld [vmem:[%s7359_s18 + $0x40] sm:$0xf] }
  0x35   : > { %538 = vst [vmem:[%s7364_s20 + $0xc] sm:$0xf] %v5588_v19  ;;  %540 = vst [vmem:[%s7364_s20 + $0x10] sm:$0xf] %v5589_v20  ;;  %v5591_v22 = vld [vmem:[%s7359_s18 + $0x4c] sm:$0xf] }
  0x36   : > { %542 = vst [vmem:[%s7364_s20 + $0x14] sm:$0xf] %v5590_v21  ;;  %v5592_v23 = vld [vmem:[%s7359_s18 + $0x58] sm:$0xf]  ;;  %v5593_v24 = vld [vmem:[%s7359_s18 + $0x64] sm:$0xf] }
  0x37   : > { %544 = vst [vmem:[%s7364_s20 + $0x18] sm:$0xf] %v5591_v22  ;;  %546 = vst [vmem:[%s7364_s20 + $0x1c] sm:$0xf] %v5592_v23  ;;  %v5594_v25 = vld [vmem:[%s7359_s18 + $0x70] sm:$0xf] }
  0x38   : > { %548 = vst [vmem:[%s7364_s20 + $0x20] sm:$0xf] %v5593_v24  ;;  %v5595_v26 = vld [vmem:[%s7359_s18 + $0x7c] sm:$0xf]  ;;  %v5596_v27 = vld [vmem:[%s7359_s18 + $0x88] sm:$0xf] }
  0x39   : > { %550 = vst [vmem:[%s7364_s20 + $0x24] sm:$0xf] %v5594_v25  ;;  %552 = vst [vmem:[%s7364_s20 + $0x28] sm:$0xf] %v5595_v26  ;;  %v5597_v28 = vld [vmem:[%s7359_s18 + $0x94] sm:$0xf] }
  0x3a   : > { %554 = vst [vmem:[%s7364_s20 + $0x2c] sm:$0xf] %v5596_v27  ;;  %v5598_v29 = vld [vmem:[%s7359_s18 + $0xa0] sm:$0xf]  ;;  %v5599_v30 = vld [vmem:[%s7359_s18 + $0xac] sm:$0xf] }
  0x3b   : > { %556 = vst [vmem:[%s7364_s20 + $0x30] sm:$0xf] %v5597_v28  ;;  %558 = vst [vmem:[%s7364_s20 + $0x34] sm:$0xf] %v5598_v29  ;;  %v5600_v31 = vld [vmem:[%s7359_s18 + $0xb8] sm:$0xf] }
  0x3c   : > { %560 = vst [vmem:[%s7364_s20 + $0x38] sm:$0xf] %v5599_v30  ;;  %v5601_v32 = vld [vmem:[%s7359_s18 + $0xc4] sm:$0xf]  ;;  %v5602_v33 = vld [vmem:[%s7359_s18 + $0xd0] sm:$0xf] }
  0x3d   : > { %562 = vst [vmem:[%s7364_s20 + $0x3c] sm:$0xf] %v5600_v31  ;;  %564 = vst [vmem:[%s7364_s20 + $0x40] sm:$0xf] %v5601_v32  ;;  %v5603_v34 = vld [vmem:[%s7359_s18 + $0xdc] sm:$0xf] }
  0x3e   : > { %566 = vst [vmem:[%s7364_s20 + $0x44] sm:$0xf] %v5602_v33  ;;  %v5604_v35 = vld [vmem:[%s7359_s18 + $0xe8] sm:$0xf]  ;;  %v5605_v36 = vld [vmem:[%s7359_s18 + $0xf4] sm:$0xf] }
  0x3f   : > { %568 = vst [vmem:[%s7364_s20 + $0x48] sm:$0xf] %v5603_v34  ;;  %570 = vst [vmem:[%s7364_s20 + $0x4c] sm:$0xf] %v5604_v35  ;;  %v5606_v37 = vld [vmem:[%s7359_s18 + $0x100] sm:$0xf] }
  0x40   : > { %572 = vst [vmem:[%s7364_s20 + $0x50] sm:$0xf] %v5605_v36  ;;  %v5607_v38 = vld [vmem:[%s7359_s18 + $0x10c] sm:$0xf]  ;;  %v5608_v39 = vld [vmem:[%s7359_s18 + $0x118] sm:$0xf] }
  0x41   : > { %574 = vst [vmem:[%s7364_s20 + $0x54] sm:$0xf] %v5606_v37  ;;  %576 = vst [vmem:[%s7364_s20 + $0x58] sm:$0xf] %v5607_v38  ;;  %v5609_v40 = vld [vmem:[%s7359_s18 + $0x124] sm:$0xf] }
  0x42   : > { %578 = vst [vmem:[%s7364_s20 + $0x5c] sm:$0xf] %v5608_v39  ;;  %v5610_v41 = vld [vmem:[%s7359_s18 + $0x130] sm:$0xf]  ;;  %v5611_v42 = vld [vmem:[%s7359_s18 + $0x13c] sm:$0xf] }
  0x43   : > { %580 = vst [vmem:[%s7364_s20 + $0x60] sm:$0xf] %v5609_v40  ;;  %582 = vst [vmem:[%s7364_s20 + $0x64] sm:$0xf] %v5610_v41  ;;  %v5612_v43 = vld [vmem:[%s7359_s18 + $0x148] sm:$0xf] }
  0x44   : > { %584 = vst [vmem:[%s7364_s20 + $0x68] sm:$0xf] %v5611_v42  ;;  %v5613_v44 = vld [vmem:[%s7359_s18 + $0x154] sm:$0xf]  ;;  %v5614_v45 = vld [vmem:[%s7359_s18 + $0x160] sm:$0xf] }
  0x45   : > { %586 = vst [vmem:[%s7364_s20 + $0x6c] sm:$0xf] %v5612_v43  ;;  %588 = vst [vmem:[%s7364_s20 + $0x70] sm:$0xf] %v5613_v44  ;;  %v5615_v46 = vld [vmem:[%s7359_s18 + $0x16c] sm:$0xf] }
  0x46   : > { %590 = vst [vmem:[%s7364_s20 + $0x74] sm:$0xf] %v5614_v45  ;;  %v5616_v47 = vld [vmem:[%s7359_s18 + $0x178] sm:$0xf]  ;;  %592 = vst [vmem:[%s7364_s20 + $0x78] sm:$0xf] %v5615_v46 }
  0x47   : > { %594 = vst [vmem:[%s7364_s20 + $0x7c] sm:$0xf] %v5616_v47 }
  0x48 PF: > { %682 = sbr.rel (!%p7312_p6) target bundleno = 98 (0x62), region = 138  ;;  %s684_s19 = sand.u32 (%p7312_p6), 1, %s7149_s22  }
  0x49   : > { %s5618_s16 = smul.u32 (%p7312_p6), 384, %s7173_s28  ;;  %s5617_s30 = sshll.u32 (%p7312_p6), %s684_s19, 7 }
  0x4a   : > { %s7439_s17 = scalar_lea.vmem (%p7312_p6), [#allocation4], %s5617_s30 }
  0x4b   : > { %s7434_s13 = scalar_lea.vmem (%p7312_p6), %s10255_s3, %s5618_s16 }
  0x4c   : > { %v5619_v48 = vld [vmem:[%s7434_s13 + $0x8] sm:$0xf] (%p7312_p6)  ;;  %v5620_v49 = vld [vmem:[%s7434_s13 + $0x14] sm:$0xf] (%p7312_p6)  ;;  %v5621_v50 = vld [vmem:[%s7434_s13 + $0x20] sm:$0xf] (%p7312_p6) }
  0x4d   : > { %708 = vst [vmem:[%s7439_s17] sm:$0xf] %v5619_v48  ;;  %710 = vst [vmem:[%s7439_s17 + $0x4] sm:$0xf] %v5620_v49  ;;  %v5622_v51 = vld [vmem:[%s7434_s13 + $0x2c] sm:$0xf] }
  0x4e   : > { %712 = vst [vmem:[%s7439_s17 + $0x8] sm:$0xf] %v5621_v50  ;;  %v5623_v52 = vld [vmem:[%s7434_s13 + $0x38] sm:$0xf]  ;;  %v5624_v53 = vld [vmem:[%s7434_s13 + $0x44] sm:$0xf] }
  0x4f   : > { %714 = vst [vmem:[%s7439_s17 + $0xc] sm:$0xf] %v5622_v51  ;;  %716 = vst [vmem:[%s7439_s17 + $0x10] sm:$0xf] %v5623_v52  ;;  %v5625_v54 = vld [vmem:[%s7434_s13 + $0x50] sm:$0xf] }
  0x50   : > { %718 = vst [vmem:[%s7439_s17 + $0x14] sm:$0xf] %v5624_v53  ;;  %v5626_v55 = vld [vmem:[%s7434_s13 + $0x5c] sm:$0xf]  ;;  %v5627_v56 = vld [vmem:[%s7434_s13 + $0x68] sm:$0xf] }
  0x51   : > { %720 = vst [vmem:[%s7439_s17 + $0x18] sm:$0xf] %v5625_v54  ;;  %722 = vst [vmem:[%s7439_s17 + $0x1c] sm:$0xf] %v5626_v55  ;;  %v5628_v57 = vld [vmem:[%s7434_s13 + $0x74] sm:$0xf] }
  0x52   : > { %724 = vst [vmem:[%s7439_s17 + $0x20] sm:$0xf] %v5627_v56  ;;  %v5629_v58 = vld [vmem:[%s7434_s13 + $0x80] sm:$0xf]  ;;  %v5630_v59 = vld [vmem:[%s7434_s13 + $0x8c] sm:$0xf] }
  0x53   : > { %726 = vst [vmem:[%s7439_s17 + $0x24] sm:$0xf] %v5628_v57  ;;  %728 = vst [vmem:[%s7439_s17 + $0x28] sm:$0xf] %v5629_v58  ;;  %v5631_v60 = vld [vmem:[%s7434_s13 + $0x98] sm:$0xf] }
  0x54   : > { %730 = vst [vmem:[%s7439_s17 + $0x2c] sm:$0xf] %v5630_v59  ;;  %v5632_v61 = vld [vmem:[%s7434_s13 + $0xa4] sm:$0xf]  ;;  %v5633_v62 = vld [vmem:[%s7434_s13 + $0xb0] sm:$0xf] }
  0x55   : > { %732 = vst [vmem:[%s7439_s17 + $0x30] sm:$0xf] %v5631_v60  ;;  %734 = vst [vmem:[%s7439_s17 + $0x34] sm:$0xf] %v5632_v61  ;;  %v5634_v63 = vld [vmem:[%s7434_s13 + $0xbc] sm:$0xf] }
  0x56   : > { %736 = vst [vmem:[%s7439_s17 + $0x38] sm:$0xf] %v5633_v62  ;;  %v5635_v0 = vld [vmem:[%s7434_s13 + $0xc8] sm:$0xf]  ;;  %v5636_v1 = vld [vmem:[%s7434_s13 + $0xd4] sm:$0xf] }
  0x57   : > { %738 = vst [vmem:[%s7439_s17 + $0x3c] sm:$0xf] %v5634_v63  ;;  %740 = vst [vmem:[%s7439_s17 + $0x40] sm:$0xf] %v5635_v0  ;;  %v5637_v2 = vld [vmem:[%s7434_s13 + $0xe0] sm:$0xf] }
  0x58   : > { %742 = vst [vmem:[%s7439_s17 + $0x44] sm:$0xf] %v5636_v1  ;;  %v5638_v3 = vld [vmem:[%s7434_s13 + $0xec] sm:$0xf]  ;;  %v5639_v4 = vld [vmem:[%s7434_s13 + $0xf8] sm:$0xf] }
  0x59   : > { %744 = vst [vmem:[%s7439_s17 + $0x48] sm:$0xf] %v5637_v2  ;;  %746 = vst [vmem:[%s7439_s17 + $0x4c] sm:$0xf] %v5638_v3  ;;  %v5640_v5 = vld [vmem:[%s7434_s13 + $0x104] sm:$0xf] }
  0x5a   : > { %748 = vst [vmem:[%s7439_s17 + $0x50] sm:$0xf] %v5639_v4  ;;  %v5641_v6 = vld [vmem:[%s7434_s13 + $0x110] sm:$0xf]  ;;  %v5642_v7 = vld [vmem:[%s7434_s13 + $0x11c] sm:$0xf] }
  0x5b   : > { %750 = vst [vmem:[%s7439_s17 + $0x54] sm:$0xf] %v5640_v5  ;;  %752 = vst [vmem:[%s7439_s17 + $0x58] sm:$0xf] %v5641_v6  ;;  %v5643_v8 = vld [vmem:[%s7434_s13 + $0x128] sm:$0xf] }
  0x5c   : > { %754 = vst [vmem:[%s7439_s17 + $0x5c] sm:$0xf] %v5642_v7  ;;  %v5644_v9 = vld [vmem:[%s7434_s13 + $0x134] sm:$0xf]  ;;  %v5645_v10 = vld [vmem:[%s7434_s13 + $0x140] sm:$0xf] }
  0x5d   : > { %756 = vst [vmem:[%s7439_s17 + $0x60] sm:$0xf] %v5643_v8  ;;  %758 = vst [vmem:[%s7439_s17 + $0x64] sm:$0xf] %v5644_v9  ;;  %v5646_v11 = vld [vmem:[%s7434_s13 + $0x14c] sm:$0xf] }
  0x5e   : > { %760 = vst [vmem:[%s7439_s17 + $0x68] sm:$0xf] %v5645_v10  ;;  %v5647_v12 = vld [vmem:[%s7434_s13 + $0x158] sm:$0xf]  ;;  %v5648_v13 = vld [vmem:[%s7434_s13 + $0x164] sm:$0xf] }
  0x5f   : > { %762 = vst [vmem:[%s7439_s17 + $0x6c] sm:$0xf] %v5646_v11  ;;  %764 = vst [vmem:[%s7439_s17 + $0x70] sm:$0xf] %v5647_v12  ;;  %v5649_v14 = vld [vmem:[%s7434_s13 + $0x170] sm:$0xf] }
  0x60   : > { %766 = vst [vmem:[%s7439_s17 + $0x74] sm:$0xf] %v5648_v13  ;;  %v5650_v15 = vld [vmem:[%s7434_s13 + $0x17c] sm:$0xf]  ;;  %768 = vst [vmem:[%s7439_s17 + $0x78] sm:$0xf] %v5649_v14 }
  0x61   : > { %770 = vst [vmem:[%s7439_s17 + $0x7c] sm:$0xf] %v5650_v15 }
  0x62 PF: > { %p5651_p10 = scmp.ge.s32.totalorder %s7177_s29, 1  ;;  %p857_p11 = scmp.lt.s32.totalorder %s7177_s29, 5 }
  0x64   : > { %p858_p12 = pnand %p5651_p10, %p857_p11 }
  0x66   : > { %861 = sbr.rel (%p858_p12) target bundleno = 3125 (0xc35), region = 179 }
  0x6b   : > { %s871_s14 = sand.u32 1, %s7145_s21   ;;  %vm1248_vm0 = vcmask 261120   ;;  %s7179_s20 = smov 96   ;;  %v1059_v1 = vlaneseq }
  0x6c   : > { %s7505_s15 = sshll.u32 %s871_s14, 7  ;;  %s864_s21 = sand.u32 1, %s7153_s23  }
  0x6d   : > { %s7508_s18 = scalar_lea.vmem [#allocation3], %s7505_s15  ;;  %s5652_s19 = sshll.u32 %s864_s21, 6  ;;  %v7692_v2 = vshrl.u32 %v1059_v1, 7  ;;  %v7694_v3 = vand.u32 127, %v1059_v1 }
  0x6e   : > { %v6490_v16 = vld [vmem:[%s7508_s18 + $0x78] sm:$0xff]   ;;  %v6492_v18 = vld [vmem:[%s7508_s18 + $0x70] sm:$0xff]   ;;  %v6494_v21 = vld [vmem:[%s7508_s18 + $0x68] sm:$0xff]   ;;  %s7533_s23 = scalar_lea.vmem [#allocation2], %s5652_s19  ;;  %s7630_s16 = scalar_lea.vmem [#allocation4], %s7505_s15 }
  0x6f   : > { %v6491_v17 = vld [vmem:[%s7508_s18 + $0x38] sm:$0xff]   ;;  %6380 = vmatprep.subr.msk.bf16.mxu0 %vm1248_vm0, %v6490_v16  ;;  %1957 = vrot.lane.b32.xlu1 %v6490_v16, %s7179_s20  ;;  %v6493_v20 = vld [vmem:[%s7508_s18 + $0x30] sm:$0xff]   ;;  %v6495_v23 = vld [vmem:[%s7508_s18 + $0x28] sm:$0xff]   ;;  %s5661_s30 = sshll.u32 %s7161_s25, 7  ;;  %10381 = vst [vmem:[#allocation7_spill] sm:$0xff] %v7692_v2  ;;  %v7703_v6 = vadd.s32 128, %v7694_v3 }
  0x70   : > { %v1295_v19 = vsel %vm1248_vm0, %v6491_v17, 0  ;;  %1941 = vrot.lane.b32.xlu0 %v6491_v17, %s7179_s20  ;;  %v1292_v22 = vsel %vm1248_vm0, %v6493_v20, 0  ;;  %v6496_v24 = vld [vmem:[%s7508_s18 + $0x60] sm:$0xff]   ;;  %v6499_v26 = vld [vmem:[%s7508_s18 + $0x18] sm:$0xff]   ;;  %v1289_v28 = vsel %vm1248_vm0, %v6495_v23, 0  ;;  %v7547_v31 = vld [vmem:[%s7508_s18 + $0x10] sm:$0xff]  }
  0x71   : > { %5813 = vmatpush3.bf16.xpose.msra.mxu0 %v1295_v19  ;;  %v6497_v25 = vld [vmem:[%s7508_s18 + $0x20] sm:$0xff]   ;;  %v6498_v29 = vld [vmem:[%s7508_s18 + $0x58] sm:$0xff]   ;;  %v7551_v32 = vld [vmem:[%s7508_s18 + $0x50] sm:$0xff]   ;;  %v1283_v33 = vsel %vm1248_vm0, %v6499_v26, 0  ;;  %v1280_v34 = vsel %vm1248_vm0, %v7547_v31, 0  ;;  %10382 = vst [vmem:[#allocation8_spill] sm:$0xff] %v7694_v3  ;;  %v7696_v4 = vstv %s5661_s30 }
  0x72   : > { %6381 = vmatprep.subr.msk.bf16.mxu0 %vm1248_vm0, %v6492_v18  ;;  %v7536_v27 = vld [vmem:[%s7533_s23] sm:$0xff]   ;;  %v1286_v30 = vsel %vm1248_vm0, %v6497_v25, 0  ;;  %v7559_v35 = vld [vmem:[%s7508_s18 + $0x48] sm:$0xff]   ;;  %v7586_v42 = vld [vmem:[%s7533_s23 + $0x10] sm:$0xff]   ;;  %v7700_v5 = vadd.s32 %v7696_v4, %v7692_v2  ;;  %10384 = vst [vmem:[#allocation10_spill] sm:$0xff] %v7703_v6  ;;  %v1061_v7 = vadd.s32 8, %v7692_v2 }
  0x73   : > { %1955 = vrot.lane.b32.xlu1 %v6492_v18, %s7179_s20  ;;  %5828 = vmatprep.mubr.msk.bf16.mxu0 %vm1248_vm0, %v7536_v27  ;;  %v7564_v36 = vld [vmem:[%s7508_s18 + $0x8] sm:$0xff]   ;;  %v7569_v38 = vld [vmem:[%s7508_s18 + $0x40] sm:$0xff]   ;;  %v7593_v43 = vld [vmem:[%s7533_s23 + $0x18] sm:$0xff]   ;;  %v1062_v10 = vadd.s32 16, %v7692_v2  ;;  %v1063_v14 = vadd.s32 24, %v7692_v2  ;;  %s7180_s9 = smov 64  }
  0x74   : > { %1939 = vrot.lane.b32.xlu0 %v6493_v20, %s7179_s20  ;;  %v1277_v37 = vsel %vm1248_vm0, %v7564_v36, 0  ;;  %v7574_v39 = vld [vmem:[%s7508_s18] sm:$0xff]   ;;  %v7579_v41 = vld [vmem:[%s7533_s23 + $0x8] sm:$0xff]   ;;  %v7614_v46 = vld [vmem:[%s7533_s23 + $0x30] sm:$0xff]   ;;  %10383 = vst [vmem:[#allocation9_spill] sm:$0xff] %v7700_v5  ;;  %vm1096_vm1 = vcmp.le.s32.totalorder %v7694_v3, %v7700_v5  ;;  %vm1097_vm2 = vcmp.le.s32.totalorder %v7703_v6, %v7700_v5  ;;  %v7711_v9 = vadd.s32 %v7696_v4, %v1061_v7  ;;  %s7181_s15 = smov 32  }
  0x75   : > { %v1274_v40 = vsel %vm1248_vm0, %v7574_v39, 0  ;;  %v7600_v44 = vld [vmem:[%s7533_s23 + $0x20] sm:$0xff]   ;;  %v7607_v45 = vld [vmem:[%s7533_s23 + $0x28] sm:$0xff]   ;;  %v7621_v47 = vld [vmem:[%s7533_s23 + $0x38] sm:$0xff]   ;;  %v7732_v17 = vadd.s32 %v7696_v4, %v1062_v10  ;;  %p941_p13 = scmp.lt.s32.totalorder %s7165_s26, 1  ;;  %s10669_s10 = sld [smem:[#allocation63_spill]] }
  0x76   : > { %v7633_v48 = vld [vmem:[%s7630_s16 + $0x78] sm:$0xff]   ;;  %v7640_v50 = vld [vmem:[%s7630_s16 + $0x70] sm:$0xff]   ;;  %v7648_v52 = vld [vmem:[%s7630_s16 + $0x68] sm:$0xff]   ;;  %10385 = vst [vmem:[#allocation11_spill] sm:$0xff] %v7711_v9  ;;  %vm1098_vm3 = vcmp.le.s32.totalorder %v7694_v3, %v7711_v9  ;;  %vm1099_vm4 = vcmp.le.s32.totalorder %v7703_v6, %v7711_v9  ;;  %s10673_s17 = sld [smem:[#allocation65_spill]] }
  0x77   : > { %1953 = vrot.lane.b32.xlu1 %v6494_v21, %s7179_s20  ;;  %v7636_v49 = vld [vmem:[%s7630_s16 + $0x38] sm:$0xff]   ;;  %5844 = vmatprep.subr.bf16.mxu1 %v7633_v48  ;;  %v7645_v51 = vld [vmem:[%s7630_s16 + $0x30] sm:$0xff]   ;;  %v7652_v53 = vld [vmem:[%s7630_s16 + $0x28] sm:$0xff]   ;;  %10386 = vst [vmem:[#allocation12_spill] sm:$0xff] %v7732_v17  ;;  %vm1100_vm5 = vcmp.le.s32.totalorder %v7694_v3, %v7732_v17  ;;  %vm10330_vm6 = vcmp.le.s32.totalorder %v7703_v6, %v7732_v17  ;;  %s10691_s26 = smov (!%p941_p13, %s7165_s26), 1 }
  0x78   : > { %1937 = vrot.lane.b32.xlu0 %v6495_v23, %s7179_s20  ;;  %5845 = vmatpush3.bf16.msra.mxu1 %v7636_v49  ;;  %v7656_v54 = vld [vmem:[%s7630_s16 + $0x60] sm:$0xff]   ;;  %v7665_v56 = vld [vmem:[%s7630_s16 + $0x58] sm:$0xff]   ;;  %v7671_v58 = vld [vmem:[%s7630_s16 + $0x50] sm:$0xff]  }
  0x79   : > { %5815 = vmatpush3.bf16.xpose.msra.mxu0 %v1292_v22  ;;  %5846 = vmatprep.subr.bf16.mxu1 %v7640_v50  ;;  %v7660_v55 = vld [vmem:[%s7630_s16 + $0x20] sm:$0xff]   ;;  %v7668_v57 = vld [vmem:[%s7630_s16 + $0x18] sm:$0xff]   ;;  %v7676_v59 = vld [vmem:[%s7630_s16 + $0x10] sm:$0xff]  }
  0x7a   : > { %6382 = vmatprep.subr.msk.bf16.mxu0 %vm1248_vm0, %v6494_v21  ;;  %v7680_v60 = vld [vmem:[%s7630_s16 + $0x48] sm:$0xff]   ;;  %v6528_v62 = vld [vmem:[%s7630_s16 + $0x40] sm:$0xff]   ;;  %v7745_v21 = vadd.s32 %v7696_v4, %v1063_v14 }
  0x7b   : > { %1951 = vrot.lane.b32.xlu1 %v6496_v24, %s7179_s20  ;;  %v7684_v61 = vld [vmem:[%s7630_s16 + $0x8] sm:$0xff]   ;;  %v6529_v63 = vld [vmem:[%s7630_s16] sm:$0xff]  }
  0x7c   : > { %1935 = vrot.lane.b32.xlu0 %v6497_v25, %s7179_s20  ;;  %5847 = vmatpush3.bf16.msra.mxu1 %v7645_v51  ;;  %10387 = vst [vmem:[#allocation13_spill] sm:$0xff] %v7745_v21  ;;  %vm10321_vm7 = vcmp.le.s32.totalorder %v7694_v3, %v7745_v21  ;;  %vm10322_vm8 = vcmp.le.s32.totalorder %v7703_v6, %v7745_v21 }
  0x7d   : > { %5848 = vmatprep.subr.bf16.mxu1 %v7648_v52 }
  0x7f   : > { %1933 = vrot.lane.b32.xlu1 %v6499_v26, %s7179_s20 }
  0x80   : > { %5849 = vmatpush3.bf16.msra.mxu1 %v7652_v53 }
  0x81   : > { %5817 = vmatpush3.bf16.xpose.msra.mxu0 %v1289_v28  ;;  %5850 = vmatprep.subr.bf16.mxu1 %v7656_v54 }
  0x82   : > { %6383 = vmatprep.subr.msk.bf16.mxu0 %vm1248_vm0, %v6496_v24  ;;  %v1064_v24 = vadd.s32 32, %v7692_v2 }
  0x83   : > { %1949 = vrot.lane.b32.xlu1 %v6498_v29, %s7179_s20 }
  0x84   : > { %5851 = vmatpush3.bf16.msra.mxu1 %v7660_v55 }
  0x85   : > { %5852 = vmatprep.subr.bf16.mxu1 %v7665_v56 }
  0x88   : > { %5853 = vmatpush3.bf16.msra.mxu1 %v7668_v57 }
  0x89   : > { %5819 = vmatpush3.bf16.xpose.msra.mxu0 %v1286_v30  ;;  %5854 = vmatprep.subr.bf16.mxu1 %v7671_v58 }
  0x8a   : > { %6384 = vmatprep.subr.msk.bf16.mxu0 %vm1248_vm0, %v6498_v29 }
  0x8c   : > { %5855 = vmatpush3.bf16.msra.mxu1 %v7676_v59 }
  0x8d   : > { %5856 = vmatprep.subr.bf16.mxu1 %v7680_v60 }
  0x90   : > { %5857 = vmatpush3.bf16.msra.mxu1 %v7684_v61 }
  0x91   : > { %5821 = vmatpush3.bf16.xpose.msra.mxu0 %v1283_v33  ;;  %5858 = vmatprep.subr.bf16.mxu1 %v6528_v62  ;;  %v7771_v33 = vadd.s32 %v7696_v4, %v1064_v24 }
  0x92   : > { %6385 = vmatprep.subr.msk.bf16.mxu0 %vm1248_vm0, %v7551_v32 }
  0x93   : > { %10388 = vst [vmem:[#allocation14_spill] sm:$0xff] %v7771_v33  ;;  %vm10324_vm9 = vcmp.le.s32.totalorder %v7694_v3, %v7771_v33  ;;  %vm10309_vm10 = vcmp.le.s32.totalorder %v7703_v6, %v7771_v33 }
  0x94   : > { %5859 = vmatpush3.bf16.msra.mxu1 %v6529_v63  ;;  %v1066_v63 = vadd.s32 48, %v7692_v2 }
  0x96   : > { %v7805_v14 = vadd.s32 %v7696_v4, %v1066_v63 }
  0x98   : > { %10390 = vst [vmem:[#allocation16_spill] sm:$0xff] %v7805_v14  ;;  %vm10270_vm13 = vcmp.le.s32.totalorder %v7694_v3, %v7805_v14  ;;  %vm10269_vm14 = vcmp.le.s32.totalorder %v7703_v6, %v7805_v14 }
  0x99   : > { %5823 = vmatpush3.bf16.xpose.msra.mxu0 %v1280_v34  ;;  %v1065_v34 = vadd.s32 40, %v7692_v2 }
  0x9a   : > { %6386 = vmatprep.subr.msk.bf16.mxu0 %vm1248_vm0, %v7559_v35 }
  0x9b   : > { %v7792_v7 = vadd.s32 %v7696_v4, %v1065_v34  ;;  %v1068_v34 = vadd.s32 64, %v7692_v2 }
  0x9d   : > { %10389 = vst [vmem:[#allocation15_spill] sm:$0xff] %v7792_v7  ;;  %vm10308_vm11 = vcmp.le.s32.totalorder %v7694_v3, %v7792_v7  ;;  %vm10268_vm12 = vcmp.le.s32.totalorder %v7703_v6, %v7792_v7 }
  0xa1   : > { %5825 = vmatpush3.bf16.xpose.msra.mxu0 %v1277_v37 }
  0xa2   : > { %6387 = vmatprep.subr.msk.bf16.mxu0 %vm1248_vm0, %v7569_v38 }
  0xa9   : > { %5827 = vmatpush3.bf16.xpose.msra.mxu0 %v1274_v40 }
  0xb0   : > { %5829 = vmatmul.mubr.msk.bf16.vlgmr.msra.gmra.mxu0 %vm1248_vm0, %v7536_v27 }
  0xb1   : > { %5830 = vmatprep.mubr.msk.bf16.mxu0 %vm1248_vm0, %v7579_v41 }
  0xb8   : > { %5831 = vmatmul.mubr.msk.bf16.gmra.mxu0 %vm1248_vm0, %v7579_v41 }
  0xb9   : > { %5832 = vmatprep.mubr.msk.bf16.mxu0 %vm1248_vm0, %v7586_v42 }
  0xc0   : > { %5833 = vmatmul.mubr.msk.bf16.gmra.mxu0 %vm1248_vm0, %v7586_v42 }
  0xc1   : > { %5834 = vmatprep.mubr.msk.bf16.mxu0 %vm1248_vm0, %v7593_v43 }
  0xc8   : > { %5835 = vmatmul.mubr.msk.bf16.gmra.mxu0 %vm1248_vm0, %v7593_v43 }
  0xc9   : > { %5836 = vmatprep.mubr.msk.bf16.mxu0 %vm1248_vm0, %v7600_v44 }
  0xd0   : > { %5837 = vmatmul.mubr.msk.bf16.gmra.mxu0 %vm1248_vm0, %v7600_v44 }
  0xd1   : > { %5838 = vmatprep.mubr.msk.bf16.mxu0 %vm1248_vm0, %v7607_v45 }
  0xd8   : > { %5839 = vmatmul.mubr.msk.bf16.gmra.mxu0 %vm1248_vm0, %v7607_v45 }
  0xd9   : > { %5840 = vmatprep.mubr.msk.bf16.mxu0 %vm1248_vm0, %v7614_v46 }
  0xe0   : > { %5841 = vmatmul.mubr.msk.bf16.gmra.mxu0 %vm1248_vm0, %v7614_v46 }
  0xe1   : > { %5842 = vmatprep.mubr.msk.bf16.mxu0 %vm1248_vm0, %v7621_v47  ;;  %v1958_v0 = vpop.permute.xlu1 %1957 }
  0xe2   : > { %6388 = vmatprep.subr.msk.bf16.mxu1 %vm1248_vm0, %v1958_v0 }
  0xe8   : > { %5843 = vmatmul.mubr.msk.bf16.gmra.mxu0 %vm1248_vm0, %v7621_v47 }
 0x170   : > { %v1355_v8 = vpop.f32.mrf.mxu0 }
 0x171   : > { %v7717_v12 = vsel %vm1096_vm1, %v1355_v8, -1e+30 }
 0x172   : > { %v1357_v11 = vpop.f32.mrf.mxu0 }
 0x173   : > { %v7722_v13 = vsel %vm1097_vm2, %v1357_v11, -1e+30 }
 0x174   : > { %v1359_v15 = vpop.f32.mrf.mxu0  ;;  %v1466_v16 = vmax.f32 %v7717_v12, %v7722_v13 }
 0x175   : > { %v7737_v19 = vsel %vm1098_vm3, %v1359_v15, -1e+30 }
 0x176   : > { %1467 = vmax.xlane.f32.xlu0 %v1466_v16  ;;  %v1361_v18 = vpop.f32.mrf.mxu0 }
 0x177   : > { %v7742_v20 = vsel %vm1099_vm4, %v1361_v18, -1e+30  ;;  %v1067_v18 = vadd.s32 56, %v7692_v2 }
 0x178   : > { %v1365_v22 = vpop.f32.mrf.mxu0  ;;  %v1469_v23 = vmax.f32 %v7737_v19, %v7742_v20 }
 0x179   : > { %v7757_v26 = vsel %vm1100_vm5, %v1365_v22, -1e+30 }
 0x17a   : > { %1470 = vmax.xlane.f32.xlu0 %v1469_v23  ;;  %v1367_v25 = vpop.f32.mrf.mxu0 }
 0x17b   : > { %v7762_v28 = vsel %vm10330_vm6, %v1367_v25, -1e+30 }
 0x17c   : > { %v1369_v29 = vpop.f32.mrf.mxu0  ;;  %v1472_v30 = vmax.f32 %v7757_v26, %v7762_v28 }
 0x17d   : > { %v7777_v40 = vsel %vm10321_vm7, %v1369_v29, -1e+30 }
 0x17e   : > { %1473 = vmax.xlane.f32.xlu1 %v1472_v30  ;;  %v1371_v37 = vpop.f32.mrf.mxu0  ;;  %v7831_v30 = vadd.s32 %v7696_v4, %v1067_v18 }
 0x17f   : > { %v7782_v62 = vsel %vm10322_vm8, %v1371_v37, -1e+30 }
 0x180   : > { %v1375_v0 = vpop.f32.mrf.mxu0  ;;  %v1475_v1 = vmax.f32 %v7777_v40, %v7782_v62  ;;  %10391 = vst [vmem:[#allocation17_spill] sm:$0xff] %v7831_v30  ;;  %vm10276_vm15 = vcmp.le.s32.totalorder %v7694_v3, %v7831_v30 }
 0x181   : > { %v7797_v10 = vsel %vm10324_vm9, %v1375_v0, -1e+30 }
 0x182   : > { %1476 = vmax.xlane.f32.xlu1 %v1475_v1  ;;  %v1377_v8 = vpop.f32.mrf.mxu0  ;;  %v1069_v1 = vadd.s32 72, %v7692_v2 }
 0x183   : > { %v7802_v11 = vsel %vm10309_vm10, %v1377_v8, -1e+30 }
 0x184   : > { %v1379_v15 = vpop.f32.mrf.mxu0  ;;  %v1478_v16 = vmax.f32 %v7797_v10, %v7802_v11 }
 0x185   : > { %v7817_v23 = vsel %vm10308_vm11, %v1379_v15, -1e+30 }
 0x186   : > { %1479 = vmax.xlane.f32.xlu0 %v1478_v16  ;;  %v1381_v22 = vpop.f32.mrf.mxu0  ;;  %v7852_v16 = vadd.s32 %v7696_v4, %v1068_v34 }
 0x187   : > { %v7822_v24 = vsel %vm10268_vm12, %v1381_v22, -1e+30  ;;  %vm10271_vm12 = vcmp.le.s32.totalorder %v7703_v6, %v7831_v30 }
 0x188   : > { %v1385_v25 = vpop.f32.mrf.mxu0  ;;  %v1481_v29 = vmax.f32 %v7817_v23, %v7822_v24  ;;  %10392 = vst [vmem:[#allocation18_spill] sm:$0xff] %v7852_v16 }
 0x189   : > { %v7837_v63 = vsel %vm10270_vm13, %v1385_v25, -1e+30  ;;  %vm10281_vm13 = vcmp.le.s32.totalorder %v7703_v6, %v7852_v16 }
 0x18a   : > { %1482 = vmax.xlane.f32.xlu1 %v1481_v29  ;;  %v1387_v37 = vpop.f32.mrf.mxu0  ;;  %v7865_v29 = vadd.s32 %v7696_v4, %v1069_v1 }
 0x18b   : > { %v7842_v0 = vsel %vm10269_vm14, %v1387_v37, -1e+30  ;;  %vm10284_vm14 = vcmp.le.s32.totalorder %v7694_v3, %v7852_v16 }
 0x18c   : > { %v1389_v8 = vpop.f32.mrf.mxu0  ;;  %v1484_v15 = vmax.f32 %v7837_v63, %v7842_v0  ;;  %10393 = vst [vmem:[#allocation19_spill] sm:$0xff] %v7865_v29 }
 0x18d   : > { %v7857_v22 = vsel %vm10276_vm15, %v1389_v8, -1e+30  ;;  %v1070_v8 = vadd.s32 80, %v7692_v2  ;;  %vm10287_vm15 = vcmp.le.s32.totalorder %v7703_v6, %v7865_v29 }
 0x18e   : > { %1485 = vmax.xlane.f32.xlu0 %v1484_v15  ;;  %v1391_v18 = vpop.f32.mrf.mxu0 }
 0x18f   : > { %v7862_v25 = vsel %vm10271_vm12, %v1391_v18, -1e+30  ;;  %vm10290_vm12 = vcmp.le.s32.totalorder %v7694_v3, %v7865_v29 }
 0x190   : > { %v1395_v34 = vpop.f32.mrf.mxu0  ;;  %v1487_v37 = vmax.f32 %v7857_v22, %v7862_v25 }
 0x191   : > { %v7877_v18 = vsel %vm10284_vm14, %v1395_v34, -1e+30  ;;  %v1071_v34 = vadd.s32 88, %v7692_v2 }
 0x192   : > { %1488 = vmax.xlane.f32.xlu1 %v1487_v37  ;;  %v1397_v15 = vpop.f32.mrf.mxu0  ;;  %v7891_v37 = vadd.s32 %v7696_v4, %v1070_v8 }
 0x193   : > { %v7882_v1 = vsel %vm10281_vm13, %v1397_v15, -1e+30 }
 0x194   : > { %v1399_v30 = vpop.f32.mrf.mxu0  ;;  %v1490_v14 = vmax.f32 %v7877_v18, %v7882_v1  ;;  %10394 = vst [vmem:[#allocation20_spill] sm:$0xff] %v7891_v37  ;;  %vm10304_vm13 = vcmp.le.s32.totalorder %v7694_v3, %v7891_v37  ;;  %vm10303_vm14 = vcmp.le.s32.totalorder %v7703_v6, %v7891_v37 }
 0x195   : > { %v7897_v15 = vsel %vm10290_vm12, %v1399_v30, -1e+30 }
 0x196   : > { %1491 = vmax.xlane.f32.xlu0 %v1490_v14  ;;  %v1401_v7 = vpop.f32.mrf.mxu0  ;;  %v7911_v14 = vadd.s32 %v7696_v4, %v1071_v34 }
 0x197   : > { %v7902_v16 = vsel %vm10287_vm15, %v1401_v7, -1e+30 }
 0x198   : > { %v1405_v33 = vpop.f32.mrf.mxu0  ;;  %v1493_v8 = vmax.f32 %v7897_v15, %v7902_v16  ;;  %10395 = vst [vmem:[#allocation21_spill] sm:$0xff] %v7911_v14  ;;  %vm10307_vm15 = vcmp.le.s32.totalorder %v7694_v3, %v7911_v14  ;;  %vm10306_vm12 = vcmp.le.s32.totalorder %v7703_v6, %v7911_v14  ;;  %v1074_v14 = vadd.s32 112, %v7692_v2 }
 0x199   : > { %v7916_v7 = vsel %vm10304_vm13, %v1405_v33, -1e+30 }
 0x19a   : > { %1494 = vmax.xlane.f32.xlu1 %v1493_v8  ;;  %v1407_v30 = vpop.f32.mrf.mxu0  ;;  %10396 = vst [vmem:[#allocation22_spill] sm:$0xff] %v7916_v7 }
 0x19b   : > { %v7921_v29 = vsel %vm10303_vm14, %v1407_v30, -1e+30 }
 0x19c   : > { %10397 = vst [vmem:[#allocation23_spill] sm:$0xff] %v7921_v29  ;;  %v1409_v21 = vpop.f32.mrf.mxu0  ;;  %v1496_v34 = vmax.f32 %v7916_v7, %v7921_v29  ;;  %v1075_v29 = vadd.s32 120, %v7692_v2 }
 0x19d   : > { %v7932_v33 = vsel %vm10307_vm15, %v1409_v21, -1e+30  ;;  %v1072_v21 = vadd.s32 96, %v7692_v2 }
 0x19e   : > { %1497 = vmax.xlane.f32.xlu1 %v1496_v34  ;;  %v1411_v8 = vpop.f32.mrf.mxu0  ;;  %10398 = vst [vmem:[#allocation24_spill] sm:$0xff] %v7932_v33 }
 0x19f   : > { %v7937_v30 = vsel %vm10306_vm12, %v1411_v8, -1e+30  ;;  %v7948_v8 = vadd.s32 %v7696_v4, %v1072_v21 }
 0x1a0   : > { %10399 = vst [vmem:[#allocation25_spill] sm:$0xff] %v7937_v30  ;;  %v1499_v37 = vmax.f32 %v7932_v33, %v7937_v30  ;;  %v1415_v17 = vpop.f32.mrf.mxu0  ;;  %v1073_v30 = vadd.s32 104, %v7692_v2  ;;  %v7952_v33 = vadd.s32 %v7696_v4, %v1074_v14 }
 0x1a1   : > { %10400 = vst [vmem:[#allocation26_spill] sm:$0xff] %v7948_v8  ;;  %vm1120_vm14 = vcmp.le.s32.totalorder %v7694_v3, %v7948_v8  ;;  %vm1121_vm13 = vcmp.le.s32.totalorder %v7703_v6, %v7948_v8 }
 0x1a2   : > { %1500 = vmax.xlane.f32.xlu0 %v1499_v37  ;;  %v1417_v34 = vpop.f32.mrf.mxu0  ;;  %10401 = vst [vmem:[#allocation27_spill] sm:$0xff] %v7952_v33  ;;  %vm10315_vm12 = vcmp.le.s32.totalorder %v7694_v3, %v7952_v33  ;;  %vm10316_vm15 = vcmp.le.s32.totalorder %v7703_v6, %v7952_v33  ;;  %v7969_v14 = vsel %vm1120_vm14, %v1415_v17, -1e+30  ;;  %v8027_v33 = vpop.permute.xlu0 %1941 }
 0x1a3   : > { %v7974_v21 = vsel %vm1121_vm13, %v1417_v34, -1e+30 }
 0x1a4   : > { %v1419_v9 = vpop.f32.mrf.mxu0  ;;  %v1502_v8 = vmax.f32 %v7969_v14, %v7974_v21 }
 0x1a6   : > { %v1421_v5 = vpop.f32.mrf.mxu0 }
 0x1a8   : > { %v1425_v37 = vpop.f32.mrf.mxu0 }
 0x1a9   : > { %v7986_v17 = vsel %vm10315_vm12, %v1425_v37, -1e+30 }
 0x1af   : > { %1947 = vrot.lane.b32.xlu1 %v7551_v32, %s7179_s20  ;;  %v1427_v32 = vpop.f32.mrf.mxu0 }
 0x1b0   : > { %v7991_v34 = vsel %vm10316_vm15, %v1427_v32, -1e+30 }
 0x1b1   : > { %v1429_v2 = vpop.f32.mrf.mxu0  ;;  %v1508_v37 = vmax.f32 %v7986_v17, %v7991_v34 }
 0x1b8   : > { %1931 = vrot.lane.b32.xlu0 %v7547_v31, %s7179_s20  ;;  %v7959_v31 = vadd.s32 %v7696_v4, %v1073_v30  ;;  %v7981_v30 = vadd.s32 %v7696_v4, %v1075_v29  ;;  %v1431_v29 = vpop.f32.mrf.mxu0 }
 0x1ba   : > { %10402 = vst [vmem:[#allocation28_spill] sm:$0xff] %v7959_v31  ;;  %vm1122_vm11 = vcmp.le.s32.totalorder %v7694_v3, %v7959_v31  ;;  %vm1123_vm10 = vcmp.le.s32.totalorder %v7703_v6, %v7959_v31  ;;  %10403 = vst [vmem:[#allocation29_spill] sm:$0xff] %v7981_v30  ;;  %vm1126_vm12 = vcmp.le.s32.totalorder %v7694_v3, %v7981_v30  ;;  %v8029_v31 = vpop.permute.xlu1 %1955 }
 0x1bb   : > { %v7998_v7 = vsel %vm1122_vm11, %v1419_v9, -1e+30  ;;  %v8003_v4 = vsel %vm1123_vm10, %v1421_v5, -1e+30  ;;  %vm1127_vm15 = vcmp.le.s32.totalorder %v7703_v6, %v7981_v30  ;;  %v8016_v32 = vsel %vm1126_vm12, %v1429_v2, -1e+30  ;;  %v8033_v2 = vpop.permute.xlu0 %1939 }
 0x1bc   : > { %v1505_v9 = vmax.f32 %v7998_v7, %v8003_v4  ;;  %v8021_v5 = vsel %vm1127_vm15, %v1431_v29, -1e+30  ;;  %v8474_v30 = vld [vmem:[%s7508_s18 + $0x60] sm:$0xff]  }
 0x1be   : > { %v8037_v29 = vpop.permute.xlu1 %1953 }
 0x1d3   : > { %1503 = vmax.xlane.f32.xlu1 %v1502_v8  ;;  %v1511_v8 = vmax.f32 %v8016_v32, %v8021_v5 }
 0x1d7   : > { %1506 = vmax.xlane.f32.xlu0 %v1505_v9  ;;  %1509 = vmax.xlane.f32.xlu1 %v1508_v37  ;;  %v8047_v37 = vpop.permute.xlu1 %1951 }
 0x1db   : > { %1512 = vmax.xlane.f32.xlu0 %v1511_v8 }
 0x1e8   : > { %1945 = vrot.lane.b32.xlu1 %v7559_v35, %s7179_s20  ;;  %v8043_v35 = vpop.permute.xlu0 %1937 }
 0x1ec   : > { %1943 = vrot.lane.b32.xlu1 %v7569_v38, %s7179_s20  ;;  %v8053_v38 = vpop.permute.xlu0 %1935 }
 0x1f0   : > { %1913 = vrot.lane.b32.xlu1 %v7579_v41, %s7179_s20 }
 0x1f1   : > { %1929 = vrot.lane.b32.xlu0 %v7564_v36, %s7179_s20  ;;  %v8057_v36 = vpop.permute.xlu1 %1933 }
 0x1f4   : > { %1917 = vrot.lane.b32.xlu1 %v7593_v43, %s7179_s20 }
 0x1f5   : > { %1927 = vrot.lane.b32.xlu0 %v7574_v39, %s7179_s20  ;;  %v8067_v9 = vpop.permute.xlu1 %1949 }
 0x1f8   : > { %1921 = vrot.lane.b32.xlu1 %v7607_v45, %s7179_s20 }
 0x1f9   : > { %1911 = vrot.lane.b32.xlu0 %v7536_v27, %s7179_s20 }
 0x1fc   : > { %1925 = vrot.lane.b32.xlu1 %v7621_v47, %s7179_s20 }
 0x1fd   : > { %1915 = vrot.lane.b32.xlu0 %v7586_v42, %s7179_s20 }
 0x1ff   : > { %v1468_v41 = vpop.xlane.xlu0 %1467 }
 0x200   : > { %v1514_v39 = vsub.f32 %v7717_v12, %v1468_v41  ;;  %v1515_v43 = vsub.f32 %v7722_v13, %v1468_v41  ;;  %2414 = vrot.lane.b32.xlu1 %v7636_v49, %s7179_s20 }
 0x201   : > { %1919 = vrot.lane.b32.xlu0 %v7600_v44, %s7179_s20 }
 0x202   : > { %v1546_v27 = vmul.f32 1.442695, %v1514_v39  ;;  %v1548_v45 = vmul.f32 1.442695, %v1515_v43 }
 0x203   : > { %v1471_v47 = vpop.xlane.xlu0 %1470 }
 0x204   : > { %6578 = vpow2.f32 %v1546_v27  ;;  %v1516_v8 = vsub.f32 %v7737_v19, %v1471_v47  ;;  %v1517_v42 = vsub.f32 %v7742_v20, %v1471_v47  ;;  %2412 = vrot.lane.b32.xlu1 %v7645_v51, %s7179_s20 }
 0x205   : > { %6580 = vpow2.f32 %v1548_v45  ;;  %1923 = vrot.lane.b32.xlu0 %v7614_v46, %s7179_s20 }
 0x206   : > { %v1550_v49 = vmul.f32 1.442695, %v1516_v8  ;;  %v1552_v12 = vmul.f32 1.442695, %v1517_v42 }
 0x207   : > { %v1474_v44 = vpop.xlane.xlu1 %1473 }
 0x208   : > { %6582 = vpow2.f32 %v1550_v49  ;;  %v1518_v13 = vsub.f32 %v7757_v26, %v1474_v44  ;;  %v1519_v41 = vsub.f32 %v7762_v28, %v1474_v44  ;;  %2410 = vrot.lane.b32.xlu1 %v7652_v53, %s7179_s20 }
 0x209   : > { %6584 = vpow2.f32 %v1552_v12  ;;  %2430 = vrot.lane.b32.xlu0 %v7633_v48, %s7179_s20 }
 0x20a   : > { %v1554_v51 = vmul.f32 1.442695, %v1518_v13  ;;  %v1556_v19 = vmul.f32 1.442695, %v1519_v41  ;;  %v2005_v13 = vsel %vm1248_vm0, %v8027_v33, 0 }
 0x20b   : > { %v1477_v20 = vpop.xlane.xlu1 %1476 }
 0x20c   : > { %6586 = vpow2.f32 %v1554_v51  ;;  %v1520_v46 = vsub.f32 %v7777_v40, %v1477_v20  ;;  %v1521_v39 = vsub.f32 %v7782_v62, %v1477_v20  ;;  %2408 = vrot.lane.b32.xlu1 %v7660_v55, %s7179_s20 }
 0x20d   : > { %6588 = vpow2.f32 %v1556_v19  ;;  %2428 = vrot.lane.b32.xlu0 %v7640_v50, %s7179_s20 }
 0x20e   : > { %v1558_v53 = vmul.f32 1.442695, %v1520_v46  ;;  %v1560_v26 = vmul.f32 1.442695, %v1521_v39 }
 0x20f   : > { %v1480_v28 = vpop.xlane.xlu0 %1479 }
 0x210   : > { %6590 = vpow2.f32 %v1558_v53  ;;  %v1522_v48 = vsub.f32 %v7797_v10, %v1480_v28  ;;  %v1523_v43 = vsub.f32 %v7802_v11, %v1480_v28  ;;  %2406 = vrot.lane.b32.xlu1 %v7668_v57, %s7179_s20 }
 0x211   : > { %v6579_v40 = vpop.eup %6578  ;;  %6592 = vpow2.f32 %v1560_v26  ;;  %2426 = vrot.lane.b32.xlu0 %v7648_v52, %s7179_s20 }
 0x212   : > { %v6581_v55 = vpop.eup %6580  ;;  %v1562_v62 = vmul.f32 1.442695, %v1522_v48  ;;  %v1564_v27 = vmul.f32 1.442695, %v1523_v43 }
 0x213   : > { %v1483_v50 = vpop.xlane.xlu1 %1482  ;;  %v8093_v45 = vadd.f32 %v6581_v55, %v6579_v40 }
 0x214   : > { %6594 = vpow2.f32 %v1562_v62  ;;  %v1524_v47 = vsub.f32 %v7817_v23, %v1483_v50  ;;  %v1525_v10 = vsub.f32 %v7822_v24, %v1483_v50  ;;  %2404 = vrot.lane.b32.xlu1 %v7676_v59, %s7179_s20 }
 0x215   : > { %v6583_v57 = vpop.eup %6582  ;;  %6596 = vpow2.f32 %v1564_v27  ;;  %2424 = vrot.lane.b32.xlu0 %v7656_v54, %s7179_s20 }
 0x216   : > { %v6585_v52 = vpop.eup %6584  ;;  %v1566_v11 = vmul.f32 1.442695, %v1524_v47  ;;  %v1568_v8 = vmul.f32 1.442695, %v1525_v10  ;;  %v1674_v42 = vpack.c.bf16 %v6583_v57, %v6579_v40 }
 0x217   : > { %v1486_v49 = vpop.xlane.xlu0 %1485  ;;  %v1675_v12 = vpack.c.bf16 %v6585_v52, %v6581_v55  ;;  %v8101_v44 = vadd.f32 %v6585_v52, %v6583_v57 }
 0x218   : > { %6598 = vpow2.f32 %v1566_v11  ;;  %v1526_v23 = vsub.f32 %v7837_v63, %v1486_v49  ;;  %v1527_v24 = vsub.f32 %v7842_v0, %v1486_v49  ;;  %2402 = vrot.lane.b32.xlu1 %v7684_v61, %s7179_s20  ;;  %v10404_v11 = vld [vmem:[#allocation22_spill] sm:$0xff] }
 0x219   : > { %v6587_v59 = vpop.eup %6586  ;;  %6600 = vpow2.f32 %v1568_v8  ;;  %1818 = vmatprep.mubr.bf16.mxu1 %v1675_v12  ;;  %2422 = vrot.lane.b32.xlu0 %v7665_v56, %s7179_s20 }
 0x21a   : > { %v6589_v54 = vpop.eup %6588  ;;  %v1570_v41 = vmul.f32 1.442695, %v1526_v23  ;;  %v1572_v51 = vmul.f32 1.442695, %v1527_v24  ;;  %1819 = vmatmul.mubr.bf16.vlgmr.msra.gmra.mxu1 %v1674_v42  ;;  %v10405_v42 = vld [vmem:[#allocation23_spill] sm:$0xff] }
 0x21b   : > { %5909 = vmatpush3.bf16.xpose.msra.mxu1 %v2005_v13  ;;  %v1489_v63 = vpop.xlane.xlu1 %1488  ;;  %v8111_v19 = vadd.f32 %v6589_v54, %v6587_v59 }
 0x21c   : > { %6602 = vpow2.f32 %v1570_v41  ;;  %6389 = vmatprep.subr.msk.bf16.mxu1 %vm1248_vm0, %v8029_v31  ;;  %v1528_v61 = vsub.f32 %v7857_v22, %v1489_v63  ;;  %v1529_v0 = vsub.f32 %v7862_v25, %v1489_v63  ;;  %v2002_v25 = vsel %vm1248_vm0, %v8033_v2, 0  ;;  %v10407_v41 = vld [vmem:[#allocation25_spill] sm:$0xff] }
 0x21d   : > { %v6591_v56 = vpop.eup %6590  ;;  %6604 = vpow2.f32 %v1572_v51  ;;  %2420 = vrot.lane.b32.xlu0 %v7671_v58, %s7179_s20 }
 0x21e   : > { %v6593_v33 = vpop.eup %6592  ;;  %v1574_v20 = vmul.f32 1.442695, %v1528_v61  ;;  %v1576_v46 = vmul.f32 1.442695, %v1529_v0  ;;  %v1676_v39 = vpack.c.bf16 %v6591_v56, %v6587_v59 }
 0x21f   : > { %v1492_v53 = vpop.xlane.xlu0 %1491  ;;  %v1677_v26 = vpack.c.bf16 %v6593_v33, %v6589_v54  ;;  %v8119_v28 = vadd.f32 %v6593_v33, %v6591_v56  ;;  %v10406_v54 = vld [vmem:[#allocation24_spill] sm:$0xff] }
 0x220   : > { %6606 = vpow2.f32 %v1574_v20  ;;  %v1530_v31 = vsub.f32 %v7877_v18, %v1492_v53  ;;  %v1531_v22 = vsub.f32 %v7882_v1, %v1492_v53 }
 0x221   : > { %v6595_v48 = vpop.eup %6594  ;;  %6608 = vpow2.f32 %v1576_v46  ;;  %1826 = vmatprep.mubr.bf16.mxu1 %v1677_v26  ;;  %2418 = vrot.lane.b32.xlu0 %v7680_v60, %s7179_s20 }
 0x222   : > { %v6597_v58 = vpop.eup %6596  ;;  %v1578_v43 = vmul.f32 1.442695, %v1530_v31  ;;  %v1580_v40 = vmul.f32 1.442695, %v1531_v22  ;;  %1827 = vmatmul.mubr.bf16.gmra.mxu1 %v1676_v39 }
 0x223   : > { %5911 = vmatpush3.bf16.xpose.msra.mxu1 %v2002_v25  ;;  %v1495_v55 = vpop.xlane.xlu1 %1494  ;;  %v8127_v62 = vadd.f32 %v6597_v58, %v6595_v48 }
 0x224   : > { %6610 = vpow2.f32 %v1578_v43  ;;  %6390 = vmatprep.subr.msk.bf16.mxu1 %vm1248_vm0, %v8037_v29  ;;  %v1532_v18 = vsub.f32 %v7897_v15, %v1495_v55  ;;  %v1533_v1 = vsub.f32 %v7902_v16, %v1495_v55  ;;  %v1999_v16 = vsel %vm1248_vm0, %v8043_v35, 0 }
 0x225   : > { %v6599_v60 = vpop.eup %6598  ;;  %6612 = vpow2.f32 %v1580_v40  ;;  %v1993_v40 = vsel %vm1248_vm0, %v8057_v36, 0 }
 0x226   : > { %v6601_v27 = vpop.eup %6600  ;;  %v1582_v50 = vmul.f32 1.442695, %v1532_v18  ;;  %v1584_v2 = vmul.f32 1.442695, %v1533_v1  ;;  %v1678_v47 = vpack.c.bf16 %v6599_v60, %v6595_v48 }
 0x227   : > { %v1498_v10 = vpop.xlane.xlu1 %1497  ;;  %v1679_v57 = vpack.c.bf16 %v6601_v27, %v6597_v58  ;;  %v8133_v52 = vadd.f32 %v6601_v27, %v6599_v60 }
 0x228   : > { %6614 = vpow2.f32 %v1582_v50  ;;  %v1534_v8 = vsub.f32 %v10404_v11, %v1498_v10  ;;  %v1535_v49 = vsub.f32 %v10405_v42, %v1498_v10 }
 0x229   : > { %v6603_v29 = vpop.eup %6602  ;;  %6616 = vpow2.f32 %v1584_v2  ;;  %1834 = vmatprep.mubr.bf16.mxu1 %v1679_v57 }
 0x22a   : > { %v6605_v15 = vpop.eup %6604  ;;  %v1586_v12 = vmul.f32 1.442695, %v1534_v8  ;;  %v1588_v23 = vmul.f32 1.442695, %v1535_v49  ;;  %1835 = vmatmul.mubr.bf16.gmra.mxu1 %v1678_v47 }
 0x22b   : > { %5913 = vmatpush3.bf16.xpose.msra.mxu1 %v1999_v16  ;;  %v1501_v24 = vpop.xlane.xlu0 %1500  ;;  %v8139_v59 = vadd.f32 %v6605_v15, %v6603_v29 }
 0x22c   : > { %6618 = vpow2.f32 %v1586_v12  ;;  %6391 = vmatprep.subr.msk.bf16.mxu1 %vm1248_vm0, %v8047_v37  ;;  %v1536_v13 = vsub.f32 %v10406_v54, %v1501_v24  ;;  %v1537_v51 = vsub.f32 %v10407_v41, %v1501_v24  ;;  %v1996_v37 = vsel %vm1248_vm0, %v8053_v38, 0  ;;  %v1948_v38 = vpop.permute.xlu1 %1947 }
 0x22d   : > { %v6607_v63 = vpop.eup %6606  ;;  %6620 = vpow2.f32 %v1588_v23 }
 0x22e   : > { %v6609_v61 = vpop.eup %6608  ;;  %v1590_v0 = vmul.f32 1.442695, %v1536_v13  ;;  %v1592_v35 = vmul.f32 1.442695, %v1537_v51  ;;  %v1680_v56 = vpack.c.bf16 %v6607_v63, %v6603_v29 }
 0x22f   : > { %v1681_v33 = vpack.c.bf16 %v6609_v61, %v6605_v15  ;;  %v8145_v20 = vadd.f32 %v6609_v61, %v6607_v63  ;;  %v1932_v60 = vpop.permute.xlu0 %1931 }
 0x230   : > { %6622 = vpow2.f32 %v1590_v0  ;;  %v1990_v2 = vsel %vm1248_vm0, %v1932_v60, 0 }
 0x231   : > { %v6611_v46 = vpop.eup %6610  ;;  %6624 = vpow2.f32 %v1592_v35  ;;  %1842 = vmatprep.mubr.bf16.mxu1 %v1681_v33 }
 0x232   : > { %v6613_v39 = vpop.eup %6612  ;;  %1843 = vmatmul.mubr.bf16.gmra.mxu1 %v1680_v56 }
 0x233   : > { %5915 = vmatpush3.bf16.xpose.msra.mxu1 %v1996_v37  ;;  %v8149_v53 = vadd.f32 %v6613_v39, %v6611_v46 }
 0x234   : > { %6392 = vmatprep.subr.msk.bf16.mxu1 %vm1248_vm0, %v8067_v9 }
 0x235   : > { %10408 = vst [vmem:[#allocation22_spill] sm:$0xff] %v8149_v53  ;;  %v6615_v26 = vpop.eup %6614 }
 0x236   : > { %v6617_v31 = vpop.eup %6616  ;;  %v1682_v22 = vpack.c.bf16 %v6615_v26, %v6611_v46 }
 0x237   : > { %v1683_v48 = vpack.c.bf16 %v6617_v31, %v6613_v39  ;;  %v8153_v58 = vadd.f32 %v6617_v31, %v6615_v26 }
 0x239   : > { %v6619_v25 = vpop.eup %6618  ;;  %1850 = vmatprep.mubr.bf16.mxu1 %v1683_v48 }
 0x23a   : > { %v6621_v43 = vpop.eup %6620  ;;  %1851 = vmatmul.mubr.bf16.gmra.mxu1 %v1682_v22 }
 0x23b   : > { %5917 = vmatpush3.bf16.xpose.msra.mxu1 %v1993_v40  ;;  %v8157_v55 = vadd.f32 %v6621_v43, %v6619_v25 }
 0x23c   : > { %6393 = vmatprep.subr.msk.bf16.mxu1 %vm1248_vm0, %v1948_v38 }
 0x23d   : > { %v6623_v9 = vpop.eup %6622 }
 0x23e   : > { %v6625_v18 = vpop.eup %6624  ;;  %v1684_v1 = vpack.c.bf16 %v6623_v9, %v6619_v25 }
 0x23f   : > { %v1685_v27 = vpack.c.bf16 %v6625_v18, %v6621_v43  ;;  %v8160_v50 = vadd.f32 %v6625_v18, %v6623_v9 }
 0x241   : > { %10409 = vst [vmem:[#allocation23_spill] sm:$0xff] %v8160_v50  ;;  %1858 = vmatprep.mubr.bf16.mxu1 %v1685_v27 }
 0x242   : > { %1859 = vmatmul.mubr.bf16.gmra.mxu1 %v1684_v1 }
 0x243   : > { %5919 = vmatpush3.bf16.xpose.msra.mxu1 %v1990_v2 }
 0x25c   : > { %v1504_v36 = vpop.xlane.xlu1 %1503 }
 0x25d   : > { %v1538_v47 = vsub.f32 %v7969_v14, %v1504_v36  ;;  %v1539_v10 = vsub.f32 %v7974_v21, %v1504_v36 }
 0x25f   : > { %v1594_v57 = vmul.f32 1.442695, %v1538_v47  ;;  %v1596_v11 = vmul.f32 1.442695, %v1539_v10 }
 0x260   : > { %v1507_v8 = vpop.xlane.xlu0 %1506  ;;  %v1510_v42 = vpop.xlane.xlu1 %1509 }
 0x261   : > { %6626 = vpow2.f32 %v1594_v57  ;;  %v1540_v49 = vsub.f32 %v7998_v7, %v1507_v8  ;;  %v1541_v29 = vsub.f32 %v8003_v4, %v1507_v8  ;;  %v1542_v15 = vsub.f32 %v7986_v17, %v1510_v42 }
 0x262   : > { %6628 = vpow2.f32 %v1596_v11  ;;  %v1543_v16 = vsub.f32 %v7991_v34, %v1510_v42 }
 0x263   : > { %v1598_v12 = vmul.f32 1.442695, %v1540_v49  ;;  %v1600_v23 = vmul.f32 1.442695, %v1541_v29  ;;  %v1602_v24 = vmul.f32 1.442695, %v1542_v15 }
 0x264   : > { %v1604_v14 = vmul.f32 1.442695, %v1543_v16  ;;  %v1513_v54 = vpop.xlane.xlu0 %1512  ;;  %v1946_v21 = vpop.permute.xlu1 %1945 }
 0x265   : > { %6630 = vpow2.f32 %v1598_v12  ;;  %v1544_v13 = vsub.f32 %v8016_v32, %v1513_v54  ;;  %v1545_v41 = vsub.f32 %v8021_v5, %v1513_v54  ;;  %6394 = vmatprep.subr.msk.bf16.mxu1 %vm1248_vm0, %v1946_v21 }
 0x266   : > { %6632 = vpow2.f32 %v1600_v23 }
 0x267   : > { %6634 = vpow2.f32 %v1602_v24  ;;  %v1606_v7 = vmul.f32 1.442695, %v1544_v13  ;;  %v1608_v17 = vmul.f32 1.442695, %v1545_v41 }
 0x268   : > { %6636 = vpow2.f32 %v1604_v14  ;;  %v1930_v4 = vpop.permute.xlu0 %1929  ;;  %v1944_v34 = vpop.permute.xlu1 %1943 }
 0x269   : > { %6638 = vpow2.f32 %v1606_v7  ;;  %v1987_v51 = vsel %vm1248_vm0, %v1930_v4, 0 }
 0x26a   : > { %6640 = vpow2.f32 %v1608_v17  ;;  %5921 = vmatpush3.bf16.xpose.msra.mxu1 %v1987_v51 }
 0x26b   : > { %6395 = vmatprep.subr.msk.bf16.mxu1 %vm1248_vm0, %v1944_v34 }
 0x26c   : > { %v1928_v63 = vpop.permute.xlu0 %1927  ;;  %v1914_v9 = vpop.permute.xlu1 %1913 }
 0x26d   : > { %v1984_v5 = vsel %vm1248_vm0, %v1928_v63, 0 }
 0x26e   : > { %v6627_v32 = vpop.eup %6626 }
 0x26f   : > { %v6629_v61 = vpop.eup %6628 }
 0x270   : > { %v8175_v0 = vadd.f32 %v6629_v61, %v6627_v32  ;;  %v1912_v38 = vpop.permute.xlu0 %1911  ;;  %v1918_v1 = vpop.permute.xlu1 %1917 }
 0x272   : > { %10410 = vst [vmem:[#allocation24_spill] sm:$0xff] %v8175_v0  ;;  %v6631_v35 = vpop.eup %6630  ;;  %5923 = vmatpush3.bf16.xpose.msra.mxu1 %v1984_v5  ;;  %v8499_v0 = vld [vmem:[%s7508_s18 + $0x8] sm:$0xff]  }
 0x273   : > { %v6633_v56 = vpop.eup %6632  ;;  %v1686_v33 = vpack.c.bf16 %v6631_v35, %v6627_v32  ;;  %10470 = vst [vmem:[#allocation56_spill] sm:$0xff] %v8499_v0 }
 0x274   : > { %v6635_v46 = vpop.eup %6634  ;;  %v1687_v39 = vpack.c.bf16 %v6633_v56, %v6629_v61  ;;  %v8177_v37 = vadd.f32 %v6633_v56, %v6631_v35  ;;  %v1916_v18 = vpop.permute.xlu0 %1915 }
 0x275   : > { %v6637_v26 = vpop.eup %6636  ;;  %v1922_v27 = vpop.permute.xlu1 %1921 }
 0x276   : > { %10411 = vst [vmem:[#allocation25_spill] sm:$0xff] %v8177_v37  ;;  %v6639_v31 = vpop.eup %6638  ;;  %1866 = vmatprep.mubr.bf16.mxu1 %v1687_v39  ;;  %v8179_v22 = vadd.f32 %v6637_v26, %v6635_v46  ;;  %v8522_v37 = vld [vmem:[%s7533_s23] sm:$0xff]  }
 0x277   : > { %v6641_v48 = vpop.eup %6640  ;;  %1867 = vmatmul.mubr.bf16.gmra.mxu1 %v1686_v33  ;;  %v1688_v40 = vpack.c.bf16 %v6639_v31, %v6635_v46  ;;  %10473 = vst [vmem:[#allocation59_spill] sm:$0xff] %v8522_v37 }
 0x278   : > { %10412 = vst [vmem:[#allocation30_spill] sm:$0xff] %v8179_v22  ;;  %v1689_v25 = vpack.c.bf16 %v6641_v48, %v6637_v26  ;;  %v8181_v43 = vadd.f32 %v6641_v48, %v6639_v31  ;;  %v1920_v60 = vpop.permute.xlu0 %1919  ;;  %v8509_v22 = vld [vmem:[%s7508_s18] sm:$0xff]  }
 0x279   : > { %v1926_v36 = vpop.permute.xlu1 %1925  ;;  %10471 = vst [vmem:[#allocation57_spill] sm:$0xff] %v8509_v22 }
 0x27a   : > { %10413 = vst [vmem:[#allocation31_spill] sm:$0xff] %v8181_v43  ;;  %1874 = vmatprep.mubr.bf16.mxu1 %v1689_v25  ;;  %v8484_v43 = vld [vmem:[%s7508_s18 + $0x58] sm:$0xff]  }
 0x27c   : > { %v1924_v2 = vpop.permute.xlu0 %1923 }
 0x27d   : > { %v2415_v4 = vpop.permute.xlu1 %2414 }
 0x27f   : > { %1875 = vmatmul.mubr.bf16.gmra.mxu1 %v1688_v40 }
 0x280   : > { %5924 = vmatprep.mubr.msk.bf16.mxu1 %vm1248_vm0, %v1912_v38  ;;  %v2431_v17 = vpop.permute.xlu0 %2430 }
 0x281   : > { %5940 = vmatprep.subr.bf16.mxu0 %v2431_v17  ;;  %v2413_v39 = vpop.permute.xlu1 %2412 }
 0x282   : > { %5941 = vmatpush3.bf16.msra.mxu0 %v2415_v4 }
 0x284   : > { %v2429_v46 = vpop.permute.xlu0 %2428 }
 0x285   : > { %5942 = vmatprep.subr.bf16.mxu0 %v2429_v46  ;;  %v2411_v31 = vpop.permute.xlu1 %2410 }
 0x286   : > { %5943 = vmatpush3.bf16.msra.mxu0 %v2413_v39 }
 0x287   : > { %5925 = vmatmul.mubr.msk.bf16.vlgmr.msra.gmra.mxu1 %vm1248_vm0, %v1912_v38 }
 0x288   : > { %5926 = vmatprep.mubr.msk.bf16.mxu1 %vm1248_vm0, %v1914_v9  ;;  %v2427_v26 = vpop.permute.xlu0 %2426 }
 0x289   : > { %5944 = vmatprep.subr.bf16.mxu0 %v2427_v26  ;;  %v2409_v25 = vpop.permute.xlu1 %2408 }
 0x28a   : > { %5945 = vmatpush3.bf16.msra.mxu0 %v2411_v31 }
 0x28c   : > { %v2425_v48 = vpop.permute.xlu0 %2424 }
 0x28d   : > { %5946 = vmatprep.subr.bf16.mxu0 %v2425_v48  ;;  %v2407_v38 = vpop.permute.xlu1 %2406 }
 0x28e   : > { %5947 = vmatpush3.bf16.msra.mxu0 %v2409_v25 }
 0x28f   : > { %5927 = vmatmul.mubr.msk.bf16.gmra.mxu1 %vm1248_vm0, %v1914_v9 }
 0x290   : > { %5928 = vmatprep.mubr.msk.bf16.mxu1 %vm1248_vm0, %v1916_v18  ;;  %v2423_v40 = vpop.permute.xlu0 %2422 }
 0x291   : > { %5948 = vmatprep.subr.bf16.mxu0 %v2423_v40 }
 0x292   : > { %5949 = vmatpush3.bf16.msra.mxu0 %v2407_v38 }
 0x294   : > { %v2421_v9 = vpop.permute.xlu0 %2420 }
 0x295   : > { %5950 = vmatprep.subr.bf16.mxu0 %v2421_v9 }
 0x297   : > { %5929 = vmatmul.mubr.msk.bf16.gmra.mxu1 %vm1248_vm0, %v1916_v18  ;;  %v2405_v18 = vpop.permute.xlu1 %2404 }
 0x298   : > { %5930 = vmatprep.mubr.msk.bf16.mxu1 %vm1248_vm0, %v1918_v1  ;;  %5951 = vmatpush3.bf16.msra.mxu0 %v2405_v18 }
 0x29f   : > { %5931 = vmatmul.mubr.msk.bf16.gmra.mxu1 %vm1248_vm0, %v1918_v1  ;;  %v2419_v1 = vpop.permute.xlu0 %2418 }
 0x2a0   : > { %5932 = vmatprep.mubr.msk.bf16.mxu1 %vm1248_vm0, %v1920_v60  ;;  %5952 = vmatprep.subr.bf16.mxu0 %v2419_v1 }
 0x2a7   : > { %5933 = vmatmul.mubr.msk.bf16.gmra.mxu1 %vm1248_vm0, %v1920_v60  ;;  %v2403_v60 = vpop.permute.xlu1 %2402 }
 0x2a8   : > { %5934 = vmatprep.mubr.msk.bf16.mxu1 %vm1248_vm0, %v1922_v27  ;;  %5953 = vmatpush3.bf16.msra.mxu0 %v2403_v60 }
 0x2af   : > { %5935 = vmatmul.mubr.msk.bf16.gmra.mxu1 %vm1248_vm0, %v1922_v27 }
 0x2b0   : > { %5936 = vmatprep.mubr.msk.bf16.mxu1 %vm1248_vm0, %v1924_v2 }
 0x2b7   : > { %5937 = vmatmul.mubr.msk.bf16.gmra.mxu1 %vm1248_vm0, %v1924_v2 }
 0x2b8   : > { %5938 = vmatprep.mubr.msk.bf16.mxu1 %vm1248_vm0, %v1926_v36 }
 0x2bf   : > { %5939 = vmatmul.mubr.msk.bf16.gmra.mxu1 %vm1248_vm0, %v1926_v36 }
 0x2da   : > { %v5860_v47 = vpop.f32.mrf.mxu1 }
 0x2dc   : > { %v5861_v10 = vpop.f32.mrf.mxu1 }
 0x2dd   : > { %v8199_v57 = vadd.f32 %v5861_v10, %v5860_v47 }
 0x2de   : > { %v8201_v11 = vpop.f32.mrf.mxu1 }
 0x2df   : > { %10414 = vst [vmem:[#allocation32_spill] sm:$0xff] %v8199_v57  ;;  %10415 = vst [vmem:[#allocation33_spill] sm:$0xff] %v8201_v11  ;;  %v8504_v57 = vld [vmem:[%s7508_s18 + $0x50] sm:$0xff]   ;;  %v8517_v11 = vld [vmem:[%s7508_s18 + $0x48] sm:$0xff]  }
 0x2e0   : > { %v8203_v8 = vpop.f32.mrf.mxu1  ;;  %10472 = vst [vmem:[#allocation58_spill] sm:$0xff] %v8517_v11 }
 0x2e1   : > { %10416 = vst [vmem:[#allocation34_spill] sm:$0xff] %v8203_v8  ;;  %v6530_v8 = vld [vmem:[%s10256_s4 + $0x18] sm:$0xff]  }
 0x2e2   : > { %v5866_v42 = vpop.f32.mrf.mxu1  ;;  %6300 = vmatprep.subr.bf16.mxu1 %v6530_v8 }
 0x2e3   : > { %6301 = vmatpush3.bf16.msra.mxu1 %v6530_v8  ;;  %v6531_v8 = vld [vmem:[%s10256_s4 + $0x10] sm:$0xff]  }
 0x2e4   : > { %v5867_v49 = vpop.f32.mrf.mxu1  ;;  %6302 = vmatprep.subr.bf16.mxu1 %v6531_v8 }
 0x2e5   : > { %v8205_v29 = vadd.f32 %v5867_v49, %v5866_v42 }
 0x2e6   : > { %v8207_v15 = vpop.f32.mrf.mxu1 }
 0x2e7   : > { %10417 = vst [vmem:[#allocation35_spill] sm:$0xff] %v8205_v29  ;;  %10418 = vst [vmem:[#allocation36_spill] sm:$0xff] %v8207_v15  ;;  %v8533_v15 = vld [vmem:[%s7533_s23 + $0x10] sm:$0xff]   ;;  %6303 = vmatpush3.bf16.msra.mxu1 %v6531_v8 }
 0x2e8   : > { %v8209_v16 = vpop.f32.mrf.mxu1  ;;  %10475 = vst [vmem:[#allocation61_spill] sm:$0xff] %v8533_v15 }
 0x2e9   : > { %10419 = vst [vmem:[#allocation37_spill] sm:$0xff] %v8209_v16  ;;  %v8528_v16 = vld [vmem:[%s7508_s18 + $0x40] sm:$0xff]  }
 0x2ea   : > { %v5872_v12 = vpop.f32.mrf.mxu1  ;;  %10474 = vst [vmem:[#allocation60_spill] sm:$0xff] %v8528_v16 }
 0x2ec   : > { %v5873_v23 = vpop.f32.mrf.mxu1 }
 0x2ed   : > { %v8211_v24 = vadd.f32 %v5873_v23, %v5872_v12 }
 0x2ee   : > { %v8213_v14 = vpop.f32.mrf.mxu1 }
 0x2ef   : > { %10420 = vst [vmem:[#allocation38_spill] sm:$0xff] %v8211_v24  ;;  %10421 = vst [vmem:[#allocation39_spill] sm:$0xff] %v8213_v14  ;;  %v10453_v24 = vld [vmem:[#allocation17_spill] sm:$0xff] }
 0x2f0   : > { %v8215_v54 = vpop.f32.mrf.mxu1 }
 0x2f1   : > { %10422 = vst [vmem:[#allocation40_spill] sm:$0xff] %v8215_v54 }
 0x2f2   : > { %v5878_v21 = vpop.f32.mrf.mxu1 }
 0x2f4   : > { %v5879_v13 = vpop.f32.mrf.mxu1 }
 0x2f5   : > { %v8217_v41 = vadd.f32 %v5879_v13, %v5878_v21 }
 0x2f6   : > { %v8219_v7 = vpop.f32.mrf.mxu1 }
 0x2f7   : > { %10423 = vst [vmem:[#allocation41_spill] sm:$0xff] %v8217_v41  ;;  %10424 = vst [vmem:[#allocation42_spill] sm:$0xff] %v8219_v7 }
 0x2f8   : > { %v8221_v34 = vpop.f32.mrf.mxu1 }
 0x2f9   : > { %10425 = vst [vmem:[#allocation43_spill] sm:$0xff] %v8221_v34 }
 0x2fa   : > { %v5884_v51 = vpop.f32.mrf.mxu1 }
 0x2fc   : > { %v5885_v63 = vpop.f32.mrf.mxu1 }
 0x2fd   : > { %v8223_v32 = vadd.f32 %v5885_v63, %v5884_v51 }
 0x2fe   : > { %v8225_v61 = vpop.f32.mrf.mxu1 }
 0x2ff   : > { %10426 = vst [vmem:[#allocation44_spill] sm:$0xff] %v8223_v32  ;;  %10427 = vst [vmem:[#allocation45_spill] sm:$0xff] %v8225_v61 }
 0x300   : > { %v8227_v5 = vpop.f32.mrf.mxu1 }
 0x301   : > { %10428 = vst [vmem:[#allocation46_spill] sm:$0xff] %v8227_v5  ;;  %v10447_v5 = vld [vmem:[#allocation16_spill] sm:$0xff] }
 0x302   : > { %v5890_v35 = vpop.f32.mrf.mxu1 }
 0x304   : > { %v5891_v56 = vpop.f32.mrf.mxu1 }
 0x305   : > { %v8229_v33 = vadd.f32 %v5891_v56, %v5890_v35 }
 0x306   : > { %v8231_v27 = vpop.f32.mrf.mxu1 }
 0x307   : > { %10429 = vst [vmem:[#allocation47_spill] sm:$0xff] %v8229_v33  ;;  %10430 = vst [vmem:[#allocation48_spill] sm:$0xff] %v8231_v27 }
 0x308   : > { %v8233_v2 = vpop.f32.mrf.mxu1 }
 0x309   : > { %10431 = vst [vmem:[#allocation49_spill] sm:$0xff] %v8233_v2 }
 0x337   : > { %v5896_v36 = vpop.f32.mrf.mxu1 }
 0x339   : > { %v5897_v47 = vpop.f32.mrf.mxu1 }
 0x33a   : > { %v8235_v10 = vadd.f32 %v5897_v47, %v5896_v36 }
 0x33b   : > { %v8237_v42 = vpop.f32.mrf.mxu1 }
 0x33c   : > { %10432 = vst [vmem:[#allocation50_spill] sm:$0xff] %v8235_v10  ;;  %10433 = vst [vmem:[#allocation51_spill] sm:$0xff] %v8237_v42 }
 0x33d   : > { %v8239_v49 = vpop.f32.mrf.mxu1 }
 0x33e   : > { %10434 = vst [vmem:[#allocation52_spill] sm:$0xff] %v8239_v49  ;;  %v7058_v49 = vld [vmem:[%s7630_s16] sm:$0xff]  }
 0x33f   : > { %v5902_v12 = vpop.f32.mrf.mxu1 }
 0x341   : > { %v5903_v23 = vpop.f32.mrf.mxu1 }
 0x342   : > { %v8241_v21 = vadd.f32 %v5903_v23, %v5902_v12 }
 0x343   : > { %v8243_v13 = vpop.f32.mrf.mxu1 }
 0x344   : > { %10435 = vst [vmem:[#allocation53_spill] sm:$0xff] %v8241_v21  ;;  %10436 = vst [vmem:[#allocation54_spill] sm:$0xff] %v8243_v13 }
 0x345   : > { %v8245_v17 = vpop.f32.mrf.mxu1 }
 0x346   : > { %10437 = vst [vmem:[#allocation55_spill] sm:$0xff] %v8245_v17 }
 0x347   : > { %v2065_v4 = vpop.f32.mrf.mxu1 }
 0x348   : > { %v8250_v35 = vsel %vm1096_vm1, %v2065_v4, -1e+30 }
 0x349   : > { %v2067_v51 = vpop.f32.mrf.mxu1 }
 0x34a   : > { %v8255_v56 = vsel %vm1097_vm2, %v2067_v51, -1e+30 }
 0x34b   : > { %v2069_v46 = vpop.f32.mrf.mxu1  ;;  %v2176_v39 = vmax.f32 %v8250_v35, %v8255_v56 }
 0x34c   : > { %v8262_v48 = vsel %vm1098_vm3, %v2069_v46, -1e+30 }
 0x34d   : > { %2177 = vmax.xlane.f32.xlu0 %v2176_v39  ;;  %v2071_v26 = vpop.f32.mrf.mxu1 }
 0x34e   : > { %v8267_v25 = vsel %vm1099_vm4, %v2071_v26, -1e+30 }
 0x34f   : > { %v2075_v40 = vpop.f32.mrf.mxu1  ;;  %v2179_v38 = vmax.f32 %v8262_v48, %v8267_v25 }
 0x350   : > { %v8274_v1 = vsel %vm1100_vm5, %v2075_v40, -1e+30  ;;  %v10442_v40 = vld [vmem:[#allocation14_spill] sm:$0xff] }
 0x351   : > { %2180 = vmax.xlane.f32.xlu1 %v2179_v38  ;;  %v2077_v9 = vpop.f32.mrf.mxu1 }
 0x352   : > { %v8279_v60 = vsel %vm10330_vm6, %v2077_v9, -1e+30 }
 0x353   : > { %v2079_v36 = vpop.f32.mrf.mxu1  ;;  %v2182_v47 = vmax.f32 %v8274_v1, %v8279_v60 }
 0x354   : > { %v8286_v4 = vsel %vm10321_vm7, %v2079_v36, -1e+30  ;;  %vm10443_vm7 = vcmp.le.s32.totalorder %v7703_v6, %v10442_v40 }
 0x355   : > { %2183 = vmax.xlane.f32.xlu0 %v2182_v47  ;;  %v2081_v12 = vpop.f32.mrf.mxu1 }
 0x356   : > { %v8291_v51 = vsel %vm10322_vm8, %v2081_v12, -1e+30 }
 0x357   : > { %v2085_v46 = vpop.f32.mrf.mxu1  ;;  %v2185_v39 = vmax.f32 %v8286_v4, %v8291_v51 }
 0x358   : > { %v8298_v38 = vsel %vm10324_vm9, %v2085_v46, -1e+30 }
 0x359   : > { %2186 = vmax.xlane.f32.xlu1 %v2185_v39  ;;  %v2087_v26 = vpop.f32.mrf.mxu1  ;;  %v10444_v39 = vld [vmem:[#allocation15_spill] sm:$0xff] }
 0x35a   : > { %v8303_v9 = vsel %vm10443_vm7, %v2087_v26, -1e+30  ;;  %vm10445_vm8 = vcmp.le.s32.totalorder %v7694_v3, %v10444_v39  ;;  %vm10446_vm9 = vcmp.le.s32.totalorder %v7703_v6, %v10444_v39  ;;  %v7059_v39 = vld [vmem:[%s7630_s16 + $0x40] sm:$0xff]   ;;  %vm10448_vm7 = vcmp.le.s32.totalorder %v7694_v3, %v10447_v5 }
 0x35b   : > { %v2089_v36 = vpop.f32.mrf.mxu1  ;;  %v2188_v47 = vmax.f32 %v8298_v38, %v8303_v9 }
 0x35c   : > { %v8310_v23 = vsel %vm10445_vm8, %v2089_v36, -1e+30  ;;  %vm10449_vm8 = vcmp.le.s32.totalorder %v7703_v6, %v10447_v5 }
 0x35d   : > { %2189 = vmax.xlane.f32.xlu0 %v2188_v47  ;;  %v2091_v12 = vpop.f32.mrf.mxu1 }
 0x35e   : > { %v8315_v46 = vsel %vm10446_vm9, %v2091_v12, -1e+30 }
 0x35f   : > { %v2191_v26 = vmax.f32 %v8310_v23, %v8315_v46  ;;  %v2095_v40 = vpop.f32.mrf.mxu1 }
 0x360   : > { %v8326_v61 = vsel %vm10448_vm7, %v2095_v40, -1e+30  ;;  %vm10454_vm7 = vcmp.le.s32.totalorder %v7694_v3, %v10453_v24 }
 0x361   : > { %2192 = vmax.xlane.f32.xlu1 %v2191_v26  ;;  %v2097_v18 = vpop.f32.mrf.mxu1 }
 0x362   : > { %v8331_v41 = vsel %vm10449_vm8, %v2097_v18, -1e+30  ;;  %vm10455_vm8 = vcmp.le.s32.totalorder %v7703_v6, %v10453_v24 }
 0x363   : > { %v2099_v47 = vpop.f32.mrf.mxu1  ;;  %v2194_v7 = vmax.f32 %v8326_v61, %v8331_v41 }
 0x364   : > { %v8348_v5 = vsel %vm10454_vm7, %v2099_v47, -1e+30 }
 0x365   : > { %v2101_v31 = vpop.f32.mrf.mxu1 }
 0x366   : > { %v8353_v18 = vsel %vm10455_vm8, %v2101_v31, -1e+30  ;;  %v10459_v31 = vld [vmem:[#allocation19_spill] sm:$0xff] }
 0x367   : > { %v2105_v63 = vpop.f32.mrf.mxu1  ;;  %v2197_v47 = vmax.f32 %v8348_v5, %v8353_v18  ;;  %vm10460_vm7 = vcmp.le.s32.totalorder %v7694_v3, %v10459_v31  ;;  %vm10461_vm8 = vcmp.le.s32.totalorder %v7703_v6, %v10459_v31  ;;  %v10467_v31 = vld [vmem:[#allocation27_spill] sm:$0xff] }
 0x369   : > { %v2107_v21 = vpop.f32.mrf.mxu1 }
 0x36b   : > { %v2109_v17 = vpop.f32.mrf.mxu1 }
 0x36d   : > { %v2111_v13 = vpop.f32.mrf.mxu1 }
 0x36e   : > { %v8377_v14 = vsel %vm10461_vm8, %v2111_v13, -1e+30  ;;  %vm10469_vm8 = vcmp.le.s32.totalorder %v7703_v6, %v10467_v31 }
 0x36f   : > { %v2115_v36 = vpop.f32.mrf.mxu1 }
 0x371   : > { %v2117_v10 = vpop.f32.mrf.mxu1 }
 0x372   : > { %2400 = vrot.lane.b32.xlu1 %v7058_v49, %s7179_s20  ;;  %v10450_v49 = vld [vmem:[#allocation18_spill] sm:$0xff] }
 0x373   : > { %2416 = vrot.lane.b32.xlu0 %v7059_v39, %s7179_s20  ;;  %v2119_v12 = vpop.f32.mrf.mxu1  ;;  %vm10451_vm9 = vcmp.le.s32.totalorder %v7694_v3, %v10450_v49  ;;  %vm10452_vm6 = vcmp.le.s32.totalorder %v7703_v6, %v10450_v49 }
 0x374   : > { %v8336_v39 = vsel %vm10451_vm9, %v2105_v63, -1e+30  ;;  %v8341_v34 = vsel %vm10452_vm6, %v2107_v21, -1e+30  ;;  %v10456_v21 = vld [vmem:[#allocation21_spill] sm:$0xff] }
 0x375   : > { %v2121_v42 = vpop.f32.mrf.mxu1  ;;  %v2200_v63 = vmax.f32 %v8336_v39, %v8341_v34  ;;  %vm10457_vm6 = vcmp.le.s32.totalorder %v7694_v3, %v10456_v21  ;;  %vm10458_vm9 = vcmp.le.s32.totalorder %v7703_v6, %v10456_v21 }
 0x376   : > { %v8360_v49 = vsel %vm10457_vm6, %v2119_v12, -1e+30  ;;  %v8365_v54 = vsel %vm10458_vm9, %v2121_v42, -1e+30  ;;  %v10462_v12 = vld [vmem:[#allocation20_spill] sm:$0xff] }
 0x377   : > { %v2125_v33 = vpop.f32.mrf.mxu1  ;;  %vm10463_vm6 = vcmp.le.s32.totalorder %v7694_v3, %v10462_v12  ;;  %v2209_v42 = vmax.f32 %v8360_v49, %v8365_v54  ;;  %vm10464_vm9 = vcmp.le.s32.totalorder %v7703_v6, %v10462_v12  ;;  %v8489_v6 = vld [vmem:[%s7508_s18 + $0x18] sm:$0xff]  }
 0x378   : > { %v8382_v21 = vsel %vm10463_vm6, %v2115_v36, -1e+30  ;;  %v8406_v12 = vsel %vm1120_vm14, %v2125_v33, -1e+30 }
 0x379   : > { %v2127_v2 = vpop.f32.mrf.mxu1 }
 0x37b   : > { %v2129_v26 = vpop.f32.mrf.mxu1 }
 0x37c   : > { %v8394_v13 = vsel %vm1122_vm11, %v2129_v26, -1e+30 }
 0x37d   : > { %v2131_v27 = vpop.f32.mrf.mxu1 }
 0x37e   : > { %v8399_v36 = vsel %vm1123_vm10, %v2131_v27, -1e+30  ;;  %v8415_v27 = vsel %vm1121_vm13, %v2127_v2, -1e+30 }
 0x37f   : > { %v2135_v32 = vpop.f32.mrf.mxu1  ;;  %v2215_v26 = vmax.f32 %v8394_v13, %v8399_v36 }
 0x381   : > { %v2137_v40 = vpop.f32.mrf.mxu1 }
 0x383   : > { %v2139_v24 = vpop.f32.mrf.mxu1 }
 0x384   : > { %v8420_v33 = vsel %vm1126_vm12, %v2139_v24, -1e+30 }
 0x392   : > { %2195 = vmax.xlane.f32.xlu0 %v2194_v7  ;;  %v8372_v7 = vsel %vm10460_vm7, %v2109_v17, -1e+30  ;;  %v8389_v17 = vsel %vm10464_vm9, %v2117_v10, -1e+30  ;;  %vm10468_vm7 = vcmp.le.s32.totalorder %v7694_v3, %v10467_v31  ;;  %v8479_v31 = vld [vmem:[%s7508_s18 + $0x20] sm:$0xff]   ;;  %v8494_v3 = vld [vmem:[%s7508_s18 + $0x10] sm:$0xff]  }
 0x393   : > { %v2206_v10 = vmax.f32 %v8382_v21, %v8389_v17  ;;  %v8434_v24 = vsel %vm10468_vm7, %v2135_v32, -1e+30  ;;  %v8449_v32 = vld [vmem:[%s7508_s18 + $0x30] sm:$0xff]  }
 0x396   : > { %2198 = vmax.xlane.f32.xlu1 %v2197_v47  ;;  %2201 = vmax.xlane.f32.xlu0 %v2200_v63  ;;  %v2203_v63 = vmax.f32 %v8372_v7, %v8377_v14  ;;  %v2141_v47 = vpop.f32.mrf.mxu1 }
 0x39a   : > { %2204 = vmax.xlane.f32.xlu0 %v2203_v63  ;;  %2210 = vmax.xlane.f32.xlu1 %v2209_v42  ;;  %v8425_v42 = vsel %vm1127_vm15, %v2141_v47, -1e+30  ;;  %v2212_v63 = vmax.f32 %v8406_v12, %v8415_v27  ;;  %v8439_v47 = vsel %vm10469_vm8, %v2137_v40, -1e+30  ;;  %v8454_v40 = vld [vmem:[%s7508_s18 + $0x70] sm:$0xff]  }
 0x39b   : > { %v2221_v2 = vmax.f32 %v8420_v33, %v8425_v42 }
 0x39e   : > { %2207 = vmax.xlane.f32.xlu0 %v2206_v10  ;;  %2216 = vmax.xlane.f32.xlu1 %v2215_v26  ;;  %v2218_v10 = vmax.f32 %v8434_v24, %v8439_v47  ;;  %v8444_v26 = vld [vmem:[%s7508_s18 + $0x78] sm:$0xff]  }
 0x3a2   : > { %2213 = vmax.xlane.f32.xlu0 %v2212_v63  ;;  %2222 = vmax.xlane.f32.xlu1 %v2221_v2  ;;  %v8459_v63 = vld [vmem:[%s7508_s18 + $0x38] sm:$0xff]   ;;  %v8464_v2 = vld [vmem:[%s7508_s18 + $0x68] sm:$0xff]  }
 0x3a6   : > { %2219 = vmax.xlane.f32.xlu0 %v2218_v10  ;;  %v8469_v10 = vld [vmem:[%s7508_s18 + $0x28] sm:$0xff]   ;;  %s5656_s18 = sshll.u32 %s10691_s26, 5 }
 0x3b3   : > { %2885 = vrot.lane.b32.xlu1 %v8444_v26, %s7180_s9 }
 0x3b7   : > { %2867 = vrot.lane.b32.xlu1 %v8449_v32, %s7180_s9 }
 0x3bb   : > { %2883 = vrot.lane.b32.xlu1 %v8454_v40, %s7180_s9 }
 0x3bc   : > { %2869 = vrot.lane.b32.xlu0 %v8459_v63, %s7180_s9 }
 0x3bf   : > { %2881 = vrot.lane.b32.xlu1 %v8464_v2, %s7180_s9 }
 0x3c0   : > { %2865 = vrot.lane.b32.xlu0 %v8469_v10, %s7180_s9 }
 0x3c3   : > { %2879 = vrot.lane.b32.xlu1 %v8474_v30, %s7180_s9 }
 0x3c4   : > { %2863 = vrot.lane.b32.xlu0 %v8479_v31, %s7180_s9 }
 0x3c7   : > { %2877 = vrot.lane.b32.xlu1 %v8484_v43, %s7180_s9 }
 0x3c8   : > { %2861 = vrot.lane.b32.xlu0 %v8489_v6, %s7180_s9 }
 0x3cb   : > { %2859 = vrot.lane.b32.xlu1 %v8494_v3, %s7180_s9 }
 0x3cc   : > { %2857 = vrot.lane.b32.xlu0 %v8499_v0, %s7180_s9 }
 0x3cf   : > { %2875 = vrot.lane.b32.xlu1 %v8504_v57, %s7180_s9 }
 0x3d0   : > { %2855 = vrot.lane.b32.xlu0 %v8509_v22, %s7180_s9 }
 0x3d3   : > { %2873 = vrot.lane.b32.xlu1 %v8517_v11, %s7180_s9 }
 0x3d4   : > { %2839 = vrot.lane.b32.xlu0 %v8522_v37, %s7180_s9 }
 0x3d6   : > { %v2178_v29 = vpop.xlane.xlu0 %2177 }
 0x3d7   : > { %v2225_v22 = vsub.f32 %v8255_v56, %v2178_v29  ;;  %2871 = vrot.lane.b32.xlu1 %v8528_v16, %s7180_s9  ;;  %v2224_v37 = vsub.f32 %v8250_v35, %v2178_v29  ;;  %v8544_v16 = vld [vmem:[%s7533_s23 + $0x8] sm:$0xff]  }
 0x3d8   : > { %2843 = vrot.lane.b32.xlu0 %v8533_v15, %s7180_s9  ;;  %v7079_v15 = vld [vmem:[%s7533_s23 + $0x20] sm:$0xff]  }
 0x3d9   : > { %v2258_v11 = vmul.f32 1.442695, %v2225_v22  ;;  %v2256_v22 = vmul.f32 1.442695, %v2224_v37 }
 0x3da   : > { %v2181_v0 = vpop.xlane.xlu1 %2180 }
 0x3db   : > { %v2226_v56 = vsub.f32 %v8262_v48, %v2181_v0  ;;  %v2227_v50 = vsub.f32 %v8267_v25, %v2181_v0  ;;  %2841 = vrot.lane.b32.xlu1 %v8544_v16, %s7180_s9  ;;  %6642 = vpow2.f32 %v2258_v11  ;;  %v7080_v0 = vld [vmem:[%s7533_s23 + $0x18] sm:$0xff]   ;;  %v7081_v25 = vld [vmem:[%s7533_s23 + $0x30] sm:$0xff]  }
 0x3dc   : > { %2847 = vrot.lane.b32.xlu0 %v7079_v15, %s7180_s9 }
 0x3dd   : > { %v2260_v53 = vmul.f32 1.442695, %v2226_v56  ;;  %v2262_v29 = vmul.f32 1.442695, %v2227_v50 }
 0x3de   : > { %v2184_v35 = vpop.xlane.xlu0 %2183 }
 0x3df   : > { %6644 = vpow2.f32 %v2260_v53  ;;  %v2229_v48 = vsub.f32 %v8279_v60, %v2184_v35  ;;  %2845 = vrot.lane.b32.xlu1 %v7080_v0, %s7180_s9  ;;  %v2228_v8 = vsub.f32 %v8274_v1, %v2184_v35  ;;  %v7082_v53 = vld [vmem:[%s7533_s23 + $0x28] sm:$0xff]  }
 0x3e0   : > { %6646 = vpow2.f32 %v2262_v29  ;;  %2851 = vrot.lane.b32.xlu0 %v7081_v25, %s7180_s9 }
 0x3e1   : > { %6648 = vpow2.f32 %v2256_v22  ;;  %v2266_v15 = vmul.f32 1.442695, %v2229_v48  ;;  %v2264_v29 = vmul.f32 1.442695, %v2228_v8 }
 0x3e2   : > { %v2187_v50 = vpop.xlane.xlu1 %2186 }
 0x3e3   : > { %v2230_v37 = vsub.f32 %v8286_v4, %v2187_v50  ;;  %v2231_v11 = vsub.f32 %v8291_v51, %v2187_v50  ;;  %2849 = vrot.lane.b32.xlu1 %v7082_v53, %s7180_s9  ;;  %6650 = vpow2.f32 %v2266_v15  ;;  %v7083_v4 = vld [vmem:[%s7533_s23 + $0x38] sm:$0xff]  }
 0x3e4   : > { %3680 = vrot.lane.b32.xlu0 %v8459_v63, %s7181_s15 }
 0x3e5   : > { %v2268_v60 = vmul.f32 1.442695, %v2230_v37  ;;  %v2270_v56 = vmul.f32 1.442695, %v2231_v11 }
 0x3e6   : > { %v2190_v22 = vpop.xlane.xlu0 %2189 }
 0x3e7   : > { %6652 = vpow2.f32 %v2268_v60  ;;  %v2232_v1 = vsub.f32 %v8298_v38, %v2190_v22  ;;  %v2233_v35 = vsub.f32 %v8303_v9, %v2190_v22  ;;  %2853 = vrot.lane.b32.xlu1 %v7083_v4, %s7180_s9 }
 0x3e8   : > { %6654 = vpow2.f32 %v2270_v56  ;;  %3678 = vrot.lane.b32.xlu0 %v8449_v32, %s7181_s15  ;;  %v6643_v25 = vpop.eup %6642 }
 0x3e9   : > { %v2272_v51 = vmul.f32 1.442695, %v2232_v1  ;;  %v2274_v48 = vmul.f32 1.442695, %v2233_v35  ;;  %6656 = vpow2.f32 %v2264_v29 }
 0x3ea   : > { %v2193_v63 = vpop.xlane.xlu1 %2192  ;;  %v2417_v0 = vpop.permute.xlu0 %2416 }
 0x3eb   : > { %6658 = vpow2.f32 %v2272_v51  ;;  %v2234_v8 = vsub.f32 %v8310_v23, %v2193_v63  ;;  %v2235_v38 = vsub.f32 %v8315_v46, %v2193_v63  ;;  %3696 = vrot.lane.b32.xlu1 %v8444_v26, %s7181_s15  ;;  %5954 = vmatprep.subr.bf16.mxu0 %v2417_v0 }
 0x3ec   : > { %v6645_v9 = vpop.eup %6644  ;;  %6660 = vpow2.f32 %v2274_v48  ;;  %3676 = vrot.lane.b32.xlu0 %v8469_v10, %s7181_s15 }
 0x3ed   : > { %v6647_v32 = vpop.eup %6646  ;;  %v2276_v15 = vmul.f32 1.442695, %v2234_v8  ;;  %v2278_v50 = vmul.f32 1.442695, %v2235_v38 }
 0x3ee   : > { %v2401_v37 = vpop.permute.xlu1 %2400  ;;  %v2385_v11 = vpack.c.bf16 %v6647_v32, %v6643_v25  ;;  %v6649_v53 = vpop.eup %6648  ;;  %v2323_v0 = vadd.f32 %v6647_v32, %v6645_v9 }
 0x3ef   : > { %6662 = vpow2.f32 %v2276_v15  ;;  %3694 = vrot.lane.b32.xlu1 %v8454_v40, %s7181_s15  ;;  %5955 = vmatpush3.bf16.msra.mxu0 %v2401_v37  ;;  %v2384_v23 = vpack.c.bf16 %v6645_v9, %v6649_v53  ;;  %v2320_v63 = vadd.f32 %v6649_v53, %v6643_v25 }
 0x3f0   : > { %6664 = vpow2.f32 %v2278_v50  ;;  %2480 = vmatprep.mubr.bf16.mxu0 %v2385_v11  ;;  %v6651_v46 = vpop.eup %6650 }
 0x3f2   : > { %2481 = vmatmul.mubr.bf16.vlgmr.msra.gmra.mxu0 %v2384_v23 }
 0x3f3   : > { %3692 = vrot.lane.b32.xlu1 %v8464_v2, %s7181_s15 }
 0x3f4   : > { %v6653_v26 = vpop.eup %6652 }
 0x3f5   : > { %v6655_v10 = vpop.eup %6654 }
 0x3f6   : > { %v2387_v60 = vpack.c.bf16 %v6655_v10, %v6651_v46  ;;  %v6657_v56 = vpop.eup %6656  ;;  %v2329_v8 = vadd.f32 %v6655_v10, %v6653_v26 }
 0x3f7   : > { %v2386_v22 = vpack.c.bf16 %v6653_v26, %v6657_v56  ;;  %v2326_v2 = vadd.f32 %v6657_v56, %v6651_v46 }
 0x3f8   : > { %v6659_v29 = vpop.eup %6658  ;;  %2488 = vmatprep.mubr.bf16.mxu0 %v2387_v60 }
 0x3f9   : > { %v6661_v1 = vpop.eup %6660 }
 0x3fa   : > { %2489 = vmatmul.mubr.bf16.gmra.mxu0 %v2386_v22  ;;  %v8578_v35 = vadd.f32 %v6661_v1, %v6659_v29 }
 0x3fc   : > { %v6663_v40 = vpop.eup %6662 }
 0x3fd   : > { %v6665_v4 = vpop.eup %6664  ;;  %v2388_v48 = vpack.c.bf16 %v6663_v40, %v6659_v29 }
 0x3fe   : > { %v2389_v51 = vpack.c.bf16 %v6665_v4, %v6661_v1  ;;  %v2335_v37 = vadd.f32 %v6665_v4, %v6663_v40 }
 0x400   : > { %2496 = vmatprep.mubr.bf16.mxu0 %v2389_v51 }
 0x402   : > { %2497 = vmatmul.mubr.bf16.gmra.mxu0 %v2388_v48 }
 0x40b   : > { %2321 = vadd.xlane.f32.xlu0 %v2320_v63 }
 0x40f   : > { %2327 = vadd.xlane.f32.xlu0 %v2326_v2 }
 0x417   : > { %2324 = vadd.xlane.f32.xlu1 %v2323_v0 }
 0x41b   : > { %2330 = vadd.xlane.f32.xlu1 %v2329_v8  ;;  %v2196_v38 = vpop.xlane.xlu0 %2195 }
 0x41c   : > { %v2236_v15 = vsub.f32 %v8326_v61, %v2196_v38  ;;  %v2237_v50 = vsub.f32 %v8331_v41, %v2196_v38 }
 0x41e   : > { %v2280_v11 = vmul.f32 1.442695, %v2236_v15  ;;  %v2282_v23 = vmul.f32 1.442695, %v2237_v50 }
 0x41f   : > { %v2199_v60 = vpop.xlane.xlu1 %2198  ;;  %2336 = vadd.xlane.f32.xlu1 %v2335_v37  ;;  %v2202_v29 = vpop.xlane.xlu0 %2201 }
 0x420   : > { %v2238_v25 = vsub.f32 %v8348_v5, %v2199_v60  ;;  %v2239_v53 = vsub.f32 %v8353_v18, %v2199_v60  ;;  %v2240_v9 = vsub.f32 %v8336_v39, %v2202_v29  ;;  %v2241_v32 = vsub.f32 %v8341_v34, %v2202_v29 }
 0x421   : > { %6666 = vpow2.f32 %v2280_v11 }
 0x422   : > { %v2284_v46 = vmul.f32 1.442695, %v2238_v25  ;;  %v2286_v26 = vmul.f32 1.442695, %v2239_v53  ;;  %v2288_v61 = vmul.f32 1.442695, %v2240_v9  ;;  %6668 = vpow2.f32 %v2282_v23 }
 0x423   : > { %v2290_v41 = vmul.f32 1.442695, %v2241_v32  ;;  %v2211_v10 = vpop.xlane.xlu1 %2210  ;;  %v2205_v56 = vpop.xlane.xlu0 %2204 }
 0x424   : > { %6670 = vpow2.f32 %v2284_v46  ;;  %v2246_v22 = vsub.f32 %v8360_v49, %v2211_v10  ;;  %v2247_v1 = vsub.f32 %v8365_v54, %v2211_v10  ;;  %v2242_v5 = vsub.f32 %v8372_v7, %v2205_v56 }
 0x425   : > { %6672 = vpow2.f32 %v2286_v26  ;;  %v2243_v39 = vsub.f32 %v8377_v14, %v2205_v56  ;;  %3674 = vrot.lane.b32.xlu0 %v8479_v31, %s7181_s15 }
 0x426   : > { %6674 = vpow2.f32 %v2288_v61  ;;  %v2300_v34 = vmul.f32 1.442695, %v2246_v22  ;;  %v2302_v18 = vmul.f32 1.442695, %v2247_v1  ;;  %v2292_v48 = vmul.f32 1.442695, %v2242_v5 }
 0x427   : > { %6676 = vpow2.f32 %v2290_v41  ;;  %v2294_v40 = vmul.f32 1.442695, %v2243_v39  ;;  %v2217_v4 = vpop.xlane.xlu1 %2216  ;;  %v2208_v51 = vpop.xlane.xlu0 %2207 }
 0x428   : > { %6678 = vpow2.f32 %v2300_v34  ;;  %v2244_v54 = vsub.f32 %v8382_v21, %v2208_v51  ;;  %v2245_v49 = vsub.f32 %v8389_v17, %v2208_v51  ;;  %v2251_v21 = vsub.f32 %v8399_v36, %v2217_v4 }
 0x429   : > { %6680 = vpow2.f32 %v2302_v18  ;;  %v2250_v61 = vsub.f32 %v8394_v13, %v2217_v4 }
 0x42a   : > { %6682 = vpow2.f32 %v2294_v40  ;;  %v2298_v7 = vmul.f32 1.442695, %v2245_v49  ;;  %v2296_v0 = vmul.f32 1.442695, %v2244_v54 }
 0x42b   : > { %v2223_v14 = vpop.xlane.xlu1 %2222  ;;  %v2214_v63 = vpop.xlane.xlu0 %2213  ;;  %6684 = vpow2.f32 %v2292_v48  ;;  %v2308_v5 = vmul.f32 1.442695, %v2250_v61 }
 0x42c   : > { %v2254_v31 = vsub.f32 %v8420_v33, %v2223_v14  ;;  %v2248_v2 = vsub.f32 %v8406_v12, %v2214_v63  ;;  %v2255_v8 = vsub.f32 %v8425_v42, %v2223_v14  ;;  %v2249_v38 = vsub.f32 %v8415_v27, %v2214_v63 }
 0x42d   : > { %6686 = vpow2.f32 %v2298_v7  ;;  %v2310_v27 = vmul.f32 1.442695, %v2251_v21 }
 0x42e   : > { %v2304_v15 = vmul.f32 1.442695, %v2248_v2  ;;  %v6667_v50 = vpop.eup %6666  ;;  %v2306_v17 = vmul.f32 1.442695, %v2249_v38  ;;  %v2316_v23 = vmul.f32 1.442695, %v2254_v31  ;;  %6688 = vpow2.f32 %v2296_v0 }
 0x42f   : > { %v2886_v37 = vpop.permute.xlu1 %2885  ;;  %v6669_v11 = vpop.eup %6668  ;;  %v2318_v33 = vmul.f32 1.442695, %v2255_v8 }
 0x430   : > { %6396 = vmatprep.subr.msk.bf16.mxu1 %vm1248_vm0, %v2886_v37  ;;  %6690 = vpow2.f32 %v2304_v15  ;;  %v2220_v29 = vpop.xlane.xlu0 %2219  ;;  %v2338_v31 = vadd.f32 %v6669_v11, %v6667_v50 }
 0x431   : > { %v6671_v60 = vpop.eup %6670  ;;  %6692 = vpow2.f32 %v2306_v17  ;;  %v2253_v32 = vsub.f32 %v8439_v47, %v2220_v29  ;;  %v2252_v34 = vsub.f32 %v8434_v24, %v2220_v29 }
 0x432   : > { %v6673_v12 = vpop.eup %6672  ;;  %v2390_v42 = vpack.c.bf16 %v6671_v60, %v6667_v50  ;;  %6694 = vpow2.f32 %v2316_v23 }
 0x433   : > { %v6675_v25 = vpop.eup %6674  ;;  %v2391_v53 = vpack.c.bf16 %v6673_v12, %v6669_v11  ;;  %6696 = vpow2.f32 %v2318_v33  ;;  %v2314_v22 = vmul.f32 1.442695, %v2253_v32  ;;  %v2312_v51 = vmul.f32 1.442695, %v2252_v34  ;;  %v8604_v15 = vpop.permute.xlu1 %2867 }
 0x434   : > { %v6677_v9 = vpop.eup %6676  ;;  %6698 = vpow2.f32 %v2310_v27  ;;  %v2341_v0 = vadd.f32 %v6673_v12, %v6671_v60  ;;  %v8612_v12 = vpop.permute.xlu0 %2869 }
 0x435   : > { %v6679_v36 = vpop.eup %6678  ;;  %2504 = vmatprep.mubr.bf16.mxu0 %v2391_v53  ;;  %v2344_v46 = vadd.f32 %v6677_v9, %v6675_v25  ;;  %6700 = vpow2.f32 %v2314_v22 }
 0x436   : > { %v6681_v26 = vpop.eup %6680  ;;  %2505 = vmatmul.mubr.bf16.gmra.mxu0 %v2390_v42  ;;  %6702 = vpow2.f32 %v2308_v5 }
 0x437   : > { %2345 = vadd.xlane.f32.xlu1 %v2344_v46  ;;  %v2353_v41 = vadd.f32 %v6681_v26, %v6679_v36  ;;  %v6683_v10 = vpop.eup %6682  ;;  %6704 = vpow2.f32 %v2312_v51  ;;  %v8606_v23 = vpop.permute.xlu1 %2883 }
 0x438   : > { %v6685_v56 = vpop.eup %6684  ;;  %v2393_v1 = vpack.c.bf16 %v6683_v10, %v6677_v9  ;;  %v8617_v42 = vpop.permute.xlu0 %2865 }
 0x439   : > { %v2392_v47 = vpack.c.bf16 %v6685_v56, %v6675_v25  ;;  %v2347_v17 = vadd.f32 %v6685_v56, %v6683_v10  ;;  %v6533_v56 = vld [vmem:[%s10256_s4] sm:$0xff]  }
 0x43a   : > { %2512 = vmatprep.mubr.bf16.mxu0 %v2393_v1  ;;  %v6687_v39 = vpop.eup %6686 }
 0x43b   : > { %2354 = vadd.xlane.f32.xlu1 %v2353_v41  ;;  %v2395_v18 = vpack.c.bf16 %v6681_v26, %v6687_v39  ;;  %v6689_v40 = vpop.eup %6688  ;;  %v8610_v60 = vpop.permute.xlu1 %2881 }
 0x43c   : > { %v2394_v14 = vpack.c.bf16 %v6679_v36, %v6689_v40  ;;  %v2350_v37 = vadd.f32 %v6689_v40, %v6687_v39 }
 0x43d   : > { %v6691_v13 = vpop.eup %6690 }
 0x43e   : > { %2513 = vmatmul.mubr.bf16.gmra.mxu0 %v2392_v47  ;;  %v6693_v4 = vpop.eup %6692 }
 0x43f   : > { %2520 = vmatprep.mubr.bf16.mxu0 %v2395_v18  ;;  %v6695_v48 = vpop.eup %6694  ;;  %v2356_v54 = vadd.f32 %v6693_v4, %v6691_v13  ;;  %v8614_v29 = vpop.permute.xlu1 %2879 }
 0x440   : > { %v6697_v49 = vpop.eup %6696 }
 0x441   : > { %2357 = vadd.xlane.f32.xlu1 %v2356_v54  ;;  %v6699_v7 = vpop.eup %6698  ;;  %v2365_v24 = vadd.f32 %v6697_v49, %v6695_v48 }
 0x442   : > { %v2397_v63 = vpack.c.bf16 %v6699_v7, %v6693_v4  ;;  %v6701_v2 = vpop.eup %6700 }
 0x443   : > { %v6703_v8 = vpop.eup %6702  ;;  %v2399_v21 = vpack.c.bf16 %v6697_v49, %v6701_v2  ;;  %v8620_v25 = vpop.permute.xlu1 %2877 }
 0x444   : > { %2333 = vadd.xlane.f32.xlu0 %v8578_v35  ;;  %v2396_v38 = vpack.c.bf16 %v6703_v8, %v6691_v13  ;;  %v6705_v35 = vpop.eup %6704  ;;  %v2359_v11 = vadd.f32 %v6703_v8, %v6699_v7 }
 0x445   : > { %2366 = vadd.xlane.f32.xlu1 %v2365_v24  ;;  %v2398_v50 = vpack.c.bf16 %v6695_v48, %v6705_v35  ;;  %v2362_v33 = vadd.f32 %v6705_v35, %v6701_v2 }
 0x446   : > { %2521 = vmatmul.mubr.bf16.gmra.mxu0 %v2394_v14 }
 0x447   : > { %2528 = vmatprep.mubr.bf16.mxu0 %v2397_v63  ;;  %v8625_v27 = vpop.permute.xlu1 %2859 }
 0x448   : > { %2339 = vadd.xlane.f32.xlu0 %v2338_v31 }
 0x44b   : > { %v8629_v9 = vpop.permute.xlu1 %2875 }
 0x44c   : > { %2342 = vadd.xlane.f32.xlu0 %v2341_v0 }
 0x44e   : > { %2529 = vmatmul.mubr.bf16.gmra.mxu0 %v2396_v38 }
 0x44f   : > { %2536 = vmatprep.mubr.bf16.mxu0 %v2399_v21  ;;  %v8633_v32 = vpop.permute.xlu1 %2873 }
 0x450   : > { %2348 = vadd.xlane.f32.xlu0 %v2347_v17 }
 0x454   : > { %2351 = vadd.xlane.f32.xlu0 %v2350_v37 }
 0x456   : > { %2537 = vmatmul.mubr.bf16.gmra.mxu0 %v2398_v50  ;;  %3690 = vrot.lane.b32.xlu1 %v8474_v30, %s7181_s15  ;;  %v8623_v30 = vpop.permute.xlu0 %2863  ;;  %v2933_v50 = vsel %vm1248_vm0, %v8612_v12, 0 }
 0x458   : > { %2360 = vadd.xlane.f32.xlu0 %v2359_v11 }
 0x45a   : > { %v8627_v53 = vpop.permute.xlu0 %2861 }
 0x45c   : > { %2363 = vadd.xlane.f32.xlu0 %v2362_v33 }
 0x45e   : > { %v8631_v36 = vpop.permute.xlu0 %2857 }
 0x460   : > { %1611 = vadd.xlane.f32.xlu0 %v8093_v45 }
 0x462   : > { %v8635_v45 = vpop.permute.xlu0 %2855 }
 0x464   : > { %1617 = vadd.xlane.f32.xlu0 %v8111_v19  ;;  %v8638_v19 = vpop.permute.xlu1 %2871 }
 0x468   : > { %1620 = vadd.xlane.f32.xlu0 %v8119_v28  ;;  %v8642_v28 = vpop.permute.xlu0 %2839  ;;  %v8644_v46 = vpop.permute.xlu1 %2841 }
 0x46c   : > { %v8646_v26 = vpop.permute.xlu0 %2843  ;;  %v8648_v61 = vpop.permute.xlu1 %2845 }
 0x470   : > { %v8650_v41 = vpop.permute.xlu0 %2847  ;;  %v8654_v10 = vpop.permute.xlu1 %2849 }
 0x474   : > { %v8664_v22 = vpop.permute.xlu1 %2853 }
 0x47a   : > { %1614 = vadd.xlane.f32.xlu1 %v8101_v44  ;;  %v6532_v44 = vld [vmem:[%s10256_s4 + $0x8] sm:$0xff]  }
 0x47b   : > { %6320 = vmatprep.subr.bf16.mxu0 %v6532_v44 }
 0x47c   : > { %6321 = vmatpush3.bf16.msra.mxu0 %v6532_v44 }
 0x47d   : > { %6322 = vmatprep.subr.bf16.mxu0 %v6533_v56 }
 0x47e   : > { %3672 = vrot.lane.b32.xlu0 %v8489_v6, %s7181_s15  ;;  %v8659_v6 = vpop.permute.xlu0 %2851 }
 0x480   : > { %6323 = vmatpush3.bf16.msra.mxu0 %v6533_v56 }
 0x482   : > { %v8666_v1 = vpop.permute.xlu0 %3680 }
 0x486   : > { %v8671_v5 = vpop.permute.xlu0 %3678 }
 0x48a   : > { %v8676_v34 = vpop.permute.xlu0 %3676 }
 0x48b   : > { %3688 = vrot.lane.b32.xlu1 %v8484_v43, %s7181_s15  ;;  %v8668_v43 = vpop.permute.xlu1 %3696 }
 0x48f   : > { %v8673_v39 = vpop.permute.xlu1 %3694 }
 0x493   : > { %v8678_v47 = vpop.permute.xlu1 %3692 }
 0x494   : > { %v2322_v18 = vpop.xlane.xlu0 %2321 }
 0x495   : > { %6706 = vrcp.f32 %v2322_v18 }
 0x498   : > { %v2328_v13 = vpop.xlane.xlu0 %2327 }
 0x49c   : > { %v8690_v11 = vpop.permute.xlu0 %3674 }
 0x49d   : > { %1626 = vadd.xlane.f32.xlu0 %v8133_v52 }
 0x4a0   : > { %v2325_v40 = vpop.xlane.xlu1 %2324 }
 0x4a1   : > { %1629 = vadd.xlane.f32.xlu0 %v8139_v59  ;;  %6708 = vrcp.f32 %v2325_v40 }
 0x4a2   : > { %6710 = vrcp.f32 %v2328_v13  ;;  %v6707_v49 = vpop.eup %6706 }
 0x4a4   : > { %v2331_v4 = vpop.xlane.xlu1 %2330 }
 0x4a5   : > { %6712 = vrcp.f32 %v2331_v4 }
 0x4a8   : > { %v2337_v44 = vpop.xlane.xlu1 %2336 }
 0x4a9   : > { %6714 = vrcp.f32 %v2337_v44 }
 0x4ae   : > { %v6709_v14 = vpop.eup %6708 }
 0x4af   : > { %1623 = vadd.xlane.f32.xlu1 %v8127_v62 }
 0x4b2   : > { %v5956_v51 = vpop.f32.mrf.mxu0 }
 0x4b3   : > { %1632 = vadd.xlane.f32.xlu1 %v8145_v20  ;;  %v6711_v20 = vpop.eup %6710 }
 0x4b4   : > { %v5957_v52 = vpop.f32.mrf.mxu0  ;;  %v6713_v17 = vpop.eup %6712 }
 0x4b5   : > { %v5958_v59 = vadd.f32 %v5957_v52, %v5956_v51 }
 0x4b6   : > { %v5959_v48 = vpop.f32.mrf.mxu0 }
 0x4b7   : > { %3670 = vrot.lane.b32.xlu0 %v8494_v3, %s7181_s15  ;;  %v2545_v63 = vmul.f32 %v6707_v49, %v5958_v59 }
 0x4b8   : > { %v5960_v54 = vpop.f32.mrf.mxu0 }
 0x4b9   : > { %v5961_v7 = vadd.f32 %v5960_v54, %v5959_v48 }
 0x4ba   : > { %v5962_v24 = vpop.f32.mrf.mxu0 }
 0x4bb   : > { %v2546_v31 = vmul.f32 %v6709_v14, %v5961_v7 }
 0x4bc   : > { %v5963_v62 = vpop.f32.mrf.mxu0 }
 0x4bd   : > { %v2561_v2 = vpack.c.bf16 %v2546_v31, %v2545_v63  ;;  %v5964_v8 = vadd.f32 %v5963_v62, %v5962_v24  ;;  %v10476_v24 = vld [vmem:[#allocation22_spill] sm:$0xff]  ;;  %v10477_v31 = vld [vmem:[#allocation23_spill] sm:$0xff]  ;;  %v10478_v62 = vld [vmem:[#allocation56_spill] sm:$0xff] }
 0x4be   : > { %v5965_v0 = vpop.f32.mrf.mxu0 }
 0x4bf   : > { %6304 = vmatprep.mubr.msk.bf16.mxu1 %vm1248_vm0, %v2561_v2  ;;  %v2547_v35 = vmul.f32 %v6711_v20, %v5964_v8  ;;  %v2915_v8 = vsel %vm1248_vm0, %v8631_v36, 0 }
 0x4c0   : > { %v5966_v38 = vpop.f32.mrf.mxu0 }
 0x4c1   : > { %v5967_v21 = vadd.f32 %v5966_v38, %v5965_v0 }
 0x4c2   : > { %v5968_v33 = vpop.f32.mrf.mxu0 }
 0x4c3   : > { %v2548_v37 = vmul.f32 %v6713_v17, %v5967_v21 }
 0x4c4   : > { %3686 = vrot.lane.b32.xlu1 %v8504_v57, %s7181_s15  ;;  %v5969_v56 = vpop.f32.mrf.mxu0  ;;  %v2930_v57 = vsel %vm1248_vm0, %v8604_v15, 0  ;;  %v6715_v15 = vpop.eup %6714 }
 0x4c5   : > { %v2562_v3 = vpack.c.bf16 %v2548_v37, %v2547_v35  ;;  %v5970_v48 = vadd.f32 %v5969_v56, %v5968_v33  ;;  %v10480_v33 = vld [vmem:[#allocation37_spill] sm:$0xff] }
 0x4c6   : > { %v5971_v40 = vpop.f32.mrf.mxu0 }
 0x4c7   : > { %6305 = vmatmul.mubr.msk.bf16.vlgmr.msra.gmra.mxu1 %vm1248_vm0, %v2562_v3 }
 0x4c8   : > { %6025 = vmatpush3.bf16.xpose.msra.mxu1 %v2933_v50  ;;  %v5972_v13 = vpop.f32.mrf.mxu0  ;;  %v10479_v50 = vld [vmem:[#allocation36_spill] sm:$0xff] }
 0x4c9   : > { %6397 = vmatprep.subr.msk.bf16.mxu1 %vm1248_vm0, %v8606_v23  ;;  %v2927_v23 = vsel %vm1248_vm0, %v8617_v42, 0  ;;  %v5973_v51 = vadd.f32 %v5972_v13, %v5971_v40  ;;  %v5871_v44 = vadd.f32 %v10480_v33, %v10479_v50  ;;  %v10482_v13 = vld [vmem:[#allocation35_spill] sm:$0xff]  ;;  %v10486_v50 = vld [vmem:[#allocation30_spill] sm:$0xff] }
 0x4cd   : > { %v2334_v18 = vpop.xlane.xlu0 %2333 }
 0x4ce   : > { %6716 = vrcp.f32 %v2334_v18  ;;  %v2912_v18 = vsel %vm1248_vm0, %v8635_v45, 0 }
 0x4d0   : > { %6027 = vmatpush3.bf16.xpose.msra.mxu1 %v2930_v57 }
 0x4d1   : > { %6398 = vmatprep.subr.msk.bf16.mxu1 %vm1248_vm0, %v8610_v60  ;;  %v2340_v12 = vpop.xlane.xlu0 %2339  ;;  %v2550_v60 = vmul.f32 %v6715_v15, %v5973_v51 }
 0x4d2   : > { %6718 = vrcp.f32 %v2340_v12 }
 0x4d5   : > { %v2343_v4 = vpop.xlane.xlu0 %2342 }
 0x4d6   : > { %1638 = vadd.xlane.f32.xlu0 %v8153_v58  ;;  %v2924_v58 = vsel %vm1248_vm0, %v8623_v30, 0  ;;  %v2346_v30 = vpop.xlane.xlu1 %2345 }
 0x4d8   : > { %6029 = vmatpush3.bf16.xpose.msra.mxu1 %v2927_v23 }
 0x4d9   : > { %6399 = vmatprep.subr.msk.bf16.mxu1 %vm1248_vm0, %v8614_v29  ;;  %v2349_v52 = vpop.xlane.xlu0 %2348 }
 0x4da   : > { %1641 = vadd.xlane.f32.xlu0 %v8157_v55  ;;  %v2921_v55 = vsel %vm1248_vm0, %v8627_v53, 0  ;;  %v2355_v53 = vpop.xlane.xlu1 %2354 }
 0x4db   : > { %v6717_v59 = vpop.eup %6716 }
 0x4dc   : > { %v2549_v54 = vmul.f32 %v6717_v59, %v5970_v48 }
 0x4dd   : > { %v2352_v49 = vpop.xlane.xlu0 %2351 }
 0x4de   : > { %v2563_v7 = vpack.c.bf16 %v2550_v60, %v2549_v54  ;;  %v2358_v2 = vpop.xlane.xlu1 %2357 }
 0x4df   : > { %v6719_v17 = vpop.eup %6718 }
 0x4e0   : > { %6031 = vmatpush3.bf16.xpose.msra.mxu1 %v2924_v58  ;;  %6308 = vmatprep.mubr.msk.bf16.mxu1 %vm1248_vm0, %v2563_v7 }
 0x4e1   : > { %6400 = vmatprep.subr.msk.bf16.mxu1 %vm1248_vm0, %v8620_v25  ;;  %v8709_v29 = vpop.xlane.xlu0 %2360  ;;  %v2918_v25 = vsel %vm1248_vm0, %v8625_v27, 0 }
 0x4e2   : > { %v2367_v20 = vpop.xlane.xlu1 %2366 }
 0x4e5   : > { %v8711_v42 = vpop.xlane.xlu0 %2363 }
 0x4e6   : > { %v8735_v12 = vpop.permute.xlu1 %3690 }
 0x4e8   : > { %6033 = vmatpush3.bf16.xpose.msra.mxu1 %v2921_v55  ;;  %1635 = vadd.xlane.f32.xlu1 %v10476_v24 }
 0x4e9   : > { %6401 = vmatprep.subr.msk.bf16.mxu1 %vm1248_vm0, %v8629_v9  ;;  %v1612_v14 = vpop.xlane.xlu0 %1611 }
 0x4ec   : > { %1644 = vadd.xlane.f32.xlu1 %v10477_v31 }
 0x4ed   : > { %v1618_v63 = vpop.xlane.xlu0 %1617 }
 0x4ee   : > { %6720 = vrcp.f32 %v1618_v63 }
 0x4ef   : > { %6722 = vrcp.f32 %v2343_v4 }
 0x4f0   : > { %6035 = vmatpush3.bf16.xpose.msra.mxu1 %v2918_v25  ;;  %3668 = vrot.lane.b32.xlu0 %v10478_v62, %s7181_s15 }
 0x4f1   : > { %6402 = vmatprep.subr.msk.bf16.mxu1 %vm1248_vm0, %v8633_v32  ;;  %v1621_v9 = vpop.xlane.xlu0 %1620 }
 0x4f2   : > { %6724 = vrcp.f32 %v1621_v9 }
 0x4f3   : > { %6726 = vrcp.f32 %v2346_v30 }
 0x4f4   : > { %6728 = vrcp.f32 %v2349_v52 }
 0x4f5   : > { %6730 = vrcp.f32 %v2355_v53 }
 0x4f6   : > { %v5974_v0 = vpop.f32.mrf.mxu0  ;;  %6732 = vrcp.f32 %v2352_v49 }
 0x4f7   : > { %6734 = vrcp.f32 %v1612_v14 }
 0x4f8   : > { %v5975_v27 = vpop.f32.mrf.mxu0  ;;  %6037 = vmatpush3.bf16.xpose.msra.mxu1 %v2915_v8 }
 0x4f9   : > { %6403 = vmatprep.subr.msk.bf16.mxu1 %vm1248_vm0, %v8638_v19  ;;  %v5976_v21 = vadd.f32 %v5975_v27, %v5974_v0  ;;  %v10481_v19 = vld [vmem:[#allocation58_spill] sm:$0xff]  ;;  %v10483_v27 = vld [vmem:[#allocation25_spill] sm:$0xff] }
 0x4fa   : > { %v5977_v38 = vpop.f32.mrf.mxu0 }
 0x4fb   : > { %v6721_v32 = vpop.eup %6720  ;;  %v2551_v57 = vmul.f32 %v6719_v17, %v5976_v21  ;;  %v10484_v21 = vld [vmem:[#allocation33_spill] sm:$0xff]  ;;  %v10485_v17 = vld [vmem:[#allocation34_spill] sm:$0xff] }
 0x4fc   : > { %v5978_v35 = vpop.f32.mrf.mxu0  ;;  %v6723_v3 = vpop.eup %6722  ;;  %v1885_v4 = vmul.f32 %v6721_v32, %v10482_v13 }
 0x4fd   : > { %v5979_v37 = vadd.f32 %v5978_v35, %v5977_v38  ;;  %3684 = vrot.lane.b32.xlu1 %v10481_v19, %s7181_s15  ;;  %v5865_v35 = vadd.f32 %v10485_v17, %v10484_v21  ;;  %v8839_v17 = vld [vmem:[%s7630_s16 + $0x68] sm:$0xff]  }
 0x4fe   : > { %v5980_v56 = vpop.f32.mrf.mxu0 }
 0x4ff   : > { %v6725_v36 = vpop.eup %6724  ;;  %v2552_v40 = vmul.f32 %v6723_v3, %v5979_v37 }
 0x500   : > { %v1886_v23 = vmul.f32 %v6725_v36, %v5871_v44  ;;  %v5981_v51 = vpop.f32.mrf.mxu0  ;;  %6039 = vmatpush3.bf16.xpose.msra.mxu1 %v2912_v18  ;;  %v6727_v60 = vpop.eup %6726  ;;  %v10487_v44 = vld [vmem:[#allocation32_spill] sm:$0xff] }
 0x501   : > { %v2564_v52 = vpack.c.bf16 %v2552_v40, %v2551_v57  ;;  %6404 = vmatprep.subr.msk.bf16.mxu1 %vm1248_vm0, %v8668_v43  ;;  %v5982_v48 = vadd.f32 %v5981_v51, %v5980_v56  ;;  %v6729_v58 = vpop.eup %6728 }
 0x502   : > { %v5983_v15 = vpop.f32.mrf.mxu0  ;;  %v1900_v45 = vpack.c.bf16 %v1886_v23, %v1885_v4  ;;  %v6731_v14 = vpop.eup %6730 }
 0x503   : > { %6309 = vmatmul.mubr.msk.bf16.gmra.mxu1 %vm1248_vm0, %v2564_v52  ;;  %v1615_v54 = vpop.xlane.xlu1 %1614  ;;  %v2553_v24 = vmul.f32 %v6727_v60, %v5982_v48  ;;  %v6733_v53 = vpop.eup %6732 }
 0x504   : > { %v5984_v59 = vpop.f32.mrf.mxu0  ;;  %6736 = vrcp.f32 %v1615_v54 }
 0x505   : > { %v5985_v7 = vadd.f32 %v5984_v59, %v5983_v15  ;;  %6738 = vrcp.f32 %v2358_v2  ;;  %v6735_v2 = vpop.eup %6734 }
 0x506   : > { %v5986_v55 = vpop.f32.mrf.mxu0  ;;  %6740 = vrcp.f32 %v8709_v29  ;;  %v1883_v56 = vmul.f32 %v6735_v2, %v10487_v44  ;;  %v10496_v2 = vld [vmem:[#allocation38_spill] sm:$0xff] }
 0x507   : > { %v2554_v30 = vmul.f32 %v6729_v58, %v5985_v7  ;;  %6742 = vrcp.f32 %v2367_v20 }
 0x508   : > { %v5987_v49 = vpop.f32.mrf.mxu0  ;;  %6744 = vrcp.f32 %v8711_v42 }
 0x509   : > { %v2565_v43 = vpack.c.bf16 %v2554_v30, %v2553_v24  ;;  %v5988_v31 = vadd.f32 %v5987_v49, %v5986_v55  ;;  %v10488_v55 = vld [vmem:[#allocation24_spill] sm:$0xff]  ;;  %v8759_v24 = vld [vmem:[%s7630_s16 + $0x78] sm:$0xff]   ;;  %v3744_v30 = vsel %vm1248_vm0, %v8666_v1, 0  ;;  %v8772_v49 = vld [vmem:[%s7630_s16 + $0x70] sm:$0xff]  }
 0x50a   : > { %v5989_v63 = vpop.f32.mrf.mxu0  ;;  %v10490_v1 = vld [vmem:[#allocation59_spill] sm:$0xff] }
 0x50b   : > { %6312 = vmatprep.mubr.msk.bf16.mxu1 %vm1248_vm0, %v2565_v43  ;;  %v2555_v0 = vmul.f32 %v6733_v53, %v5988_v31  ;;  %v3673_v43 = vpop.permute.xlu0 %3672  ;;  %v3689_v31 = vpop.permute.xlu1 %3688 }
 0x50c   : > { %v5990_v25 = vpop.f32.mrf.mxu0 }
 0x50d   : > { %v5991_v62 = vadd.f32 %v5990_v25, %v5989_v63  ;;  %v10491_v25 = vld [vmem:[#allocation57_spill] sm:$0xff] }
 0x50e   : > { %v5992_v9 = vpop.f32.mrf.mxu0 }
 0x50f   : > { %v2556_v8 = vmul.f32 %v6731_v14, %v5991_v62  ;;  %1650 = vadd.xlane.f32.xlu0 %v10483_v27  ;;  %v10492_v62 = vld [vmem:[#allocation60_spill] sm:$0xff] }
 0x510   : > { %v5993_v38 = vpop.f32.mrf.mxu0 }
 0x511   : > { %v2566_v29 = vpack.c.bf16 %v2556_v8, %v2555_v0  ;;  %v6737_v37 = vpop.eup %6736  ;;  %v5994_v3 = vadd.f32 %v5993_v38, %v5992_v9  ;;  %v10493_v0 = vld [vmem:[#allocation61_spill] sm:$0xff]  ;;  %v10495_v8 = vld [vmem:[#allocation40_spill] sm:$0xff]  ;;  %v3732_v38 = vsel %vm1248_vm0, %v3673_v43, 0 }
 0x512   : > { %v5995_v32 = vpop.f32.mrf.mxu0  ;;  %v1884_v36 = vmul.f32 %v6737_v37, %v5865_v35  ;;  %v6739_v20 = vpop.eup %6738  ;;  %v10497_v37 = vld [vmem:[#allocation42_spill] sm:$0xff] }
 0x513   : > { %6313 = vmatmul.mubr.msk.bf16.gmra.mxu1 %vm1248_vm0, %v2566_v29  ;;  %1653 = vadd.xlane.f32.xlu0 %v10486_v50  ;;  %v6741_v57 = vpop.eup %6740  ;;  %v2557_v19 = vmul.f32 %v6739_v20, %v5994_v3  ;;  %v10498_v3 = vld [vmem:[#allocation43_spill] sm:$0xff] }
 0x514   : > { %v5996_v33 = vpop.f32.mrf.mxu0  ;;  %v1899_v42 = vpack.c.bf16 %v1884_v36, %v1883_v56  ;;  %v6743_v48 = vpop.eup %6742  ;;  %v5883_v50 = vadd.f32 %v10498_v3, %v10497_v37  ;;  %v10499_v36 = vld [vmem:[#allocation41_spill] sm:$0xff] }
 0x515   : > { %v5997_v18 = vadd.f32 %v5996_v33, %v5995_v32  ;;  %v6745_v60 = vpop.eup %6744  ;;  %v8844_v32 = vld [vmem:[%s7630_s16 + $0x8] sm:$0xff]  }
 0x516   : > { %v5998_v40 = vpop.f32.mrf.mxu0  ;;  %6324 = vmatprep.mubr.msk.bf16.mxu0 %vm1248_vm0, %v1899_v42 }
 0x517   : > { %v2558_v13 = vmul.f32 %v6741_v57, %v5997_v18  ;;  %6325 = vmatmul.mubr.msk.bf16.vlgmr.msra.gmra.mxu0 %vm1248_vm0, %v1900_v45  ;;  %v10489_v45 = vld [vmem:[#allocation31_spill] sm:$0xff] }
 0x518   : > { %v5999_v4 = vpop.f32.mrf.mxu0  ;;  %v7093_v57 = vld [vmem:[%s7630_s16] sm:$0xff]  }
 0x519   : > { %v2567_v23 = vpack.c.bf16 %v2558_v13, %v2557_v19  ;;  %v6000_v52 = vadd.f32 %v5999_v4, %v5998_v40  ;;  %v7095_v13 = vld [vmem:[%s7533_s23 + $0x18] sm:$0xff]  }
 0x51a   : > { %v6001_v51 = vpop.f32.mrf.mxu0  ;;  %v8869_v4 = vld [vmem:[%s7630_s16 + $0x58] sm:$0xff]  }
 0x51b   : > { %6316 = vmatprep.mubr.msk.bf16.mxu1 %vm1248_vm0, %v2567_v23  ;;  %v2559_v54 = vmul.f32 %v6745_v60, %v6000_v52  ;;  %v8878_v23 = vld [vmem:[%s7630_s16 + $0x18] sm:$0xff]   ;;  %v7100_v52 = vld [vmem:[%s7630_s16 + $0x40] sm:$0xff]  }
 0x51c   : > { %v6002_v15 = vpop.f32.mrf.mxu0 }
 0x51d   : > { %v6003_v59 = vadd.f32 %v6002_v15, %v6001_v51  ;;  %v8883_v51 = vld [vmem:[%s7630_s16 + $0x10] sm:$0xff]   ;;  %v7101_v15 = vld [vmem:[%s7533_s23 + $0x20] sm:$0xff]  }
 0x51f   : > { %v2560_v7 = vmul.f32 %v6743_v48, %v6003_v59 }
 0x521   : > { %v2568_v58 = vpack.c.bf16 %v2560_v7, %v2559_v54  ;;  %1647 = vadd.xlane.f32.xlu1 %v10488_v55 }
 0x523   : > { %6317 = vmatmul.mubr.msk.bf16.gmra.mxu1 %vm1248_vm0, %v2568_v58 }
 0x524   : > { %6040 = vmatprep.mubr.msk.bf16.mxu1 %vm1248_vm0, %v8642_v28 }
 0x525   : > { %1656 = vadd.xlane.f32.xlu1 %v10489_v45  ;;  %v10501_v45 = vld [vmem:[#allocation46_spill] sm:$0xff] }
 0x526   : > { %v1627_v63 = vpop.xlane.xlu0 %1626 }
 0x527   : > { %6746 = vrcp.f32 %v1627_v63 }
 0x529   : > { %3358 = vrot.lane.b32.xlu0 %v8759_v24, %s7180_s9 }
 0x52b   : > { %6041 = vmatmul.mubr.msk.bf16.vlgmr.msra.gmra.mxu1 %vm1248_vm0, %v8642_v28  ;;  %v3741_v28 = vsel %vm1248_vm0, %v8671_v5, 0  ;;  %v1630_v5 = vpop.xlane.xlu0 %1629 }
 0x52c   : > { %6131 = vmatpush3.bf16.xpose.msra.mxu1 %v3744_v30  ;;  %6042 = vmatprep.mubr.msk.bf16.mxu1 %vm1248_vm0, %v8644_v46 }
 0x52d   : > { %6405 = vmatprep.subr.msk.bf16.mxu1 %vm1248_vm0, %v8673_v39  ;;  %3356 = vrot.lane.b32.xlu0 %v8772_v49, %s7180_s9  ;;  %v8787_v39 = vld [vmem:[%s7630_s16 + $0x28] sm:$0xff]  }
 0x52f   : > { %v3671_v42 = vpop.permute.xlu0 %3670 }
 0x530   : > { %v3729_v19 = vsel %vm1248_vm0, %v3671_v42, 0  ;;  %v10509_v42 = vld [vmem:[#allocation50_spill] sm:$0xff] }
 0x531   : > { %3650 = vrot.lane.b32.xlu0 %v10490_v1, %s7181_s15  ;;  %v10502_v1 = vld [vmem:[#allocation44_spill] sm:$0xff] }
 0x533   : > { %6043 = vmatmul.mubr.msk.bf16.gmra.mxu1 %vm1248_vm0, %v8644_v46  ;;  %v8794_v46 = vld [vmem:[%s7630_s16 + $0x20] sm:$0xff]  }
 0x534   : > { %6133 = vmatpush3.bf16.xpose.msra.mxu1 %v3741_v28  ;;  %6044 = vmatprep.mubr.msk.bf16.mxu1 %vm1248_vm0, %v8646_v26  ;;  %v6747_v9 = vpop.eup %6746 }
 0x535   : > { %6406 = vmatprep.subr.msk.bf16.mxu1 %vm1248_vm0, %v8678_v47  ;;  %3338 = vrot.lane.b32.xlu0 %v8787_v39, %s7180_s9  ;;  %v3738_v47 = vsel %vm1248_vm0, %v8676_v34, 0  ;;  %v8811_v34 = vld [vmem:[%s7630_s16 + $0x38] sm:$0xff]  }
 0x536   : > { %3666 = vrot.lane.b32.xlu1 %v10491_v25, %s7181_s15  ;;  %v10503_v25 = vld [vmem:[#allocation48_spill] sm:$0xff] }
 0x538   : > { %v1624_v14 = vpop.xlane.xlu1 %1623 }
 0x539   : > { %3336 = vrot.lane.b32.xlu0 %v8794_v46, %s7180_s9  ;;  %6748 = vrcp.f32 %v1624_v14 }
 0x53a   : > { %6750 = vrcp.f32 %v1630_v5  ;;  %3682 = vrot.lane.b32.xlu1 %v10492_v62, %s7181_s15  ;;  %v10504_v5 = vld [vmem:[#allocation49_spill] sm:$0xff] }
 0x53b   : > { %6045 = vmatmul.mubr.msk.bf16.gmra.mxu1 %vm1248_vm0, %v8646_v26  ;;  %v8816_v26 = vld [vmem:[%s7630_s16 + $0x50] sm:$0xff]   ;;  %v5895_v14 = vadd.f32 %v10504_v5, %v10503_v25 }
 0x53c   : > { %6135 = vmatpush3.bf16.xpose.msra.mxu1 %v3738_v47  ;;  %6046 = vmatprep.mubr.msk.bf16.mxu1 %vm1248_vm0, %v8648_v61  ;;  %v1633_v53 = vpop.xlane.xlu1 %1632 }
 0x53d   : > { %6407 = vmatprep.subr.msk.bf16.mxu1 %vm1248_vm0, %v8735_v12  ;;  %3652 = vrot.lane.b32.xlu0 %v8544_v16, %s7181_s15  ;;  %6752 = vrcp.f32 %v1633_v53  ;;  %v3735_v12 = vsel %vm1248_vm0, %v8690_v11, 0  ;;  %v8828_v16 = vld [vmem:[%s7630_s16 + $0x30] sm:$0xff]   ;;  %v10494_v11 = vld [vmem:[#allocation39_spill] sm:$0xff] }
 0x53e   : > { %3342 = vrot.lane.b32.xlu1 %v8811_v34, %s7180_s9  ;;  %v5877_v27 = vadd.f32 %v10495_v8, %v10494_v11  ;;  %v10505_v53 = vld [vmem:[#allocation47_spill] sm:$0xff] }
 0x540   : > { %v1888_v21 = vmul.f32 %v6747_v9, %v5877_v27  ;;  %v3687_v56 = vpop.permute.xlu1 %3686 }
 0x541   : > { %3348 = vrot.lane.b32.xlu0 %v8816_v26, %s7180_s9 }
 0x542   : > { %3340 = vrot.lane.b32.xlu1 %v8828_v16, %s7180_s9 }
 0x543   : > { %6047 = vmatmul.mubr.msk.bf16.gmra.mxu1 %vm1248_vm0, %v8648_v61 }
 0x544   : > { %6137 = vmatpush3.bf16.xpose.msra.mxu1 %v3735_v12  ;;  %6048 = vmatprep.mubr.msk.bf16.mxu1 %vm1248_vm0, %v8650_v41 }
 0x545   : > { %6408 = vmatprep.subr.msk.bf16.mxu1 %vm1248_vm0, %v3689_v31  ;;  %3654 = vrot.lane.b32.xlu0 %v10493_v0, %s7181_s15 }
 0x546   : > { %v6749_v61 = vpop.eup %6748  ;;  %3354 = vrot.lane.b32.xlu1 %v8839_v17, %s7180_s9 }
 0x547   : > { %v1887_v29 = vmul.f32 %v6749_v61, %v10496_v2  ;;  %v6751_v35 = vpop.eup %6750 }
 0x548   : > { %v1889_v20 = vmul.f32 %v6751_v35, %v10499_v36  ;;  %v10506_v36 = vld [vmem:[#allocation51_spill] sm:$0xff] }
 0x549   : > { %3330 = vrot.lane.b32.xlu0 %v8844_v32, %s7180_s9  ;;  %v1901_v33 = vpack.c.bf16 %v1888_v21, %v1887_v29 }
 0x54a   : > { %v6753_v44 = vpop.eup %6752 }
 0x54b   : > { %6049 = vmatmul.mubr.msk.bf16.gmra.mxu1 %vm1248_vm0, %v8650_v41  ;;  %6328 = vmatprep.mubr.msk.bf16.mxu0 %vm1248_vm0, %v1901_v33  ;;  %v1890_v18 = vmul.f32 %v6753_v44, %v5883_v50  ;;  %v8860_v41 = vld [vmem:[%s7630_s16 + $0x60] sm:$0xff]  }
 0x54c   : > { %6050 = vmatprep.mubr.msk.bf16.mxu1 %vm1248_vm0, %v8654_v10  ;;  %6139 = vmatpush3.bf16.xpose.msra.mxu1 %v3732_v38 }
 0x54d   : > { %6409 = vmatprep.subr.msk.bf16.mxu1 %vm1248_vm0, %v3687_v56  ;;  %3328 = vrot.lane.b32.xlu0 %v7093_v57, %s7180_s9  ;;  %v1902_v40 = vpack.c.bf16 %v1890_v18, %v1889_v20  ;;  %v10507_v20 = vld [vmem:[#allocation52_spill] sm:$0xff] }
 0x54e   : > { %3352 = vrot.lane.b32.xlu1 %v8860_v41, %s7180_s9  ;;  %v5901_v18 = vadd.f32 %v10507_v20, %v10506_v36 }
 0x54f   : > { %6329 = vmatmul.mubr.msk.bf16.gmra.mxu0 %vm1248_vm0, %v1902_v40 }
 0x551   : > { %3656 = vrot.lane.b32.xlu0 %v7095_v13, %s7181_s15 }
 0x552   : > { %3350 = vrot.lane.b32.xlu1 %v8869_v4, %s7180_s9 }
 0x553   : > { %6051 = vmatmul.mubr.msk.bf16.gmra.mxu1 %vm1248_vm0, %v8654_v10  ;;  %v8892_v10 = vld [vmem:[%s7630_s16 + $0x48] sm:$0xff]  }
 0x554   : > { %6052 = vmatprep.mubr.msk.bf16.mxu1 %vm1248_vm0, %v8659_v6  ;;  %6141 = vmatpush3.bf16.xpose.msra.mxu1 %v3729_v19 }
 0x556   : > { %3334 = vrot.lane.b32.xlu1 %v8878_v23, %s7180_s9 }
 0x55a   : > { %3332 = vrot.lane.b32.xlu1 %v8883_v51, %s7180_s9 }
 0x55b   : > { %6053 = vmatmul.mubr.msk.bf16.gmra.mxu1 %vm1248_vm0, %v8659_v6 }
 0x55c   : > { %6054 = vmatprep.mubr.msk.bf16.mxu1 %vm1248_vm0, %v8664_v22 }
 0x55e   : > { %3346 = vrot.lane.b32.xlu1 %v8892_v10, %s7180_s9 }
 0x55f   : > { %v1639_v48 = vpop.xlane.xlu0 %1638 }
 0x560   : > { %6754 = vrcp.f32 %v1639_v48  ;;  %v10510_v48 = vld [vmem:[#allocation54_spill] sm:$0xff] }
 0x562   : > { %3344 = vrot.lane.b32.xlu1 %v7100_v52, %s7180_s9  ;;  %s10672_s9 = sld [smem:[#allocation64_spill]] }
 0x563   : > { %6055 = vmatmul.mubr.msk.bf16.gmra.mxu1 %vm1248_vm0, %v8664_v22  ;;  %v1642_v6 = vpop.xlane.xlu0 %1641  ;;  %v10500_v22 = vld [vmem:[#allocation45_spill] sm:$0xff] }
 0x564   : > { %v5889_v30 = vadd.f32 %v10501_v45, %v10500_v22 }
 0x566   : > { %3658 = vrot.lane.b32.xlu1 %v7101_v15, %s7181_s15 }
 0x567   : > { %v3669_v54 = vpop.permute.xlu0 %3668 }
 0x568   : > { %v3726_v7 = vsel %vm1248_vm0, %v3669_v54, 0 }
 0x56d   : > { %v6755_v55 = vpop.eup %6754 }
 0x56e   : > { %v1892_v63 = vmul.f32 %v6755_v55, %v5889_v30  ;;  %v10513_v55 = vld [vmem:[#allocation53_spill] sm:$0xff] }
 0x571   : > { %v1636_v59 = vpop.xlane.xlu1 %1635 }
 0x572   : > { %6756 = vrcp.f32 %v1636_v59 }
 0x573   : > { %6758 = vrcp.f32 %v1642_v6  ;;  %v10511_v6 = vld [vmem:[#allocation55_spill] sm:$0xff] }
 0x574   : > { %v5907_v59 = vadd.f32 %v10511_v6, %v10510_v48 }
 0x575   : > { %v1645_v60 = vpop.xlane.xlu1 %1644 }
 0x576   : > { %6760 = vrcp.f32 %v1645_v60 }
 0x579   : > { %v3685_v58 = vpop.permute.xlu1 %3684 }
 0x57a   : > { %6410 = vmatprep.subr.msk.bf16.mxu1 %vm1248_vm0, %v3685_v58 }
 0x57b   : > { %6143 = vmatpush3.bf16.xpose.msra.mxu1 %v3726_v7 }
 0x57f   : > { %v6757_v43 = vpop.eup %6756 }
 0x580   : > { %v1891_v28 = vmul.f32 %v6757_v43, %v10502_v1  ;;  %v6759_v31 = vpop.eup %6758 }
 0x581   : > { %v1893_v12 = vmul.f32 %v6759_v31, %v10505_v53 }
 0x582   : > { %v1903_v47 = vpack.c.bf16 %v1892_v63, %v1891_v28 }
 0x583   : > { %v6761_v62 = vpop.eup %6760 }
 0x584   : > { %6332 = vmatprep.mubr.msk.bf16.mxu0 %vm1248_vm0, %v1903_v47  ;;  %v1894_v9 = vmul.f32 %v6761_v62, %v5895_v14 }
 0x586   : > { %v1904_v0 = vpack.c.bf16 %v1894_v9, %v1893_v12 }
 0x587   : > { %v8916_v57 = vpop.f32.mrf.mxu1 }
 0x588   : > { %6333 = vmatmul.mubr.msk.bf16.gmra.mxu0 %vm1248_vm0, %v1904_v0  ;;  %10508 = vst [vmem:[#allocation22_spill] sm:$0xff] %v8916_v57 }
 0x589   : > { %v8922_v60 = vpop.f32.mrf.mxu1 }
 0x58a   : > { %10512 = vst [vmem:[#allocation23_spill] sm:$0xff] %v8922_v60 }
 0x58b   : > { %v8926_v43 = vpop.f32.mrf.mxu1 }
 0x58c   : > { %10514 = vst [vmem:[#allocation56_spill] sm:$0xff] %v8926_v43 }
 0x58d   : > { %v8931_v31 = vpop.f32.mrf.mxu1 }
 0x58e   : > { %10515 = vst [vmem:[#allocation36_spill] sm:$0xff] %v8931_v31 }
 0x598   : > { %v1651_v11 = vpop.xlane.xlu0 %1650 }
 0x599   : > { %6762 = vrcp.f32 %v1651_v11 }
 0x59c   : > { %v1654_v8 = vpop.xlane.xlu0 %1653 }
 0x5a0   : > { %v3359_v27 = vpop.permute.xlu0 %3358 }
 0x5a1   : > { %6056 = vmatprep.subr.bf16.mxu0 %v3359_v27 }
 0x5a4   : > { %v3357_v61 = vpop.permute.xlu0 %3356 }
 0x5a6   : > { %v6763_v33 = vpop.eup %6762 }
 0x5a7   : > { %v1896_v13 = vmul.f32 %v6763_v33, %v5901_v18  ;;  %v10530_v18 = vld [vmem:[#allocation10_spill] sm:$0xff] }
 0x5a8   : > { %v3651_v38 = vpop.permute.xlu0 %3650 }
 0x5a9   : > { %6146 = vmatprep.mubr.msk.bf16.mxu1 %vm1248_vm0, %v3651_v38 }
 0x5aa   : > { %v1648_v2 = vpop.xlane.xlu1 %1647 }
 0x5ab   : > { %6764 = vrcp.f32 %v1648_v2 }
 0x5ac   : > { %v3339_v29 = vpop.permute.xlu0 %3338  ;;  %6766 = vrcp.f32 %v1654_v8 }
 0x5ae   : > { %v1657_v21 = vpop.xlane.xlu1 %1656 }
 0x5af   : > { %6768 = vrcp.f32 %v1657_v21 }
 0x5b0   : > { %v3337_v35 = vpop.permute.xlu0 %3336 }
 0x5b2   : > { %v3667_v37 = vpop.permute.xlu1 %3666 }
 0x5b3   : > { %v3723_v50 = vsel %vm1248_vm0, %v3667_v37, 0 }
 0x5b4   : > { %v3653_v3 = vpop.permute.xlu0 %3652 }
 0x5b6   : > { %v3683_v44 = vpop.permute.xlu1 %3682 }
 0x5b7   : > { %6411 = vmatprep.subr.msk.bf16.mxu1 %vm1248_vm0, %v3683_v44 }
 0x5b8   : > { %v3349_v56 = vpop.permute.xlu0 %3348  ;;  %v6765_v40 = vpop.eup %6764  ;;  %6145 = vmatpush3.bf16.xpose.msra.mxu1 %v3723_v50 }
 0x5b9   : > { %v1895_v19 = vmul.f32 %v6765_v40, %v10509_v42  ;;  %v6767_v52 = vpop.eup %6766 }
 0x5ba   : > { %v3343_v15 = vpop.permute.xlu1 %3342  ;;  %v1897_v22 = vmul.f32 %v6767_v52, %v10513_v55 }
 0x5bb   : > { %v1905_v54 = vpack.c.bf16 %v1896_v13, %v1895_v19  ;;  %6057 = vmatpush3.bf16.msra.mxu0 %v3343_v15 }
 0x5bc   : > { %v3655_v7 = vpop.permute.xlu0 %3654  ;;  %v6769_v58 = vpop.eup %6768  ;;  %6058 = vmatprep.subr.bf16.mxu0 %v3357_v61 }
 0x5bd   : > { %6336 = vmatprep.mubr.msk.bf16.mxu0 %vm1248_vm0, %v1905_v54  ;;  %v1898_v45 = vmul.f32 %v6769_v58, %v5907_v59 }
 0x5be   : > { %v3341_v30 = vpop.permute.xlu1 %3340 }
 0x5bf   : > { %6147 = vmatmul.mubr.msk.bf16.vlgmr.msra.gmra.mxu1 %vm1248_vm0, %v3651_v38  ;;  %v1906_v1 = vpack.c.bf16 %v1898_v45, %v1897_v22  ;;  %6059 = vmatpush3.bf16.msra.mxu0 %v3341_v30 }
 0x5c0   : > { %6148 = vmatprep.mubr.msk.bf16.mxu1 %vm1248_vm0, %v3653_v3  ;;  %v3331_v28 = vpop.permute.xlu0 %3330 }
 0x5c1   : > { %6337 = vmatmul.mubr.msk.bf16.gmra.mxu0 %vm1248_vm0, %v1906_v1  ;;  %v10534_v1 = vld [vmem:[#allocation13_spill] sm:$0xff] }
 0x5c2   : > { %v3355_v63 = vpop.permute.xlu1 %3354  ;;  %vm10536_vm7 = vcmp.le.s32.totalorder %v10530_v18, %v10534_v1 }
 0x5c3   : > { %6060 = vmatprep.subr.bf16.mxu0 %v3355_v63  ;;  %v8933_v25 = vpop.f32.mrf.mxu1 }
 0x5c4   : > { %6061 = vmatpush3.bf16.msra.mxu0 %v3339_v29  ;;  %10516 = vst [vmem:[#allocation37_spill] sm:$0xff] %v8933_v25  ;;  %v3329_v14 = vpop.permute.xlu0 %3328 }
 0x5c5   : > { %v8937_v47 = vpop.f32.mrf.mxu1 }
 0x5c6   : > { %v3353_v5 = vpop.permute.xlu1 %3352  ;;  %10517 = vst [vmem:[#allocation58_spill] sm:$0xff] %v8937_v47 }
 0x5c7   : > { %6149 = vmatmul.mubr.msk.bf16.gmra.mxu1 %vm1248_vm0, %v3653_v3  ;;  %6062 = vmatprep.subr.bf16.mxu0 %v3353_v5  ;;  %v8939_v53 = vpop.f32.mrf.mxu1 }
 0x5c8   : > { %6150 = vmatprep.mubr.msk.bf16.mxu1 %vm1248_vm0, %v3655_v7  ;;  %6063 = vmatpush3.bf16.msra.mxu0 %v3337_v35  ;;  %10518 = vst [vmem:[#allocation35_spill] sm:$0xff] %v8939_v53  ;;  %v3657_v12 = vpop.permute.xlu0 %3656 }
 0x5c9   : > { %v8943_v0 = vpop.f32.mrf.mxu1 }
 0x5ca   : > { %v3351_v62 = vpop.permute.xlu1 %3350  ;;  %10519 = vst [vmem:[#allocation25_spill] sm:$0xff] %v8943_v0  ;;  %v10552_v0 = vld [vmem:[#allocation20_spill] sm:$0xff] }
 0x5cb   : > { %6064 = vmatprep.subr.bf16.mxu0 %v3351_v62 }
 0x5ce   : > { %v3335_v9 = vpop.permute.xlu1 %3334 }
 0x5cf   : > { %6151 = vmatmul.mubr.msk.bf16.gmra.mxu1 %vm1248_vm0, %v3655_v7  ;;  %6065 = vmatpush3.bf16.msra.mxu0 %v3335_v9  ;;  %v10532_v7 = vld [vmem:[#allocation12_spill] sm:$0xff] }
 0x5d0   : > { %6152 = vmatprep.mubr.msk.bf16.mxu1 %vm1248_vm0, %v3657_v12  ;;  %6066 = vmatprep.subr.bf16.mxu0 %v3349_v56  ;;  %v10528_v56 = vld [vmem:[#allocation8_spill] sm:$0xff]  ;;  %vm10533_vm6 = vcmp.le.s32.totalorder %v10530_v18, %v10532_v7 }
 0x5d1   : > { %vm10535_vm9 = vcmp.le.s32.totalorder %v10528_v56, %v10534_v1 }
 0x5d2   : > { %v3333_v11 = vpop.permute.xlu1 %3332 }
 0x5d3   : > { %v8945_v8 = vpop.f32.mrf.mxu1  ;;  %6067 = vmatpush3.bf16.msra.mxu0 %v3333_v11 }
 0x5d4   : > { %10520 = vst [vmem:[#allocation33_spill] sm:$0xff] %v8945_v8  ;;  %v7102_v8 = vld [vmem:[%s7533_s23 + $0x28] sm:$0xff]  }
 0x5d5   : > { %v8947_v61 = vpop.f32.mrf.mxu1 }
 0x5d6   : > { %v3347_v27 = vpop.permute.xlu1 %3346  ;;  %10521 = vst [vmem:[#allocation34_spill] sm:$0xff] %v8947_v61 }
 0x5d7   : > { %6153 = vmatmul.mubr.msk.bf16.gmra.mxu1 %vm1248_vm0, %v3657_v12  ;;  %6068 = vmatprep.subr.bf16.mxu0 %v3347_v27  ;;  %v8950_v2 = vpop.f32.mrf.mxu1  ;;  %v10537_v12 = vld [vmem:[#allocation14_spill] sm:$0xff] }
 0x5d8   : > { %6069 = vmatpush3.bf16.msra.mxu0 %v3331_v28  ;;  %10522 = vst [vmem:[#allocation30_spill] sm:$0xff] %v8950_v2  ;;  %vm10538_vm8 = vcmp.le.s32.totalorder %v10528_v56, %v10537_v12 }
 0x5d9   : > { %v8952_v21 = vpop.f32.mrf.mxu1 }
 0x5da   : > { %v3345_v38 = vpop.permute.xlu1 %3344  ;;  %10523 = vst [vmem:[#allocation32_spill] sm:$0xff] %v8952_v21 }
 0x5db   : > { %6070 = vmatprep.subr.bf16.mxu0 %v3345_v38 }
 0x5dc   : > { %6071 = vmatpush3.bf16.msra.mxu0 %v3329_v14 }
 0x5de   : > { %v3659_v29 = vpop.permute.xlu1 %3658 }
 0x5df   : > { %6154 = vmatprep.mubr.msk.bf16.mxu1 %vm1248_vm0, %v3659_v29 }
 0x5e0   : > { %6155 = vmatmul.mubr.msk.bf16.gmra.mxu1 %vm1248_vm0, %v3659_v29 }
 0x5e3   : > { %v8956_v35 = vpop.f32.mrf.mxu1 }
 0x5e4   : > { %10524 = vst [vmem:[#allocation24_spill] sm:$0xff] %v8956_v35 }
 0x5e5   : > { %v8958_v37 = vpop.f32.mrf.mxu1 }
 0x5e6   : > { %10525 = vst [vmem:[#allocation31_spill] sm:$0xff] %v8958_v37  ;;  %v10555_v37 = vld [vmem:[#allocation21_spill] sm:$0xff] }
 0x5e7   : > { %v8960_v3 = vpop.f32.mrf.mxu1 }
 0x5e8   : > { %10526 = vst [vmem:[#allocation59_spill] sm:$0xff] %v8960_v3 }
 0x5e9   : > { %v8962_v50 = vpop.f32.mrf.mxu1 }
 0x5ea   : > { %10527 = vst [vmem:[#allocation57_spill] sm:$0xff] %v8962_v50 }
 0x5eb   : > { %v2993_v33 = vpop.f32.mrf.mxu1 }
 0x5ec   : > { %v8967_v20 = vsel %vm1096_vm1, %v2993_v33, -1e+30  ;;  %v10540_v33 = vld [vmem:[#allocation15_spill] sm:$0xff] }
 0x5ed   : > { %v2995_v44 = vpop.f32.mrf.mxu1 }
 0x5ee   : > { %v8972_v40 = vsel %vm1097_vm2, %v2995_v44, -1e+30 }
 0x5ef   : > { %v3104_v42 = vmax.f32 %v8967_v20, %v8972_v40  ;;  %v2997_v19 = vpop.f32.mrf.mxu1 }
 0x5f0   : > { %v8979_v15 = vsel %vm1098_vm3, %v2997_v19, -1e+30 }
 0x5f1   : > { %3105 = vmax.xlane.f32.xlu0 %v3104_v42  ;;  %v2999_v13 = vpop.f32.mrf.mxu1 }
 0x5f2   : > { %v8984_v48 = vsel %vm1099_vm4, %v2999_v13, -1e+30 }
 0x5f3   : > { %v3107_v6 = vmax.f32 %v8979_v15, %v8984_v48  ;;  %v3003_v59 = vpop.f32.mrf.mxu1 }
 0x5f4   : > { %v8991_v58 = vsel %vm1100_vm5, %v3003_v59, -1e+30  ;;  %v10543_v59 = vld [vmem:[#allocation16_spill] sm:$0xff] }
 0x5f5   : > { %3108 = vmax.xlane.f32.xlu1 %v3107_v6  ;;  %v3005_v54 = vpop.f32.mrf.mxu1 }
 0x5f6   : > { %v8996_v55 = vsel %vm10533_vm6, %v3005_v54, -1e+30  ;;  %vm10539_vm6 = vcmp.le.s32.totalorder %v10530_v18, %v10537_v12 }
 0x5f7   : > { %v3110_v22 = vmax.f32 %v8991_v58, %v8996_v55  ;;  %v3007_v45 = vpop.f32.mrf.mxu1 }
 0x5f8   : > { %v9003_v28 = vsel %vm10535_vm9, %v3007_v45, -1e+30  ;;  %vm10541_vm9 = vcmp.le.s32.totalorder %v10528_v56, %v10540_v33 }
 0x5f9   : > { %3111 = vmax.xlane.f32.xlu0 %v3110_v22  ;;  %v3009_v30 = vpop.f32.mrf.mxu1 }
 0x5fa   : > { %v9008_v63 = vsel %vm10536_vm7, %v3009_v30, -1e+30  ;;  %vm10542_vm7 = vcmp.le.s32.totalorder %v10530_v18, %v10540_v33 }
 0x5fb   : > { %v3113_v5 = vmax.f32 %v9003_v28, %v9008_v63  ;;  %v3013_v14 = vpop.f32.mrf.mxu1 }
 0x5fc   : > { %v9015_v9 = vsel %vm10538_vm8, %v3013_v14, -1e+30  ;;  %vm10544_vm8 = vcmp.le.s32.totalorder %v10528_v56, %v10543_v59  ;;  %v10546_v14 = vld [vmem:[#allocation17_spill] sm:$0xff] }
 0x5fd   : > { %3114 = vmax.xlane.f32.xlu1 %v3113_v5  ;;  %v3015_v62 = vpop.f32.mrf.mxu1 }
 0x5fe   : > { %v9020_v11 = vsel %vm10539_vm6, %v3015_v62, -1e+30  ;;  %vm10545_vm6 = vcmp.le.s32.totalorder %v10530_v18, %v10543_v59 }
 0x5ff   : > { %v3116_v27 = vmax.f32 %v9015_v9, %v9020_v11  ;;  %v3017_v38 = vpop.f32.mrf.mxu1 }
 0x600   : > { %v9027_v44 = vsel %vm10541_vm9, %v3017_v38, -1e+30  ;;  %vm10547_vm9 = vcmp.le.s32.totalorder %v10528_v56, %v10546_v14 }
 0x601   : > { %3117 = vmax.xlane.f32.xlu1 %v3116_v27  ;;  %v3019_v29 = vpop.f32.mrf.mxu1 }
 0x602   : > { %v9032_v42 = vsel %vm10542_vm7, %v3019_v29, -1e+30  ;;  %vm10548_vm7 = vcmp.le.s32.totalorder %v10530_v18, %v10546_v14 }
 0x603   : > { %v3119_v19 = vmax.f32 %v9027_v44, %v9032_v42  ;;  %v3023_v13 = vpop.f32.mrf.mxu1 }
 0x604   : > { %v9039_v54 = vsel %vm10544_vm8, %v3023_v13, -1e+30  ;;  %v10549_v13 = vld [vmem:[#allocation18_spill] sm:$0xff] }
 0x605   : > { %3120 = vmax.xlane.f32.xlu0 %v3119_v19  ;;  %v3025_v6 = vpop.f32.mrf.mxu1  ;;  %vm10550_vm8 = vcmp.le.s32.totalorder %v10528_v56, %v10549_v13 }
 0x606   : > { %v9044_v22 = vsel %vm10545_vm6, %v3025_v6, -1e+30  ;;  %vm10551_vm6 = vcmp.le.s32.totalorder %v10530_v18, %v10549_v13 }
 0x607   : > { %v3122_v45 = vmax.f32 %v9039_v54, %v9044_v22  ;;  %v3027_v30 = vpop.f32.mrf.mxu1 }
 0x608   : > { %v9051_v62 = vsel %vm10547_vm9, %v3027_v30, -1e+30  ;;  %vm10553_vm9 = vcmp.le.s32.totalorder %v10528_v56, %v10552_v0 }
 0x609   : > { %3123 = vmax.xlane.f32.xlu0 %v3122_v45  ;;  %v3029_v5 = vpop.f32.mrf.mxu1 }
 0x60a   : > { %v9056_v27 = vsel %vm10548_vm7, %v3029_v5, -1e+30  ;;  %vm10554_vm7 = vcmp.le.s32.totalorder %v10530_v18, %v10552_v0 }
 0x60b   : > { %v3125_v38 = vmax.f32 %v9051_v62, %v9056_v27  ;;  %v3033_v29 = vpop.f32.mrf.mxu1 }
 0x60c   : > { %v9063_v6 = vsel %vm10550_vm8, %v3033_v29, -1e+30  ;;  %vm10556_vm8 = vcmp.le.s32.totalorder %v10528_v56, %v10555_v37 }
 0x60d   : > { %3126 = vmax.xlane.f32.xlu1 %v3125_v38  ;;  %v3035_v19 = vpop.f32.mrf.mxu1 }
 0x60e   : > { %v9068_v45 = vsel %vm10551_vm6, %v3035_v19, -1e+30  ;;  %vm10557_vm6 = vcmp.le.s32.totalorder %v10530_v18, %v10555_v37 }
 0x60f   : > { %v3128_v30 = vmax.f32 %v9063_v6, %v9068_v45  ;;  %v3037_v5 = vpop.f32.mrf.mxu1 }
 0x611   : > { %3129 = vmax.xlane.f32.xlu1 %v3128_v30  ;;  %v3039_v50 = vpop.f32.mrf.mxu1 }
 0x613   : > { %v3043_v21 = vpop.f32.mrf.mxu1 }
 0x614   : > { %v9075_v31 = vsel %vm10553_vm9, %v3043_v21, -1e+30 }
 0x615   : > { %v3045_v38 = vpop.f32.mrf.mxu1 }
 0x616   : > { %v9080_v29 = vsel %vm10554_vm7, %v3045_v38, -1e+30 }
 0x617   : > { %v3134_v19 = vmax.f32 %v9075_v31, %v9080_v29  ;;  %v3047_v3 = vpop.f32.mrf.mxu1 }
 0x618   : > { %v9087_v35 = vsel %vm10556_vm8, %v3047_v3, -1e+30 }
 0x619   : > { %3135 = vmax.xlane.f32.xlu1 %v3134_v19  ;;  %v3049_v30 = vpop.f32.mrf.mxu1 }
 0x61a   : > { %v9092_v21 = vsel %vm10557_vm6, %v3049_v30, -1e+30 }
 0x61b   : > { %v3137_v38 = vmax.f32 %v9087_v35, %v9092_v21  ;;  %v3053_v2 = vpop.f32.mrf.mxu1 }
 0x61d   : > { %3138 = vmax.xlane.f32.xlu1 %v3137_v38  ;;  %v3055_v61 = vpop.f32.mrf.mxu1 }
 0x61f   : > { %3660 = vrot.lane.b32.xlu0 %v7102_v8, %s7181_s15  ;;  %v3057_v19 = vpop.f32.mrf.mxu1  ;;  %v10559_v8 = vld [vmem:[#allocation27_spill] sm:$0xff] }
 0x620   : > { %v9101_v3 = vsel %vm1122_vm11, %v3057_v19, -1e+30  ;;  %vm10560_vm9 = vcmp.le.s32.totalorder %v10528_v56, %v10559_v8  ;;  %vm10561_vm7 = vcmp.le.s32.totalorder %v10530_v18, %v10559_v8  ;;  %v10563_v8 = vld [vmem:[#allocation19_spill] sm:$0xff] }
 0x621   : > { %v3059_v53 = vpop.f32.mrf.mxu1  ;;  %vm10564_vm8 = vcmp.le.s32.totalorder %v10530_v18, %v10563_v8  ;;  %vm10565_vm6 = vcmp.le.s32.totalorder %v10528_v56, %v10563_v8 }
 0x622   : > { %v9106_v30 = vsel %vm1123_vm10, %v3059_v53, -1e+30  ;;  %v9137_v0 = vsel %vm10564_vm8, %v3039_v50, -1e+30  ;;  %v9156_v50 = vsel %vm1120_vm14, %v3053_v2, -1e+30  ;;  %vm10574_vm8 = vcmp.le.s32.totalorder %v10528_v56, %v10543_v59 }
 0x623   : > { %v3143_v25 = vmax.f32 %v9101_v3, %v9106_v30  ;;  %v3063_v38 = vpop.f32.mrf.mxu1 }
 0x624   : > { %v9113_v60 = vsel %vm10560_vm9, %v3063_v38, -1e+30  ;;  %vm10572_vm9 = vcmp.le.s32.totalorder %v10528_v56, %v10540_v33 }
 0x625   : > { %3144 = vmax.xlane.f32.xlu1 %v3143_v25  ;;  %v3065_v43 = vpop.f32.mrf.mxu1  ;;  %v9149_v25 = vsel %vm1121_vm13, %v3055_v61, -1e+30  ;;  %v7104_v61 = vld [vmem:[%s7533_s23 + $0x38] sm:$0xff]  }
 0x626   : > { %v9118_v19 = vsel %vm10561_vm7, %v3065_v43, -1e+30  ;;  %vm10573_vm7 = vcmp.le.s32.totalorder %v10530_v18, %v10540_v33 }
 0x627   : > { %v3146_v53 = vmax.f32 %v9113_v60, %v9118_v19  ;;  %v3067_v57 = vpop.f32.mrf.mxu1 }
 0x628   : > { %v9125_v37 = vsel %vm1126_vm12, %v3067_v57, -1e+30  ;;  %v9142_v57 = vsel %vm10565_vm6, %v3037_v5, -1e+30  ;;  %v3140_v5 = vmax.f32 %v9156_v50, %v9149_v25  ;;  %vm10575_vm6 = vcmp.le.s32.totalorder %v10530_v18, %v10543_v59 }
 0x629   : > { %3147 = vmax.xlane.f32.xlu1 %v3146_v53  ;;  %v3069_v47 = vpop.f32.mrf.mxu1  ;;  %v3131_v53 = vmax.f32 %v9142_v57, %v9137_v0 }
 0x62a   : > { %v9130_v38 = vsel %vm1127_vm15, %v3069_v47, -1e+30 }
 0x62b   : > { %v3149_v43 = vmax.f32 %v9125_v37, %v9130_v38 }
 0x62d   : > { %3150 = vmax.xlane.f32.xlu1 %v3149_v43  ;;  %v7103_v43 = vld [vmem:[%s7533_s23 + $0x30] sm:$0xff]   ;;  %s10671_s23 = sld [smem:[#allocation62_spill]] }
 0x63e   : > { %3132 = vmax.xlane.f32.xlu0 %v3131_v53  ;;  %3662 = vrot.lane.b32.xlu1 %v7103_v43, %s7181_s15 }
 0x642   : > { %3141 = vmax.xlane.f32.xlu0 %v3140_v5  ;;  %4153 = vrot.lane.b32.xlu1 %v8811_v34, %s7181_s15 }
 0x646   : > { %4167 = vrot.lane.b32.xlu1 %v8772_v49, %s7181_s15 }
 0x64a   : > { %4151 = vrot.lane.b32.xlu1 %v8828_v16, %s7181_s15 }
 0x64e   : > { %4149 = vrot.lane.b32.xlu1 %v8787_v39, %s7181_s15 }
 0x652   : > { %4147 = vrot.lane.b32.xlu1 %v8794_v46, %s7181_s15 }
 0x656   : > { %4145 = vrot.lane.b32.xlu1 %v8878_v23, %s7181_s15 }
 0x658   : > { %3664 = vrot.lane.b32.xlu0 %v7104_v61, %s7181_s15 }
 0x65a   : > { %4143 = vrot.lane.b32.xlu1 %v8883_v51, %s7181_s15 }
 0x65c   : > { %4169 = vrot.lane.b32.xlu0 %v8759_v24, %s7181_s15 }
 0x660   : > { %4165 = vrot.lane.b32.xlu0 %v8839_v17, %s7181_s15 }
 0x664   : > { %4163 = vrot.lane.b32.xlu0 %v8860_v41, %s7181_s15 }
 0x668   : > { %4161 = vrot.lane.b32.xlu0 %v8869_v4, %s7181_s15 }
 0x66c   : > { %4159 = vrot.lane.b32.xlu0 %v8816_v26, %s7181_s15 }
 0x67a   : > { %v3106_v49 = vpop.xlane.xlu0 %3105 }
 0x67b   : > { %v3152_v39 = vsub.f32 %v8967_v20, %v3106_v49  ;;  %v3153_v46 = vsub.f32 %v8972_v40, %v3106_v49 }
 0x67d   : > { %v3184_v34 = vmul.f32 1.442695, %v3152_v39  ;;  %v3186_v16 = vmul.f32 1.442695, %v3153_v46 }
 0x67e   : > { %v3109_v24 = vpop.xlane.xlu1 %3108 }
 0x67f   : > { %6770 = vpow2.f32 %v3184_v34  ;;  %v3154_v17 = vsub.f32 %v8979_v15, %v3109_v24  ;;  %v3155_v23 = vsub.f32 %v8984_v48, %v3109_v24  ;;  %v3804_v4 = vpop.f32.mrf.mxu1 }
 0x680   : > { %6772 = vpow2.f32 %v3186_v16  ;;  %v9195_v40 = vsel %vm1096_vm1, %v3804_v4, -1e+30  ;;  %vm10567_vm1 = vcmp.le.s32.totalorder %v10530_v18, %v10532_v7 }
 0x681   : > { %v3188_v41 = vmul.f32 1.442695, %v3154_v17  ;;  %v3190_v51 = vmul.f32 1.442695, %v3155_v23  ;;  %v3806_v26 = vpop.f32.mrf.mxu1 }
 0x682   : > { %v3112_v2 = vpop.xlane.xlu0 %3111  ;;  %v9200_v15 = vsel %vm1097_vm2, %v3806_v26, -1e+30  ;;  %vm10568_vm2 = vcmp.le.s32.totalorder %v10528_v56, %v10534_v1 }
 0x683   : > { %6774 = vpow2.f32 %v3188_v41  ;;  %v3156_v53 = vsub.f32 %v8991_v58, %v3112_v2  ;;  %v3157_v20 = vsub.f32 %v8996_v55, %v3112_v2  ;;  %v3808_v5 = vpop.f32.mrf.mxu1  ;;  %v3915_v61 = vmax.f32 %v9195_v40, %v9200_v15 }
 0x684   : > { %6776 = vpow2.f32 %v3190_v51  ;;  %v9205_v58 = vsel %vm1098_vm3, %v3808_v5, -1e+30  ;;  %vm10569_vm3 = vcmp.le.s32.totalorder %v10530_v18, %v10534_v1 }
 0x685   : > { %v3192_v48 = vmul.f32 1.442695, %v3156_v53  ;;  %v3194_v43 = vmul.f32 1.442695, %v3157_v20  ;;  %v3810_v49 = vpop.f32.mrf.mxu1 }
 0x686   : > { %v3115_v55 = vpop.xlane.xlu1 %3114  ;;  %v9214_v46 = vsel %vm1099_vm4, %v3810_v49, -1e+30  ;;  %vm10570_vm4 = vcmp.le.s32.totalorder %v10528_v56, %v10537_v12 }
 0x687   : > { %6778 = vpow2.f32 %v3192_v48  ;;  %v3158_v39 = vsub.f32 %v9003_v28, %v3115_v55  ;;  %v3159_v36 = vsub.f32 %v9008_v63, %v3115_v55  ;;  %v3918_v34 = vmax.f32 %v9205_v58, %v9214_v46  ;;  %v3814_v17 = vpop.f32.mrf.mxu1 }
 0x688   : > { %6780 = vpow2.f32 %v3194_v43  ;;  %v9221_v23 = vsel %vm1100_vm5, %v3814_v17, -1e+30  ;;  %vm10571_vm5 = vcmp.le.s32.totalorder %v10530_v18, %v10537_v12 }
 0x689   : > { %v3196_v16 = vmul.f32 1.442695, %v3158_v39  ;;  %v3198_v24 = vmul.f32 1.442695, %v3159_v36  ;;  %3919 = vmax.xlane.f32.xlu1 %v3918_v34  ;;  %v3816_v63 = vpop.f32.mrf.mxu1 }
 0x68a   : > { %v3118_v28 = vpop.xlane.xlu1 %3117  ;;  %v9228_v4 = vsel %vm10567_vm1, %v3816_v63, -1e+30  ;;  %vm10576_vm1 = vcmp.le.s32.totalorder %v10528_v56, %v10546_v14 }
 0x68b   : > { %6782 = vpow2.f32 %v3196_v16  ;;  %v3160_v41 = vsub.f32 %v9015_v9, %v3118_v28  ;;  %v3161_v52 = vsub.f32 %v9020_v11, %v3118_v28  ;;  %3916 = vmax.xlane.f32.xlu0 %v3915_v61  ;;  %v3921_v26 = vmax.f32 %v9221_v23, %v9228_v4  ;;  %v3818_v48 = vpop.f32.mrf.mxu1 }
 0x68c   : > { %v6771_v51 = vpop.eup %6770  ;;  %6784 = vpow2.f32 %v3198_v24  ;;  %v9235_v9 = vsel %vm10568_vm2, %v3818_v48, -1e+30  ;;  %vm10577_vm2 = vcmp.le.s32.totalorder %v10530_v18, %v10546_v14  ;;  %v6534_v14 = vld [vmem:[%s10256_s4 + $0x28] sm:$0xff]  }
 0x68d   : > { %v6773_v2 = vpop.eup %6772  ;;  %v3200_v53 = vmul.f32 1.442695, %v3160_v41  ;;  %v3202_v20 = vmul.f32 1.442695, %v3161_v52  ;;  %v3820_v5 = vpop.f32.mrf.mxu1  ;;  %6340 = vmatprep.subr.bf16.mxu0 %v6534_v14 }
 0x68e   : > { %v3121_v11 = vpop.xlane.xlu0 %3120  ;;  %v9237_v43 = vadd.f32 %v6773_v2, %v6771_v51  ;;  %v9244_v49 = vsel %vm10569_vm3, %v3820_v5, -1e+30  ;;  %vm10578_vm3 = vcmp.le.s32.totalorder %v10528_v56, %v10563_v8 }
 0x68f   : > { %6786 = vpow2.f32 %v3200_v53  ;;  %v3162_v7 = vsub.f32 %v9027_v44, %v3121_v11  ;;  %v3163_v55 = vsub.f32 %v9032_v42, %v3121_v11  ;;  %3922 = vmax.xlane.f32.xlu0 %v3921_v26  ;;  %v3924_v36 = vmax.f32 %v9235_v9, %v9244_v49  ;;  %v3824_v24 = vpop.f32.mrf.mxu1 }
 0x690   : > { %v6775_v61 = vpop.eup %6774  ;;  %6788 = vpow2.f32 %v3202_v20  ;;  %v9251_v44 = vsel %vm10570_vm4, %v3824_v24, -1e+30  ;;  %vm10580_vm4 = vcmp.le.s32.totalorder %v10530_v18, %v10563_v8 }
 0x691   : > { %v6777_v39 = vpop.eup %6776  ;;  %v3204_v34 = vmul.f32 1.442695, %v3162_v7  ;;  %v3206_v16 = vmul.f32 1.442695, %v3163_v55  ;;  %v3312_v17 = vpack.c.bf16 %v6775_v61, %v6771_v51  ;;  %3925 = vmax.xlane.f32.xlu1 %v3924_v36  ;;  %v3826_v1 = vpop.f32.mrf.mxu1 }
 0x692   : > { %v3124_v42 = vpop.xlane.xlu0 %3123  ;;  %v3313_v28 = vpack.c.bf16 %v6777_v39, %v6773_v2  ;;  %v9253_v63 = vadd.f32 %v6777_v39, %v6775_v61  ;;  %v9260_v51 = vsel %vm10571_vm5, %v3826_v1, -1e+30  ;;  %vm10585_vm5 = vcmp.le.s32.totalorder %v10528_v56, %v10549_v13 }
 0x693   : > { %6790 = vpow2.f32 %v3204_v34  ;;  %v3164_v41 = vsub.f32 %v9039_v54, %v3124_v42  ;;  %v3165_v52 = vsub.f32 %v9044_v22, %v3124_v42  ;;  %v3927_v2 = vmax.f32 %v9251_v44, %v9260_v51  ;;  %v3828_v11 = vpop.f32.mrf.mxu1 }
 0x694   : > { %v6779_v26 = vpop.eup %6778  ;;  %6792 = vpow2.f32 %v3206_v16  ;;  %3408 = vmatprep.mubr.bf16.mxu0 %v3313_v28  ;;  %v9267_v54 = vsel %vm10572_vm9, %v3828_v11, -1e+30  ;;  %vm10587_vm9 = vcmp.le.s32.totalorder %v10530_v18, %v10549_v13 }
 0x695   : > { %v6781_v53 = vpop.eup %6780  ;;  %v3208_v20 = vmul.f32 1.442695, %v3164_v41  ;;  %v3210_v48 = vmul.f32 1.442695, %v3165_v52  ;;  %3409 = vmatmul.mubr.bf16.vlgmr.msra.gmra.mxu0 %v3312_v17  ;;  %3928 = vmax.xlane.f32.xlu0 %v3927_v2  ;;  %v3830_v12 = vpop.f32.mrf.mxu1 }
 0x696   : > { %v3127_v22 = vpop.xlane.xlu1 %3126  ;;  %v3661_v5 = vpop.permute.xlu0 %3660  ;;  %v9269_v7 = vadd.f32 %v6781_v53, %v6779_v26  ;;  %v9277_v36 = vsel %vm10573_vm7, %v3830_v12, -1e+30  ;;  %6341 = vmatpush3.bf16.msra.mxu0 %v6534_v14 }
 0x697   : > { %6794 = vpow2.f32 %v3208_v20  ;;  %v3166_v55 = vsub.f32 %v9051_v62, %v3127_v22  ;;  %v3167_v61 = vsub.f32 %v9056_v27, %v3127_v22  ;;  %6156 = vmatprep.mubr.msk.bf16.mxu1 %vm1248_vm0, %v3661_v5  ;;  %v3930_v16 = vmax.f32 %v9267_v54, %v9277_v36  ;;  %v3834_v62 = vpop.f32.mrf.mxu1 }
 0x698   : > { %v6783_v39 = vpop.eup %6782  ;;  %6796 = vpow2.f32 %v3210_v48  ;;  %6157 = vmatmul.mubr.msk.bf16.gmra.mxu1 %vm1248_vm0, %v3661_v5  ;;  %v9285_v27 = vsel %vm10574_vm8, %v3834_v62, -1e+30 }
 0x699   : > { %v6785_v34 = vpop.eup %6784  ;;  %v3212_v24 = vmul.f32 1.442695, %v3166_v55  ;;  %v3214_v17 = vmul.f32 1.442695, %v3167_v61  ;;  %v3314_v42 = vpack.c.bf16 %v6783_v39, %v6779_v26  ;;  %3931 = vmax.xlane.f32.xlu1 %v3930_v16  ;;  %v3836_v33 = vpop.f32.mrf.mxu1 }
 0x69a   : > { %v3315_v28 = vpack.c.bf16 %v6785_v34, %v6781_v53  ;;  %v9287_v1 = vadd.f32 %v6785_v34, %v6783_v39  ;;  %v9292_v52 = vsel %vm10575_vm6, %v3836_v33, -1e+30  ;;  %v3130_v59 = vpop.xlane.xlu1 %3129 }
 0x69b   : > { %6798 = vpow2.f32 %v3212_v24  ;;  %v3933_v2 = vmax.f32 %v9285_v27, %v9292_v52  ;;  %v3838_v20 = vpop.f32.mrf.mxu1 }
 0x69c   : > { %v6787_v41 = vpop.eup %6786  ;;  %6800 = vpow2.f32 %v3214_v17  ;;  %3416 = vmatprep.mubr.bf16.mxu0 %v3315_v28  ;;  %v9299_v53 = vsel %vm10576_vm1, %v3838_v20, -1e+30 }
 0x69d   : > { %v6789_v26 = vpop.eup %6788  ;;  %3417 = vmatmul.mubr.bf16.gmra.mxu0 %v3314_v42  ;;  %3934 = vmax.xlane.f32.xlu0 %v3933_v2  ;;  %v3840_v11 = vpop.f32.mrf.mxu1  ;;  %v6535_v2 = vld [vmem:[%s10256_s4 + $0x20] sm:$0xff]  }
 0x69e   : > { %v9301_v48 = vadd.f32 %v6789_v26, %v6787_v41  ;;  %v9306_v5 = vsel %vm10577_vm2, %v3840_v11, -1e+30  ;;  %6342 = vmatprep.subr.bf16.mxu0 %v6535_v2 }
 0x69f   : > { %v3936_v55 = vmax.f32 %v9299_v53, %v9306_v5  ;;  %6343 = vmatpush3.bf16.msra.mxu0 %v6535_v2 }
 0x6a0   : > { %v6791_v22 = vpop.eup %6790 }
 0x6a1   : > { %v6793_v12 = vpop.eup %6792  ;;  %v3316_v61 = vpack.c.bf16 %v6791_v22, %v6787_v41  ;;  %3937 = vmax.xlane.f32.xlu1 %v3936_v55  ;;  %v3168_v55 = vsub.f32 %v9063_v6, %v3130_v59 }
 0x6a2   : > { %v3317_v39 = vpack.c.bf16 %v6793_v12, %v6789_v26  ;;  %v9310_v34 = vadd.f32 %v6793_v12, %v6791_v22  ;;  %v3136_v24 = vpop.xlane.xlu1 %3135 }
 0x6a3   : > { %v3173_v14 = vsub.f32 %v9080_v29, %v3136_v24 }
 0x6a4   : > { %v6795_v16 = vpop.eup %6794  ;;  %3424 = vmatprep.mubr.bf16.mxu0 %v3317_v39 }
 0x6a5   : > { %v6797_v17 = vpop.eup %6796  ;;  %3425 = vmatmul.mubr.bf16.gmra.mxu0 %v3316_v61  ;;  %v3169_v61 = vsub.f32 %v9068_v45, %v3130_v59  ;;  %v3172_v45 = vsub.f32 %v9075_v31, %v3136_v24  ;;  %v3226_v59 = vmul.f32 1.442695, %v3173_v14 }
 0x6a6   : > { %v9312_v62 = vadd.f32 %v6797_v17, %v6795_v16  ;;  %v3139_v41 = vpop.xlane.xlu1 %3138 }
 0x6a7   : > { %v3175_v39 = vsub.f32 %v9092_v21, %v3139_v41  ;;  %v3174_v2 = vsub.f32 %v9087_v35, %v3139_v41 }
 0x6a8   : > { %v9314_v42 = vpop.eup %6798 }
 0x6a9   : > { %v9319_v28 = vpop.eup %6800  ;;  %v3318_v33 = vpack.c.bf16 %v9314_v42, %v6795_v16  ;;  %v3216_v16 = vmul.f32 1.442695, %v3168_v55 }
 0x6aa   : > { %v3319_v26 = vpack.c.bf16 %v9319_v28, %v6797_v17  ;;  %v3218_v17 = vmul.f32 1.442695, %v3169_v61  ;;  %v3224_v61 = vmul.f32 1.442695, %v3172_v45 }
 0x6ab   : > { %6802 = vpow2.f32 %v3216_v16 }
 0x6ac   : > { %3432 = vmatprep.mubr.bf16.mxu0 %v3319_v26  ;;  %6804 = vpow2.f32 %v3218_v17 }
 0x6ad   : > { %3433 = vmatmul.mubr.bf16.gmra.mxu0 %v3318_v33 }
 0x6ae   : > { %v3145_v20 = vpop.xlane.xlu1 %3144 }
 0x6af   : > { %v3178_v55 = vsub.f32 %v9101_v3, %v3145_v20 }
 0x6b1   : > { %v3236_v35 = vmul.f32 1.442695, %v3178_v55 }
 0x6b2   : > { %v9326_v11 = vpop.xlane.xlu1 %3147  ;;  %4141 = vrot.lane.b32.xlu1 %v8844_v32, %s7181_s15  ;;  %v3230_v32 = vmul.f32 1.442695, %v3175_v39 }
 0x6b3   : > { %4157 = vrot.lane.b32.xlu0 %v8892_v10, %s7181_s15  ;;  %v3181_v14 = vsub.f32 %v9118_v19, %v9326_v11 }
 0x6b4   : > { %6806 = vpow2.f32 %v3230_v32 }
 0x6b6   : > { %v3151_v22 = vpop.xlane.xlu1 %3150 }
 0x6b7   : > { %v3182_v31 = vsub.f32 %v9125_v37, %v3151_v22  ;;  %v3183_v41 = vsub.f32 %v9130_v38, %v3151_v22 }
 0x6b8   : > { %v6803_v16 = vpop.eup %6802 }
 0x6b9   : > { %v3246_v37 = vmul.f32 1.442695, %v3183_v41  ;;  %v6805_v17 = vpop.eup %6804 }
 0x6ba   : > { %v3663_v12 = vpop.permute.xlu1 %3662 }
 0x6bb   : > { %6158 = vmatprep.mubr.msk.bf16.mxu1 %vm1248_vm0, %v3663_v12 }
 0x6bc   : > { %6159 = vmatmul.mubr.msk.bf16.gmra.mxu1 %vm1248_vm0, %v3663_v12 }
 0x6c1   : > { %v6807_v32 = vpop.eup %6806 }
 0x6c7   : > { %v3133_v33 = vpop.xlane.xlu0 %3132 }
 0x6c8   : > { %v3170_v10 = vsub.f32 %v9142_v57, %v3133_v33  ;;  %v3171_v26 = vsub.f32 %v9137_v0, %v3133_v33  ;;  %v3228_v57 = vmul.f32 1.442695, %v3174_v2  ;;  %v3179_v0 = vsub.f32 %v9106_v30, %v3145_v20 }
 0x6c9   : > { %v3244_v20 = vmul.f32 1.442695, %v3182_v31 }
 0x6ca   : > { %v3220_v12 = vmul.f32 1.442695, %v3170_v10  ;;  %v3222_v6 = vmul.f32 1.442695, %v3171_v26  ;;  %v3238_v3 = vmul.f32 1.442695, %v3179_v0 }
 0x6cb   : > { %v3142_v21 = vpop.xlane.xlu0 %3141  ;;  %v3242_v10 = vmul.f32 1.442695, %v3181_v14 }
 0x6cc   : > { %6808 = vpow2.f32 %v3220_v12  ;;  %v3177_v29 = vsub.f32 %v9149_v25, %v3142_v21  ;;  %v3176_v30 = vsub.f32 %v9156_v50, %v3142_v21 }
 0x6cd   : > { %6810 = vpow2.f32 %v3222_v6 }
 0x6ce   : > { %6812 = vpow2.f32 %v3226_v59  ;;  %v3234_v24 = vmul.f32 1.442695, %v3177_v29  ;;  %v3232_v33 = vmul.f32 1.442695, %v3176_v30  ;;  %v7105_v30 = vld [vmem:[%s7630_s16] sm:$0xff]  }
 0x6cf   : > { %v3665_v39 = vpop.permute.xlu0 %3664  ;;  %6814 = vpow2.f32 %v3228_v57  ;;  %v3272_v57 = vadd.f32 %v6805_v17, %v6803_v16 }
 0x6d0   : > { %6160 = vmatprep.mubr.msk.bf16.mxu1 %vm1248_vm0, %v3665_v39  ;;  %6816 = vpow2.f32 %v3224_v61 }
 0x6d1   : > { %6161 = vmatmul.mubr.msk.bf16.gmra.mxu1 %vm1248_vm0, %v3665_v39  ;;  %6818 = vpow2.f32 %v3236_v35 }
 0x6d2   : > { %3249 = vadd.xlane.f32.xlu0 %v9237_v43  ;;  %6820 = vpow2.f32 %v3234_v24  ;;  %v3269_v43 = vadd.f32 %v9319_v28, %v9314_v42  ;;  %v9363_v24 = vpop.permute.xlu1 %4153 }
 0x6d3   : > { %v4170_v25 = vpop.permute.xlu0 %4169  ;;  %6822 = vpow2.f32 %v3238_v3 }
 0x6d4   : > { %6162 = vmatprep.subr.bf16.mxu0 %v4170_v25  ;;  %6824 = vpow2.f32 %v3244_v20 }
 0x6d5   : > { %6826 = vpow2.f32 %v3246_v37 }
 0x6d6   : > { %3252 = vadd.xlane.f32.xlu1 %v9253_v63  ;;  %3255 = vadd.xlane.f32.xlu0 %v9269_v7  ;;  %6828 = vpow2.f32 %v3232_v33  ;;  %v3180_v63 = vsub.f32 %v9113_v60, %v9326_v11  ;;  %v9365_v25 = vpop.permute.xlu1 %4167  ;;  %v3844_v33 = vpop.f32.mrf.mxu1 }
 0x6d7   : > { %6830 = vpow2.f32 %v3242_v10 }
 0x6d8   : > { %v3240_v45 = vmul.f32 1.442695, %v3180_v63 }
 0x6d9   : > { %v6809_v38 = vpop.eup %6808 }
 0x6da   : > { %v6811_v50 = vpop.eup %6810  ;;  %v3320_v22 = vpack.c.bf16 %v6809_v38, %v6803_v16  ;;  %3270 = vadd.xlane.f32.xlu1 %v3269_v43  ;;  %3258 = vadd.xlane.f32.xlu0 %v9287_v1  ;;  %6832 = vpow2.f32 %v3240_v45  ;;  %v9369_v20 = vpop.permute.xlu1 %4151 }
 0x6db   : > { %v3321_v26 = vpack.c.bf16 %v6811_v50, %v6805_v17  ;;  %v6813_v2 = vpop.eup %6812  ;;  %v3275_v7 = vadd.f32 %v6811_v50, %v6809_v38  ;;  %v9371_v16 = vpop.permute.xlu0 %4165  ;;  %v7106_v38 = vld [vmem:[%s7630_s16 + $0x40] sm:$0xff]  }
 0x6dc   : > { %v3323_v19 = vpack.c.bf16 %v6807_v32, %v6813_v2  ;;  %v6815_v12 = vpop.eup %6814  ;;  %v3846_v50 = vpop.f32.mrf.mxu1 }
 0x6dd   : > { %3440 = vmatprep.mubr.bf16.mxu0 %v3321_v26  ;;  %v6817_v6 = vpop.eup %6816  ;;  %v3281_v59 = vadd.f32 %v6815_v12, %v6807_v32 }
 0x6de   : > { %3441 = vmatmul.mubr.bf16.gmra.mxu0 %v3320_v22  ;;  %3261 = vadd.xlane.f32.xlu0 %v9301_v48  ;;  %v6819_v42 = vpop.eup %6818  ;;  %v3322_v1 = vpack.c.bf16 %v6815_v12, %v6817_v6  ;;  %v3278_v35 = vadd.f32 %v6817_v6, %v6813_v2  ;;  %v9373_v37 = vpop.permute.xlu1 %4149 }
 0x6df   : > { %3448 = vmatprep.mubr.bf16.mxu0 %v3323_v19  ;;  %3276 = vadd.xlane.f32.xlu1 %v3275_v7  ;;  %v6821_v28 = vpop.eup %6820  ;;  %v9375_v17 = vpop.permute.xlu0 %4163 }
 0x6e0   : > { %v6823_v21 = vpop.eup %6822  ;;  %v3848_v10 = vpop.f32.mrf.mxu1 }
 0x6e1   : > { %v3325_v55 = vpack.c.bf16 %v6823_v21, %v6821_v28  ;;  %v6825_v60 = vpop.eup %6824  ;;  %v3287_v11 = vadd.f32 %v6823_v21, %v6819_v42  ;;  %v9394_v63 = vsel %vm10578_vm3, %v3848_v10, -1e+30 }
 0x6e2   : > { %3264 = vadd.xlane.f32.xlu0 %v9310_v34  ;;  %v6827_v29 = vpop.eup %6826  ;;  %v9377_v14 = vpop.permute.xlu1 %4147  ;;  %10579 = vst [vmem:[#allocation60_spill] sm:$0xff] %v9394_v63 }
 0x6e3   : > { %3282 = vadd.xlane.f32.xlu1 %v3281_v59  ;;  %v6829_v48 = vpop.eup %6828  ;;  %v3293_v0 = vadd.f32 %v6827_v29, %v6825_v60  ;;  %v9379_v32 = vpop.permute.xlu0 %4161 }
 0x6e4   : > { %v6831_v61 = vpop.eup %6830  ;;  %v3324_v34 = vpack.c.bf16 %v6819_v42, %v6829_v48  ;;  %v3284_v31 = vadd.f32 %v6829_v48, %v6821_v28  ;;  %v3850_v19 = vpop.f32.mrf.mxu1  ;;  %v9426_v48 = vsel %vm10585_vm5, %v3844_v33, -1e+30 }
 0x6e5   : > { %v3327_v39 = vpack.c.bf16 %v6827_v29, %v6831_v61  ;;  %v9399_v7 = vsel %vm10580_vm4, %v3850_v19, -1e+30  ;;  %v9405_v42 = vpop.f32.mrf.mxu0  ;;  %10586 = vst [vmem:[#allocation42_spill] sm:$0xff] %v9426_v48  ;;  %v10606_v19 = vld [vmem:[#allocation20_spill] sm:$0xff] }
 0x6e6   : > { %3449 = vmatmul.mubr.bf16.gmra.mxu0 %v3322_v1  ;;  %3267 = vadd.xlane.f32.xlu0 %v9312_v62  ;;  %v9383_v43 = vpop.permute.xlu1 %4145  ;;  %10581 = vst [vmem:[#allocation61_spill] sm:$0xff] %v9399_v7  ;;  %10582 = vst [vmem:[#allocation39_spill] sm:$0xff] %v9405_v42  ;;  %v3942_v28 = vmax.f32 %v9394_v63, %v9399_v7  ;;  %vm10607_vm7 = vcmp.le.s32.totalorder %v10528_v56, %v10606_v19 }
 0x6e7   : > { %3456 = vmatprep.mubr.bf16.mxu0 %v3325_v55  ;;  %3288 = vadd.xlane.f32.xlu1 %v3287_v11  ;;  %v6833_v3 = vpop.eup %6832  ;;  %v9385_v22 = vpop.permute.xlu0 %4159  ;;  %vm10609_vm8 = vcmp.le.s32.totalorder %v10530_v18, %v10606_v19 }
 0x6e8   : > { %v3326_v62 = vpack.c.bf16 %v6825_v60, %v6833_v3  ;;  %v3290_v41 = vadd.f32 %v6833_v3, %v6831_v61  ;;  %v9413_v21 = vpop.f32.mrf.mxu0 }
 0x6e9   : > { %10583 = vst [vmem:[#allocation40_spill] sm:$0xff] %v9413_v21 }
 0x6ea   : > { %3273 = vadd.xlane.f32.xlu0 %v3272_v57  ;;  %v9387_v26 = vpop.permute.xlu1 %4143  ;;  %v9419_v60 = vpop.f32.mrf.mxu0  ;;  %v9431_v57 = vsel %vm10587_vm9, %v3846_v50, -1e+30 }
 0x6eb   : > { %3294 = vadd.xlane.f32.xlu1 %v3293_v0  ;;  %10584 = vst [vmem:[#allocation38_spill] sm:$0xff] %v9419_v60  ;;  %10588 = vst [vmem:[#allocation43_spill] sm:$0xff] %v9431_v57 }
 0x6ec   : > { %v9435_v0 = vpop.f32.mrf.mxu0 }
 0x6ed   : > { %10589 = vst [vmem:[#allocation41_spill] sm:$0xff] %v9435_v0 }
 0x6ee   : > { %3457 = vmatmul.mubr.bf16.gmra.mxu0 %v3324_v34  ;;  %3279 = vadd.xlane.f32.xlu0 %v3278_v35  ;;  %v9439_v61 = vpop.f32.mrf.mxu0  ;;  %v3939_v34 = vmax.f32 %v9426_v48, %v9431_v57 }
 0x6ef   : > { %3464 = vmatprep.mubr.bf16.mxu0 %v3327_v39  ;;  %10590 = vst [vmem:[#allocation45_spill] sm:$0xff] %v9439_v61 }
 0x6f2   : > { %3285 = vadd.xlane.f32.xlu0 %v3284_v31  ;;  %v9447_v31 = vpop.f32.mrf.mxu0 }
 0x6f3   : > { %10591 = vst [vmem:[#allocation46_spill] sm:$0xff] %v9447_v31 }
 0x6f6   : > { %3465 = vmatmul.mubr.bf16.gmra.mxu0 %v3326_v62  ;;  %3291 = vadd.xlane.f32.xlu0 %v3290_v41  ;;  %v9449_v62 = vpop.f32.mrf.mxu0 }
 0x6f7   : > { %10592 = vst [vmem:[#allocation44_spill] sm:$0xff] %v9449_v62  ;;  %v10612_v62 = vld [vmem:[#allocation21_spill] sm:$0xff] }
 0x6f8   : > { %vm10613_vm6 = vcmp.le.s32.totalorder %v10528_v56, %v10612_v62  ;;  %vm10615_vm1 = vcmp.le.s32.totalorder %v10530_v18, %v10612_v62 }
 0x6fc   : > { %4139 = vrot.lane.b32.xlu1 %v7105_v30, %s7181_s15  ;;  %v9455_v30 = vpop.f32.mrf.mxu0 }
 0x6fd   : > { %10595 = vst [vmem:[#allocation47_spill] sm:$0xff] %v9455_v30 }
 0x70c   : > { %4155 = vrot.lane.b32.xlu0 %v7106_v38, %s7181_s15  ;;  %v9459_v38 = vpop.f32.mrf.mxu0  ;;  %s5655_s15 = sshll.u32 %s7161_s25, 4 }
 0x70d   : > { %10596 = vst [vmem:[#allocation51_spill] sm:$0xff] %v9459_v38  ;;  %p943_p0 = scmp.lt.s32.totalorder %s5655_s15, 31 }
 0x70e   : > { %v9463_v50 = vpop.f32.mrf.mxu0 }
 0x70f   : > { %10598 = vst [vmem:[#allocation50_spill] sm:$0xff] %v9463_v50  ;;  %s10693_s15 = smov (!%p943_p0, %s5655_s15), 31 }
 0x710   : > { %s9773_s20 = sadd.s32 %s5656_s18, %s10693_s15 }
 0x711   : > { %s5657_s21 = sshll.u32 %s9773_s20, 3 }
 0x712   : > { %v9401_v12 = vpop.xlane.xlu1 %3919  ;;  %s9781_s30 = scalar_lea.vmem %s10252_s0, %s5657_s21  ;;  %s10176_s14 = scalar_lea.vmem %s10673_s17, %s5657_s21 }
 0x714   : > { %v9389_v2 = vpop.xlane.xlu0 %3916 }
 0x718   : > { %v9403_v6 = vpop.xlane.xlu0 %3922 }
 0x71a   : > { %v9409_v45 = vpop.xlane.xlu1 %3925 }
 0x71e   : > { %v9411_v59 = vpop.xlane.xlu0 %3928 }
 0x71f   : > { %v3971_v8 = vsub.f32 %v9251_v44, %v9411_v59 }
 0x720   : > { %3943 = vmax.xlane.f32.xlu1 %v3942_v28  ;;  %v9469_v28 = vpop.f32.mrf.mxu0 }
 0x721   : > { %v4011_v1 = vmul.f32 1.442695, %v3971_v8  ;;  %10600 = vst [vmem:[#allocation55_spill] sm:$0xff] %v9469_v28 }
 0x722   : > { %v9417_v55 = vpop.xlane.xlu1 %3931  ;;  %v9471_v8 = vpop.f32.mrf.mxu0 }
 0x723   : > { %v3973_v11 = vsub.f32 %v9267_v54, %v9417_v55  ;;  %6834 = vpow2.f32 %v4011_v1  ;;  %10601 = vst [vmem:[#allocation53_spill] sm:$0xff] %v9471_v8 }
 0x724   : > { %v9473_v1 = vpop.f32.mrf.mxu0 }
 0x725   : > { %v4015_v29 = vmul.f32 1.442695, %v3973_v11  ;;  %10602 = vst [vmem:[#allocation8_spill] sm:$0xff] %v9473_v1 }
 0x726   : > { %v9433_v44 = vpop.xlane.xlu0 %3934  ;;  %v9475_v11 = vpop.f32.mrf.mxu0 }
 0x727   : > { %6836 = vpow2.f32 %v4015_v29  ;;  %v3975_v54 = vsub.f32 %v9285_v27, %v9433_v44  ;;  %10603 = vst [vmem:[#allocation9_spill] sm:$0xff] %v9475_v11 }
 0x728   : > { %v9477_v29 = vpop.f32.mrf.mxu0 }
 0x729   : > { %v4019_v39 = vmul.f32 1.442695, %v3975_v54  ;;  %10604 = vst [vmem:[#allocation10_spill] sm:$0xff] %v9477_v29 }
 0x72a   : > { %v9443_v35 = vpop.xlane.xlu1 %3937  ;;  %v9479_v54 = vpop.f32.mrf.mxu0 }
 0x72b   : > { %v3977_v13 = vsub.f32 %v9299_v53, %v9443_v35  ;;  %3940 = vmax.xlane.f32.xlu0 %v3939_v34  ;;  %6838 = vpow2.f32 %v4019_v39  ;;  %10605 = vst [vmem:[#allocation11_spill] sm:$0xff] %v9479_v54 }
 0x72d   : > { %v4023_v3 = vmul.f32 1.442695, %v3977_v13  ;;  %v9481_v13 = vpop.permute.xlu0 %4157 }
 0x72e   : > { %v9493_v29 = vpop.permute.xlu1 %4141 }
 0x72f   : > { %6840 = vpow2.f32 %v4023_v3  ;;  %10611 = vst [vmem:[#allocation14_spill] sm:$0xff] %v9493_v29 }
 0x730   : > { %v9451_v27 = vpop.eup %6834 }
 0x731   : > { %10593 = vst [vmem:[#allocation48_spill] sm:$0xff] %v9451_v27 }
 0x734   : > { %v9453_v41 = vpop.eup %6836 }
 0x735   : > { %10594 = vst [vmem:[#allocation49_spill] sm:$0xff] %v9453_v41 }
 0x738   : > { %v9461_v53 = vpop.eup %6838 }
 0x739   : > { %10597 = vst [vmem:[#allocation52_spill] sm:$0xff] %v9461_v53 }
 0x73c   : > { %v9465_v10 = vpop.eup %6840 }
 0x73d   : > { %10599 = vst [vmem:[#allocation54_spill] sm:$0xff] %v9465_v10 }
 0x755   : > { %v6072_v34 = vpop.f32.mrf.mxu0 }
 0x757   : > { %v6073_v39 = vpop.f32.mrf.mxu0 }
 0x758   : > { %v3854_v3 = vpop.f32.mrf.mxu1  ;;  %v6074_v48 = vadd.f32 %v6073_v39, %v6072_v34 }
 0x759   : > { %v6075_v33 = vpop.f32.mrf.mxu0  ;;  %v9486_v0 = vsel %vm10607_vm7, %v3854_v3, -1e+30 }
 0x75a   : > { %v3856_v30 = vpop.f32.mrf.mxu1  ;;  %10608 = vst [vmem:[#allocation12_spill] sm:$0xff] %v9486_v0 }
 0x75b   : > { %v6076_v8 = vpop.f32.mrf.mxu0  ;;  %v9491_v11 = vsel %vm10609_vm8, %v3856_v30, -1e+30  ;;  %v3250_v28 = vpop.xlane.xlu0 %3249 }
 0x75c   : > { %10610 = vst [vmem:[#allocation13_spill] sm:$0xff] %v9491_v11  ;;  %v3945_v54 = vmax.f32 %v9486_v0, %v9491_v11  ;;  %v3858_v1 = vpop.f32.mrf.mxu1  ;;  %6842 = vrcp.f32 %v3250_v28  ;;  %v6077_v7 = vadd.f32 %v6076_v8, %v6075_v33 }
 0x75d   : > { %v6078_v50 = vpop.f32.mrf.mxu0  ;;  %v9500_v3 = vsel %vm10613_vm6, %v3858_v1, -1e+30 }
 0x75e   : > { %v3860_v38 = vpop.f32.mrf.mxu1  ;;  %3946 = vmax.xlane.f32.xlu0 %v3945_v54  ;;  %10614 = vst [vmem:[#allocation15_spill] sm:$0xff] %v9500_v3 }
 0x75f   : > { %v6079_v31 = vpop.f32.mrf.mxu0  ;;  %v9505_v30 = vsel %vm10615_vm1, %v3860_v38, -1e+30  ;;  %v3253_v61 = vpop.xlane.xlu1 %3252 }
 0x760   : > { %10616 = vst [vmem:[#allocation16_spill] sm:$0xff] %v9505_v30  ;;  %v3948_v19 = vmax.f32 %v9500_v3, %v9505_v30  ;;  %v3256_v60 = vpop.xlane.xlu0 %3255  ;;  %6844 = vrcp.f32 %v3253_v61  ;;  %v6080_v41 = vadd.f32 %v6079_v31, %v6078_v50 }
 0x761   : > { %v6081_v21 = vpop.f32.mrf.mxu0  ;;  %6846 = vrcp.f32 %v3256_v60 }
 0x762   : > { %3949 = vmax.xlane.f32.xlu0 %v3948_v19 }
 0x763   : > { %v6082_v54 = vpop.f32.mrf.mxu0  ;;  %v3271_v63 = vpop.xlane.xlu1 %3270 }
 0x764   : > { %v3259_v42 = vpop.xlane.xlu0 %3258  ;;  %v6083_v27 = vadd.f32 %v6082_v54, %v6081_v21 }
 0x765   : > { %v6084_v1 = vpop.f32.mrf.mxu0  ;;  %6848 = vrcp.f32 %v3259_v42 }
 0x767   : > { %v6085_v11 = vpop.f32.mrf.mxu0 }
 0x768   : > { %v3262_v0 = vpop.xlane.xlu0 %3261 }
 0x769   : > { %v6087_v57 = vpop.f32.mrf.mxu0  ;;  %v6843_v38 = vpop.eup %6842  ;;  %6850 = vrcp.f32 %v3262_v0 }
 0x76a   : > { %v3473_v61 = vmul.f32 %v6843_v38, %v6074_v48 }
 0x76b   : > { %v6088_v62 = vpop.f32.mrf.mxu0 }
 0x76c   : > { %v3265_v28 = vpop.xlane.xlu0 %3264 }
 0x76d   : > { %v6090_v30 = vpop.f32.mrf.mxu0  ;;  %v6845_v3 = vpop.eup %6844  ;;  %6852 = vrcp.f32 %v3265_v28  ;;  %v3964_v28 = vsub.f32 %v9200_v15, %v9389_v2  ;;  %v3966_v15 = vsub.f32 %v9214_v46, %v9401_v12 }
 0x76e   : > { %v3474_v19 = vmul.f32 %v6845_v3, %v6077_v7  ;;  %v6847_v60 = vpop.eup %6846  ;;  %6854 = vrcp.f32 %v3271_v63  ;;  %v6086_v7 = vadd.f32 %v6085_v11, %v6084_v1  ;;  %v6089_v63 = vadd.f32 %v6088_v62, %v6087_v57  ;;  %v9521_v11 = vpop.xlane.xlu1 %3276 }
 0x76f   : > { %v6091_v53 = vpop.f32.mrf.mxu0  ;;  %v3475_v0 = vmul.f32 %v6847_v60, %v6080_v41  ;;  %v3963_v62 = vsub.f32 %v9195_v40, %v9389_v2 }
 0x770   : > { %v3268_v10 = vpop.xlane.xlu0 %3267  ;;  %v3489_v42 = vpack.c.bf16 %v3474_v19, %v3473_v61  ;;  %v6092_v57 = vadd.f32 %v6091_v53, %v6090_v30  ;;  %v3965_v61 = vsub.f32 %v9205_v58, %v9401_v12  ;;  %v3967_v58 = vsub.f32 %v9221_v23, %v9403_v6 }
 0x771   : > { %6856 = vrcp.f32 %v3268_v10  ;;  %v6093_v33 = vpop.f32.mrf.mxu0  ;;  %v4001_v12 = vmul.f32 1.442695, %v3966_v15  ;;  %v10623_v15 = vld [vmem:[#allocation48_spill] sm:$0xff] }
 0x772   : > { %v6849_v29 = vpop.eup %6848  ;;  %6344 = vmatprep.mubr.msk.bf16.mxu0 %vm1248_vm0, %v3489_v42  ;;  %v3995_v42 = vmul.f32 1.442695, %v3963_v62  ;;  %v9560_v46 = vpop.xlane.xlu1 %3282  ;;  %v4003_v23 = vmul.f32 1.442695, %v3967_v58 }
 0x773   : > { %v3476_v34 = vmul.f32 %v6849_v29, %v6083_v27  ;;  %v6094_v48 = vpop.f32.mrf.mxu0 }
 0x774   : > { %v9513_v21 = vpop.xlane.xlu0 %3273  ;;  %v6095_v10 = vadd.f32 %v6094_v48, %v6093_v33  ;;  %v3969_v33 = vsub.f32 %v9235_v9, %v9409_v45  ;;  %6858 = vpow2.f32 %v3995_v42  ;;  %v3976_v48 = vsub.f32 %v9292_v52, %v9433_v44 }
 0x775   : > { %v3490_v8 = vpack.c.bf16 %v3476_v34, %v3475_v0  ;;  %v3997_v0 = vmul.f32 1.442695, %v3964_v28  ;;  %v3968_v34 = vsub.f32 %v9228_v4, %v9403_v6 }
 0x776   : > { %v6851_v39 = vpop.eup %6850  ;;  %v9574_v9 = vpop.xlane.xlu1 %3288 }
 0x777   : > { %6345 = vmatmul.mubr.msk.bf16.vlgmr.msra.gmra.mxu0 %vm1248_vm0, %v3490_v8  ;;  %v3477_v41 = vmul.f32 %v6851_v39, %v6086_v7  ;;  %v3970_v8 = vsub.f32 %v9244_v49, %v9409_v45  ;;  %6860 = vpow2.f32 %v3997_v0  ;;  %v4005_v6 = vmul.f32 1.442695, %v3968_v34  ;;  %v10618_v7 = vld [vmem:[#allocation14_spill] sm:$0xff] }
 0x778   : > { %6163 = vmatpush3.bf16.msra.mxu0 %v9363_v24  ;;  %v9543_v40 = vpop.xlane.xlu0 %3279  ;;  %v3972_v39 = vsub.f32 %v9260_v51, %v9411_v59  ;;  %v3974_v49 = vsub.f32 %v9277_v36, %v9417_v55  ;;  %v4021_v59 = vmul.f32 1.442695, %v3976_v48 }
 0x779   : > { %6164 = vmatprep.subr.bf16.mxu0 %v9365_v25 }
 0x77a   : > { %v6853_v31 = vpop.eup %6852  ;;  %v4013_v45 = vmul.f32 1.442695, %v3972_v39  ;;  %v9587_v36 = vpop.xlane.xlu1 %3294 }
 0x77b   : > { %v3478_v29 = vmul.f32 %v6853_v31, %v6089_v63  ;;  %v6855_v24 = vpop.eup %6854 }
 0x77c   : > { %v3864_v50 = vpop.f32.mrf.mxu1  ;;  %6165 = vmatpush3.bf16.msra.mxu0 %v9369_v20  ;;  %v3480_v30 = vmul.f32 %v6855_v24, %v6095_v10  ;;  %v9569_v4 = vpop.xlane.xlu0 %3285 }
 0x77d   : > { %v9518_v27 = vsel %vm1120_vm14, %v3864_v50, -1e+30  ;;  %6166 = vmatprep.subr.bf16.mxu0 %v9371_v16  ;;  %v3491_v25 = vpack.c.bf16 %v3478_v29, %v3477_v41 }
 0x77e   : > { %v3866_v3 = vpop.f32.mrf.mxu1  ;;  %v6857_v1 = vpop.eup %6856 }
 0x77f   : > { %v9527_v54 = vsel %vm1121_vm13, %v3866_v3, -1e+30  ;;  %v3479_v53 = vmul.f32 %v6857_v1, %v6092_v57  ;;  %6348 = vmatprep.mubr.msk.bf16.mxu0 %vm1248_vm0, %v3491_v25  ;;  %v4140_v10 = vpop.permute.xlu1 %4139 }
 0x780   : > { %v3951_v20 = vmax.f32 %v9518_v27, %v9527_v54  ;;  %v3868_v38 = vpop.f32.mrf.mxu1  ;;  %6167 = vmatpush3.bf16.msra.mxu0 %v9373_v37  ;;  %v9581_v51 = vpop.xlane.xlu0 %3291 }
 0x781   : > { %v9539_v47 = vsel %vm1122_vm11, %v3868_v38, -1e+30  ;;  %v3492_v2 = vpack.c.bf16 %v3480_v30, %v3479_v53  ;;  %6168 = vmatprep.subr.bf16.mxu0 %v9375_v17  ;;  %v3999_v17 = vmul.f32 1.442695, %v3965_v61 }
 0x782   : > { %v3870_v19 = vpop.f32.mrf.mxu1  ;;  %3952 = vmax.xlane.f32.xlu0 %v3951_v20 }
 0x783   : > { %v9552_v60 = vsel %vm1123_vm10, %v3870_v19, -1e+30  ;;  %6349 = vmatmul.mubr.msk.bf16.gmra.mxu0 %vm1248_vm0, %v3492_v2  ;;  %6862 = vpow2.f32 %v3999_v17 }
 0x784   : > { %v3954_v37 = vmax.f32 %v9539_v47, %v9552_v60  ;;  %6169 = vmatpush3.bf16.msra.mxu0 %v9377_v14  ;;  %6864 = vpow2.f32 %v4001_v12  ;;  %v4007_v14 = vmul.f32 1.442695, %v3969_v33  ;;  %v4156_v52 = vpop.permute.xlu0 %4155  ;;  %v10624_v12 = vld [vmem:[#allocation49_spill] sm:$0xff]  ;;  %v10625_v33 = vld [vmem:[#allocation52_spill] sm:$0xff] }
 0x785   : > { %6170 = vmatprep.subr.bf16.mxu0 %v9379_v32  ;;  %6866 = vpow2.f32 %v4003_v23  ;;  %v4009_v32 = vmul.f32 1.442695, %v3970_v8 }
 0x786   : > { %3955 = vmax.xlane.f32.xlu1 %v3954_v37  ;;  %6868 = vpow2.f32 %v4005_v6 }
 0x787   : > { %6870 = vpow2.f32 %v4007_v14 }
 0x788   : > { %6171 = vmatpush3.bf16.msra.mxu0 %v9383_v43  ;;  %v3978_v43 = vsub.f32 %v9306_v5, %v9443_v35  ;;  %6872 = vpow2.f32 %v4009_v32 }
 0x789   : > { %6172 = vmatprep.subr.bf16.mxu0 %v9385_v22  ;;  %v4017_v22 = vmul.f32 1.442695, %v3974_v49  ;;  %6874 = vpow2.f32 %v4013_v45  ;;  %v10626_v45 = vld [vmem:[#allocation54_spill] sm:$0xff] }
 0x78a   : > { %v4025_v44 = vmul.f32 1.442695, %v3978_v43 }
 0x78b   : > { %6876 = vpow2.f32 %v4017_v22 }
 0x78c   : > { %6173 = vmatpush3.bf16.msra.mxu0 %v9387_v26  ;;  %v10619_v26 = vld [vmem:[#allocation27_spill] sm:$0xff]  ;;  %6878 = vpow2.f32 %v4021_v59 }
 0x78d   : > { %6174 = vmatprep.subr.bf16.mxu0 %v9481_v13  ;;  %vm10620_vm10 = vcmp.le.s32.totalorder %v10528_v56, %v10619_v26  ;;  %vm10621_vm11 = vcmp.le.s32.totalorder %v10530_v18, %v10619_v26  ;;  %v9600_v13 = vpop.eup %6858  ;;  %6880 = vpow2.f32 %v4025_v44 }
 0x78e   : > { %v9604_v41 = vpop.eup %6860  ;;  %6882 = vrcp.f32 %v9521_v11 }
 0x78f   : > { %6884 = vrcp.f32 %v9513_v21  ;;  %v4059_v11 = vadd.f32 %v9604_v41, %v9600_v13 }
 0x790   : > { %6175 = vmatpush3.bf16.msra.mxu0 %v10618_v7  ;;  %v9606_v29 = vpop.eup %6862  ;;  %6886 = vrcp.f32 %v9560_v46 }
 0x791   : > { %v3874_v55 = vpop.f32.mrf.mxu1  ;;  %6176 = vmatprep.subr.bf16.mxu0 %v4156_v52  ;;  %v9608_v24 = vpop.eup %6864  ;;  %6888 = vrcp.f32 %v9543_v40  ;;  %v10628_v52 = vld [vmem:[#allocation61_spill] sm:$0xff] }
 0x792   : > { %v9593_v5 = vsel %vm10620_vm10, %v3874_v55, -1e+30  ;;  %v9621_v62 = vpop.eup %6866  ;;  %v4062_v18 = vadd.f32 %v9608_v24, %v9606_v29  ;;  %6890 = vrcp.f32 %v9574_v9  ;;  %v10627_v55 = vld [vmem:[#allocation60_spill] sm:$0xff] }
 0x793   : > { %v3876_v63 = vpop.f32.mrf.mxu1  ;;  %v9628_v38 = vpop.eup %6868  ;;  %6892 = vrcp.f32 %v9569_v4 }
 0x794   : > { %v9598_v35 = vsel %vm10621_vm11, %v3876_v63, -1e+30  ;;  %6177 = vmatpush3.bf16.msra.mxu0 %v4140_v10  ;;  %v9630_v56 = vpop.eup %6870  ;;  %v4065_v21 = vadd.f32 %v9628_v38, %v9621_v62  ;;  %6894 = vrcp.f32 %v9587_v36 }
 0x795   : > { %v3957_v31 = vmax.f32 %v9593_v5, %v9598_v35  ;;  %v3878_v50 = vpop.f32.mrf.mxu1  ;;  %v9632_v28 = vpop.eup %6872 }
 0x796   : > { %v9614_v25 = vsel %vm1126_vm12, %v3878_v50, -1e+30  ;;  %v9638_v53 = vpop.eup %6874  ;;  %v4068_v19 = vadd.f32 %v9632_v28, %v9630_v56 }
 0x797   : > { %3958 = vmax.xlane.f32.xlu0 %v3957_v31  ;;  %v3880_v3 = vpop.f32.mrf.mxu1  ;;  %v4071_v2 = vadd.f32 %v9638_v53, %v10623_v15 }
 0x798   : > { %v9619_v1 = vsel %vm1127_vm15, %v3880_v3, -1e+30  ;;  %v9641_v61 = vpop.eup %6876 }
 0x799   : > { %v3960_v20 = vmax.f32 %v9614_v25, %v9619_v1  ;;  %v9648_v42 = vpop.eup %6878  ;;  %v4074_v40 = vadd.f32 %v9641_v61, %v10624_v12 }
 0x79a   : > { %v9650_v0 = vpop.eup %6880  ;;  %v4077_v23 = vadd.f32 %v9648_v42, %v10625_v33 }
 0x79b   : > { %3961 = vmax.xlane.f32.xlu1 %v3960_v20  ;;  %4060 = vadd.xlane.f32.xlu0 %v4059_v11  ;;  %v6883_v46 = vpop.eup %6882  ;;  %v4080_v48 = vadd.f32 %v9650_v0, %v10626_v45 }
 0x79c   : > { %v6885_v8 = vpop.eup %6884 }
 0x79d   : > { %v6887_v26 = vpop.eup %6886 }
 0x79e   : > { %v6096_v30 = vpop.f32.mrf.mxu0  ;;  %v6889_v4 = vpop.eup %6888 }
 0x79f   : > { %4063 = vadd.xlane.f32.xlu1 %v4062_v18  ;;  %4066 = vadd.xlane.f32.xlu0 %v4065_v21 }
 0x7a0   : > { %v6097_v16 = vpop.f32.mrf.mxu0 }
 0x7a1   : > { %v6098_v37 = vadd.f32 %v6097_v16, %v6096_v30  ;;  %v6891_v16 = vpop.eup %6890 }
 0x7a2   : > { %v6099_v58 = vpop.f32.mrf.mxu0 }
 0x7a3   : > { %4069 = vadd.xlane.f32.xlu1 %v4068_v19  ;;  %4072 = vadd.xlane.f32.xlu0 %v4071_v2  ;;  %v3481_v39 = vmul.f32 %v6885_v8, %v6098_v37  ;;  %v6893_v2 = vpop.eup %6892 }
 0x7a4   : > { %v6100_v34 = vpop.f32.mrf.mxu0 }
 0x7a5   : > { %v6101_v17 = vadd.f32 %v6100_v34, %v6099_v58 }
 0x7a6   : > { %v6102_v6 = vpop.f32.mrf.mxu0 }
 0x7a7   : > { %v3482_v14 = vmul.f32 %v6883_v46, %v6101_v17  ;;  %4075 = vadd.xlane.f32.xlu1 %v4074_v40  ;;  %4078 = vadd.xlane.f32.xlu0 %v4077_v23  ;;  %v10629_v46 = vld [vmem:[#allocation42_spill] sm:$0xff]  ;;  %v10630_v40 = vld [vmem:[#allocation43_spill] sm:$0xff] }
 0x7a8   : > { %v6103_v32 = vpop.f32.mrf.mxu0 }
 0x7a9   : > { %v3493_v49 = vpack.c.bf16 %v3482_v14, %v3481_v39  ;;  %v3944_v43 = vpop.xlane.xlu1 %3943  ;;  %v6104_v59 = vadd.f32 %v6103_v32, %v6102_v6  ;;  %v6895_v32 = vpop.eup %6894 }
 0x7aa   : > { %v6105_v22 = vpop.f32.mrf.mxu0  ;;  %v3981_v7 = vsub.f32 %v10627_v55, %v3944_v43  ;;  %v3982_v44 = vsub.f32 %v10628_v52, %v3944_v43 }
 0x7ab   : > { %6352 = vmatprep.mubr.msk.bf16.mxu0 %vm1248_vm0, %v3493_v49  ;;  %4081 = vadd.xlane.f32.xlu1 %v4080_v48  ;;  %v3483_v3 = vmul.f32 %v6889_v4, %v6104_v59 }
 0x7ac   : > { %v6106_v63 = vpop.f32.mrf.mxu0  ;;  %v4031_v9 = vmul.f32 1.442695, %v3981_v7  ;;  %v4033_v31 = vmul.f32 1.442695, %v3982_v44 }
 0x7ad   : > { %v6107_v50 = vadd.f32 %v6106_v63, %v6105_v22 }
 0x7ae   : > { %v6108_v10 = vpop.f32.mrf.mxu0  ;;  %6896 = vpow2.f32 %v4031_v9 }
 0x7af   : > { %v3484_v57 = vmul.f32 %v6887_v26, %v6107_v50  ;;  %6898 = vpow2.f32 %v4033_v31  ;;  %v4124_v26 = vpack.c.bf16 %v9608_v24, %v9604_v41  ;;  %v4123_v50 = vpack.c.bf16 %v9606_v29, %v9600_v13 }
 0x7b0   : > { %v6109_v20 = vpop.f32.mrf.mxu0  ;;  %6900 = vrcp.f32 %v9581_v51  ;;  %v4128_v41 = vpack.c.bf16 %v9641_v61, %v9638_v53  ;;  %v4130_v24 = vpack.c.bf16 %v9650_v0, %v9648_v42  ;;  %v10631_v13 = vpack.c.bf16 %v10624_v12, %v10623_v15  ;;  %v10634_v53 = vld [vmem:[#allocation13_spill] sm:$0xff]  ;;  %v10635_v15 = vld [vmem:[#allocation15_spill] sm:$0xff]  ;;  %v10636_v12 = vld [vmem:[#allocation16_spill] sm:$0xff] }
 0x7b1   : > { %v3494_v11 = vpack.c.bf16 %v3484_v57, %v3483_v3  ;;  %v6110_v21 = vadd.f32 %v6109_v20, %v6108_v10  ;;  %v4126_v10 = vpack.c.bf16 %v9632_v28, %v9628_v38  ;;  %v4125_v3 = vpack.c.bf16 %v9630_v56, %v9621_v62  ;;  %v10633_v56 = vld [vmem:[#allocation12_spill] sm:$0xff] }
 0x7b2   : > { %v6111_v18 = vpop.f32.mrf.mxu0  ;;  %v10632_v38 = vpack.c.bf16 %v10626_v45, %v10625_v33 }
 0x7b3   : > { %6353 = vmatmul.mubr.msk.bf16.gmra.mxu0 %vm1248_vm0, %v3494_v11  ;;  %v3485_v36 = vmul.f32 %v6893_v2, %v6110_v21 }
 0x7b4   : > { %v6112_v30 = vpop.f32.mrf.mxu0  ;;  %v3941_v58 = vpop.xlane.xlu0 %3940 }
 0x7b5   : > { %v6113_v19 = vadd.f32 %v6112_v30, %v6111_v18  ;;  %v3979_v17 = vsub.f32 %v10629_v46, %v3941_v58  ;;  %v3980_v23 = vsub.f32 %v10630_v40, %v3941_v58 }
 0x7b6   : > { %v6114_v37 = vpop.f32.mrf.mxu0 }
 0x7b7   : > { %v3486_v34 = vmul.f32 %v6891_v16, %v6113_v19  ;;  %v4027_v51 = vmul.f32 1.442695, %v3979_v17  ;;  %v4029_v39 = vmul.f32 1.442695, %v3980_v23 }
 0x7b8   : > { %v6115_v8 = vpop.f32.mrf.mxu0 }
 0x7b9   : > { %v3495_v6 = vpack.c.bf16 %v3486_v34, %v3485_v36  ;;  %6902 = vpow2.f32 %v4027_v51  ;;  %v6116_v49 = vadd.f32 %v6115_v8, %v6114_v37 }
 0x7ba   : > { %v6117_v14 = vpop.f32.mrf.mxu0  ;;  %6904 = vpow2.f32 %v4029_v39 }
 0x7bb   : > { %6356 = vmatprep.mubr.msk.bf16.mxu0 %vm1248_vm0, %v3495_v6  ;;  %v6897_v48 = vpop.eup %6896 }
 0x7bc   : > { %v6118_v43 = vpop.f32.mrf.mxu0  ;;  %v6899_v22 = vpop.eup %6898 }
 0x7bd   : > { %v6119_v59 = vadd.f32 %v6118_v43, %v6117_v14  ;;  %v6901_v55 = vpop.eup %6900  ;;  %v4086_v7 = vadd.f32 %v6899_v22, %v6897_v48 }
 0x7be   : > { %v3487_v52 = vmul.f32 %v6901_v55, %v6116_v49 }
 0x7bf   : > { %v3488_v44 = vmul.f32 %v6895_v32, %v6119_v59  ;;  %4087 = vadd.xlane.f32.xlu1 %v4086_v7  ;;  %v6536_v32 = vld [vmem:[%s10256_s4 + $0x38] sm:$0xff]  }
 0x7c0   : > { %6360 = vmatprep.subr.bf16.mxu1 %v6536_v32 }
 0x7c1   : > { %v3496_v63 = vpack.c.bf16 %v3488_v44, %v3487_v52  ;;  %6361 = vmatpush3.bf16.msra.mxu1 %v6536_v32  ;;  %v10651_v32 = vld [vmem:[#allocation34_spill] sm:$0xff] }
 0x7c3   : > { %6357 = vmatmul.mubr.msk.bf16.gmra.mxu0 %vm1248_vm0, %v3496_v63 }
 0x7c4   : > { %4219 = vmatprep.mubr.bf16.mxu0 %v4124_v26 }
 0x7c6   : > { %v6903_v9 = vpop.eup %6902 }
 0x7c7   : > { %v6905_v31 = vpop.eup %6904  ;;  %v4131_v57 = vpack.c.bf16 %v6897_v48, %v6903_v9 }
 0x7c8   : > { %v4083_v4 = vadd.f32 %v6905_v31, %v6903_v9  ;;  %v4132_v29 = vpack.c.bf16 %v6899_v22, %v6905_v31 }
 0x7ca   : > { %4084 = vadd.xlane.f32.xlu0 %v4083_v4 }
 0x7cb   : > { %4220 = vmatmul.mubr.bf16.vlgmr.msra.gmra.mxu0 %v4123_v50 }
 0x7cc   : > { %4227 = vmatprep.mubr.bf16.mxu0 %v4126_v10 }
 0x7d3   : > { %4228 = vmatmul.mubr.bf16.gmra.mxu0 %v4125_v3 }
 0x7d4   : > { %4235 = vmatprep.mubr.bf16.mxu0 %v4128_v41 }
 0x7db   : > { %4236 = vmatmul.mubr.bf16.gmra.mxu0 %v10631_v13  ;;  %v10637_v13 = vld [vmem:[#allocation22_spill] sm:$0xff] }
 0x7dc   : > { %4243 = vmatprep.mubr.bf16.mxu0 %v4130_v24 }
 0x7e3   : > { %4244 = vmatmul.mubr.bf16.gmra.mxu0 %v10632_v38 }
 0x7e4   : > { %4251 = vmatprep.mubr.bf16.mxu0 %v4132_v29  ;;  %v10638_v29 = vld [vmem:[#allocation39_spill] sm:$0xff] }
 0x7e7   : > { %v3947_v62 = vpop.xlane.xlu0 %3946 }
 0x7e8   : > { %v3983_v28 = vsub.f32 %v10633_v56, %v3947_v62  ;;  %v3984_v61 = vsub.f32 %v10634_v53, %v3947_v62  ;;  %v10639_v56 = vld [vmem:[#allocation23_spill] sm:$0xff] }
 0x7ea   : > { %v4035_v20 = vmul.f32 1.442695, %v3983_v28  ;;  %v4037_v11 = vmul.f32 1.442695, %v3984_v61  ;;  %v10640_v28 = vld [vmem:[#allocation40_spill] sm:$0xff] }
 0x7eb   : > { %4252 = vmatmul.mubr.bf16.gmra.mxu0 %v4131_v57  ;;  %v3950_v42 = vpop.xlane.xlu0 %3949  ;;  %v2777_v53 = vadd.f32 %v10640_v28, %v10639_v56 }
 0x7ec   : > { %6906 = vpow2.f32 %v4035_v20  ;;  %v3985_v0 = vsub.f32 %v10635_v15, %v3950_v42  ;;  %v3986_v18 = vsub.f32 %v10636_v12, %v3950_v42  ;;  %v10641_v20 = vld [vmem:[#allocation56_spill] sm:$0xff] }
 0x7ed   : > { %6908 = vpow2.f32 %v4037_v11  ;;  %v10642_v11 = vld [vmem:[#allocation38_spill] sm:$0xff] }
 0x7ee   : > { %v4039_v21 = vmul.f32 1.442695, %v3985_v0  ;;  %v4041_v33 = vmul.f32 1.442695, %v3986_v18  ;;  %v2788_v42 = vadd.f32 %v10642_v11, %v10641_v20 }
 0x7f0   : > { %6910 = vpow2.f32 %v4039_v21  ;;  %v10643_v21 = vld [vmem:[#allocation37_spill] sm:$0xff] }
 0x7f1   : > { %6912 = vpow2.f32 %v4041_v33  ;;  %v10644_v33 = vld [vmem:[#allocation45_spill] sm:$0xff] }
 0x7f9   : > { %v6907_v45 = vpop.eup %6906 }
 0x7fa   : > { %v6909_v30 = vpop.eup %6908 }
 0x7fb   : > { %v4089_v16 = vadd.f32 %v6909_v30, %v6907_v45 }
 0x7fd   : > { %v6911_v19 = vpop.eup %6910  ;;  %4090 = vadd.xlane.f32.xlu0 %v4089_v16  ;;  %v10645_v16 = vld [vmem:[#allocation58_spill] sm:$0xff] }
 0x7fe   : > { %v6913_v2 = vpop.eup %6912  ;;  %v4133_v58 = vpack.c.bf16 %v6911_v19, %v6907_v45  ;;  %v2801_v45 = vadd.f32 %v10644_v33, %v10643_v21 }
 0x7ff   : > { %v4134_v37 = vpack.c.bf16 %v6913_v2, %v6909_v30  ;;  %v4092_v36 = vadd.f32 %v6913_v2, %v6911_v19  ;;  %v10646_v19 = vld [vmem:[#allocation46_spill] sm:$0xff] }
 0x800   : > { %v2793_v2 = vadd.f32 %v10646_v19, %v10645_v16 }
 0x801   : > { %4259 = vmatprep.mubr.bf16.mxu0 %v4134_v37  ;;  %4093 = vadd.xlane.f32.xlu1 %v4092_v36  ;;  %v10647_v36 = vld [vmem:[#allocation35_spill] sm:$0xff] }
 0x802   : > { %4260 = vmatmul.mubr.bf16.gmra.mxu0 %v4133_v58 }
 0x80b   : > { %v3953_v34 = vpop.xlane.xlu0 %3952 }
 0x80c   : > { %v3987_v46 = vsub.f32 %v9518_v27, %v3953_v34  ;;  %v3988_v17 = vsub.f32 %v9527_v54, %v3953_v34  ;;  %v6537_v54 = vld [vmem:[%s10256_s4 + $0x30] sm:$0xff]   ;;  %v10648_v34 = vld [vmem:[#allocation44_spill] sm:$0xff] }
 0x80d   : > { %6362 = vmatprep.subr.bf16.mxu1 %v6537_v54 }
 0x80e   : > { %v4043_v40 = vmul.f32 1.442695, %v3987_v46  ;;  %v4045_v23 = vmul.f32 1.442695, %v3988_v17  ;;  %6363 = vmatpush3.bf16.msra.mxu1 %v6537_v54  ;;  %v2804_v46 = vadd.f32 %v10648_v34, %v10647_v36 }
 0x80f   : > { %v3956_v8 = vpop.xlane.xlu1 %3955 }
 0x810   : > { %6914 = vpow2.f32 %v4043_v40  ;;  %v3989_v6 = vsub.f32 %v9539_v47, %v3956_v8  ;;  %v3990_v51 = vsub.f32 %v9552_v60, %v3956_v8 }
 0x811   : > { %6916 = vpow2.f32 %v4045_v23 }
 0x812   : > { %v4047_v39 = vmul.f32 1.442695, %v3989_v6  ;;  %v4049_v14 = vmul.f32 1.442695, %v3990_v51  ;;  %v10649_v6 = vld [vmem:[#allocation33_spill] sm:$0xff]  ;;  %v10650_v51 = vld [vmem:[#allocation51_spill] sm:$0xff] }
 0x814   : > { %6918 = vpow2.f32 %v4047_v39  ;;  %v2817_v39 = vadd.f32 %v10650_v51, %v10649_v6 }
 0x815   : > { %6920 = vpow2.f32 %v4049_v14 }
 0x81d   : > { %v6915_v27 = vpop.eup %6914 }
 0x81e   : > { %v6917_v49 = vpop.eup %6916 }
 0x81f   : > { %v4095_v47 = vadd.f32 %v6917_v49, %v6915_v27 }
 0x820   : > { %v3959_v60 = vpop.xlane.xlu0 %3958 }
 0x821   : > { %v6919_v48 = vpop.eup %6918  ;;  %4096 = vadd.xlane.f32.xlu0 %v4095_v47  ;;  %v3991_v43 = vsub.f32 %v9593_v5, %v3959_v60  ;;  %v3992_v22 = vsub.f32 %v9598_v35, %v3959_v60  ;;  %v10653_v60 = vld [vmem:[#allocation30_spill] sm:$0xff] }
 0x822   : > { %v6921_v59 = vpop.eup %6920  ;;  %v4135_v55 = vpack.c.bf16 %v6919_v48, %v6915_v27  ;;  %v10652_v27 = vld [vmem:[#allocation50_spill] sm:$0xff] }
 0x823   : > { %v4051_v7 = vmul.f32 1.442695, %v3991_v43  ;;  %v4053_v52 = vmul.f32 1.442695, %v3992_v22  ;;  %v4098_v44 = vadd.f32 %v6921_v59, %v6919_v48  ;;  %v4136_v63 = vpack.c.bf16 %v6921_v59, %v6917_v49  ;;  %v10654_v48 = vld [vmem:[#allocation55_spill] sm:$0xff] }
 0x824   : > { %v3962_v26 = vpop.xlane.xlu1 %3961  ;;  %v2809_v54 = vadd.f32 %v10652_v27, %v10651_v32  ;;  %v2820_v43 = vadd.f32 %v10654_v48, %v10653_v60 }
 0x825   : > { %6922 = vpow2.f32 %v4051_v7  ;;  %v3993_v9 = vsub.f32 %v9614_v25, %v3962_v26  ;;  %v3994_v31 = vsub.f32 %v9619_v1, %v3962_v26  ;;  %4099 = vadd.xlane.f32.xlu1 %v4098_v44  ;;  %4267 = vmatprep.mubr.bf16.mxu0 %v4136_v63  ;;  %v2785_v25 = vadd.f32 %v10638_v29, %v10637_v13  ;;  %v10656_v44 = vld [vmem:[#allocation8_spill] sm:$0xff]  ;;  %v4061_v26 = vpop.xlane.xlu0 %4060 }
 0x826   : > { %6924 = vpow2.f32 %v4053_v52  ;;  %4268 = vmatmul.mubr.bf16.gmra.mxu0 %v4135_v55  ;;  %v10655_v52 = vld [vmem:[#allocation24_spill] sm:$0xff] }
 0x827   : > { %v4055_v50 = vmul.f32 1.442695, %v3993_v9  ;;  %v4057_v5 = vmul.f32 1.442695, %v3994_v31  ;;  %v2833_v63 = vadd.f32 %v10656_v44, %v10655_v52 }
 0x828   : > { %v4064_v9 = vpop.xlane.xlu1 %4063 }
 0x829   : > { %6926 = vpow2.f32 %v4055_v50  ;;  %v10657_v50 = vld [vmem:[#allocation31_spill] sm:$0xff] }
 0x82a   : > { %6928 = vpow2.f32 %v4057_v5  ;;  %v10658_v5 = vld [vmem:[#allocation9_spill] sm:$0xff] }
 0x82b   : > { %6930 = vrcp.f32 %v4061_v26 }
 0x82c   : > { %6932 = vrcp.f32 %v4064_v9 }
 0x832   : > { %v6923_v35 = vpop.eup %6922 }
 0x833   : > { %v6925_v4 = vpop.eup %6924 }
 0x834   : > { %v4101_v10 = vadd.f32 %v6925_v4, %v6923_v35 }
 0x836   : > { %v6927_v3 = vpop.eup %6926  ;;  %4102 = vadd.xlane.f32.xlu0 %v4101_v10 }
 0x837   : > { %v6929_v41 = vpop.eup %6928  ;;  %v4137_v24 = vpack.c.bf16 %v6927_v3, %v6923_v35  ;;  %v6346_v62 = vpop.f32.mrf.mxu0  ;;  %v2825_v35 = vadd.f32 %v10658_v5, %v10657_v50 }
 0x838   : > { %v4104_v38 = vadd.f32 %v6929_v41, %v6927_v3  ;;  %v4138_v1 = vpack.c.bf16 %v6929_v41, %v6925_v4  ;;  %v9710_v61 = vadd.f32 %v6346_v62, %v2785_v25  ;;  %v10659_v3 = vld [vmem:[#allocation59_spill] sm:$0xff]  ;;  %v10660_v41 = vld [vmem:[#allocation10_spill] sm:$0xff]  ;;  %v4070_v62 = vpop.xlane.xlu1 %4069  ;;  %v6931_v11 = vpop.eup %6930 }
 0x839   : > { %v3571_v57 = vpop.f32.mrf.mxu0  ;;  %v6933_v21 = vpop.eup %6932 }
 0x83a   : > { %4105 = vadd.xlane.f32.xlu1 %v4104_v38  ;;  %4275 = vmatprep.mubr.bf16.mxu0 %v4138_v1  ;;  %v9714_v15 = vadd.f32 %v3571_v57, %v2777_v53  ;;  %v4067_v1 = vpop.xlane.xlu0 %4066 }
 0x83b   : > { %4276 = vmatmul.mubr.bf16.gmra.mxu0 %v4137_v24  ;;  %v6347_v0 = vpop.f32.mrf.mxu0  ;;  %v2836_v24 = vadd.f32 %v10660_v41, %v10659_v3  ;;  %6934 = vrcp.f32 %v4067_v1 }
 0x83c   : > { %v9716_v12 = vadd.f32 %v6347_v0, %v2788_v42  ;;  %6936 = vrcp.f32 %v4070_v62  ;;  %v4076_v33 = vpop.xlane.xlu1 %4075 }
 0x83d   : > { %v9718_v18 = vpop.f32.mrf.mxu0 }
 0x83e   : > { %v4073_v42 = vpop.xlane.xlu0 %4072 }
 0x83f   : > { %6938 = vrcp.f32 %v4073_v42 }
 0x840   : > { %6940 = vrcp.f32 %v4076_v33 }
 0x843   : > { %v6350_v30 = vpop.f32.mrf.mxu0 }
 0x844   : > { %v9724_v58 = vadd.f32 %v6350_v30, %v2801_v45 }
 0x845   : > { %v3587_v37 = vpop.f32.mrf.mxu0 }
 0x846   : > { %v9728_v17 = vadd.f32 %v3587_v37, %v2793_v2 }
 0x847   : > { %v6351_v40 = vpop.f32.mrf.mxu0 }
 0x848   : > { %v9730_v23 = vadd.f32 %v6351_v40, %v2804_v46  ;;  %v6935_v46 = vpop.eup %6934  ;;  %v4079_v40 = vpop.xlane.xlu0 %4078 }
 0x849   : > { %v9732_v8 = vpop.f32.mrf.mxu0  ;;  %v6937_v51 = vpop.eup %6936  ;;  %6942 = vrcp.f32 %v4079_v40 }
 0x853   : > { %v4085_v26 = vpop.xlane.xlu0 %4084 }
 0x873   : > { %v6354_v14 = vpop.f32.mrf.mxu0 }
 0x874   : > { %v9738_v49 = vadd.f32 %v6354_v14, %v2817_v39  ;;  %v4082_v39 = vpop.xlane.xlu1 %4081 }
 0x875   : > { %v3603_v47 = vpop.f32.mrf.mxu0  ;;  %6944 = vrcp.f32 %v4082_v39 }
 0x876   : > { %v9742_v22 = vadd.f32 %v3603_v47, %v2809_v54 }
 0x877   : > { %v6355_v59 = vpop.f32.mrf.mxu0 }
 0x878   : > { %v9744_v55 = vadd.f32 %v6355_v59, %v2820_v43  ;;  %v6939_v59 = vpop.eup %6938  ;;  %v4088_v52 = vpop.xlane.xlu1 %4087 }
 0x879   : > { %v9746_v7 = vpop.f32.mrf.mxu0  ;;  %6946 = vrcp.f32 %v4088_v52 }
 0x87a   : > { %6948 = vrcp.f32 %v4085_v26 }
 0x883   : > { %v6358_v31 = vpop.f32.mrf.mxu0 }
 0x884   : > { %v9752_v4 = vadd.f32 %v6358_v31, %v2833_v63  ;;  %v6941_v63 = vpop.eup %6940 }
 0x885   : > { %v3619_v10 = vpop.f32.mrf.mxu0 }
 0x886   : > { %v9756_v13 = vadd.f32 %v3619_v10, %v2825_v35 }
 0x887   : > { %v6359_v29 = vpop.f32.mrf.mxu0 }
 0x888   : > { %v9758_v25 = vadd.f32 %v6359_v29, %v2836_v24  ;;  %v6943_v24 = vpop.eup %6942 }
 0x889   : > { %v9760_v38 = vpop.f32.mrf.mxu0  ;;  %v6945_v1 = vpop.eup %6944 }
 0x88b   : > { %v6178_v56 = vpop.f32.mrf.mxu0 }
 0x88d   : > { %v6179_v28 = vpop.f32.mrf.mxu0 }
 0x88e   : > { %v6180_v57 = vadd.f32 %v6179_v28, %v6178_v56 }
 0x88f   : > { %v6181_v53 = vpop.f32.mrf.mxu0 }
 0x890   : > { %v4284_v30 = vmul.f32 %v6931_v11, %v6180_v57 }
 0x891   : > { %v6182_v20 = vpop.f32.mrf.mxu0 }
 0x892   : > { %v6183_v0 = vadd.f32 %v6182_v20, %v6181_v53 }
 0x893   : > { %v6184_v45 = vpop.f32.mrf.mxu0 }
 0x894   : > { %v4285_v16 = vmul.f32 %v6933_v21, %v6183_v0  ;;  %v6947_v0 = vpop.eup %6946 }
 0x895   : > { %v6185_v19 = vpop.f32.mrf.mxu0  ;;  %v6949_v33 = vpop.eup %6948 }
 0x896   : > { %v4300_v2 = vpack.c.bf16 %v4285_v16, %v4284_v30  ;;  %v6186_v36 = vadd.f32 %v6185_v19, %v6184_v45  ;;  %v4091_v19 = vpop.xlane.xlu0 %4090 }
 0x897   : > { %v6187_v37 = vpop.f32.mrf.mxu0  ;;  %6950 = vrcp.f32 %v4091_v19 }
 0x898   : > { %6364 = vmatprep.mubr.msk.bf16.mxu1 %vm1248_vm0, %v4300_v2  ;;  %v4286_v32 = vmul.f32 %v6935_v46, %v6186_v36  ;;  %v4094_v2 = vpop.xlane.xlu1 %4093 }
 0x899   : > { %v6188_v34 = vpop.f32.mrf.mxu0  ;;  %6952 = vrcp.f32 %v4094_v2  ;;  %v9791_v2 = vld [vmem:[%s10257_s5] ss:$0 sm:$0xff] }
 0x89a   : > { %v6189_v6 = vadd.f32 %v6188_v34, %v6187_v37 }
 0x89b   : > { %v6190_v14 = vpop.f32.mrf.mxu0 }
 0x89c   : > { %v4287_v27 = vmul.f32 %v6937_v51, %v6189_v6 }
 0x89d   : > { %v6191_v54 = vpop.f32.mrf.mxu0 }
 0x89e   : > { %v4301_v47 = vpack.c.bf16 %v4287_v27, %v4286_v32  ;;  %v6192_v48 = vadd.f32 %v6191_v54, %v6190_v14 }
 0x89f   : > { %v6193_v60 = vpop.f32.mrf.mxu0 }
 0x8a0   : > { %6365 = vmatmul.mubr.msk.bf16.vlgmr.msra.gmra.mxu1 %vm1248_vm0, %v4301_v47  ;;  %v4288_v31 = vmul.f32 %v6939_v59, %v6192_v48 }
 0x8a1   : > { %v6194_v43 = vpop.f32.mrf.mxu0 }
 0x8a2   : > { %v6195_v44 = vadd.f32 %v6194_v43, %v6193_v60 }
 0x8a3   : > { %v6196_v9 = vpop.f32.mrf.mxu0 }
 0x8a4   : > { %v4289_v50 = vmul.f32 %v6941_v63, %v6195_v44  ;;  %v6951_v6 = vpop.eup %6950 }
 0x8a5   : > { %v6197_v5 = vpop.f32.mrf.mxu0 }
 0x8a6   : > { %v4302_v35 = vpack.c.bf16 %v4289_v50, %v4288_v31  ;;  %v6198_v3 = vadd.f32 %v6197_v5, %v6196_v9  ;;  %v6953_v39 = vpop.eup %6952 }
 0x8a7   : > { %v6199_v10 = vpop.f32.mrf.mxu0 }
 0x8a8   : > { %6368 = vmatprep.mubr.msk.bf16.mxu1 %vm1248_vm0, %v4302_v35  ;;  %v4290_v56 = vmul.f32 %v6943_v24, %v6198_v3 }
 0x8a9   : > { %v6200_v41 = vpop.f32.mrf.mxu0 }
 0x8aa   : > { %v6201_v29 = vadd.f32 %v6200_v41, %v6199_v10  ;;  %v4097_v54 = vpop.xlane.xlu0 %4096 }
 0x8ab   : > { %v6202_v62 = vpop.f32.mrf.mxu0  ;;  %6954 = vrcp.f32 %v4097_v54 }
 0x8ac   : > { %v4291_v28 = vmul.f32 %v6945_v1, %v6201_v29 }
 0x8ad   : > { %v6203_v53 = vpop.f32.mrf.mxu0 }
 0x8ae   : > { %v4303_v57 = vpack.c.bf16 %v4291_v28, %v4290_v56  ;;  %v6204_v11 = vadd.f32 %v6203_v53, %v6202_v62  ;;  %v4100_v47 = vpop.xlane.xlu1 %4099 }
 0x8af   : > { %v6205_v20 = vpop.f32.mrf.mxu0  ;;  %6956 = vrcp.f32 %v4100_v47 }
 0x8b0   : > { %6369 = vmatmul.mubr.msk.bf16.gmra.mxu1 %vm1248_vm0, %v4303_v57  ;;  %v4292_v45 = vmul.f32 %v6949_v33, %v6204_v11  ;;  %v962_v11 = vld [vmem:[%s9781_s30] sm:$0xff] }
 0x8b1   : > { %v6206_v42 = vpop.f32.mrf.mxu0 }
 0x8b2   : > { %v6207_v21 = vadd.f32 %v6206_v42, %v6205_v20 }
 0x8b4   : > { %v4293_v30 = vmul.f32 %v6947_v0, %v6207_v21  ;;  %v10661_v0 = vld [vmem:[#allocation36_spill] sm:$0xff]  ;;  %v10662_v21 = vld [vmem:[#allocation41_spill] sm:$0xff] }
 0x8b5   : > { %v2780_v33 = vadd.f32 %v10662_v21, %v10661_v0  ;;  %v6544_v0 = vld [vmem:[%s10260_s8 + $0x50] ss:$8 sps:$4 sm:$0xff]  }
 0x8b6   : > { %v4304_v16 = vpack.c.bf16 %v4293_v30, %v4292_v45 }
 0x8b8   : > { %6372 = vmatprep.mubr.msk.bf16.mxu1 %vm1248_vm0, %v4304_v16  ;;  %v6955_v44 = vpop.eup %6954  ;;  %v3635_v16 = vadd.f32 %v9718_v18, %v2780_v33 }
 0x8bc   : > { %v6957_v26 = vpop.eup %6956 }
 0x8bf   : > { %v4103_v5 = vpop.xlane.xlu0 %4102 }
 0x8c0   : > { %6958 = vrcp.f32 %v4103_v5 }
 0x8c2   : > { %v6208_v37 = vpop.f32.mrf.mxu0 }
 0x8c3   : > { %v4106_v35 = vpop.xlane.xlu1 %4105 }
 0x8c4   : > { %v6209_v36 = vpop.f32.mrf.mxu0  ;;  %6960 = vrcp.f32 %v4106_v35 }
 0x8c5   : > { %v6210_v46 = vadd.f32 %v6209_v36, %v6208_v37  ;;  %v963_v37 = vld [vmem:[%s9781_s30 + $0x8] sm:$0xff] }
 0x8c6   : > { %v6211_v34 = vpop.f32.mrf.mxu0 }
 0x8c7   : > { %v4294_v14 = vmul.f32 %v6951_v6, %v6210_v46  ;;  %v964_v6 = vld [vmem:[%s9781_s30 + $0x10] sm:$0xff] }
 0x8c8   : > { %v6212_v40 = vpop.f32.mrf.mxu0 }
 0x8c9   : > { %v6213_v51 = vadd.f32 %v6212_v40, %v6211_v34 }
 0x8cb   : > { %v4295_v32 = vmul.f32 %v6953_v39, %v6213_v51 }
 0x8cd   : > { %v4305_v27 = vpack.c.bf16 %v4295_v32, %v4294_v14  ;;  %v6959_v1 = vpop.eup %6958  ;;  %v965_v32 = vld [vmem:[%s9781_s30 + $0x18] sm:$0xff] }
 0x8cf   : > { %6373 = vmatmul.mubr.msk.bf16.gmra.mxu1 %vm1248_vm0, %v4305_v27 }
 0x8d1   : > { %v6961_v56 = vpop.eup %6960 }
 0x8e6   : > { %v6214_v60 = vpop.f32.mrf.mxu0 }
 0x8e8   : > { %v6215_v48 = vpop.f32.mrf.mxu0 }
 0x8e9   : > { %v6216_v59 = vadd.f32 %v6215_v48, %v6214_v60  ;;  %v10663_v48 = vld [vmem:[#allocation25_spill] sm:$0xff] }
 0x8ea   : > { %v6217_v43 = vpop.f32.mrf.mxu0 }
 0x8eb   : > { %v4296_v9 = vmul.f32 %v6955_v44, %v6216_v59 }
 0x8ec   : > { %v6218_v52 = vpop.f32.mrf.mxu0 }
 0x8ed   : > { %v6219_v63 = vadd.f32 %v6218_v52, %v6217_v43  ;;  %v10664_v43 = vld [vmem:[#allocation47_spill] sm:$0xff] }
 0x8ee   : > { %v2796_v59 = vadd.f32 %v10664_v43, %v10663_v48  ;;  %v6561_v48 = vld [vmem:[%s10260_s8 + $0x4] ss:$8 sps:$4 sm:$0xff]  }
 0x8ef   : > { %v4297_v31 = vmul.f32 %v6957_v26, %v6219_v63  ;;  %v971_v43 = vld [vmem:[%s9781_s30 + $0x48] sm:$0xff] }
 0x8f1   : > { %v4306_v50 = vpack.c.bf16 %v4297_v31, %v4296_v9  ;;  %v3639_v9 = vadd.f32 %v9732_v8, %v2796_v59  ;;  %v6540_v8 = vld [vmem:[%s10260_s8 + $0x74] ss:$8 sps:$4 sm:$0xff]  }
 0x8f2   : > { %4871 = vmatprep.subr.bf16.mxu0 %v6540_v8 }
 0x8f3   : > { %6376 = vmatprep.mubr.msk.bf16.mxu1 %vm1248_vm0, %v4306_v50  ;;  %v967_v50 = vld [vmem:[%s9781_s30 + $0x28] sm:$0xff] }
 0x8fb   : > { %v6220_v10 = vpop.f32.mrf.mxu0 }
 0x8fd   : > { %v6221_v3 = vpop.f32.mrf.mxu0 }
 0x8fe   : > { %v6222_v24 = vadd.f32 %v6221_v3, %v6220_v10 }
 0x8ff   : > { %v6223_v41 = vpop.f32.mrf.mxu0 }
 0x900   : > { %v4298_v28 = vmul.f32 %v6959_v1, %v6222_v24 }
 0x901   : > { %v6224_v29 = vpop.f32.mrf.mxu0 }
 0x902   : > { %v6225_v62 = vadd.f32 %v6224_v29, %v6223_v41  ;;  %v968_v41 = vld [vmem:[%s9781_s30 + $0x30] sm:$0xff] }
 0x904   : > { %v4299_v53 = vmul.f32 %v6961_v56, %v6225_v62 }
 0x906   : > { %v4307_v57 = vpack.c.bf16 %v4299_v53, %v4298_v28  ;;  %v969_v28 = vld [vmem:[%s9781_s30 + $0x38] sm:$0xff]  ;;  %v6543_v53 = vld [vmem:[%s10260_s8 + $0x64] ss:$8 sps:$4 sm:$0xff]  }
 0x908   : > { %6377 = vmatmul.mubr.msk.bf16.gmra.mxu1 %vm1248_vm0, %v4307_v57  ;;  %v6541_v57 = vld [vmem:[%s10260_s8 + $0x60] ss:$8 sps:$4 sm:$0xff]  }
 0x960   : > { %v6366_v20 = vpop.f32.mrf.mxu1 }
 0x961   : > { %v4447_v34 = vadd.f32 %v6366_v20, %v9710_v61 }
 0x962   : > { %v4382_v42 = vpop.f32.mrf.mxu1 }
 0x963   : > { %v4445_v45 = vadd.f32 %v4382_v42, %v9714_v15  ;;  %v4463_v18 = vadd.f32 %v4447_v34, %v964_v6  ;;  %v6546_v42 = vld [vmem:[%s10260_s8 + $0x54] ss:$8 sps:$4 sm:$0xff]   ;;  %v6553_v34 = vld [vmem:[%s10260_s8 + $0x20] ss:$8 sps:$4 sm:$0xff]  }
 0x964   : > { %v6367_v30 = vpop.f32.mrf.mxu1  ;;  %v6558_v6 = vld [vmem:[%s10260_s8 + $0x14] ss:$8 sps:$4 sm:$0xff]  }
 0x965   : > { %v4461_v19 = vadd.f32 %v4445_v45, %v962_v11  ;;  %v4448_v51 = vadd.f32 %v6367_v30, %v9716_v12  ;;  %v9809_v61 = vadd.f32 %v9791_v2, %v4463_v18  ;;  %v966_v12 = vld [vmem:[%s9781_s30 + $0x20] sm:$0xff] }
 0x966   : > { %v4385_v36 = vpop.f32.mrf.mxu1  ;;  %v6549_v45 = vld [vmem:[%s10260_s8 + $0x44] ss:$8 sps:$4 sm:$0xff]   ;;  %v6547_v30 = vld [vmem:[%s10260_s8 + $0x40] ss:$8 sps:$4 sm:$0xff]  }
 0x967   : > { %v9796_v46 = vadd.f32 %v9791_v2, %v4461_v19  ;;  %v4446_v40 = vadd.f32 %v4385_v36, %v3635_v16  ;;  %v4464_v27 = vadd.f32 %v4448_v51, %v965_v32  ;;  %v4553_v63 = vmul.f32 %v9809_v61, %v9809_v61  ;;  %v6552_v19 = vld [vmem:[%s10260_s8 + $0x34] ss:$8 sps:$4 sm:$0xff]   ;;  %v6555_v36 = vld [vmem:[%s10260_s8 + $0x24] ss:$8 sps:$4 sm:$0xff]   ;;  %v6556_v51 = vld [vmem:[%s10260_s8 + $0x10] ss:$8 sps:$4 sm:$0xff]  }
 0x968   : > { %v10666_v32 = vld [vmem:[#allocation53_spill] sm:$0xff] }
 0x969   : > { %v4462_v15 = vadd.f32 %v4446_v40, %v963_v37  ;;  %4502 = vadd.xlane.f32.xlu0 %v9796_v46  ;;  %v4551_v14 = vmul.f32 %v9796_v46, %v9796_v46  ;;  %v9818_v52 = vadd.f32 %v9791_v2, %v4464_v27  ;;  %v6550_v37 = vld [vmem:[%s10260_s8 + $0x30] ss:$8 sps:$4 sm:$0xff]  }
 0x96b   : > { %v9802_v39 = vadd.f32 %v9791_v2, %v4462_v15  ;;  %v970_v15 = vld [vmem:[%s9781_s30 + $0x40] sm:$0xff] }
 0x96d   : > { %4567 = vadd.xlane.f32.xlu0 %v4551_v14  ;;  %4504 = vadd.xlane.f32.xlu1 %v9802_v39  ;;  %v4552_v54 = vmul.f32 %v9802_v39, %v9802_v39  ;;  %v10665_v14 = vld [vmem:[#allocation32_spill] sm:$0xff] }
 0x96e   : > { %v2812_v27 = vadd.f32 %v10666_v32, %v10665_v14 }
 0x970   : > { %v6370_v47 = vpop.f32.mrf.mxu1 }
 0x971   : > { %4506 = vadd.xlane.f32.xlu0 %v9809_v61  ;;  %4569 = vadd.xlane.f32.xlu1 %v4552_v54  ;;  %v4451_v35 = vadd.f32 %v6370_v47, %v9724_v58  ;;  %v6538_v58 = vld [vmem:[%s10260_s8 + $0x70] ss:$8 sps:$4 sm:$0xff]  }
 0x972   : > { %v4398_v60 = vpop.f32.mrf.mxu1  ;;  %4872 = vmatpush1.bf16.msra.mxu0 %v6538_v58 }
 0x973   : > { %v4449_v44 = vadd.f32 %v4398_v60, %v9728_v17  ;;  %v4554_v17 = vmul.f32 %v9818_v52, %v9818_v52  ;;  %v4467_v29 = vadd.f32 %v4451_v35, %v968_v41  ;;  %4873 = vmatprep.subr.bf16.mxu0 %v6543_v53  ;;  %v10668_v53 = vld [vmem:[#allocation11_spill] sm:$0xff] }
 0x974   : > { %v6371_v26 = vpop.f32.mrf.mxu1 }
 0x975   : > { %v4465_v31 = vadd.f32 %v4449_v44, %v966_v12  ;;  %4571 = vadd.xlane.f32.xlu0 %v4553_v63  ;;  %4508 = vadd.xlane.f32.xlu1 %v9818_v52  ;;  %v4452_v1 = vadd.f32 %v6371_v26, %v9730_v23  ;;  %v9855_v23 = vadd.f32 %v9791_v2, %v4467_v29  ;;  %v6559_v44 = vld [vmem:[%s10260_s8] ss:$8 sps:$4 sm:$0xff]  }
 0x976   : > { %v4401_v5 = vpop.f32.mrf.mxu1  ;;  %4874 = vmatpush1.bf16.msra.mxu0 %v6541_v57  ;;  %v3643_v12 = vadd.f32 %v9746_v7, %v2812_v27  ;;  %v972_v7 = vld [vmem:[%s9781_s30 + $0x50] sm:$0xff] }
 0x977   : > { %v9828_v10 = vadd.f32 %v9791_v2, %v4465_v31  ;;  %v4450_v3 = vadd.f32 %v4401_v5, %v3639_v9  ;;  %v4468_v20 = vadd.f32 %v4452_v1, %v969_v28  ;;  %4875 = vmatprep.subr.bf16.mxu0 %v6546_v42  ;;  %v4557_v33 = vmul.f32 %v9855_v23, %v9855_v23  ;;  %v974_v1 = vld [vmem:[%s9781_s30 + $0x60] sm:$0xff]  ;;  %v10667_v28 = vld [vmem:[#allocation57_spill] sm:$0xff] }
 0x978   : > { %v7182_v31 = vmov 0   ;;  %v2828_v57 = vadd.f32 %v10668_v53, %v10667_v28 }
 0x979   : > { %v4466_v24 = vadd.f32 %v4450_v3, %v967_v50  ;;  %4573 = vadd.xlane.f32.xlu1 %v4554_v17  ;;  %4510 = vadd.xlane.f32.xlu0 %v9828_v10  ;;  %v4555_v56 = vmul.f32 %v9828_v10, %v9828_v10  ;;  %v9867_v21 = vadd.f32 %v9791_v2, %v4468_v20  ;;  %v973_v3 = vld [vmem:[%s9781_s30 + $0x58] sm:$0xff] }
 0x97a   : > { %4876 = vmatpush1.bf16.msra.mxu0 %v6544_v0  ;;  %4903 = vmatprep.mubr.bf16.mxu0 %v7182_v31  ;;  %v3647_v42 = vadd.f32 %v9760_v38, %v2828_v57 }
 0x97b   : > { %v9842_v62 = vadd.f32 %v9791_v2, %v4466_v24  ;;  %4877 = vmatprep.subr.bf16.mxu0 %v6549_v45  ;;  %v4558_v16 = vmul.f32 %v9867_v21, %v9867_v21 }
 0x97d   : > { %4575 = vadd.xlane.f32.xlu0 %v4555_v56  ;;  %4512 = vadd.xlane.f32.xlu1 %v9842_v62  ;;  %v4556_v11 = vmul.f32 %v9842_v62, %v9842_v62 }
 0x97e   : > { %4878 = vmatpush1.bf16.msra.mxu0 %v6547_v30 }
 0x97f   : > { %4879 = vmatprep.subr.bf16.mxu0 %v6552_v19 }
 0x981   : > { %4514 = vadd.xlane.f32.xlu0 %v9855_v23  ;;  %4577 = vadd.xlane.f32.xlu1 %v4556_v11 }
 0x982   : > { %4880 = vmatpush1.bf16.msra.mxu0 %v6550_v37  ;;  %v976_v37 = vld [vmem:[%s9781_s30 + $0x70] sm:$0xff] }
 0x983   : > { %4881 = vmatprep.subr.bf16.mxu0 %v6555_v36 }
 0x985   : > { %4579 = vadd.xlane.f32.xlu0 %v4557_v33  ;;  %4516 = vadd.xlane.f32.xlu1 %v9867_v21  ;;  %v975_v33 = vld [vmem:[%s9781_s30 + $0x68] sm:$0xff] }
 0x986   : > { %4882 = vmatpush1.bf16.msra.mxu0 %v6553_v34 }
 0x987   : > { %4883 = vmatprep.subr.bf16.mxu0 %v6558_v6  ;;  %v977_v6 = vld [vmem:[%s9781_s30 + $0x78] sm:$0xff] }
 0x989   : > { %4581 = vadd.xlane.f32.xlu1 %v4558_v16 }
 0x98a   : > { %4884 = vmatpush1.bf16.msra.mxu0 %v6556_v51 }
 0x98b   : > { %4885 = vmatprep.subr.bf16.mxu0 %v6561_v48 }
 0x98e   : > { %4886 = vmatpush1.bf16.msra.mxu0 %v6559_v44 }
 0x98f   : > { %v6374_v40 = vpop.f32.mrf.mxu1 }
 0x990   : > { %v4455_v63 = vadd.f32 %v6374_v40, %v9738_v49 }
 0x991   : > { %v4414_v18 = vpop.f32.mrf.mxu1 }
 0x992   : > { %v4453_v54 = vadd.f32 %v4414_v18, %v9742_v22  ;;  %v4471_v50 = vadd.f32 %v4455_v63, %v972_v7 }
 0x993   : > { %v6375_v47 = vpop.f32.mrf.mxu1 }
 0x994   : > { %v4469_v60 = vadd.f32 %v4453_v54, %v970_v15  ;;  %v4456_v5 = vadd.f32 %v6375_v47, %v9744_v55  ;;  %v9926_v17 = vadd.f32 %v9791_v2, %v4471_v50 }
 0x995   : > { %v4417_v59 = vpop.f32.mrf.mxu1 }
 0x996   : > { %v9912_v22 = vadd.f32 %v9791_v2, %v4469_v60  ;;  %v4454_v26 = vadd.f32 %v4417_v59, %v3643_v12  ;;  %v4472_v41 = vadd.f32 %v4456_v5, %v973_v3  ;;  %v4561_v24 = vmul.f32 %v9926_v17, %v9926_v17 }
 0x998   : > { %v4470_v9 = vadd.f32 %v4454_v26, %v971_v43  ;;  %4518 = vadd.xlane.f32.xlu0 %v9912_v22  ;;  %v4559_v49 = vmul.f32 %v9912_v22, %v9912_v22  ;;  %v9932_v55 = vadd.f32 %v9791_v2, %v4472_v41 }
 0x99a   : > { %v9919_v35 = vadd.f32 %v9791_v2, %v4470_v9  ;;  %v4562_v58 = vmul.f32 %v9932_v55, %v9932_v55 }
 0x99c   : > { %4583 = vadd.xlane.f32.xlu0 %v4559_v49  ;;  %4520 = vadd.xlane.f32.xlu1 %v9919_v35  ;;  %v4560_v8 = vmul.f32 %v9919_v35, %v9919_v35 }
 0x9a0   : > { %4522 = vadd.xlane.f32.xlu0 %v9926_v17  ;;  %4585 = vadd.xlane.f32.xlu1 %v4560_v8 }
 0x9a4   : > { %4587 = vadd.xlane.f32.xlu0 %v4561_v24  ;;  %4524 = vadd.xlane.f32.xlu1 %v9932_v55 }
 0x9a8   : > { %4589 = vadd.xlane.f32.xlu1 %v4562_v58 }
 0x9c8   : > { %v6378_v29 = vpop.f32.mrf.mxu1 }
 0x9c9   : > { %v4459_v30 = vadd.f32 %v6378_v29, %v9752_v4 }
 0x9ca   : > { %v4430_v56 = vpop.f32.mrf.mxu1 }
 0x9cb   : > { %v4457_v20 = vadd.f32 %v4430_v56, %v9756_v13  ;;  %v4475_v34 = vadd.f32 %v4459_v30, %v976_v37 }
 0x9cc   : > { %v6379_v11 = vpop.f32.mrf.mxu1 }
 0x9cd   : > { %v4473_v0 = vadd.f32 %v4457_v20, %v974_v1  ;;  %v4460_v13 = vadd.f32 %v6379_v11, %v9758_v25  ;;  %v9960_v4 = vadd.f32 %v9791_v2, %v4475_v34 }
 0x9ce   : > { %v4433_v45 = vpop.f32.mrf.mxu1 }
 0x9cf   : > { %v9947_v16 = vadd.f32 %v9791_v2, %v4473_v0  ;;  %v4458_v19 = vadd.f32 %v4433_v45, %v3647_v42  ;;  %v4476_v15 = vadd.f32 %v4460_v13, %v977_v6  ;;  %v4565_v51 = vmul.f32 %v9960_v4, %v9960_v4  ;;  %v9985_v13 = vld [vmem:[%s10258_s6] ss:$0 sm:$0xff] }
 0x9d1   : > { %v4474_v36 = vadd.f32 %v4458_v19, %v975_v33  ;;  %4526 = vadd.xlane.f32.xlu0 %v9947_v16  ;;  %v4563_v38 = vmul.f32 %v9947_v16, %v9947_v16  ;;  %v9966_v25 = vadd.f32 %v9791_v2, %v4476_v15 }
 0x9d3   : > { %v9953_v40 = vadd.f32 %v9791_v2, %v4474_v36  ;;  %v4566_v14 = vmul.f32 %v9966_v25, %v9966_v25 }
 0x9d5   : > { %4591 = vadd.xlane.f32.xlu0 %v4563_v38  ;;  %4528 = vadd.xlane.f32.xlu1 %v9953_v40  ;;  %v4564_v18 = vmul.f32 %v9953_v40, %v9953_v40 }
 0x9d9   : > { %4530 = vadd.xlane.f32.xlu0 %v9960_v4  ;;  %4593 = vadd.xlane.f32.xlu1 %v4564_v18 }
 0x9dd   : > { %4595 = vadd.xlane.f32.xlu0 %v4565_v51  ;;  %4532 = vadd.xlane.f32.xlu1 %v9966_v25 }
 0x9e1   : > { %4597 = vadd.xlane.f32.xlu1 %v4566_v14 }
 0x9f2   : > { %v4503_v32 = vpop.xlane.xlu0 %4502 }
 0x9f3   : > { %v4535_v27 = vmul.f32 0.0078125, %v4503_v32 }
 0x9f5   : > { %v4615_v12 = vmul.f32 %v4535_v27, %v4535_v27  ;;  %v4679_v30 = vsub.f32 %v9796_v46, %v4535_v27 }
 0x9f6   : > { %v4505_v54 = vpop.xlane.xlu1 %4504  ;;  %v4568_v47 = vpop.xlane.xlu0 %4567 }
 0x9f7   : > { %v4536_v60 = vmul.f32 0.0078125, %v4505_v54  ;;  %v4599_v48 = vmul.f32 0.0078125, %v4568_v47 }
 0x9f9   : > { %v4631_v43 = vsub.f32 %v4599_v48, %v4615_v12  ;;  %v4616_v44 = vmul.f32 %v4536_v60, %v4536_v60  ;;  %v4680_v14 = vsub.f32 %v9802_v39, %v4536_v60 }
 0x9fa   : > { %v4570_v2 = vpop.xlane.xlu1 %4569  ;;  %v4507_v59 = vpop.xlane.xlu0 %4506 }
 0x9fb   : > { %v4647_v63 = vadd.f32 1e-05, %v4631_v43  ;;  %v4600_v26 = vmul.f32 0.0078125, %v4570_v2  ;;  %v4537_v7 = vmul.f32 0.0078125, %v4507_v59 }
 0x9fd   : > { %6962 = vrsqrt.f32 %v4647_v63  ;;  %v4632_v9 = vsub.f32 %v4600_v26, %v4616_v44  ;;  %v4617_v3 = vmul.f32 %v4537_v7, %v4537_v7  ;;  %v9992_v44 = vld [vmem:[%s10259_s7] ss:$0 sm:$0xff]  ;;  %v4681_v60 = vsub.f32 %v9809_v61, %v4537_v7 }
 0x9fe   : > { %v4509_v50 = vpop.xlane.xlu1 %4508  ;;  %v4572_v5 = vpop.xlane.xlu0 %4571 }
 0x9ff   : > { %v4648_v49 = vadd.f32 1e-05, %v4632_v9  ;;  %v9973_v41 = vmul.f32 0.0078125, %v4509_v50  ;;  %v4601_v8 = vmul.f32 0.0078125, %v4572_v5 }
 0xa01   : > { %6964 = vrsqrt.f32 %v4648_v49  ;;  %v4633_v24 = vsub.f32 %v4601_v8, %v4617_v3  ;;  %v4618_v1 = vmul.f32 %v9973_v41, %v9973_v41 }
 0xa02   : > { %v4574_v58 = vpop.xlane.xlu1 %4573  ;;  %v4511_v29 = vpop.xlane.xlu0 %4510 }
 0xa03   : > { %v4649_v56 = vadd.f32 1e-05, %v4633_v24  ;;  %v4602_v28 = vmul.f32 0.0078125, %v4574_v58  ;;  %v9977_v53 = vmul.f32 0.0078125, %v4511_v29 }
 0xa05   : > { %6966 = vrsqrt.f32 %v4649_v56  ;;  %v4634_v57 = vsub.f32 %v4602_v28, %v4618_v1  ;;  %v4619_v0 = vmul.f32 %v9977_v53, %v9977_v53  ;;  %v4682_v1 = vsub.f32 %v9818_v52, %v9973_v41 }
 0xa06   : > { %v4513_v20 = vpop.xlane.xlu1 %4512  ;;  %v4576_v11 = vpop.xlane.xlu0 %4575 }
 0xa07   : > { %v4650_v42 = vadd.f32 1e-05, %v4634_v57  ;;  %v4540_v33 = vmul.f32 0.0078125, %v4513_v20  ;;  %v4603_v45 = vmul.f32 0.0078125, %v4576_v11 }
 0xa09   : > { %6968 = vrsqrt.f32 %v4650_v42  ;;  %v4635_v19 = vsub.f32 %v4603_v45, %v4619_v0  ;;  %v4620_v6 = vmul.f32 %v4540_v33, %v4540_v33  ;;  %v4683_v42 = vsub.f32 %v9828_v10, %v9977_v53 }
 0xa0a   : > { %v6963_v37 = vpop.eup %6962  ;;  %v4578_v36 = vpop.xlane.xlu1 %4577 }
 0xa0b   : > { %v4515_v34 = vpop.xlane.xlu0 %4514  ;;  %v4695_v38 = vmul.f32 %v6963_v37, %v4679_v30  ;;  %v4651_v15 = vadd.f32 1e-05, %v4635_v19  ;;  %v4604_v18 = vmul.f32 0.0078125, %v4578_v36  ;;  %v4684_v37 = vsub.f32 %v9842_v62, %v4540_v33 }
 0xa0c   : > { %v4541_v51 = vmul.f32 0.0078125, %v4515_v34 }
 0xa0d   : > { %6970 = vrsqrt.f32 %v4651_v15  ;;  %v4636_v32 = vsub.f32 %v4604_v18, %v4620_v6  ;;  %v4717_v54 = vmul.f32 %v9985_v13, %v4695_v38 }
 0xa0e   : > { %v6965_v27 = vpop.eup %6964  ;;  %v4517_v47 = vpop.xlane.xlu1 %4516  ;;  %v4621_v63 = vmul.f32 %v4541_v51, %v4541_v51  ;;  %v4685_v18 = vsub.f32 %v9855_v23, %v4541_v51 }
 0xa0f   : > { %v4580_v12 = vpop.xlane.xlu0 %4579  ;;  %v4696_v48 = vmul.f32 %v6965_v27, %v4680_v14  ;;  %v4652_v43 = vadd.f32 1e-05, %v4636_v32  ;;  %v4542_v2 = vmul.f32 0.0078125, %v4517_v47  ;;  %v4739_v49 = vadd.f32 %v9992_v44, %v4717_v54 }
 0xa10   : > { %v4605_v59 = vmul.f32 0.0078125, %v4580_v12 }
 0xa11   : > { %v4718_v26 = vmul.f32 %v9985_v13, %v4696_v48  ;;  %6972 = vrsqrt.f32 %v4652_v43  ;;  %v4622_v3 = vmul.f32 %v4542_v2, %v4542_v2  ;;  %v4686_v47 = vsub.f32 %v9867_v21, %v4542_v2 }
 0xa12   : > { %v6967_v9 = vpop.eup %6966  ;;  %v4637_v50 = vsub.f32 %v4605_v59, %v4621_v63  ;;  %v4582_v5 = vpop.xlane.xlu1 %4581 }
 0xa13   : > { %v4606_v8 = vmul.f32 0.0078125, %v4582_v5  ;;  %v4740_v24 = vadd.f32 %v9992_v44, %v4718_v26  ;;  %v4697_v58 = vmul.f32 %v6967_v9, %v4681_v60 }
 0xa14   : > { %v4653_v29 = vadd.f32 1e-05, %v4637_v50 }
 0xa15   : > { %v4638_v56 = vsub.f32 %v4606_v8, %v4622_v3  ;;  %v4755_v28 = vpack.c.bf16 %v4740_v24, %v4739_v49  ;;  %v4719_v11 = vmul.f32 %v9985_v13, %v4697_v58 }
 0xa16   : > { %v6969_v57 = vpop.eup %6968  ;;  %6974 = vrsqrt.f32 %v4653_v29 }
 0xa17   : > { %v4654_v7 = vadd.f32 1e-05, %v4638_v56  ;;  %4904 = vmatmul.mubr.bf16.vlgmr.msra.gmra.mxu0 %v4755_v28  ;;  %v4698_v20 = vmul.f32 %v6969_v57, %v4682_v1  ;;  %v4741_v41 = vadd.f32 %v9992_v44, %v4719_v11 }
 0xa18   : > { %4913 = vmatprep.mubr.bf16.mxu0 %v7182_v31 }
 0xa19   : > { %6976 = vrsqrt.f32 %v4654_v7  ;;  %v4720_v0 = vmul.f32 %v9985_v13, %v4698_v20 }
 0xa1a   : > { %v6971_v45 = vpop.eup %6970 }
 0xa1b   : > { %v4742_v30 = vadd.f32 %v9992_v44, %v4720_v0  ;;  %v4699_v19 = vmul.f32 %v6971_v45, %v4683_v42 }
 0xa1d   : > { %v4756_v36 = vpack.c.bf16 %v4742_v30, %v4741_v41  ;;  %v4721_v6 = vmul.f32 %v9985_v13, %v4699_v19 }
 0xa1e   : > { %v6973_v34 = vpop.eup %6972 }
 0xa1f   : > { %4914 = vmatmul.mubr.bf16.gmra.mxu0 %v4756_v36  ;;  %v4700_v38 = vmul.f32 %v6973_v34, %v4684_v37  ;;  %v4743_v27 = vadd.f32 %v9992_v44, %v4721_v6 }
 0xa20   : > { %4923 = vmatprep.mubr.bf16.mxu0 %v7182_v31 }
 0xa21   : > { %v4519_v53 = vpop.xlane.xlu0 %4518  ;;  %v4722_v15 = vmul.f32 %v9985_v13, %v4700_v38 }
 0xa22   : > { %v4543_v14 = vmul.f32 0.0078125, %v4519_v53 }
 0xa23   : > { %v6975_v32 = vpop.eup %6974  ;;  %v4744_v54 = vadd.f32 %v9992_v44, %v4722_v15 }
 0xa24   : > { %v4701_v33 = vmul.f32 %v6975_v32, %v4685_v18  ;;  %v4623_v63 = vmul.f32 %v4543_v14, %v4543_v14  ;;  %v4687_v38 = vsub.f32 %v9912_v22, %v4543_v14 }
 0xa25   : > { %v4521_v12 = vpop.xlane.xlu1 %4520  ;;  %v4584_v48 = vpop.xlane.xlu0 %4583  ;;  %v4757_v43 = vpack.c.bf16 %v4744_v54, %v4743_v27 }
 0xa26   : > { %v6977_v59 = vpop.eup %6976  ;;  %v4544_v26 = vmul.f32 0.0078125, %v4521_v12  ;;  %v4607_v60 = vmul.f32 0.0078125, %v4584_v48  ;;  %v4723_v51 = vmul.f32 %v9985_v13, %v4701_v33 }
 0xa27   : > { %4924 = vmatmul.mubr.bf16.gmra.mxu0 %v4757_v43  ;;  %v4702_v9 = vmul.f32 %v6977_v59, %v4686_v47 }
 0xa28   : > { %v4639_v50 = vsub.f32 %v4607_v60, %v4623_v63  ;;  %4933 = vmatprep.mubr.bf16.mxu0 %v7182_v31  ;;  %v4624_v8 = vmul.f32 %v4544_v26, %v4544_v26  ;;  %v4745_v29 = vadd.f32 %v9992_v44, %v4723_v51  ;;  %v4688_v15 = vsub.f32 %v9919_v35, %v4544_v26 }
 0xa29   : > { %v4586_v5 = vpop.xlane.xlu1 %4585  ;;  %v4523_v49 = vpop.xlane.xlu0 %4522  ;;  %v4724_v3 = vmul.f32 %v9985_v13, %v4702_v9 }
 0xa2a   : > { %v4655_v2 = vadd.f32 1e-05, %v4639_v50  ;;  %v4608_v24 = vmul.f32 0.0078125, %v4586_v5  ;;  %v4545_v58 = vmul.f32 0.0078125, %v4523_v49  ;;  %v6562_v49 = vld [vmem:[%s10669_s10 + $0x78] sm:$0xff]  }
 0xa2b   : > { %v4746_v1 = vadd.f32 %v9992_v44, %v4724_v3  ;;  %v6563_v3 = vld [vmem:[%s10669_s10 + $0x38] sm:$0xff]   ;;  %6236 = vmatprep.subr.bf16.mxu1 %v6562_v49  ;;  %v6576_v49 = vld [vmem:[%s10669_s10 + $0x40] sm:$0xff]  }
 0xa2c   : > { %6978 = vrsqrt.f32 %v4655_v2  ;;  %v4640_v56 = vsub.f32 %v4608_v24, %v4624_v8  ;;  %v4625_v11 = vmul.f32 %v4545_v58, %v4545_v58  ;;  %v4689_v54 = vsub.f32 %v9926_v17, %v4545_v58  ;;  %6237 = vmatpush3.bf16.msra.mxu1 %v6563_v3  ;;  %v6564_v24 = vld [vmem:[%s10669_s10 + $0x70] sm:$0xff]  }
 0xa2d   : > { %v4525_v28 = vpop.xlane.xlu1 %4524  ;;  %v4588_v57 = vpop.xlane.xlu0 %4587  ;;  %v4758_v7 = vpack.c.bf16 %v4746_v1, %v4745_v29  ;;  %v6565_v58 = vld [vmem:[%s10669_s10 + $0x30] sm:$0xff]   ;;  %6238 = vmatprep.subr.bf16.mxu1 %v6564_v24 }
 0xa2e   : > { %v4656_v20 = vadd.f32 1e-05, %v4640_v56  ;;  %v4546_v42 = vmul.f32 0.0078125, %v4525_v28  ;;  %v4609_v0 = vmul.f32 0.0078125, %v4588_v57 }
 0xa2f   : > { %4934 = vmatmul.mubr.bf16.gmra.mxu0 %v4758_v7  ;;  %v6566_v7 = vld [vmem:[%s10669_s10 + $0x68] sm:$0xff]  }
 0xa30   : > { %6980 = vrsqrt.f32 %v4656_v20  ;;  %v4641_v45 = vsub.f32 %v4609_v0, %v4625_v11  ;;  %4943 = vmatprep.mubr.bf16.mxu0 %v7182_v31  ;;  %v4626_v30 = vmul.f32 %v4546_v42, %v4546_v42  ;;  %v4690_v14 = vsub.f32 %v9932_v55, %v4546_v42  ;;  %6239 = vmatpush3.bf16.msra.mxu1 %v6565_v58  ;;  %v6567_v11 = vld [vmem:[%s10669_s10 + $0x28] sm:$0xff]  }
 0xa31   : > { %v4590_v41 = vpop.xlane.xlu1 %4589  ;;  %6240 = vmatprep.subr.bf16.mxu1 %v6566_v7 }
 0xa32   : > { %v4657_v19 = vadd.f32 1e-05, %v4641_v45  ;;  %v4610_v37 = vmul.f32 0.0078125, %v4590_v41 }
 0xa34   : > { %6982 = vrsqrt.f32 %v4657_v19  ;;  %v4642_v36 = vsub.f32 %v4610_v37, %v4626_v30  ;;  %6241 = vmatpush3.bf16.msra.mxu1 %v6567_v11  ;;  %v6568_v37 = vld [vmem:[%s10669_s10 + $0x60] sm:$0xff]  }
 0xa35   : > { %6242 = vmatprep.subr.bf16.mxu1 %v6568_v37 }
 0xa36   : > { %v4658_v34 = vadd.f32 1e-05, %v4642_v36 }
 0xa38   : > { %6984 = vrsqrt.f32 %v4658_v34  ;;  %v6569_v34 = vld [vmem:[%s10669_s10 + $0x20] sm:$0xff]  }
 0xa39   : > { %v6979_v6 = vpop.eup %6978  ;;  %6243 = vmatpush3.bf16.msra.mxu1 %v6569_v34 }
 0xa3a   : > { %v4703_v53 = vmul.f32 %v6979_v6, %v4687_v38 }
 0xa3c   : > { %v4725_v27 = vmul.f32 %v9985_v13, %v4703_v53 }
 0xa3d   : > { %v6981_v18 = vpop.eup %6980 }
 0xa3e   : > { %v4704_v32 = vmul.f32 %v6981_v18, %v4688_v15  ;;  %v4747_v12 = vadd.f32 %v9992_v44, %v4725_v27  ;;  %v6570_v27 = vld [vmem:[%s10669_s10 + $0x58] sm:$0xff]  }
 0xa3f   : > { %6244 = vmatprep.subr.bf16.mxu1 %v6570_v27 }
 0xa40   : > { %v4726_v33 = vmul.f32 %v9985_v13, %v4704_v32 }
 0xa41   : > { %v6983_v47 = vpop.eup %6982 }
 0xa42   : > { %v4748_v48 = vadd.f32 %v9992_v44, %v4726_v33  ;;  %v4705_v43 = vmul.f32 %v6983_v47, %v4689_v54  ;;  %v6571_v33 = vld [vmem:[%s10669_s10 + $0x18] sm:$0xff]  }
 0xa43   : > { %6245 = vmatpush3.bf16.msra.mxu1 %v6571_v33 }
 0xa44   : > { %v4759_v59 = vpack.c.bf16 %v4748_v48, %v4747_v12  ;;  %v4727_v60 = vmul.f32 %v9985_v13, %v4705_v43 }
 0xa45   : > { %v6985_v63 = vpop.eup %6984 }
 0xa46   : > { %4944 = vmatmul.mubr.bf16.gmra.mxu0 %v4759_v59  ;;  %v4706_v26 = vmul.f32 %v6985_v63, %v4690_v14  ;;  %v4749_v51 = vadd.f32 %v9992_v44, %v4727_v60  ;;  %v6572_v14 = vld [vmem:[%s10669_s10 + $0x50] sm:$0xff]   ;;  %v6574_v60 = vld [vmem:[%s10669_s10 + $0x48] sm:$0xff]  }
 0xa47   : > { %4953 = vmatprep.mubr.bf16.mxu0 %v7182_v31  ;;  %v6573_v63 = vld [vmem:[%s10669_s10 + $0x10] sm:$0xff]   ;;  %6246 = vmatprep.subr.bf16.mxu1 %v6572_v14 }
 0xa48   : > { %v4728_v9 = vmul.f32 %v9985_v13, %v4706_v26  ;;  %6247 = vmatpush3.bf16.msra.mxu1 %v6573_v63 }
 0xa49   : > { %6248 = vmatprep.subr.bf16.mxu1 %v6574_v60 }
 0xa4a   : > { %v4750_v50 = vadd.f32 %v9992_v44, %v4728_v9 }
 0xa4c   : > { %v4760_v5 = vpack.c.bf16 %v4750_v50, %v4749_v51  ;;  %v6575_v51 = vld [vmem:[%s10669_s10 + $0x8] sm:$0xff]  }
 0xa4d   : > { %6249 = vmatpush3.bf16.msra.mxu1 %v6575_v51 }
 0xa4e   : > { %4954 = vmatmul.mubr.bf16.gmra.mxu0 %v4760_v5  ;;  %6250 = vmatprep.subr.bf16.mxu1 %v6576_v49 }
 0xa4f   : > { %4963 = vmatprep.mubr.bf16.mxu0 %v7182_v31 }
 0xa5a   : > { %v4527_v8 = vpop.xlane.xlu0 %4526 }
 0xa5b   : > { %v4547_v2 = vmul.f32 0.0078125, %v4527_v8  ;;  %v6577_v8 = vld [vmem:[%s10669_s10] sm:$0xff]  }
 0xa5c   : > { %6251 = vmatpush3.bf16.msra.mxu1 %v6577_v8 }
 0xa5d   : > { %v4627_v56 = vmul.f32 %v4547_v2, %v4547_v2  ;;  %v4691_v9 = vsub.f32 %v9947_v16, %v4547_v2 }
 0xa5e   : > { %v4529_v29 = vpop.xlane.xlu1 %4528  ;;  %v4592_v1 = vpop.xlane.xlu0 %4591 }
 0xa5f   : > { %v4548_v28 = vmul.f32 0.0078125, %v4529_v29  ;;  %v4611_v57 = vmul.f32 0.0078125, %v4592_v1 }
 0xa61   : > { %v4643_v20 = vsub.f32 %v4611_v57, %v4627_v56  ;;  %v4628_v45 = vmul.f32 %v4548_v28, %v4548_v28  ;;  %v4692_v3 = vsub.f32 %v9953_v40, %v4548_v28 }
 0xa62   : > { %v4594_v42 = vpop.xlane.xlu1 %4593  ;;  %v4531_v0 = vpop.xlane.xlu0 %4530 }
 0xa63   : > { %v4659_v41 = vadd.f32 1e-05, %v4643_v20  ;;  %v4612_v30 = vmul.f32 0.0078125, %v4594_v42  ;;  %v4549_v19 = vmul.f32 0.0078125, %v4531_v0 }
 0xa65   : > { %6986 = vrsqrt.f32 %v4659_v41  ;;  %v4644_v36 = vsub.f32 %v4612_v30, %v4628_v45  ;;  %v4629_v15 = vmul.f32 %v4549_v19, %v4549_v19  ;;  %v4693_v29 = vsub.f32 %v9960_v4, %v4549_v19 }
 0xa66   : > { %v4533_v38 = vpop.xlane.xlu1 %4532  ;;  %v4596_v6 = vpop.xlane.xlu0 %4595 }
 0xa67   : > { %v4660_v53 = vadd.f32 1e-05, %v4644_v36  ;;  %v4550_v18 = vmul.f32 0.0078125, %v4533_v38  ;;  %v4613_v32 = vmul.f32 0.0078125, %v4596_v6  ;;  %v10670_v36 = vld [vmem:[#allocation7_spill] sm:$0xff] }
 0xa68   : > { %v4783_v34 = vsub.s32 0, %v10670_v36  ;;  %v4779_v38 = vld [vmem:[%s10671_s23] sm:$0x3]  ;;  %v4787_v6 = vsub.s32 1, %v10670_v36 }
 0xa69   : > { %6988 = vrsqrt.f32 %v4660_v53  ;;  %v4645_v54 = vsub.f32 %v4613_v32, %v4629_v15  ;;  %v4630_v12 = vmul.f32 %v4550_v18, %v4550_v18  ;;  %v4694_v20 = vsub.f32 %v9966_v25, %v4550_v18 }
 0xa6a   : > { %v4598_v47 = vpop.xlane.xlu1 %4597  ;;  %v10101_v53 = vrot.slane %v4779_v38, %v4783_v34  ;;  %v10103_v15 = vrot.slane %v4779_v38, %v4787_v6 }
 0xa6b   : > { %v4661_v48 = vadd.f32 1e-05, %v4645_v54  ;;  %v4614_v43 = vmul.f32 0.0078125, %v4598_v47 }
 0xa6d   : > { %6990 = vrsqrt.f32 %v4661_v48  ;;  %v4646_v59 = vsub.f32 %v4614_v43, %v4630_v12 }
 0xa6f   : > { %v4662_v26 = vadd.f32 1e-05, %v4646_v59 }
 0xa71   : > { %6992 = vrsqrt.f32 %v4662_v26 }
 0xa72   : > { %v6987_v50 = vpop.eup %6986 }
 0xa73   : > { %v4707_v5 = vmul.f32 %v6987_v50, %v4691_v9 }
 0xa75   : > { %v4729_v58 = vmul.f32 %v9985_v13, %v4707_v5 }
 0xa76   : > { %v6989_v2 = vpop.eup %6988 }
 0xa77   : > { %v4708_v24 = vmul.f32 %v6989_v2, %v4692_v3  ;;  %v4751_v57 = vadd.f32 %v9992_v44, %v4729_v58 }
 0xa79   : > { %v4730_v1 = vmul.f32 %v9985_v13, %v4708_v24 }
 0xa7a   : > { %v6991_v56 = vpop.eup %6990 }
 0xa7b   : > { %v4752_v7 = vadd.f32 %v9992_v44, %v4730_v1  ;;  %v4709_v28 = vmul.f32 %v6991_v56, %v4693_v29 }
 0xa7d   : > { %v4761_v11 = vpack.c.bf16 %v4752_v7, %v4751_v57  ;;  %v4731_v45 = vmul.f32 %v9985_v13, %v4709_v28 }
 0xa7e   : > { %v6993_v42 = vpop.eup %6992 }
 0xa7f   : > { %4964 = vmatmul.mubr.bf16.gmra.mxu0 %v4761_v11  ;;  %v4710_v0 = vmul.f32 %v6993_v42, %v4694_v20  ;;  %v4753_v30 = vadd.f32 %v9992_v44, %v4731_v45 }
 0xa80   : > { %4973 = vmatprep.mubr.bf16.mxu0 %v7182_v31 }
 0xa81   : > { %v4732_v41 = vmul.f32 %v9985_v13, %v4710_v0 }
 0xa83   : > { %v4754_v19 = vadd.f32 %v9992_v44, %v4732_v41 }
 0xa85   : > { %v4762_v37 = vpack.c.bf16 %v4754_v19, %v4753_v30 }
 0xa87   : > { %4974 = vmatmul.mubr.bf16.gmra.mxu0 %v4762_v37 }
 0xad7   : > { %v4905_v31 = vpop.f32.mrf.mxu0 }
 0xad8   : > { %v4906_v13 = vadd.f32 %v4905_v31, %v10101_v53 }
 0xad9   : > { %v4907_v18 = vpop.f32.mrf.mxu0 }
 0xada   : > { %v4908_v44 = vadd.f32 %v4907_v18, %v10103_v15  ;;  %v5016_v32 = vmul.f32 0.70710677, %v4906_v13 }
 0xadb   : > { %v4909_v27 = vpop.f32.mrf.mxu0 }
 0xadc   : > { %v5017_v54 = vmul.f32 0.70710677, %v4908_v44  ;;  %v4910_v33 = vadd.f32 %v4909_v27, %v10101_v53  ;;  %v4985_v11 = vmul.f32 0.5, %v4908_v44  ;;  %v4984_v44 = vmul.f32 0.5, %v4906_v13 }
 0xadd   : > { %v4911_v47 = vpop.f32.mrf.mxu0 }
 0xade   : > { %6994 = verf.f32 %v5017_v54  ;;  %v5018_v12 = vmul.f32 0.70710677, %v4910_v33  ;;  %v4912_v48 = vadd.f32 %v4911_v47, %v10103_v15  ;;  %v4986_v36 = vmul.f32 0.5, %v4910_v33 }
 0xadf   : > { %6996 = verf.f32 %v5016_v32  ;;  %v4915_v43 = vpop.f32.mrf.mxu0 }
 0xae0   : > { %6998 = verf.f32 %v5018_v12  ;;  %v5019_v14 = vmul.f32 0.70710677, %v4912_v48  ;;  %v10110_v59 = vadd.f32 %v4915_v43, %v10101_v53  ;;  %v4987_v6 = vmul.f32 0.5, %v4912_v48 }
 0xae1   : > { %v4917_v63 = vpop.f32.mrf.mxu0 }
 0xae2   : > { %7000 = verf.f32 %v5019_v14  ;;  %v10113_v26 = vadd.f32 %v4917_v63, %v10103_v15  ;;  %v5020_v60 = vmul.f32 0.70710677, %v10110_v59 }
 0xae3   : > { %v4919_v9 = vpop.f32.mrf.mxu0 }
 0xae4   : > { %v5021_v51 = vmul.f32 0.70710677, %v10113_v26  ;;  %v4920_v50 = vadd.f32 %v4919_v9, %v10101_v53 }
 0xae5   : > { %v4921_v5 = vpop.f32.mrf.mxu0 }
 0xae6   : > { %7002 = verf.f32 %v5021_v51  ;;  %v5022_v49 = vmul.f32 0.70710677, %v4920_v50  ;;  %v4922_v3 = vadd.f32 %v4921_v5, %v10103_v15 }
 0xae7   : > { %7004 = verf.f32 %v5020_v60  ;;  %v4925_v8 = vpop.f32.mrf.mxu0 }
 0xae8   : > { %7006 = verf.f32 %v5022_v49  ;;  %v5023_v2 = vmul.f32 0.70710677, %v4922_v3  ;;  %v10120_v24 = vadd.f32 %v4925_v8, %v10101_v53 }
 0xae9   : > { %v4927_v58 = vpop.f32.mrf.mxu0 }
 0xaea   : > { %7008 = verf.f32 %v5023_v2  ;;  %v5024_v29 = vmul.f32 0.70710677, %v10120_v24  ;;  %v10124_v56 = vadd.f32 %v4927_v58, %v10103_v15 }
 0xaeb   : > { %v6995_v1 = vpop.eup %6994  ;;  %v4929_v57 = vpop.f32.mrf.mxu0 }
 0xaec   : > { %v6997_v7 = vpop.eup %6996  ;;  %v10127_v28 = vadd.f32 %v4929_v57, %v10101_v53  ;;  %v5025_v42 = vmul.f32 0.70710677, %v10124_v56  ;;  %v5081_v45 = vadd.f32 1.0, %v6995_v1  ;;  %7010 = verf.f32 %v5024_v29 }
 0xaed   : > { %v6999_v20 = vpop.eup %6998  ;;  %v4931_v0 = vpop.f32.mrf.mxu0  ;;  %v5080_v37 = vadd.f32 1.0, %v6997_v7  ;;  %v4990_v7 = vmul.f32 0.5, %v4920_v50 }
 0xaee   : > { %v5082_v41 = vadd.f32 1.0, %v6999_v20  ;;  %v5026_v30 = vmul.f32 0.70710677, %v10127_v28  ;;  %7012 = verf.f32 %v5025_v42  ;;  %v4932_v34 = vadd.f32 %v4931_v0, %v10103_v15 }
 0xaef   : > { %v7001_v19 = vpop.eup %7000  ;;  %v4935_v38 = vpop.f32.mrf.mxu0  ;;  %v5113_v47 = vmul.f32 %v5081_v45, %v4985_v11  ;;  %v5112_v14 = vmul.f32 %v5080_v37, %v4984_v44  ;;  %v4989_v11 = vmul.f32 0.5, %v10113_v26  ;;  %v4991_v42 = vmul.f32 0.5, %v4922_v3 }
 0xaf0   : > { %v5083_v31 = vadd.f32 1.0, %v7001_v19  ;;  %7014 = verf.f32 %v5026_v30  ;;  %v10133_v18 = vadd.f32 %v4935_v38, %v10101_v53  ;;  %v5114_v32 = vmul.f32 %v5082_v41, %v4986_v36 }
 0xaf1   : > { %v5027_v27 = vmul.f32 0.70710677, %v4932_v34  ;;  %v4937_v54 = vpop.f32.mrf.mxu0  ;;  %v4988_v45 = vmul.f32 0.5, %v10110_v59  ;;  %v4993_v59 = vmul.f32 0.5, %v10124_v56 }
 0xaf2   : > { %v5115_v12 = vmul.f32 %v5083_v31, %v4987_v6  ;;  %v5028_v33 = vmul.f32 0.70710677, %v10133_v18  ;;  %v10137_v63 = vadd.f32 %v4937_v54, %v10103_v15  ;;  %v5144_v13 = vpack.c.bf16 %v5114_v32, %v5112_v14 }
 0xaf3   : > { %v7003_v43 = vpop.eup %7002  ;;  %7016 = verf.f32 %v5027_v27  ;;  %v4939_v48 = vpop.f32.mrf.mxu0  ;;  %v4994_v54 = vmul.f32 0.5, %v10127_v28 }
 0xaf4   : > { %v7005_v60 = vpop.eup %7004  ;;  %v4940_v9 = vadd.f32 %v4939_v48, %v10101_v53  ;;  %v5145_v51 = vpack.c.bf16 %v5115_v12, %v5113_v47  ;;  %v5029_v49 = vmul.f32 0.70710677, %v10137_v63  ;;  %v5085_v2 = vadd.f32 1.0, %v7003_v43 }
 0xaf5   : > { %v7007_v5 = vpop.eup %7006  ;;  %v4941_v8 = vpop.f32.mrf.mxu0  ;;  %7018 = verf.f32 %v5028_v33  ;;  %v5084_v57 = vadd.f32 1.0, %v7005_v60  ;;  %v4995_v47 = vmul.f32 0.5, %v4932_v34  ;;  %v4992_v43 = vmul.f32 0.5, %v10120_v24 }
 0xaf6   : > { %v5086_v58 = vadd.f32 1.0, %v7007_v5  ;;  %v5030_v29 = vmul.f32 0.70710677, %v4940_v9  ;;  %5327 = vmatprep.mubr.bf16.mxu1 %v5145_v51  ;;  %7020 = verf.f32 %v5029_v49  ;;  %v4942_v20 = vadd.f32 %v4941_v8, %v10103_v15 }
 0xaf7   : > { %v7009_v1 = vpop.eup %7008  ;;  %5328 = vmatmul.mubr.bf16.vlgmr.msra.gmra.mxu1 %v5144_v13  ;;  %v5117_v19 = vmul.f32 %v5085_v2, %v4989_v11  ;;  %v5116_v38 = vmul.f32 %v5084_v57, %v4988_v45  ;;  %v4997_v57 = vmul.f32 0.5, %v10137_v63 }
 0xaf8   : > { %v5087_v0 = vadd.f32 1.0, %v7009_v1  ;;  %7022 = verf.f32 %v5030_v29  ;;  %v5118_v41 = vmul.f32 %v5086_v58, %v4990_v7  ;;  %v5031_v30 = vmul.f32 0.70710677, %v4942_v20 }
 0xaf9   : > { %v7011_v36 = vpop.eup %7010  ;;  %v4998_v1 = vmul.f32 0.5, %v4940_v9  ;;  %v4999_v7 = vmul.f32 0.5, %v4942_v20 }
 0xafa   : > { %v5119_v37 = vmul.f32 %v5087_v0, %v4991_v42  ;;  %7024 = verf.f32 %v5031_v30  ;;  %v5146_v44 = vpack.c.bf16 %v5118_v41, %v5116_v38  ;;  %v5088_v3 = vadd.f32 1.0, %v7011_v36 }
 0xafb   : > { %v7013_v6 = vpop.eup %7012  ;;  %v4996_v0 = vmul.f32 0.5, %v10133_v18 }
 0xafc   : > { %v5147_v50 = vpack.c.bf16 %v5119_v37, %v5117_v19  ;;  %v5089_v27 = vadd.f32 1.0, %v7013_v6  ;;  %v5120_v5 = vmul.f32 %v5088_v3, %v4992_v43 }
 0xafd   : > { %v7015_v31 = vpop.eup %7014 }
 0xafe   : > { %v5090_v32 = vadd.f32 1.0, %v7015_v31  ;;  %5335 = vmatprep.mubr.bf16.mxu1 %v5147_v50  ;;  %v5121_v48 = vmul.f32 %v5089_v27, %v4993_v59 }
 0xaff   : > { %5336 = vmatmul.mubr.bf16.gmra.mxu1 %v5146_v44 }
 0xb00   : > { %v7017_v26 = vpop.eup %7016  ;;  %v5122_v14 = vmul.f32 %v5090_v32, %v4994_v54 }
 0xb01   : > { %v5091_v12 = vadd.f32 1.0, %v7017_v26 }
 0xb02   : > { %v7019_v33 = vpop.eup %7018  ;;  %v5148_v8 = vpack.c.bf16 %v5122_v14, %v5120_v5 }
 0xb03   : > { %v5123_v60 = vmul.f32 %v5091_v12, %v4995_v47  ;;  %v7021_v51 = vpop.eup %7020  ;;  %v5092_v34 = vadd.f32 1.0, %v7019_v33 }
 0xb04   : > { %v5093_v29 = vadd.f32 1.0, %v7021_v51 }
 0xb05   : > { %v7023_v13 = vpop.eup %7022  ;;  %v5149_v49 = vpack.c.bf16 %v5123_v60, %v5121_v48  ;;  %v5124_v38 = vmul.f32 %v5092_v34, %v4996_v0 }
 0xb06   : > { %v5094_v2 = vadd.f32 1.0, %v7023_v13  ;;  %v4945_v58 = vpop.f32.mrf.mxu0  ;;  %v5125_v19 = vmul.f32 %v5093_v29, %v4997_v57 }
 0xb07   : > { %v4946_v28 = vadd.f32 %v4945_v58, %v10101_v53  ;;  %5343 = vmatprep.mubr.bf16.mxu1 %v5149_v49  ;;  %v7025_v56 = vpop.eup %7024 }
 0xb08   : > { %5344 = vmatmul.mubr.bf16.gmra.mxu1 %v5148_v8  ;;  %v4947_v24 = vpop.f32.mrf.mxu0  ;;  %v5095_v11 = vadd.f32 1.0, %v7025_v56  ;;  %v5126_v45 = vmul.f32 %v5094_v2, %v4998_v1 }
 0xb09   : > { %v4948_v42 = vadd.f32 %v4947_v24, %v10103_v15  ;;  %v5032_v41 = vmul.f32 0.70710677, %v4946_v28  ;;  %v5000_v34 = vmul.f32 0.5, %v4946_v28 }
 0xb0a   : > { %v4949_v30 = vpop.f32.mrf.mxu0  ;;  %v5127_v37 = vmul.f32 %v5095_v11, %v4999_v7  ;;  %v5150_v20 = vpack.c.bf16 %v5126_v45, %v5124_v38 }
 0xb0b   : > { %v5033_v36 = vmul.f32 0.70710677, %v4948_v42  ;;  %v4950_v6 = vadd.f32 %v4949_v30, %v10101_v53  ;;  %v5001_v58 = vmul.f32 0.5, %v4948_v42 }
 0xb0c   : > { %v4951_v9 = vpop.f32.mrf.mxu0  ;;  %v5151_v63 = vpack.c.bf16 %v5127_v37, %v5125_v19 }
 0xb0d   : > { %7026 = verf.f32 %v5033_v36  ;;  %v4952_v50 = vadd.f32 %v4951_v9, %v10103_v15  ;;  %v5034_v31 = vmul.f32 0.70710677, %v4950_v6  ;;  %v5002_v8 = vmul.f32 0.5, %v4950_v6 }
 0xb0e   : > { %7028 = verf.f32 %v5032_v41  ;;  %v4955_v44 = vpop.f32.mrf.mxu0  ;;  %5351 = vmatprep.mubr.bf16.mxu1 %v5151_v63 }
 0xb0f   : > { %v5035_v32 = vmul.f32 0.70710677, %v4952_v50  ;;  %v4956_v18 = vadd.f32 %v4955_v44, %v10101_v53  ;;  %7030 = verf.f32 %v5034_v31  ;;  %v5003_v29 = vmul.f32 0.5, %v4952_v50 }
 0xb10   : > { %5352 = vmatmul.mubr.bf16.gmra.mxu1 %v5150_v20  ;;  %v4957_v27 = vpop.f32.mrf.mxu0 }
 0xb11   : > { %7032 = verf.f32 %v5035_v32  ;;  %v4958_v26 = vadd.f32 %v4957_v27, %v10103_v15  ;;  %v5036_v3 = vmul.f32 0.70710677, %v4956_v18  ;;  %v5004_v28 = vmul.f32 0.5, %v4956_v18 }
 0xb12   : > { %v4959_v54 = vpop.f32.mrf.mxu0 }
 0xb13   : > { %v5037_v59 = vmul.f32 0.70710677, %v4958_v26  ;;  %v4960_v47 = vadd.f32 %v4959_v54, %v10101_v53  ;;  %v5005_v42 = vmul.f32 0.5, %v4958_v26 }
 0xb14   : > { %v4961_v12 = vpop.f32.mrf.mxu0 }
 0xb15   : > { %7034 = verf.f32 %v5037_v59  ;;  %v5038_v43 = vmul.f32 0.70710677, %v4960_v47  ;;  %v4962_v14 = vadd.f32 %v4961_v12, %v10103_v15  ;;  %v5006_v6 = vmul.f32 0.5, %v4960_v47 }
 0xb16   : > { %7036 = verf.f32 %v5036_v3 }
 0xb17   : > { %7038 = verf.f32 %v5038_v43  ;;  %v5039_v33 = vmul.f32 0.70710677, %v4962_v14  ;;  %v5007_v9 = vmul.f32 0.5, %v4962_v14 }
 0xb19   : > { %7040 = verf.f32 %v5039_v33 }
 0xb1a   : > { %v7027_v48 = vpop.eup %7026 }
 0xb1b   : > { %v7029_v60 = vpop.eup %7028  ;;  %v5097_v5 = vadd.f32 1.0, %v7027_v48 }
 0xb1c   : > { %v7031_v51 = vpop.eup %7030  ;;  %v5096_v49 = vadd.f32 1.0, %v7029_v60 }
 0xb1d   : > { %v5098_v2 = vadd.f32 1.0, %v7031_v51  ;;  %v5129_v24 = vmul.f32 %v5097_v5, %v5001_v58 }
 0xb1e   : > { %v7033_v13 = vpop.eup %7032  ;;  %v5128_v11 = vmul.f32 %v5096_v49, %v5000_v34 }
 0xb1f   : > { %v5099_v56 = vadd.f32 1.0, %v7033_v13  ;;  %v5130_v1 = vmul.f32 %v5098_v2, %v5002_v8 }
 0xb21   : > { %v5131_v57 = vmul.f32 %v5099_v56, %v5003_v29  ;;  %v5152_v30 = vpack.c.bf16 %v5130_v1, %v5128_v11 }
 0xb22   : > { %v7035_v7 = vpop.eup %7034 }
 0xb23   : > { %v7037_v0 = vpop.eup %7036  ;;  %v5153_v45 = vpack.c.bf16 %v5131_v57, %v5129_v24  ;;  %v5101_v19 = vadd.f32 1.0, %v7035_v7 }
 0xb24   : > { %v7039_v41 = vpop.eup %7038  ;;  %v5100_v38 = vadd.f32 1.0, %v7037_v0 }
 0xb25   : > { %v5102_v37 = vadd.f32 1.0, %v7039_v41  ;;  %5359 = vmatprep.mubr.bf16.mxu1 %v5153_v45  ;;  %v5133_v20 = vmul.f32 %v5101_v19, %v5005_v42 }
 0xb26   : > { %v7041_v36 = vpop.eup %7040  ;;  %5360 = vmatmul.mubr.bf16.gmra.mxu1 %v5152_v30  ;;  %v5132_v44 = vmul.f32 %v5100_v38, %v5004_v28 }
 0xb27   : > { %v5103_v50 = vadd.f32 1.0, %v7041_v36  ;;  %v5134_v63 = vmul.f32 %v5102_v37, %v5006_v6 }
 0xb29   : > { %v5135_v31 = vmul.f32 %v5103_v50, %v5007_v9  ;;  %v5154_v27 = vpack.c.bf16 %v5134_v63, %v5132_v44 }
 0xb2b   : > { %v5155_v32 = vpack.c.bf16 %v5135_v31, %v5133_v20 }
 0xb2d   : > { %5367 = vmatprep.mubr.bf16.mxu1 %v5155_v32 }
 0xb2e   : > { %5368 = vmatmul.mubr.bf16.gmra.mxu1 %v5154_v27 }
 0xb3f   : > { %v4965_v3 = vpop.f32.mrf.mxu0 }
 0xb40   : > { %v4966_v54 = vadd.f32 %v4965_v3, %v10101_v53 }
 0xb41   : > { %v4967_v59 = vpop.f32.mrf.mxu0 }
 0xb42   : > { %v4968_v12 = vadd.f32 %v4967_v59, %v10103_v15  ;;  %v5040_v47 = vmul.f32 0.70710677, %v4966_v54  ;;  %v5008_v38 = vmul.f32 0.5, %v4966_v54 }
 0xb43   : > { %v4969_v43 = vpop.f32.mrf.mxu0 }
 0xb44   : > { %v5041_v26 = vmul.f32 0.70710677, %v4968_v12  ;;  %v4970_v14 = vadd.f32 %v4969_v43, %v10101_v53  ;;  %v5009_v37 = vmul.f32 0.5, %v4968_v12 }
 0xb45   : > { %v4971_v18 = vpop.f32.mrf.mxu0 }
 0xb46   : > { %7042 = verf.f32 %v5041_v26  ;;  %v5042_v33 = vmul.f32 0.70710677, %v4970_v14  ;;  %v4972_v48 = vadd.f32 %v4971_v18, %v10103_v15  ;;  %v5010_v19 = vmul.f32 0.5, %v4970_v14 }
 0xb47   : > { %7044 = verf.f32 %v5040_v47  ;;  %v4975_v60 = vpop.f32.mrf.mxu0 }
 0xb48   : > { %7046 = verf.f32 %v5042_v33  ;;  %v5043_v51 = vmul.f32 0.70710677, %v4972_v48  ;;  %v4976_v5 = vadd.f32 %v4975_v60, %v10101_v53  ;;  %v5011_v36 = vmul.f32 0.5, %v4972_v48 }
 0xb49   : > { %v4977_v13 = vpop.f32.mrf.mxu0 }
 0xb4a   : > { %7048 = verf.f32 %v5043_v51  ;;  %v4978_v49 = vadd.f32 %v4977_v13, %v10103_v15  ;;  %v5044_v8 = vmul.f32 0.70710677, %v4976_v5  ;;  %v5012_v54 = vmul.f32 0.5, %v4976_v5  ;;  %v10168_v13 = vld [vmem:[%s10672_s9] ss:$0 sm:$0xff] }
 0xb4b   : > { %v4979_v2 = vpop.f32.mrf.mxu0 }
 0xb4c   : > { %v5045_v58 = vmul.f32 0.70710677, %v4978_v49  ;;  %v4980_v29 = vadd.f32 %v4979_v2, %v10101_v53  ;;  %v5013_v12 = vmul.f32 0.5, %v4978_v49 }
 0xb4d   : > { %v4981_v56 = vpop.f32.mrf.mxu0 }
 0xb4e   : > { %7050 = verf.f32 %v5045_v58  ;;  %v5046_v34 = vmul.f32 0.70710677, %v4980_v29  ;;  %v4982_v1 = vadd.f32 %v4981_v56, %v10103_v15  ;;  %v5014_v59 = vmul.f32 0.5, %v4980_v29 }
 0xb4f   : > { %7052 = verf.f32 %v5044_v8 }
 0xb50   : > { %7054 = verf.f32 %v5046_v34  ;;  %v5047_v24 = vmul.f32 0.70710677, %v4982_v1  ;;  %v5015_v47 = vmul.f32 0.5, %v4982_v1 }
 0xb52   : > { %7056 = verf.f32 %v5047_v24 }
 0xb53   : > { %v7043_v57 = vpop.eup %7042 }
 0xb54   : > { %v7045_v7 = vpop.eup %7044  ;;  %v5105_v0 = vadd.f32 1.0, %v7043_v57 }
 0xb55   : > { %v7047_v11 = vpop.eup %7046  ;;  %v5104_v30 = vadd.f32 1.0, %v7045_v7 }
 0xb56   : > { %v5106_v45 = vadd.f32 1.0, %v7047_v11  ;;  %v5137_v42 = vmul.f32 %v5105_v0, %v5009_v37 }
 0xb57   : > { %v7049_v41 = vpop.eup %7048  ;;  %v5136_v50 = vmul.f32 %v5104_v30, %v5008_v38 }
 0xb58   : > { %v5107_v53 = vadd.f32 1.0, %v7049_v41  ;;  %v5138_v6 = vmul.f32 %v5106_v45, %v5010_v19 }
 0xb5a   : > { %v5139_v9 = vmul.f32 %v5107_v53, %v5011_v36  ;;  %v5156_v31 = vpack.c.bf16 %v5138_v6, %v5136_v50 }
 0xb5b   : > { %v7051_v15 = vpop.eup %7050 }
 0xb5c   : > { %v7053_v28 = vpop.eup %7052  ;;  %v5157_v63 = vpack.c.bf16 %v5139_v9, %v5137_v42  ;;  %v5109_v44 = vadd.f32 1.0, %v7051_v15 }
 0xb5d   : > { %v7055_v20 = vpop.eup %7054  ;;  %v5108_v3 = vadd.f32 1.0, %v7053_v28 }
 0xb5e   : > { %v5110_v32 = vadd.f32 1.0, %v7055_v20  ;;  %5375 = vmatprep.mubr.bf16.mxu1 %v5157_v63  ;;  %v5141_v14 = vmul.f32 %v5109_v44, %v5013_v12 }
 0xb5f   : > { %v7057_v27 = vpop.eup %7056  ;;  %5376 = vmatmul.mubr.bf16.gmra.mxu1 %v5156_v31  ;;  %v5140_v33 = vmul.f32 %v5108_v3, %v5012_v54 }
 0xb60   : > { %v5111_v43 = vadd.f32 1.0, %v7057_v27  ;;  %v5142_v26 = vmul.f32 %v5110_v32, %v5014_v59 }
 0xb62   : > { %v5143_v18 = vmul.f32 %v5111_v43, %v5015_v47  ;;  %v5158_v60 = vpack.c.bf16 %v5142_v26, %v5140_v33 }
 0xb64   : > { %v5159_v48 = vpack.c.bf16 %v5143_v18, %v5141_v14 }
 0xb66   : > { %5383 = vmatprep.mubr.bf16.mxu1 %v5159_v48 }
 0xb67   : > { %5384 = vmatmul.mubr.bf16.gmra.mxu1 %v5158_v60 }
 0xbb7   : > { %v6252_v51 = vpop.f32.mrf.mxu1 }
 0xbb9   : > { %v6253_v8 = vpop.f32.mrf.mxu1 }
 0xbba   : > { %v6254_v49 = vadd.f32 %v6253_v8, %v6252_v51 }
 0xbbb   : > { %v6255_v2 = vpop.f32.mrf.mxu1 }
 0xbbc   : > { %v5330_v58 = vadd.f32 %v6254_v49, %v10168_v13 }
 0xbbd   : > { %v6256_v5 = vpop.f32.mrf.mxu1 }
 0xbbe   : > { %v5392_v29 = vadd.f32 %v5330_v58, %v9796_v46  ;;  %v6257_v56 = vadd.f32 %v6256_v5, %v6255_v2 }
 0xbbf   : > { %v6258_v34 = vpop.f32.mrf.mxu1 }
 0xbc0   : > { %5408 = vst [vmem:[%s10176_s14] sm:$0xff] %v5392_v29  ;;  %v5333_v1 = vadd.f32 %v6257_v56, %v10168_v13 }
 0xbc1   : > { %v6259_v24 = vpop.f32.mrf.mxu1 }
 0xbc2   : > { %v5393_v57 = vadd.f32 %v5333_v1, %v9802_v39  ;;  %v6260_v7 = vadd.f32 %v6259_v24, %v6258_v34 }
 0xbc3   : > { %v6261_v11 = vpop.f32.mrf.mxu1 }
 0xbc4   : > { %5409 = vst [vmem:[%s10176_s14 + $0x8] sm:$0xff] %v5393_v57  ;;  %v5338_v0 = vadd.f32 %v6260_v7, %v10168_v13 }
 0xbc5   : > { %v6262_v45 = vpop.f32.mrf.mxu1 }
 0xbc6   : > { %v5394_v41 = vadd.f32 %v5338_v0, %v9809_v61  ;;  %v6263_v30 = vadd.f32 %v6262_v45, %v6261_v11 }
 0xbc8   : > { %5410 = vst [vmem:[%s10176_s14 + $0x10] sm:$0xff] %v5394_v41  ;;  %v5341_v46 = vadd.f32 %v6263_v30, %v10168_v13  ;;  %v6264_v19 = vpop.f32.mrf.mxu1 }
 0xbca   : > { %v5395_v37 = vadd.f32 %v5341_v46, %v9818_v52  ;;  %v6265_v36 = vpop.f32.mrf.mxu1 }
 0xbcb   : > { %v6266_v53 = vadd.f32 %v6265_v36, %v6264_v19 }
 0xbcc   : > { %5411 = vst [vmem:[%s10176_s14 + $0x18] sm:$0xff] %v5395_v37  ;;  %v6267_v39 = vpop.f32.mrf.mxu1 }
 0xbcd   : > { %v5346_v38 = vadd.f32 %v6266_v53, %v10168_v13 }
 0xbce   : > { %v6268_v6 = vpop.f32.mrf.mxu1 }
 0xbcf   : > { %v5396_v42 = vadd.f32 %v5346_v38, %v9828_v10  ;;  %v6269_v9 = vadd.f32 %v6268_v6, %v6267_v39 }
 0xbd0   : > { %v6270_v61 = vpop.f32.mrf.mxu1 }
 0xbd1   : > { %5412 = vst [vmem:[%s10176_s14 + $0x20] sm:$0xff] %v5396_v42  ;;  %v5349_v15 = vadd.f32 %v6269_v9, %v10168_v13 }
 0xbd2   : > { %v6271_v50 = vpop.f32.mrf.mxu1 }
 0xbd3   : > { %v5397_v52 = vadd.f32 %v5349_v15, %v9842_v62  ;;  %v6272_v28 = vadd.f32 %v6271_v50, %v6270_v61 }
 0xbd4   : > { %v6273_v63 = vpop.f32.mrf.mxu1 }
 0xbd5   : > { %5413 = vst [vmem:[%s10176_s14 + $0x28] sm:$0xff] %v5397_v52  ;;  %v5354_v20 = vadd.f32 %v6272_v28, %v10168_v13 }
 0xbd6   : > { %v6274_v31 = vpop.f32.mrf.mxu1 }
 0xbd7   : > { %v5398_v44 = vadd.f32 %v5354_v20, %v9855_v23  ;;  %v6275_v32 = vadd.f32 %v6274_v31, %v6273_v63 }
 0xbd9   : > { %5414 = vst [vmem:[%s10176_s14 + $0x30] sm:$0xff] %v5398_v44  ;;  %v5357_v10 = vadd.f32 %v6275_v32, %v10168_v13 }
 0xbdb   : > { %v5399_v27 = vadd.f32 %v5357_v10, %v9867_v21 }
 0xbdd   : > { %5415 = vst [vmem:[%s10176_s14 + $0x38] sm:$0xff] %v5399_v27 }
 0xbe6   : > { %v6276_v3 = vpop.f32.mrf.mxu1 }
 0xbe8   : > { %v6277_v59 = vpop.f32.mrf.mxu1 }
 0xbe9   : > { %v6278_v62 = vadd.f32 %v6277_v59, %v6276_v3 }
 0xbea   : > { %v6279_v12 = vpop.f32.mrf.mxu1 }
 0xbeb   : > { %v5362_v47 = vadd.f32 %v6278_v62, %v10168_v13 }
 0xbec   : > { %v6280_v43 = vpop.f32.mrf.mxu1 }
 0xbed   : > { %v5400_v54 = vadd.f32 %v5362_v47, %v9912_v22  ;;  %v6281_v26 = vadd.f32 %v6280_v43, %v6279_v12 }
 0xbee   : > { %v6282_v23 = vpop.f32.mrf.mxu1 }
 0xbef   : > { %5416 = vst [vmem:[%s10176_s14 + $0x40] sm:$0xff] %v5400_v54  ;;  %v5365_v14 = vadd.f32 %v6281_v26, %v10168_v13 }
 0xbf0   : > { %v6283_v18 = vpop.f32.mrf.mxu1 }
 0xbf1   : > { %v5401_v21 = vadd.f32 %v5365_v14, %v9919_v35  ;;  %v6284_v33 = vadd.f32 %v6283_v18, %v6282_v23 }
 0xbf2   : > { %v6285_v48 = vpop.f32.mrf.mxu1 }
 0xbf3   : > { %5417 = vst [vmem:[%s10176_s14 + $0x48] sm:$0xff] %v5401_v21  ;;  %v5370_v60 = vadd.f32 %v6284_v33, %v10168_v13 }
 0xbf4   : > { %v6286_v51 = vpop.f32.mrf.mxu1 }
 0xbf5   : > { %v5402_v8 = vadd.f32 %v5370_v60, %v9926_v17  ;;  %v6287_v49 = vadd.f32 %v6286_v51, %v6285_v48 }
 0xbf7   : > { %5418 = vst [vmem:[%s10176_s14 + $0x50] sm:$0xff] %v5402_v8  ;;  %v5373_v22 = vadd.f32 %v6287_v49, %v10168_v13 }
 0xbf9   : > { %v5403_v2 = vadd.f32 %v5373_v22, %v9932_v55 }
 0xbfb   : > { %5419 = vst [vmem:[%s10176_s14 + $0x58] sm:$0xff] %v5403_v2 }
 0xc1f   : > { %v6288_v58 = vpop.f32.mrf.mxu1 }
 0xc21   : > { %v6289_v5 = vpop.f32.mrf.mxu1 }
 0xc22   : > { %v6290_v35 = vadd.f32 %v6289_v5, %v6288_v58 }
 0xc23   : > { %v6291_v29 = vpop.f32.mrf.mxu1 }
 0xc24   : > { %v5378_v56 = vadd.f32 %v6290_v35, %v10168_v13 }
 0xc25   : > { %v6292_v34 = vpop.f32.mrf.mxu1 }
 0xc26   : > { %v5404_v1 = vadd.f32 %v5378_v56, %v9947_v16  ;;  %v6293_v24 = vadd.f32 %v6292_v34, %v6291_v29 }
 0xc27   : > { %v6294_v17 = vpop.f32.mrf.mxu1 }
 0xc28   : > { %5420 = vst [vmem:[%s10176_s14 + $0x60] sm:$0xff] %v5404_v1  ;;  %v5381_v57 = vadd.f32 %v6293_v24, %v10168_v13 }
 0xc29   : > { %v6295_v7 = vpop.f32.mrf.mxu1 }
 0xc2a   : > { %v5405_v55 = vadd.f32 %v5381_v57, %v9953_v40  ;;  %v6296_v11 = vadd.f32 %v6295_v7, %v6294_v17 }
 0xc2b   : > { %v6297_v0 = vpop.f32.mrf.mxu1 }
 0xc2c   : > { %5421 = vst [vmem:[%s10176_s14 + $0x68] sm:$0xff] %v5405_v55  ;;  %v5386_v45 = vadd.f32 %v6296_v11, %v10168_v13 }
 0xc2d   : > { %v6298_v41 = vpop.f32.mrf.mxu1 }
 0xc2e   : > { %v5406_v30 = vadd.f32 %v5386_v45, %v9960_v4  ;;  %v6299_v46 = vadd.f32 %v6298_v41, %v6297_v0 }
 0xc30   : > { %5422 = vst [vmem:[%s10176_s14 + $0x70] sm:$0xff] %v5406_v30  ;;  %v5389_v16 = vadd.f32 %v6299_v46, %v10168_v13 }
 0xc32   : > { %v5407_v19 = vadd.f32 %v5389_v16, %v9966_v25 }
 0xc34   : > { %5423 = vst [vmem:[%s10176_s14 + $0x78] sm:$0xff] %v5407_v19 }
 0xc35 PF: > { %s22_s29 = sadd.s32 1, %s7177_s29   ;;  %s10674_s20 = sld [smem:[#allocation5_spill]] }
 0xc36   : > { %p19_p1 = scmp.ge.s32.totalorder %s22_s29, 6   ;;  %s10675_s15 = sld [smem:[#allocation6_spill]] }
 0xc37   : > { %s10676_s21 = smov %s7149_s22  ;;  %s10677_s22 = smov %s7320_s12 }
 0xc38   : > { %s10678_s23 = smov %s7157_s24  ;;  %s10679_s24 = smov %s7323_s11 }
 0xc39   : > { %s10680_s25 = smov %s7169_s27  ;;  %s10681_s26 = smov %s7173_s28 }
 0xc3a   :  { %21 = sbr.rel (!%p19_p1) target bundleno = 10 (0xa), region = 245 }
 0xc3b   : > { %s10682_s27 = smov %s10674_s20 }
 0xc3c   : > { %s10683_s28 = smov %s10675_s15 }

</bundles_post_ra>
